<compile_context>
chip_gen: v6e
topology: v6e:2x2x1
jax: 0.10.0
libtpu: 0.0.40
codegen_flags: <defaults>
</compile_context>

<pallas_src>
import functools

import jax
import jax.numpy as jnp
from jax.experimental import pallas as pl
from jax.experimental.pallas import tpu as pltpu


# ----------------------------------------------------------------------------
# Fused RDB kernel (one grid step == one batch element)
# ----------------------------------------------------------------------------
def _rdb_kernel(x_ref, mask_l_ref, mask_r_ref, w1x1_ref,
                dw1, pw1, pb1, dw2, pw2, pb2, dw3, pw3, pb3,
                dw4, pw4, pb4, dw5, pw5, pb5,
                out_ref,
                xpad, o1pad, o2pad, o3pad, o4pad,
                *, C, G, H, W, M):
    HW = H * W
    x = x_ref[0]                       # (C, HW)  lane-dense
    mask_l = mask_l_ref[...]           # (1, HW)  zero where col == 0
    mask_r = mask_r_ref[...]           # (1, HW)  zero where col == W-1

    def store_padded(pad_ref, val):
        # Zero the halo every step (safe under megacore grid partitioning),
        # then write the interior with a lane-aligned store.
        nch, hwp = pad_ref.shape
        zmargin = jnp.zeros((nch, M), jnp.float32)
        pad_ref[:, 0:M] = zmargin
        pad_ref[:, M + HW:hwp] = zmargin
        pad_ref[:, M:M + HW] = val

    def sepconv3(sources, dw_ref, pw_ref, pb_ref, cout, lrelu):
        # sources: list of (padded_src_ref, n_channels, channel_offset) in the
        # exact [x, out1, out2, ...] concatenation order.
        y = jnp.zeros((cout, HW), jnp.float32)
        for src_ref, nch, off in sources:
            acc = jnp.zeros((nch, HW), jnp.float32)
            for dy in range(3):
                for dx in range(3):
                    # shifted 3x3 window, loaded straight from the VMEM ref
                    start = M + (dy - 1) * W + (dx - 1)
                    win = src_ref[:, start:start + HW]        # (nch, HW)
                    if dx == 0:
                        win = win * mask_l
                    elif dx == 2:
                        win = win * mask_r
                    t = dy * 3 + dx
                    tap = dw_ref[off:off + nch, t:t + 1]       # (nch, 1)
                    acc = acc + win * tap
            # pointwise contribution of this channel group (MXU)
            y = y + jnp.dot(pw_ref[:, off:off + nch], acc,
                            preferred_element_type=jnp.float32)
        y = y + pb_ref[...]                                    # (cout, 1) bcast
        if lrelu:
            y = jnp.where(y >= 0.0, y, 0.2 * y)
        return y

    # x into its zero-haloed scratch
    store_padded(xpad, x)
    src_x = (xpad, C, 0)

    out1 = sepconv3([src_x], dw1, pw1, pb1, G, True)
    store_padded(o1pad, out1)
    src_1 = (o1pad, G, C)

    out2 = sepconv3([src_x, src_1], dw2, pw2, pb2, G, True)
    out2 = out2 + jnp.dot(w1x1_ref[...], x,
                          preferred_element_type=jnp.float32)  # conv1x1(x)
    store_padded(o2pad, out2)
    src_2 = (o2pad, G, C + G)

    out3 = sepconv3([src_x, src_1, src_2], dw3, pw3, pb3, G, True)
    store_padded(o3pad, out3)
    src_3 = (o3pad, G, C + 2 * G)

    out4 = sepconv3([src_x, src_1, src_2, src_3], dw4, pw4, pb4, G, True)
    out4 = out4 + out2
    store_padded(o4pad, out4)
    src_4 = (o4pad, G, C + 3 * G)

    out5 = sepconv3([src_x, src_1, src_2, src_3, src_4], dw5, pw5, pb5,
                    C, False)

    out_ref[0] = out5 * 0.2 + x                                 # residual


# ----------------------------------------------------------------------------
# Parameter handling (PyTorch nn.Conv2d layouts) + kernel-friendly folding
# ----------------------------------------------------------------------------
def make_sepconv_params(key, cin, cout, kh, kw, bias=True):
    k1, k2, k3, k4 = jax.random.split(key, 4)
    dw_w = 0.1 * jax.random.normal(k1, (cin, 1, kh, kw), jnp.float32)
    pw_w = 0.1 * jax.random.normal(k2, (cout, cin, 1, 1), jnp.float32)
    if bias:
        dw_b = 0.05 * jax.random.normal(k3, (cin,), jnp.float32)
        pw_b = 0.05 * jax.random.normal(k4, (cout,), jnp.float32)
    else:  # bias=False == adding zero bias
        dw_b = jnp.zeros((cin,), jnp.float32)
        pw_b = jnp.zeros((cout,), jnp.float32)
    return {"dw_w": dw_w, "dw_b": dw_b, "pw_w": pw_w, "pw_b": pw_b}


def make_rdb_params(key, channels, growth_channels):
    ks = jax.random.split(key, 6)
    C, G = channels, growth_channels
    return {
        "conv1x1": make_sepconv_params(ks[0], C, G, 1, 1, bias=False),
        "conv1":   make_sepconv_params(ks[1], C + 0 * G, G, 3, 3),
        "conv2":   make_sepconv_params(ks[2], C + 1 * G, G, 3, 3),
        "conv3":   make_sepconv_params(ks[3], C + 2 * G, G, 3, 3),
        "conv4":   make_sepconv_params(ks[4], C + 3 * G, G, 3, 3),
        "conv5":   make_sepconv_params(ks[5], C + 4 * G, C, 3, 3),
    }


def _prepare_kernel_params(params):
    """Fold / reshape PyTorch-layout weights into kernel-friendly arrays."""
    def sep(p):
        cin, _, kh, kw = p["dw_w"].shape
        cout = p["pw_w"].shape[0]
        dw = p["dw_w"].reshape(cin, kh * kw).astype(jnp.float32)     # (Cin, 9)
        pw = p["pw_w"].reshape(cout, cin).astype(jnp.float32)        # (Cout, Cin)
        # depthwise bias folds exactly into the pointwise bias
        pb = (p["pw_b"] + pw @ p["dw_b"]).astype(jnp.float32).reshape(cout, 1)
        return dw, pw, pb

    c = params["conv1x1"]
    cout1, cin1 = c["pw_w"].shape[:2]
    # 1x1 depthwise is a per-channel scale -> fold into the pointwise weight
    w1x1 = (c["pw_w"].reshape(cout1, cin1) *
            c["dw_w"].reshape(1, cin1)).astype(jnp.float32)

    flat = [w1x1]
    for name in ("conv1", "conv2", "conv3", "conv4", "conv5"):
        flat.extend(sep(params[name]))
    return flat


# ----------------------------------------------------------------------------
# Public forward: NCHW in -> NCHW out (matches PyTorch module)
# ----------------------------------------------------------------------------
def residual_dense_block(x, params):
    N, C, H, W = x.shape
    G = params["conv1"]["pw_w"].shape[0]
    HW = H * W
    M = ((W + 1 + 127) // 128) * 128      # lane-aligned halo margin (>= W+1)
    HWP = HW + 2 * M

    kparams = _prepare_kernel_params(params)
    w1x1, convs = kparams[0], kparams[1:]

    x_flat = x.reshape(N, C, HW).astype(jnp.float32)   # free reshape, no transpose

    # column-wrap masks for the flattened-lane depthwise windows (hoisted)
    col = jnp.arange(HW, dtype=jnp.int32) % W
    mask_l = (col > 0).astype(jnp.float32).reshape(1, HW)
    mask_r = (col < W - 1).astype(jnp.float32).reshape(1, HW)

    kern = functools.partial(_rdb_kernel, C=C, G=G, H=H, W=W, M=M)

    def full(arr):
        return pl.BlockSpec(arr.shape, lambda b: (0,) * arr.ndim)

    in_specs = [pl.BlockSpec((1, C, HW), lambda b: (b, 0, 0)),
                full(mask_l), full(mask_r), full(w1x1)]
    in_specs += [full(a) for a in convs]

    # rough cost hint for the XLA scheduler
    cins = [C + i * G for i in range(5)]
    couts = [G, G, G, G, C]
    flops = sum(2 * HW * (ci * 9 + ci * co) for ci, co in zip(cins, couts))
    flops += 2 * HW * C * G
    flops *= N
    bytes_accessed = 4 * (2 * N * C * HW + sum(int(a.size) for a in kparams))

    out_flat = pl.pallas_call(
        kern,
        out_shape=jax.ShapeDtypeStruct((N, C, HW), jnp.float32),
        grid=(N,),
        in_specs=in_specs,
        out_specs=pl.BlockSpec((1, C, HW), lambda b: (b, 0, 0)),
        scratch_shapes=[pltpu.VMEM((C, HWP), jnp.float32)]
                      + [pltpu.VMEM((G, HWP), jnp.float32) for _ in range(4)],
        compiler_params=pltpu.CompilerParams(
            dimension_semantics=("parallel",),
            vmem_limit_bytes=48 * 1024 * 1024),
        cost_estimate=pl.CostEstimate(flops=flops, transcendentals=0,
                                      bytes_accessed=bytes_accessed),
    )(x_flat, mask_l, mask_r, w1x1, *convs)

    return out_flat.reshape(N, C, H, W)


# ----------------------------------------------------------------------------
# Pure-JAX (lax conv, NCHW) reference for correctness checking
# ----------------------------------------------------------------------------
def _sepconv_ref(x, p, padding):
    cin = p["dw_w"].shape[0]
    y = jax.lax.conv_general_dilated(
        x, p["dw_w"], (1, 1), [(padding, padding), (padding, padding)],
        dimension_numbers=("NCHW", "OIHW", "NCHW"),
        feature_group_count=cin)
    y = y + p["dw_b"].reshape(1, -1, 1, 1)
    y = jax.lax.conv_general_dilated(
        y, p["pw_w"], (1, 1), [(0, 0), (0, 0)],
        dimension_numbers=("NCHW", "OIHW", "NCHW"))
    y = y + p["pw_b"].reshape(1, -1, 1, 1)
    return y


def residual_dense_block_ref(x, params):
    lrelu = lambda t: jnp.where(t >= 0.0, t, 0.2 * t)
    out1 = lrelu(_sepconv_ref(x, params["conv1"], 1))
    out2 = lrelu(_sepconv_ref(jnp.concatenate([x, out1], 1),
                              params["conv2"], 1))
    out2 = out2 + _sepconv_ref(x, params["conv1x1"], 0)
    out3 = lrelu(_sepconv_ref(jnp.concatenate([x, out1, out2], 1),
                              params["conv3"], 1))
    out4 = lrelu(_sepconv_ref(jnp.concatenate([x, out1, out2, out3], 1),
                              params["conv4"], 1))
    out4 = out4 + out2
    out5 = _sepconv_ref(jnp.concatenate([x, out1, out2, out3, out4], 1),
                        params["conv5"], 1)
    return out5 * 0.2 + x


if __name__ == "__main__":
    N, C, H, W = 2, 4, 16, 16
    G = 4

    key = jax.random.PRNGKey(0)
    kx, kp = jax.random.split(key)
    x = jax.random.normal(kx, (N, C, H, W), jnp.float32)
    params = make_rdb_params(kp, C, G)

    rdb = jax.jit(residual_dense_block)
    out = jax.block_until_ready(rdb(x, params))

    ref = jax.block_until_ready(residual_dense_block_ref(x, params))
    assert out.shape == (N, C, H, W)
    max_err = jnp.max(jnp.abs(out - ref))
    assert jnp.allclose(out, ref, rtol=2e-3, atol=2e-3), (
        f"max abs err {max_err}")

    print("KERNEL_OK")
</pallas_src>

<mosaic_0001>
module attributes {stable_mosaic.version = 11 : i64} {
  func.func @_rdb_kernel(%arg0: i32, %arg1: memref<1x4x256xf32, #tpu.memory_space<vmem>>, %arg2: memref<1x256xf32, #tpu.memory_space<vmem>>, %arg3: memref<1x256xf32, #tpu.memory_space<vmem>>, %arg4: memref<4x4xf32, #tpu.memory_space<vmem>>, %arg5: memref<4x9xf32, #tpu.memory_space<vmem>>, %arg6: memref<4x4xf32, #tpu.memory_space<vmem>>, %arg7: memref<4x1xf32, #tpu.memory_space<vmem>>, %arg8: memref<8x9xf32, #tpu.memory_space<vmem>>, %arg9: memref<4x8xf32, #tpu.memory_space<vmem>>, %arg10: memref<4x1xf32, #tpu.memory_space<vmem>>, %arg11: memref<12x9xf32, #tpu.memory_space<vmem>>, %arg12: memref<4x12xf32, #tpu.memory_space<vmem>>, %arg13: memref<4x1xf32, #tpu.memory_space<vmem>>, %arg14: memref<16x9xf32, #tpu.memory_space<vmem>>, %arg15: memref<4x16xf32, #tpu.memory_space<vmem>>, %arg16: memref<4x1xf32, #tpu.memory_space<vmem>>, %arg17: memref<20x9xf32, #tpu.memory_space<vmem>>, %arg18: memref<4x20xf32, #tpu.memory_space<vmem>>, %arg19: memref<4x1xf32, #tpu.memory_space<vmem>>, %arg20: memref<1x4x256xf32, #tpu.memory_space<vmem>>, %arg21: memref<4x512xf32, #tpu.memory_space<vmem>>, %arg22: memref<4x512xf32, #tpu.memory_space<vmem>>, %arg23: memref<4x512xf32, #tpu.memory_space<vmem>>, %arg24: memref<4x512xf32, #tpu.memory_space<vmem>>, %arg25: memref<4x512xf32, #tpu.memory_space<vmem>>) attributes {dimension_semantics = [#tpu.dimension_semantics<parallel>], iteration_bounds = array<i64: 2>, scalar_prefetch = 0 : i64, scratch_operands = 5 : i64, tpu.core_type = #tpu.core_type<tc>, window_params = [{transform_indices = @transform_0, window_bounds = array<i64: 1, 4, 256>}, {pipeline_mode = #tpu.pipeline_mode<synchronous>, transform_indices = @transform_1, window_bounds = array<i64: 1, 256>}, {pipeline_mode = #tpu.pipeline_mode<synchronous>, transform_indices = @transform_2, window_bounds = array<i64: 1, 256>}, {pipeline_mode = #tpu.pipeline_mode<synchronous>, transform_indices = @transform_3, window_bounds = array<i64: 4, 4>}, {pipeline_mode = #tpu.pipeline_mode<synchronous>, transform_indices = @transform_4, window_bounds = array<i64: 4, 9>}, {pipeline_mode = #tpu.pipeline_mode<synchronous>, transform_indices = @transform_5, window_bounds = array<i64: 4, 4>}, {pipeline_mode = #tpu.pipeline_mode<synchronous>, transform_indices = @transform_6, window_bounds = array<i64: 4, 1>}, {pipeline_mode = #tpu.pipeline_mode<synchronous>, transform_indices = @transform_7, window_bounds = array<i64: 8, 9>}, {pipeline_mode = #tpu.pipeline_mode<synchronous>, transform_indices = @transform_8, window_bounds = array<i64: 4, 8>}, {pipeline_mode = #tpu.pipeline_mode<synchronous>, transform_indices = @transform_9, window_bounds = array<i64: 4, 1>}, {pipeline_mode = #tpu.pipeline_mode<synchronous>, transform_indices = @transform_10, window_bounds = array<i64: 12, 9>}, {pipeline_mode = #tpu.pipeline_mode<synchronous>, transform_indices = @transform_11, window_bounds = array<i64: 4, 12>}, {pipeline_mode = #tpu.pipeline_mode<synchronous>, transform_indices = @transform_12, window_bounds = array<i64: 4, 1>}, {pipeline_mode = #tpu.pipeline_mode<synchronous>, transform_indices = @transform_13, window_bounds = array<i64: 16, 9>}, {pipeline_mode = #tpu.pipeline_mode<synchronous>, transform_indices = @transform_14, window_bounds = array<i64: 4, 16>}, {pipeline_mode = #tpu.pipeline_mode<synchronous>, transform_indices = @transform_15, window_bounds = array<i64: 4, 1>}, {pipeline_mode = #tpu.pipeline_mode<synchronous>, transform_indices = @transform_16, window_bounds = array<i64: 20, 9>}, {pipeline_mode = #tpu.pipeline_mode<synchronous>, transform_indices = @transform_17, window_bounds = array<i64: 4, 20>}, {pipeline_mode = #tpu.pipeline_mode<synchronous>, transform_indices = @transform_18, window_bounds = array<i64: 4, 1>}, {transform_indices = @transform_19, window_bounds = array<i64: 1, 4, 256>}]} {
    %c0 = arith.constant 0 : index
    %c0_0 = arith.constant 0 : index
    %c0_1 = arith.constant 0 : index
    %0 = vector.load %arg1[%c0, %c0_0, %c0_1] : memref<1x4x256xf32, #tpu.memory_space<vmem>>, vector<1x4x256xf32>
    %1 = vector.shape_cast %0 : vector<1x4x256xf32> to vector<4x256xf32>
    %c0_2 = arith.constant 0 : index
    %c0_3 = arith.constant 0 : index
    %2 = vector.load %arg2[%c0_2, %c0_3] : memref<1x256xf32, #tpu.memory_space<vmem>>, vector<1x256xf32>
    %c0_4 = arith.constant 0 : index
    %c0_5 = arith.constant 0 : index
    %3 = vector.load %arg3[%c0_4, %c0_5] : memref<1x256xf32, #tpu.memory_space<vmem>>, vector<1x256xf32>
    %cst = arith.constant 0.000000e+00 : f32
    %4 = vector.broadcast %cst : f32 to vector<4x128xf32>
    %c0_6 = arith.constant 0 : index
    %c0_7 = arith.constant 0 : index
    %5 = vector.load %arg21[%c0_6, %c0_7] : memref<4x512xf32, #tpu.memory_space<vmem>>, vector<4x128xf32>
    tpu.vector_store %arg21[%c0_6, %c0_7], %4 {strides = array<i32>} : memref<4x512xf32, #tpu.memory_space<vmem>>, vector<4x128xf32>,
    %c0_8 = arith.constant 0 : index
    %c384 = arith.constant 384 : index
    %6 = vector.load %arg21[%c0_8, %c384] : memref<4x512xf32, #tpu.memory_space<vmem>>, vector<4x128xf32>
    tpu.vector_store %arg21[%c0_8, %c384], %4 {strides = array<i32>} : memref<4x512xf32, #tpu.memory_space<vmem>>, vector<4x128xf32>,
    %c0_9 = arith.constant 0 : index
    %c128 = arith.constant 128 : index
    %7 = vector.load %arg21[%c0_9, %c128] : memref<4x512xf32, #tpu.memory_space<vmem>>, vector<4x256xf32>
    tpu.vector_store %arg21[%c0_9, %c128], %1 {strides = array<i32>} : memref<4x512xf32, #tpu.memory_space<vmem>>, vector<4x256xf32>,
    %cst_10 = arith.constant 0.000000e+00 : f32
    %8 = vector.broadcast %cst_10 : f32 to vector<4x256xf32>
    %cst_11 = arith.constant 0.000000e+00 : f32
    %9 = vector.broadcast %cst_11 : f32 to vector<4x256xf32>
    %c0_12 = arith.constant 0 : index
    %c111 = arith.constant 111 : index
    %10 = vector.load %arg21[%c0_12, %c111] : memref<4x512xf32, #tpu.memory_space<vmem>>, vector<4x256xf32>
    %11 = vector.broadcast %2 : vector<1x256xf32> to vector<4x256xf32>
    %12 = arith.mulf %10, %11 : vector<4x256xf32>
    %c0_13 = arith.constant 0 : index
    %c0_14 = arith.constant 0 : index
    %13 = vector.load %arg5[%c0_13, %c0_14] : memref<4x9xf32, #tpu.memory_space<vmem>>, vector<4x1xf32>
    %14 = vector.broadcast %13 : vector<4x1xf32> to vector<4x256xf32>
    %15 = arith.mulf %12, %14 : vector<4x256xf32>
    %16 = arith.addf %9, %15 : vector<4x256xf32>
    %c0_15 = arith.constant 0 : index
    %c112 = arith.constant 112 : index
    %17 = vector.load %arg21[%c0_15, %c112] : memref<4x512xf32, #tpu.memory_space<vmem>>, vector<4x256xf32>
    %c0_16 = arith.constant 0 : index
    %c1 = arith.constant 1 : index
    %18 = vector.load %arg5[%c0_16, %c1] : memref<4x9xf32, #tpu.memory_space<vmem>>, vector<4x1xf32>
    %19 = vector.broadcast %18 : vector<4x1xf32> to vector<4x256xf32>
    %20 = arith.mulf %17, %19 : vector<4x256xf32>
    %21 = arith.addf %16, %20 : vector<4x256xf32>
    %c0_17 = arith.constant 0 : index
    %c113 = arith.constant 113 : index
    %22 = vector.load %arg21[%c0_17, %c113] : memref<4x512xf32, #tpu.memory_space<vmem>>, vector<4x256xf32>
    %23 = vector.broadcast %3 : vector<1x256xf32> to vector<4x256xf32>
    %24 = arith.mulf %22, %23 : vector<4x256xf32>
    %c0_18 = arith.constant 0 : index
    %c2 = arith.constant 2 : index
    %25 = vector.load %arg5[%c0_18, %c2] : memref<4x9xf32, #tpu.memory_space<vmem>>, vector<4x1xf32>
    %26 = vector.broadcast %25 : vector<4x1xf32> to vector<4x256xf32>
    %27 = arith.mulf %24, %26 : vector<4x256xf32>
    %28 = arith.addf %21, %27 : vector<4x256xf32>
    %c0_19 = arith.constant 0 : index
    %c127 = arith.constant 127 : index
    %29 = vector.load %arg21[%c0_19, %c127] : memref<4x512xf32, #tpu.memory_space<vmem>>, vector<4x256xf32>
    %30 = vector.broadcast %2 : vector<1x256xf32> to vector<4x256xf32>
    %31 = arith.mulf %29, %30 : vector<4x256xf32>
    %c0_20 = arith.constant 0 : index
    %c3 = arith.constant 3 : index
    %32 = vector.load %arg5[%c0_20, %c3] : memref<4x9xf32, #tpu.memory_space<vmem>>, vector<4x1xf32>
    %33 = vector.broadcast %32 : vector<4x1xf32> to vector<4x256xf32>
    %34 = arith.mulf %31, %33 : vector<4x256xf32>
    %35 = arith.addf %28, %34 : vector<4x256xf32>
    %c0_21 = arith.constant 0 : index
    %c128_22 = arith.constant 128 : index
    %36 = vector.load %arg21[%c0_21, %c128_22] : memref<4x512xf32, #tpu.memory_space<vmem>>, vector<4x256xf32>
    %c0_23 = arith.constant 0 : index
    %c4 = arith.constant 4 : index
    %37 = vector.load %arg5[%c0_23, %c4] : memref<4x9xf32, #tpu.memory_space<vmem>>, vector<4x1xf32>
    %38 = vector.broadcast %37 : vector<4x1xf32> to vector<4x256xf32>
    %39 = arith.mulf %36, %38 : vector<4x256xf32>
    %40 = arith.addf %35, %39 : vector<4x256xf32>
    %c0_24 = arith.constant 0 : index
    %c129 = arith.constant 129 : index
    %41 = vector.load %arg21[%c0_24, %c129] : memref<4x512xf32, #tpu.memory_space<vmem>>, vector<4x256xf32>
    %42 = vector.broadcast %3 : vector<1x256xf32> to vector<4x256xf32>
    %43 = arith.mulf %41, %42 : vector<4x256xf32>
    %c0_25 = arith.constant 0 : index
    %c5 = arith.constant 5 : index
    %44 = vector.load %arg5[%c0_25, %c5] : memref<4x9xf32, #tpu.memory_space<vmem>>, vector<4x1xf32>
    %45 = vector.broadcast %44 : vector<4x1xf32> to vector<4x256xf32>
    %46 = arith.mulf %43, %45 : vector<4x256xf32>
    %47 = arith.addf %40, %46 : vector<4x256xf32>
    %c0_26 = arith.constant 0 : index
    %c143 = arith.constant 143 : index
    %48 = vector.load %arg21[%c0_26, %c143] : memref<4x512xf32, #tpu.memory_space<vmem>>, vector<4x256xf32>
    %49 = vector.broadcast %2 : vector<1x256xf32> to vector<4x256xf32>
    %50 = arith.mulf %48, %49 : vector<4x256xf32>
    %c0_27 = arith.constant 0 : index
    %c6 = arith.constant 6 : index
    %51 = vector.load %arg5[%c0_27, %c6] : memref<4x9xf32, #tpu.memory_space<vmem>>, vector<4x1xf32>
    %52 = vector.broadcast %51 : vector<4x1xf32> to vector<4x256xf32>
    %53 = arith.mulf %50, %52 : vector<4x256xf32>
    %54 = arith.addf %47, %53 : vector<4x256xf32>
    %c0_28 = arith.constant 0 : index
    %c144 = arith.constant 144 : index
    %55 = vector.load %arg21[%c0_28, %c144] : memref<4x512xf32, #tpu.memory_space<vmem>>, vector<4x256xf32>
    %c0_29 = arith.constant 0 : index
    %c7 = arith.constant 7 : index
    %56 = vector.load %arg5[%c0_29, %c7] : memref<4x9xf32, #tpu.memory_space<vmem>>, vector<4x1xf32>
    %57 = vector.broadcast %56 : vector<4x1xf32> to vector<4x256xf32>
    %58 = arith.mulf %55, %57 : vector<4x256xf32>
    %59 = arith.addf %54, %58 : vector<4x256xf32>
    %c0_30 = arith.constant 0 : index
    %c145 = arith.constant 145 : index
    %60 = vector.load %arg21[%c0_30, %c145] : memref<4x512xf32, #tpu.memory_space<vmem>>, vector<4x256xf32>
    %61 = vector.broadcast %3 : vector<1x256xf32> to vector<4x256xf32>
    %62 = arith.mulf %60, %61 : vector<4x256xf32>
    %c0_31 = arith.constant 0 : index
    %c8 = arith.constant 8 : index
    %63 = vector.load %arg5[%c0_31, %c8] : memref<4x9xf32, #tpu.memory_space<vmem>>, vector<4x1xf32>
    %64 = vector.broadcast %63 : vector<4x1xf32> to vector<4x256xf32>
    %65 = arith.mulf %62, %64 : vector<4x256xf32>
    %66 = arith.addf %59, %65 : vector<4x256xf32>
    %c0_32 = arith.constant 0 : index
    %c0_33 = arith.constant 0 : index
    %67 = vector.load %arg6[%c0_32, %c0_33] : memref<4x4xf32, #tpu.memory_space<vmem>>, vector<4x4xf32>
    %cst_34 = arith.constant dense<0.000000e+00> : vector<4x256xf32>
    %68 = tpu.matmul %67, %66, %cst_34 {dimension_numbers = #tpu.dot_dimension_numbers<[1], [0], [0], [1], [0, 0, 1, 1], [], []>} : vector<4x4xf32>, vector<4x256xf32>, vector<4x256xf32> -> vector<4x256xf32>
    %69 = arith.addf %8, %68 : vector<4x256xf32>
    %c0_35 = arith.constant 0 : index
    %c0_36 = arith.constant 0 : index
    %70 = vector.load %arg7[%c0_35, %c0_36] : memref<4x1xf32, #tpu.memory_space<vmem>>, vector<4x1xf32>
    %71 = vector.broadcast %70 : vector<4x1xf32> to vector<4x256xf32>
    %72 = arith.addf %69, %71 : vector<4x256xf32>
    %cst_37 = arith.constant 0.000000e+00 : f32
    %73 = vector.broadcast %cst_37 : f32 to vector<4x256xf32>
    %74 = arith.cmpf oge, %72, %73 : vector<4x256xf32>
    %cst_38 = arith.constant 2.000000e-01 : f32
    %75 = vector.broadcast %cst_38 : f32 to vector<4x256xf32>
    %76 = arith.mulf %75, %72 : vector<4x256xf32>
    %77 = arith.select %74, %72, %76 : vector<4x256xi1>, vector<4x256xf32>
    %cst_39 = arith.constant 0.000000e+00 : f32
    %78 = vector.broadcast %cst_39 : f32 to vector<4x128xf32>
    %c0_40 = arith.constant 0 : index
    %c0_41 = arith.constant 0 : index
    %79 = vector.load %arg22[%c0_40, %c0_41] : memref<4x512xf32, #tpu.memory_space<vmem>>, vector<4x128xf32>
    tpu.vector_store %arg22[%c0_40, %c0_41], %78 {strides = array<i32>} : memref<4x512xf32, #tpu.memory_space<vmem>>, vector<4x128xf32>,
    %c0_42 = arith.constant 0 : index
    %c384_43 = arith.constant 384 : index
    %80 = vector.load %arg22[%c0_42, %c384_43] : memref<4x512xf32, #tpu.memory_space<vmem>>, vector<4x128xf32>
    tpu.vector_store %arg22[%c0_42, %c384_43], %78 {strides = array<i32>} : memref<4x512xf32, #tpu.memory_space<vmem>>, vector<4x128xf32>,
    %c0_44 = arith.constant 0 : index
    %c128_45 = arith.constant 128 : index
    %81 = vector.load %arg22[%c0_44, %c128_45] : memref<4x512xf32, #tpu.memory_space<vmem>>, vector<4x256xf32>
    tpu.vector_store %arg22[%c0_44, %c128_45], %77 {strides = array<i32>} : memref<4x512xf32, #tpu.memory_space<vmem>>, vector<4x256xf32>,
    %cst_46 = arith.constant 0.000000e+00 : f32
    %82 = vector.broadcast %cst_46 : f32 to vector<4x256xf32>
    %cst_47 = arith.constant 0.000000e+00 : f32
    %83 = vector.broadcast %cst_47 : f32 to vector<4x256xf32>
    %c0_48 = arith.constant 0 : index
    %c111_49 = arith.constant 111 : index
    %84 = vector.load %arg21[%c0_48, %c111_49] : memref<4x512xf32, #tpu.memory_space<vmem>>, vector<4x256xf32>
    %85 = vector.broadcast %2 : vector<1x256xf32> to vector<4x256xf32>
    %86 = arith.mulf %84, %85 : vector<4x256xf32>
    %c0_50 = arith.constant 0 : index
    %c0_51 = arith.constant 0 : index
    %87 = vector.load %arg8[%c0_50, %c0_51] : memref<8x9xf32, #tpu.memory_space<vmem>>, vector<4x1xf32>
    %88 = vector.broadcast %87 : vector<4x1xf32> to vector<4x256xf32>
    %89 = arith.mulf %86, %88 : vector<4x256xf32>
    %90 = arith.addf %83, %89 : vector<4x256xf32>
    %c0_52 = arith.constant 0 : index
    %c112_53 = arith.constant 112 : index
    %91 = vector.load %arg21[%c0_52, %c112_53] : memref<4x512xf32, #tpu.memory_space<vmem>>, vector<4x256xf32>
    %c0_54 = arith.constant 0 : index
    %c1_55 = arith.constant 1 : index
    %92 = vector.load %arg8[%c0_54, %c1_55] : memref<8x9xf32, #tpu.memory_space<vmem>>, vector<4x1xf32>
    %93 = vector.broadcast %92 : vector<4x1xf32> to vector<4x256xf32>
    %94 = arith.mulf %91, %93 : vector<4x256xf32>
    %95 = arith.addf %90, %94 : vector<4x256xf32>
    %c0_56 = arith.constant 0 : index
    %c113_57 = arith.constant 113 : index
    %96 = vector.load %arg21[%c0_56, %c113_57] : memref<4x512xf32, #tpu.memory_space<vmem>>, vector<4x256xf32>
    %97 = vector.broadcast %3 : vector<1x256xf32> to vector<4x256xf32>
    %98 = arith.mulf %96, %97 : vector<4x256xf32>
    %c0_58 = arith.constant 0 : index
    %c2_59 = arith.constant 2 : index
    %99 = vector.load %arg8[%c0_58, %c2_59] : memref<8x9xf32, #tpu.memory_space<vmem>>, vector<4x1xf32>
    %100 = vector.broadcast %99 : vector<4x1xf32> to vector<4x256xf32>
    %101 = arith.mulf %98, %100 : vector<4x256xf32>
    %102 = arith.addf %95, %101 : vector<4x256xf32>
    %c0_60 = arith.constant 0 : index
    %c127_61 = arith.constant 127 : index
    %103 = vector.load %arg21[%c0_60, %c127_61] : memref<4x512xf32, #tpu.memory_space<vmem>>, vector<4x256xf32>
    %104 = vector.broadcast %2 : vector<1x256xf32> to vector<4x256xf32>
    %105 = arith.mulf %103, %104 : vector<4x256xf32>
    %c0_62 = arith.constant 0 : index
    %c3_63 = arith.constant 3 : index
    %106 = vector.load %arg8[%c0_62, %c3_63] : memref<8x9xf32, #tpu.memory_space<vmem>>, vector<4x1xf32>
    %107 = vector.broadcast %106 : vector<4x1xf32> to vector<4x256xf32>
    %108 = arith.mulf %105, %107 : vector<4x256xf32>
    %109 = arith.addf %102, %108 : vector<4x256xf32>
    %c0_64 = arith.constant 0 : index
    %c128_65 = arith.constant 128 : index
    %110 = vector.load %arg21[%c0_64, %c128_65] : memref<4x512xf32, #tpu.memory_space<vmem>>, vector<4x256xf32>
    %c0_66 = arith.constant 0 : index
    %c4_67 = arith.constant 4 : index
    %111 = vector.load %arg8[%c0_66, %c4_67] : memref<8x9xf32, #tpu.memory_space<vmem>>, vector<4x1xf32>
    %112 = vector.broadcast %111 : vector<4x1xf32> to vector<4x256xf32>
    %113 = arith.mulf %110, %112 : vector<4x256xf32>
    %114 = arith.addf %109, %113 : vector<4x256xf32>
    %c0_68 = arith.constant 0 : index
    %c129_69 = arith.constant 129 : index
    %115 = vector.load %arg21[%c0_68, %c129_69] : memref<4x512xf32, #tpu.memory_space<vmem>>, vector<4x256xf32>
    %116 = vector.broadcast %3 : vector<1x256xf32> to vector<4x256xf32>
    %117 = arith.mulf %115, %116 : vector<4x256xf32>
    %c0_70 = arith.constant 0 : index
    %c5_71 = arith.constant 5 : index
    %118 = vector.load %arg8[%c0_70, %c5_71] : memref<8x9xf32, #tpu.memory_space<vmem>>, vector<4x1xf32>
    %119 = vector.broadcast %118 : vector<4x1xf32> to vector<4x256xf32>
    %120 = arith.mulf %117, %119 : vector<4x256xf32>
    %121 = arith.addf %114, %120 : vector<4x256xf32>
    %c0_72 = arith.constant 0 : index
    %c143_73 = arith.constant 143 : index
    %122 = vector.load %arg21[%c0_72, %c143_73] : memref<4x512xf32, #tpu.memory_space<vmem>>, vector<4x256xf32>
    %123 = vector.broadcast %2 : vector<1x256xf32> to vector<4x256xf32>
    %124 = arith.mulf %122, %123 : vector<4x256xf32>
    %c0_74 = arith.constant 0 : index
    %c6_75 = arith.constant 6 : index
    %125 = vector.load %arg8[%c0_74, %c6_75] : memref<8x9xf32, #tpu.memory_space<vmem>>, vector<4x1xf32>
    %126 = vector.broadcast %125 : vector<4x1xf32> to vector<4x256xf32>
    %127 = arith.mulf %124, %126 : vector<4x256xf32>
    %128 = arith.addf %121, %127 : vector<4x256xf32>
    %c0_76 = arith.constant 0 : index
    %c144_77 = arith.constant 144 : index
    %129 = vector.load %arg21[%c0_76, %c144_77] : memref<4x512xf32, #tpu.memory_space<vmem>>, vector<4x256xf32>
    %c0_78 = arith.constant 0 : index
    %c7_79 = arith.constant 7 : index
    %130 = vector.load %arg8[%c0_78, %c7_79] : memref<8x9xf32, #tpu.memory_space<vmem>>, vector<4x1xf32>
    %131 = vector.broadcast %130 : vector<4x1xf32> to vector<4x256xf32>
    %132 = arith.mulf %129, %131 : vector<4x256xf32>
    %133 = arith.addf %128, %132 : vector<4x256xf32>
    %c0_80 = arith.constant 0 : index
    %c145_81 = arith.constant 145 : index
    %134 = vector.load %arg21[%c0_80, %c145_81] : memref<4x512xf32, #tpu.memory_space<vmem>>, vector<4x256xf32>
    %135 = vector.broadcast %3 : vector<1x256xf32> to vector<4x256xf32>
    %136 = arith.mulf %134, %135 : vector<4x256xf32>
    %c0_82 = arith.constant 0 : index
    %c8_83 = arith.constant 8 : index
    %137 = vector.load %arg8[%c0_82, %c8_83] : memref<8x9xf32, #tpu.memory_space<vmem>>, vector<4x1xf32>
    %138 = vector.broadcast %137 : vector<4x1xf32> to vector<4x256xf32>
    %139 = arith.mulf %136, %138 : vector<4x256xf32>
    %140 = arith.addf %133, %139 : vector<4x256xf32>
    %c0_84 = arith.constant 0 : index
    %c0_85 = arith.constant 0 : index
    %141 = vector.load %arg9[%c0_84, %c0_85] : memref<4x8xf32, #tpu.memory_space<vmem>>, vector<4x4xf32>
    %cst_86 = arith.constant dense<0.000000e+00> : vector<4x256xf32>
    %142 = tpu.matmul %141, %140, %cst_86 {dimension_numbers = #tpu.dot_dimension_numbers<[1], [0], [0], [1], [0, 0, 1, 1], [], []>} : vector<4x4xf32>, vector<4x256xf32>, vector<4x256xf32> -> vector<4x256xf32>
    %143 = arith.addf %82, %142 : vector<4x256xf32>
    %cst_87 = arith.constant 0.000000e+00 : f32
    %144 = vector.broadcast %cst_87 : f32 to vector<4x256xf32>
    %c0_88 = arith.constant 0 : index
    %c111_89 = arith.constant 111 : index
    %145 = vector.load %arg22[%c0_88, %c111_89] : memref<4x512xf32, #tpu.memory_space<vmem>>, vector<4x256xf32>
    %146 = vector.broadcast %2 : vector<1x256xf32> to vector<4x256xf32>
    %147 = arith.mulf %145, %146 : vector<4x256xf32>
    %c4_90 = arith.constant 4 : index
    %c0_91 = arith.constant 0 : index
    %148 = vector.load %arg8[%c4_90, %c0_91] : memref<8x9xf32, #tpu.memory_space<vmem>>, vector<4x1xf32>
    %149 = vector.broadcast %148 : vector<4x1xf32> to vector<4x256xf32>
    %150 = arith.mulf %147, %149 : vector<4x256xf32>
    %151 = arith.addf %144, %150 : vector<4x256xf32>
    %c0_92 = arith.constant 0 : index
    %c112_93 = arith.constant 112 : index
    %152 = vector.load %arg22[%c0_92, %c112_93] : memref<4x512xf32, #tpu.memory_space<vmem>>, vector<4x256xf32>
    %c4_94 = arith.constant 4 : index
    %c1_95 = arith.constant 1 : index
    %153 = vector.load %arg8[%c4_94, %c1_95] : memref<8x9xf32, #tpu.memory_space<vmem>>, vector<4x1xf32>
    %154 = vector.broadcast %153 : vector<4x1xf32> to vector<4x256xf32>
    %155 = arith.mulf %152, %154 : vector<4x256xf32>
    %156 = arith.addf %151, %155 : vector<4x256xf32>
    %c0_96 = arith.constant 0 : index
    %c113_97 = arith.constant 113 : index
    %157 = vector.load %arg22[%c0_96, %c113_97] : memref<4x512xf32, #tpu.memory_space<vmem>>, vector<4x256xf32>
    %158 = vector.broadcast %3 : vector<1x256xf32> to vector<4x256xf32>
    %159 = arith.mulf %157, %158 : vector<4x256xf32>
    %c4_98 = arith.constant 4 : index
    %c2_99 = arith.constant 2 : index
    %160 = vector.load %arg8[%c4_98, %c2_99] : memref<8x9xf32, #tpu.memory_space<vmem>>, vector<4x1xf32>
    %161 = vector.broadcast %160 : vector<4x1xf32> to vector<4x256xf32>
    %162 = arith.mulf %159, %161 : vector<4x256xf32>
    %163 = arith.addf %156, %162 : vector<4x256xf32>
    %c0_100 = arith.constant 0 : index
    %c127_101 = arith.constant 127 : index
    %164 = vector.load %arg22[%c0_100, %c127_101] : memref<4x512xf32, #tpu.memory_space<vmem>>, vector<4x256xf32>
    %165 = vector.broadcast %2 : vector<1x256xf32> to vector<4x256xf32>
    %166 = arith.mulf %164, %165 : vector<4x256xf32>
    %c4_102 = arith.constant 4 : index
    %c3_103 = arith.constant 3 : index
    %167 = vector.load %arg8[%c4_102, %c3_103] : memref<8x9xf32, #tpu.memory_space<vmem>>, vector<4x1xf32>
    %168 = vector.broadcast %167 : vector<4x1xf32> to vector<4x256xf32>
    %169 = arith.mulf %166, %168 : vector<4x256xf32>
    %170 = arith.addf %163, %169 : vector<4x256xf32>
    %c0_104 = arith.constant 0 : index
    %c128_105 = arith.constant 128 : index
    %171 = vector.load %arg22[%c0_104, %c128_105] : memref<4x512xf32, #tpu.memory_space<vmem>>, vector<4x256xf32>
    %c4_106 = arith.constant 4 : index
    %c4_107 = arith.constant 4 : index
    %172 = vector.load %arg8[%c4_106, %c4_107] : memref<8x9xf32, #tpu.memory_space<vmem>>, vector<4x1xf32>
    %173 = vector.broadcast %172 : vector<4x1xf32> to vector<4x256xf32>
    %174 = arith.mulf %171, %173 : vector<4x256xf32>
    %175 = arith.addf %170, %174 : vector<4x256xf32>
    %c0_108 = arith.constant 0 : index
    %c129_109 = arith.constant 129 : index
    %176 = vector.load %arg22[%c0_108, %c129_109] : memref<4x512xf32, #tpu.memory_space<vmem>>, vector<4x256xf32>
    %177 = vector.broadcast %3 : vector<1x256xf32> to vector<4x256xf32>
    %178 = arith.mulf %176, %177 : vector<4x256xf32>
    %c4_110 = arith.constant 4 : index
    %c5_111 = arith.constant 5 : index
    %179 = vector.load %arg8[%c4_110, %c5_111] : memref<8x9xf32, #tpu.memory_space<vmem>>, vector<4x1xf32>
    %180 = vector.broadcast %179 : vector<4x1xf32> to vector<4x256xf32>
    %181 = arith.mulf %178, %180 : vector<4x256xf32>
    %182 = arith.addf %175, %181 : vector<4x256xf32>
    %c0_112 = arith.constant 0 : index
    %c143_113 = arith.constant 143 : index
    %183 = vector.load %arg22[%c0_112, %c143_113] : memref<4x512xf32, #tpu.memory_space<vmem>>, vector<4x256xf32>
    %184 = vector.broadcast %2 : vector<1x256xf32> to vector<4x256xf32>
    %185 = arith.mulf %183, %184 : vector<4x256xf32>
    %c4_114 = arith.constant 4 : index
    %c6_115 = arith.constant 6 : index
    %186 = vector.load %arg8[%c4_114, %c6_115] : memref<8x9xf32, #tpu.memory_space<vmem>>, vector<4x1xf32>
    %187 = vector.broadcast %186 : vector<4x1xf32> to vector<4x256xf32>
    %188 = arith.mulf %185, %187 : vector<4x256xf32>
    %189 = arith.addf %182, %188 : vector<4x256xf32>
    %c0_116 = arith.constant 0 : index
    %c144_117 = arith.constant 144 : index
    %190 = vector.load %arg22[%c0_116, %c144_117] : memref<4x512xf32, #tpu.memory_space<vmem>>, vector<4x256xf32>
    %c4_118 = arith.constant 4 : index
    %c7_119 = arith.constant 7 : index
    %191 = vector.load %arg8[%c4_118, %c7_119] : memref<8x9xf32, #tpu.memory_space<vmem>>, vector<4x1xf32>
    %192 = vector.broadcast %191 : vector<4x1xf32> to vector<4x256xf32>
    %193 = arith.mulf %190, %192 : vector<4x256xf32>
    %194 = arith.addf %189, %193 : vector<4x256xf32>
    %c0_120 = arith.constant 0 : index
    %c145_121 = arith.constant 145 : index
    %195 = vector.load %arg22[%c0_120, %c145_121] : memref<4x512xf32, #tpu.memory_space<vmem>>, vector<4x256xf32>
    %196 = vector.broadcast %3 : vector<1x256xf32> to vector<4x256xf32>
    %197 = arith.mulf %195, %196 : vector<4x256xf32>
    %c4_122 = arith.constant 4 : index
    %c8_123 = arith.constant 8 : index
    %198 = vector.load %arg8[%c4_122, %c8_123] : memref<8x9xf32, #tpu.memory_space<vmem>>, vector<4x1xf32>
    %199 = vector.broadcast %198 : vector<4x1xf32> to vector<4x256xf32>
    %200 = arith.mulf %197, %199 : vector<4x256xf32>
    %201 = arith.addf %194, %200 : vector<4x256xf32>
    %c0_124 = arith.constant 0 : index
    %c4_125 = arith.constant 4 : index
    %202 = vector.load %arg9[%c0_124, %c4_125] : memref<4x8xf32, #tpu.memory_space<vmem>>, vector<4x4xf32>
    %cst_126 = arith.constant dense<0.000000e+00> : vector<4x256xf32>
    %203 = tpu.matmul %202, %201, %cst_126 {dimension_numbers = #tpu.dot_dimension_numbers<[1], [0], [0], [1], [0, 0, 1, 1], [], []>} : vector<4x4xf32>, vector<4x256xf32>, vector<4x256xf32> -> vector<4x256xf32>
    %204 = arith.addf %143, %203 : vector<4x256xf32>
    %c0_127 = arith.constant 0 : index
    %c0_128 = arith.constant 0 : index
    %205 = vector.load %arg10[%c0_127, %c0_128] : memref<4x1xf32, #tpu.memory_space<vmem>>, vector<4x1xf32>
    %206 = vector.broadcast %205 : vector<4x1xf32> to vector<4x256xf32>
    %207 = arith.addf %204, %206 : vector<4x256xf32>
    %cst_129 = arith.constant 0.000000e+00 : f32
    %208 = vector.broadcast %cst_129 : f32 to vector<4x256xf32>
    %209 = arith.cmpf oge, %207, %208 : vector<4x256xf32>
    %cst_130 = arith.constant 2.000000e-01 : f32
    %210 = vector.broadcast %cst_130 : f32 to vector<4x256xf32>
    %211 = arith.mulf %210, %207 : vector<4x256xf32>
    %212 = arith.select %209, %207, %211 : vector<4x256xi1>, vector<4x256xf32>
    %c0_131 = arith.constant 0 : index
    %c0_132 = arith.constant 0 : index
    %213 = vector.load %arg4[%c0_131, %c0_132] : memref<4x4xf32, #tpu.memory_space<vmem>>, vector<4x4xf32>
    %cst_133 = arith.constant dense<0.000000e+00> : vector<4x256xf32>
    %214 = tpu.matmul %213, %1, %cst_133 {dimension_numbers = #tpu.dot_dimension_numbers<[1], [0], [0], [1], [0, 0, 1, 1], [], []>} : vector<4x4xf32>, vector<4x256xf32>, vector<4x256xf32> -> vector<4x256xf32>
    %215 = arith.addf %212, %214 : vector<4x256xf32>
    %cst_134 = arith.constant 0.000000e+00 : f32
    %216 = vector.broadcast %cst_134 : f32 to vector<4x128xf32>
    %c0_135 = arith.constant 0 : index
    %c0_136 = arith.constant 0 : index
    %217 = vector.load %arg23[%c0_135, %c0_136] : memref<4x512xf32, #tpu.memory_space<vmem>>, vector<4x128xf32>
    tpu.vector_store %arg23[%c0_135, %c0_136], %216 {strides = array<i32>} : memref<4x512xf32, #tpu.memory_space<vmem>>, vector<4x128xf32>,
    %c0_137 = arith.constant 0 : index
    %c384_138 = arith.constant 384 : index
    %218 = vector.load %arg23[%c0_137, %c384_138] : memref<4x512xf32, #tpu.memory_space<vmem>>, vector<4x128xf32>
    tpu.vector_store %arg23[%c0_137, %c384_138], %216 {strides = array<i32>} : memref<4x512xf32, #tpu.memory_space<vmem>>, vector<4x128xf32>,
    %c0_139 = arith.constant 0 : index
    %c128_140 = arith.constant 128 : index
    %219 = vector.load %arg23[%c0_139, %c128_140] : memref<4x512xf32, #tpu.memory_space<vmem>>, vector<4x256xf32>
    tpu.vector_store %arg23[%c0_139, %c128_140], %215 {strides = array<i32>} : memref<4x512xf32, #tpu.memory_space<vmem>>, vector<4x256xf32>,
    %cst_141 = arith.constant 0.000000e+00 : f32
    %220 = vector.broadcast %cst_141 : f32 to vector<4x256xf32>
    %cst_142 = arith.constant 0.000000e+00 : f32
    %221 = vector.broadcast %cst_142 : f32 to vector<4x256xf32>
    %c0_143 = arith.constant 0 : index
    %c111_144 = arith.constant 111 : index
    %222 = vector.load %arg21[%c0_143, %c111_144] : memref<4x512xf32, #tpu.memory_space<vmem>>, vector<4x256xf32>
    %223 = vector.broadcast %2 : vector<1x256xf32> to vector<4x256xf32>
    %224 = arith.mulf %222, %223 : vector<4x256xf32>
    %c0_145 = arith.constant 0 : index
    %c0_146 = arith.constant 0 : index
    %225 = vector.load %arg11[%c0_145, %c0_146] : memref<12x9xf32, #tpu.memory_space<vmem>>, vector<4x1xf32>
    %226 = vector.broadcast %225 : vector<4x1xf32> to vector<4x256xf32>
    %227 = arith.mulf %224, %226 : vector<4x256xf32>
    %228 = arith.addf %221, %227 : vector<4x256xf32>
    %c0_147 = arith.constant 0 : index
    %c112_148 = arith.constant 112 : index
    %229 = vector.load %arg21[%c0_147, %c112_148] : memref<4x512xf32, #tpu.memory_space<vmem>>, vector<4x256xf32>
    %c0_149 = arith.constant 0 : index
    %c1_150 = arith.constant 1 : index
    %230 = vector.load %arg11[%c0_149, %c1_150] : memref<12x9xf32, #tpu.memory_space<vmem>>, vector<4x1xf32>
    %231 = vector.broadcast %230 : vector<4x1xf32> to vector<4x256xf32>
    %232 = arith.mulf %229, %231 : vector<4x256xf32>
    %233 = arith.addf %228, %232 : vector<4x256xf32>
    %c0_151 = arith.constant 0 : index
    %c113_152 = arith.constant 113 : index
    %234 = vector.load %arg21[%c0_151, %c113_152] : memref<4x512xf32, #tpu.memory_space<vmem>>, vector<4x256xf32>
    %235 = vector.broadcast %3 : vector<1x256xf32> to vector<4x256xf32>
    %236 = arith.mulf %234, %235 : vector<4x256xf32>
    %c0_153 = arith.constant 0 : index
    %c2_154 = arith.constant 2 : index
    %237 = vector.load %arg11[%c0_153, %c2_154] : memref<12x9xf32, #tpu.memory_space<vmem>>, vector<4x1xf32>
    %238 = vector.broadcast %237 : vector<4x1xf32> to vector<4x256xf32>
    %239 = arith.mulf %236, %238 : vector<4x256xf32>
    %240 = arith.addf %233, %239 : vector<4x256xf32>
    %c0_155 = arith.constant 0 : index
    %c127_156 = arith.constant 127 : index
    %241 = vector.load %arg21[%c0_155, %c127_156] : memref<4x512xf32, #tpu.memory_space<vmem>>, vector<4x256xf32>
    %242 = vector.broadcast %2 : vector<1x256xf32> to vector<4x256xf32>
    %243 = arith.mulf %241, %242 : vector<4x256xf32>
    %c0_157 = arith.constant 0 : index
    %c3_158 = arith.constant 3 : index
    %244 = vector.load %arg11[%c0_157, %c3_158] : memref<12x9xf32, #tpu.memory_space<vmem>>, vector<4x1xf32>
    %245 = vector.broadcast %244 : vector<4x1xf32> to vector<4x256xf32>
    %246 = arith.mulf %243, %245 : vector<4x256xf32>
    %247 = arith.addf %240, %246 : vector<4x256xf32>
    %c0_159 = arith.constant 0 : index
    %c128_160 = arith.constant 128 : index
    %248 = vector.load %arg21[%c0_159, %c128_160] : memref<4x512xf32, #tpu.memory_space<vmem>>, vector<4x256xf32>
    %c0_161 = arith.constant 0 : index
    %c4_162 = arith.constant 4 : index
    %249 = vector.load %arg11[%c0_161, %c4_162] : memref<12x9xf32, #tpu.memory_space<vmem>>, vector<4x1xf32>
    %250 = vector.broadcast %249 : vector<4x1xf32> to vector<4x256xf32>
    %251 = arith.mulf %248, %250 : vector<4x256xf32>
    %252 = arith.addf %247, %251 : vector<4x256xf32>
    %c0_163 = arith.constant 0 : index
    %c129_164 = arith.constant 129 : index
    %253 = vector.load %arg21[%c0_163, %c129_164] : memref<4x512xf32, #tpu.memory_space<vmem>>, vector<4x256xf32>
    %254 = vector.broadcast %3 : vector<1x256xf32> to vector<4x256xf32>
    %255 = arith.mulf %253, %254 : vector<4x256xf32>
    %c0_165 = arith.constant 0 : index
    %c5_166 = arith.constant 5 : index
    %256 = vector.load %arg11[%c0_165, %c5_166] : memref<12x9xf32, #tpu.memory_space<vmem>>, vector<4x1xf32>
    %257 = vector.broadcast %256 : vector<4x1xf32> to vector<4x256xf32>
    %258 = arith.mulf %255, %257 : vector<4x256xf32>
    %259 = arith.addf %252, %258 : vector<4x256xf32>
    %c0_167 = arith.constant 0 : index
    %c143_168 = arith.constant 143 : index
    %260 = vector.load %arg21[%c0_167, %c143_168] : memref<4x512xf32, #tpu.memory_space<vmem>>, vector<4x256xf32>
    %261 = vector.broadcast %2 : vector<1x256xf32> to vector<4x256xf32>
    %262 = arith.mulf %260, %261 : vector<4x256xf32>
    %c0_169 = arith.constant 0 : index
    %c6_170 = arith.constant 6 : index
    %263 = vector.load %arg11[%c0_169, %c6_170] : memref<12x9xf32, #tpu.memory_space<vmem>>, vector<4x1xf32>
    %264 = vector.broadcast %263 : vector<4x1xf32> to vector<4x256xf32>
    %265 = arith.mulf %262, %264 : vector<4x256xf32>
    %266 = arith.addf %259, %265 : vector<4x256xf32>
    %c0_171 = arith.constant 0 : index
    %c144_172 = arith.constant 144 : index
    %267 = vector.load %arg21[%c0_171, %c144_172] : memref<4x512xf32, #tpu.memory_space<vmem>>, vector<4x256xf32>
    %c0_173 = arith.constant 0 : index
    %c7_174 = arith.constant 7 : index
    %268 = vector.load %arg11[%c0_173, %c7_174] : memref<12x9xf32, #tpu.memory_space<vmem>>, vector<4x1xf32>
    %269 = vector.broadcast %268 : vector<4x1xf32> to vector<4x256xf32>
    %270 = arith.mulf %267, %269 : vector<4x256xf32>
    %271 = arith.addf %266, %270 : vector<4x256xf32>
    %c0_175 = arith.constant 0 : index
    %c145_176 = arith.constant 145 : index
    %272 = vector.load %arg21[%c0_175, %c145_176] : memref<4x512xf32, #tpu.memory_space<vmem>>, vector<4x256xf32>
    %273 = vector.broadcast %3 : vector<1x256xf32> to vector<4x256xf32>
    %274 = arith.mulf %272, %273 : vector<4x256xf32>
    %c0_177 = arith.constant 0 : index
    %c8_178 = arith.constant 8 : index
    %275 = vector.load %arg11[%c0_177, %c8_178] : memref<12x9xf32, #tpu.memory_space<vmem>>, vector<4x1xf32>
    %276 = vector.broadcast %275 : vector<4x1xf32> to vector<4x256xf32>
    %277 = arith.mulf %274, %276 : vector<4x256xf32>
    %278 = arith.addf %271, %277 : vector<4x256xf32>
    %c0_179 = arith.constant 0 : index
    %c0_180 = arith.constant 0 : index
    %279 = vector.load %arg12[%c0_179, %c0_180] : memref<4x12xf32, #tpu.memory_space<vmem>>, vector<4x4xf32>
    %cst_181 = arith.constant dense<0.000000e+00> : vector<4x256xf32>
    %280 = tpu.matmul %279, %278, %cst_181 {dimension_numbers = #tpu.dot_dimension_numbers<[1], [0], [0], [1], [0, 0, 1, 1], [], []>} : vector<4x4xf32>, vector<4x256xf32>, vector<4x256xf32> -> vector<4x256xf32>
    %281 = arith.addf %220, %280 : vector<4x256xf32>
    %cst_182 = arith.constant 0.000000e+00 : f32
    %282 = vector.broadcast %cst_182 : f32 to vector<4x256xf32>
    %c0_183 = arith.constant 0 : index
    %c111_184 = arith.constant 111 : index
    %283 = vector.load %arg22[%c0_183, %c111_184] : memref<4x512xf32, #tpu.memory_space<vmem>>, vector<4x256xf32>
    %284 = vector.broadcast %2 : vector<1x256xf32> to vector<4x256xf32>
    %285 = arith.mulf %283, %284 : vector<4x256xf32>
    %c4_185 = arith.constant 4 : index
    %c0_186 = arith.constant 0 : index
    %286 = vector.load %arg11[%c4_185, %c0_186] : memref<12x9xf32, #tpu.memory_space<vmem>>, vector<4x1xf32>
    %287 = vector.broadcast %286 : vector<4x1xf32> to vector<4x256xf32>
    %288 = arith.mulf %285, %287 : vector<4x256xf32>
    %289 = arith.addf %282, %288 : vector<4x256xf32>
    %c0_187 = arith.constant 0 : index
    %c112_188 = arith.constant 112 : index
    %290 = vector.load %arg22[%c0_187, %c112_188] : memref<4x512xf32, #tpu.memory_space<vmem>>, vector<4x256xf32>
    %c4_189 = arith.constant 4 : index
    %c1_190 = arith.constant 1 : index
    %291 = vector.load %arg11[%c4_189, %c1_190] : memref<12x9xf32, #tpu.memory_space<vmem>>, vector<4x1xf32>
    %292 = vector.broadcast %291 : vector<4x1xf32> to vector<4x256xf32>
    %293 = arith.mulf %290, %292 : vector<4x256xf32>
    %294 = arith.addf %289, %293 : vector<4x256xf32>
    %c0_191 = arith.constant 0 : index
    %c113_192 = arith.constant 113 : index
    %295 = vector.load %arg22[%c0_191, %c113_192] : memref<4x512xf32, #tpu.memory_space<vmem>>, vector<4x256xf32>
    %296 = vector.broadcast %3 : vector<1x256xf32> to vector<4x256xf32>
    %297 = arith.mulf %295, %296 : vector<4x256xf32>
    %c4_193 = arith.constant 4 : index
    %c2_194 = arith.constant 2 : index
    %298 = vector.load %arg11[%c4_193, %c2_194] : memref<12x9xf32, #tpu.memory_space<vmem>>, vector<4x1xf32>
    %299 = vector.broadcast %298 : vector<4x1xf32> to vector<4x256xf32>
    %300 = arith.mulf %297, %299 : vector<4x256xf32>
    %301 = arith.addf %294, %300 : vector<4x256xf32>
    %c0_195 = arith.constant 0 : index
    %c127_196 = arith.constant 127 : index
    %302 = vector.load %arg22[%c0_195, %c127_196] : memref<4x512xf32, #tpu.memory_space<vmem>>, vector<4x256xf32>
    %303 = vector.broadcast %2 : vector<1x256xf32> to vector<4x256xf32>
    %304 = arith.mulf %302, %303 : vector<4x256xf32>
    %c4_197 = arith.constant 4 : index
    %c3_198 = arith.constant 3 : index
    %305 = vector.load %arg11[%c4_197, %c3_198] : memref<12x9xf32, #tpu.memory_space<vmem>>, vector<4x1xf32>
    %306 = vector.broadcast %305 : vector<4x1xf32> to vector<4x256xf32>
    %307 = arith.mulf %304, %306 : vector<4x256xf32>
    %308 = arith.addf %301, %307 : vector<4x256xf32>
    %c0_199 = arith.constant 0 : index
    %c128_200 = arith.constant 128 : index
    %309 = vector.load %arg22[%c0_199, %c128_200] : memref<4x512xf32, #tpu.memory_space<vmem>>, vector<4x256xf32>
    %c4_201 = arith.constant 4 : index
    %c4_202 = arith.constant 4 : index
    %310 = vector.load %arg11[%c4_201, %c4_202] : memref<12x9xf32, #tpu.memory_space<vmem>>, vector<4x1xf32>
    %311 = vector.broadcast %310 : vector<4x1xf32> to vector<4x256xf32>
    %312 = arith.mulf %309, %311 : vector<4x256xf32>
    %313 = arith.addf %308, %312 : vector<4x256xf32>
    %c0_203 = arith.constant 0 : index
    %c129_204 = arith.constant 129 : index
    %314 = vector.load %arg22[%c0_203, %c129_204] : memref<4x512xf32, #tpu.memory_space<vmem>>, vector<4x256xf32>
    %315 = vector.broadcast %3 : vector<1x256xf32> to vector<4x256xf32>
    %316 = arith.mulf %314, %315 : vector<4x256xf32>
    %c4_205 = arith.constant 4 : index
    %c5_206 = arith.constant 5 : index
    %317 = vector.load %arg11[%c4_205, %c5_206] : memref<12x9xf32, #tpu.memory_space<vmem>>, vector<4x1xf32>
    %318 = vector.broadcast %317 : vector<4x1xf32> to vector<4x256xf32>
    %319 = arith.mulf %316, %318 : vector<4x256xf32>
    %320 = arith.addf %313, %319 : vector<4x256xf32>
    %c0_207 = arith.constant 0 : index
    %c143_208 = arith.constant 143 : index
    %321 = vector.load %arg22[%c0_207, %c143_208] : memref<4x512xf32, #tpu.memory_space<vmem>>, vector<4x256xf32>
    %322 = vector.broadcast %2 : vector<1x256xf32> to vector<4x256xf32>
    %323 = arith.mulf %321, %322 : vector<4x256xf32>
    %c4_209 = arith.constant 4 : index
    %c6_210 = arith.constant 6 : index
    %324 = vector.load %arg11[%c4_209, %c6_210] : memref<12x9xf32, #tpu.memory_space<vmem>>, vector<4x1xf32>
    %325 = vector.broadcast %324 : vector<4x1xf32> to vector<4x256xf32>
    %326 = arith.mulf %323, %325 : vector<4x256xf32>
    %327 = arith.addf %320, %326 : vector<4x256xf32>
    %c0_211 = arith.constant 0 : index
    %c144_212 = arith.constant 144 : index
    %328 = vector.load %arg22[%c0_211, %c144_212] : memref<4x512xf32, #tpu.memory_space<vmem>>, vector<4x256xf32>
    %c4_213 = arith.constant 4 : index
    %c7_214 = arith.constant 7 : index
    %329 = vector.load %arg11[%c4_213, %c7_214] : memref<12x9xf32, #tpu.memory_space<vmem>>, vector<4x1xf32>
    %330 = vector.broadcast %329 : vector<4x1xf32> to vector<4x256xf32>
    %331 = arith.mulf %328, %330 : vector<4x256xf32>
    %332 = arith.addf %327, %331 : vector<4x256xf32>
    %c0_215 = arith.constant 0 : index
    %c145_216 = arith.constant 145 : index
    %333 = vector.load %arg22[%c0_215, %c145_216] : memref<4x512xf32, #tpu.memory_space<vmem>>, vector<4x256xf32>
    %334 = vector.broadcast %3 : vector<1x256xf32> to vector<4x256xf32>
    %335 = arith.mulf %333, %334 : vector<4x256xf32>
    %c4_217 = arith.constant 4 : index
    %c8_218 = arith.constant 8 : index
    %336 = vector.load %arg11[%c4_217, %c8_218] : memref<12x9xf32, #tpu.memory_space<vmem>>, vector<4x1xf32>
    %337 = vector.broadcast %336 : vector<4x1xf32> to vector<4x256xf32>
    %338 = arith.mulf %335, %337 : vector<4x256xf32>
    %339 = arith.addf %332, %338 : vector<4x256xf32>
    %c0_219 = arith.constant 0 : index
    %c4_220 = arith.constant 4 : index
    %340 = vector.load %arg12[%c0_219, %c4_220] : memref<4x12xf32, #tpu.memory_space<vmem>>, vector<4x4xf32>
    %cst_221 = arith.constant dense<0.000000e+00> : vector<4x256xf32>
    %341 = tpu.matmul %340, %339, %cst_221 {dimension_numbers = #tpu.dot_dimension_numbers<[1], [0], [0], [1], [0, 0, 1, 1], [], []>} : vector<4x4xf32>, vector<4x256xf32>, vector<4x256xf32> -> vector<4x256xf32>
    %342 = arith.addf %281, %341 : vector<4x256xf32>
    %cst_222 = arith.constant 0.000000e+00 : f32
    %343 = vector.broadcast %cst_222 : f32 to vector<4x256xf32>
    %c0_223 = arith.constant 0 : index
    %c111_224 = arith.constant 111 : index
    %344 = vector.load %arg23[%c0_223, %c111_224] : memref<4x512xf32, #tpu.memory_space<vmem>>, vector<4x256xf32>
    %345 = vector.broadcast %2 : vector<1x256xf32> to vector<4x256xf32>
    %346 = arith.mulf %344, %345 : vector<4x256xf32>
    %c8_225 = arith.constant 8 : index
    %c0_226 = arith.constant 0 : index
    %347 = vector.load %arg11[%c8_225, %c0_226] : memref<12x9xf32, #tpu.memory_space<vmem>>, vector<4x1xf32>
    %348 = vector.broadcast %347 : vector<4x1xf32> to vector<4x256xf32>
    %349 = arith.mulf %346, %348 : vector<4x256xf32>
    %350 = arith.addf %343, %349 : vector<4x256xf32>
    %c0_227 = arith.constant 0 : index
    %c112_228 = arith.constant 112 : index
    %351 = vector.load %arg23[%c0_227, %c112_228] : memref<4x512xf32, #tpu.memory_space<vmem>>, vector<4x256xf32>
    %c8_229 = arith.constant 8 : index
    %c1_230 = arith.constant 1 : index
    %352 = vector.load %arg11[%c8_229, %c1_230] : memref<12x9xf32, #tpu.memory_space<vmem>>, vector<4x1xf32>
    %353 = vector.broadcast %352 : vector<4x1xf32> to vector<4x256xf32>
    %354 = arith.mulf %351, %353 : vector<4x256xf32>
    %355 = arith.addf %350, %354 : vector<4x256xf32>
    %c0_231 = arith.constant 0 : index
    %c113_232 = arith.constant 113 : index
    %356 = vector.load %arg23[%c0_231, %c113_232] : memref<4x512xf32, #tpu.memory_space<vmem>>, vector<4x256xf32>
    %357 = vector.broadcast %3 : vector<1x256xf32> to vector<4x256xf32>
    %358 = arith.mulf %356, %357 : vector<4x256xf32>
    %c8_233 = arith.constant 8 : index
    %c2_234 = arith.constant 2 : index
    %359 = vector.load %arg11[%c8_233, %c2_234] : memref<12x9xf32, #tpu.memory_space<vmem>>, vector<4x1xf32>
    %360 = vector.broadcast %359 : vector<4x1xf32> to vector<4x256xf32>
    %361 = arith.mulf %358, %360 : vector<4x256xf32>
    %362 = arith.addf %355, %361 : vector<4x256xf32>
    %c0_235 = arith.constant 0 : index
    %c127_236 = arith.constant 127 : index
    %363 = vector.load %arg23[%c0_235, %c127_236] : memref<4x512xf32, #tpu.memory_space<vmem>>, vector<4x256xf32>
    %364 = vector.broadcast %2 : vector<1x256xf32> to vector<4x256xf32>
    %365 = arith.mulf %363, %364 : vector<4x256xf32>
    %c8_237 = arith.constant 8 : index
    %c3_238 = arith.constant 3 : index
    %366 = vector.load %arg11[%c8_237, %c3_238] : memref<12x9xf32, #tpu.memory_space<vmem>>, vector<4x1xf32>
    %367 = vector.broadcast %366 : vector<4x1xf32> to vector<4x256xf32>
    %368 = arith.mulf %365, %367 : vector<4x256xf32>
    %369 = arith.addf %362, %368 : vector<4x256xf32>
    %c0_239 = arith.constant 0 : index
    %c128_240 = arith.constant 128 : index
    %370 = vector.load %arg23[%c0_239, %c128_240] : memref<4x512xf32, #tpu.memory_space<vmem>>, vector<4x256xf32>
    %c8_241 = arith.constant 8 : index
    %c4_242 = arith.constant 4 : index
    %371 = vector.load %arg11[%c8_241, %c4_242] : memref<12x9xf32, #tpu.memory_space<vmem>>, vector<4x1xf32>
    %372 = vector.broadcast %371 : vector<4x1xf32> to vector<4x256xf32>
    %373 = arith.mulf %370, %372 : vector<4x256xf32>
    %374 = arith.addf %369, %373 : vector<4x256xf32>
    %c0_243 = arith.constant 0 : index
    %c129_244 = arith.constant 129 : index
    %375 = vector.load %arg23[%c0_243, %c129_244] : memref<4x512xf32, #tpu.memory_space<vmem>>, vector<4x256xf32>
    %376 = vector.broadcast %3 : vector<1x256xf32> to vector<4x256xf32>
    %377 = arith.mulf %375, %376 : vector<4x256xf32>
    %c8_245 = arith.constant 8 : index
    %c5_246 = arith.constant 5 : index
    %378 = vector.load %arg11[%c8_245, %c5_246] : memref<12x9xf32, #tpu.memory_space<vmem>>, vector<4x1xf32>
    %379 = vector.broadcast %378 : vector<4x1xf32> to vector<4x256xf32>
    %380 = arith.mulf %377, %379 : vector<4x256xf32>
    %381 = arith.addf %374, %380 : vector<4x256xf32>
    %c0_247 = arith.constant 0 : index
    %c143_248 = arith.constant 143 : index
    %382 = vector.load %arg23[%c0_247, %c143_248] : memref<4x512xf32, #tpu.memory_space<vmem>>, vector<4x256xf32>
    %383 = vector.broadcast %2 : vector<1x256xf32> to vector<4x256xf32>
    %384 = arith.mulf %382, %383 : vector<4x256xf32>
    %c8_249 = arith.constant 8 : index
    %c6_250 = arith.constant 6 : index
    %385 = vector.load %arg11[%c8_249, %c6_250] : memref<12x9xf32, #tpu.memory_space<vmem>>, vector<4x1xf32>
    %386 = vector.broadcast %385 : vector<4x1xf32> to vector<4x256xf32>
    %387 = arith.mulf %384, %386 : vector<4x256xf32>
    %388 = arith.addf %381, %387 : vector<4x256xf32>
    %c0_251 = arith.constant 0 : index
    %c144_252 = arith.constant 144 : index
    %389 = vector.load %arg23[%c0_251, %c144_252] : memref<4x512xf32, #tpu.memory_space<vmem>>, vector<4x256xf32>
    %c8_253 = arith.constant 8 : index
    %c7_254 = arith.constant 7 : index
    %390 = vector.load %arg11[%c8_253, %c7_254] : memref<12x9xf32, #tpu.memory_space<vmem>>, vector<4x1xf32>
    %391 = vector.broadcast %390 : vector<4x1xf32> to vector<4x256xf32>
    %392 = arith.mulf %389, %391 : vector<4x256xf32>
    %393 = arith.addf %388, %392 : vector<4x256xf32>
    %c0_255 = arith.constant 0 : index
    %c145_256 = arith.constant 145 : index
    %394 = vector.load %arg23[%c0_255, %c145_256] : memref<4x512xf32, #tpu.memory_space<vmem>>, vector<4x256xf32>
    %395 = vector.broadcast %3 : vector<1x256xf32> to vector<4x256xf32>
    %396 = arith.mulf %394, %395 : vector<4x256xf32>
    %c8_257 = arith.constant 8 : index
    %c8_258 = arith.constant 8 : index
    %397 = vector.load %arg11[%c8_257, %c8_258] : memref<12x9xf32, #tpu.memory_space<vmem>>, vector<4x1xf32>
    %398 = vector.broadcast %397 : vector<4x1xf32> to vector<4x256xf32>
    %399 = arith.mulf %396, %398 : vector<4x256xf32>
    %400 = arith.addf %393, %399 : vector<4x256xf32>
    %c0_259 = arith.constant 0 : index
    %c8_260 = arith.constant 8 : index
    %401 = vector.load %arg12[%c0_259, %c8_260] : memref<4x12xf32, #tpu.memory_space<vmem>>, vector<4x4xf32>
    %cst_261 = arith.constant dense<0.000000e+00> : vector<4x256xf32>
    %402 = tpu.matmul %401, %400, %cst_261 {dimension_numbers = #tpu.dot_dimension_numbers<[1], [0], [0], [1], [0, 0, 1, 1], [], []>} : vector<4x4xf32>, vector<4x256xf32>, vector<4x256xf32> -> vector<4x256xf32>
    %403 = arith.addf %342, %402 : vector<4x256xf32>
    %c0_262 = arith.constant 0 : index
    %c0_263 = arith.constant 0 : index
    %404 = vector.load %arg13[%c0_262, %c0_263] : memref<4x1xf32, #tpu.memory_space<vmem>>, vector<4x1xf32>
    %405 = vector.broadcast %404 : vector<4x1xf32> to vector<4x256xf32>
    %406 = arith.addf %403, %405 : vector<4x256xf32>
    %cst_264 = arith.constant 0.000000e+00 : f32
    %407 = vector.broadcast %cst_264 : f32 to vector<4x256xf32>
    %408 = arith.cmpf oge, %406, %407 : vector<4x256xf32>
    %cst_265 = arith.constant 2.000000e-01 : f32
    %409 = vector.broadcast %cst_265 : f32 to vector<4x256xf32>
    %410 = arith.mulf %409, %406 : vector<4x256xf32>
    %411 = arith.select %408, %406, %410 : vector<4x256xi1>, vector<4x256xf32>
    %cst_266 = arith.constant 0.000000e+00 : f32
    %412 = vector.broadcast %cst_266 : f32 to vector<4x128xf32>
    %c0_267 = arith.constant 0 : index
    %c0_268 = arith.constant 0 : index
    %413 = vector.load %arg24[%c0_267, %c0_268] : memref<4x512xf32, #tpu.memory_space<vmem>>, vector<4x128xf32>
    tpu.vector_store %arg24[%c0_267, %c0_268], %412 {strides = array<i32>} : memref<4x512xf32, #tpu.memory_space<vmem>>, vector<4x128xf32>,
    %c0_269 = arith.constant 0 : index
    %c384_270 = arith.constant 384 : index
    %414 = vector.load %arg24[%c0_269, %c384_270] : memref<4x512xf32, #tpu.memory_space<vmem>>, vector<4x128xf32>
    tpu.vector_store %arg24[%c0_269, %c384_270], %412 {strides = array<i32>} : memref<4x512xf32, #tpu.memory_space<vmem>>, vector<4x128xf32>,
    %c0_271 = arith.constant 0 : index
    %c128_272 = arith.constant 128 : index
    %415 = vector.load %arg24[%c0_271, %c128_272] : memref<4x512xf32, #tpu.memory_space<vmem>>, vector<4x256xf32>
    tpu.vector_store %arg24[%c0_271, %c128_272], %411 {strides = array<i32>} : memref<4x512xf32, #tpu.memory_space<vmem>>, vector<4x256xf32>,
    %cst_273 = arith.constant 0.000000e+00 : f32
    %416 = vector.broadcast %cst_273 : f32 to vector<4x256xf32>
    %cst_274 = arith.constant 0.000000e+00 : f32
    %417 = vector.broadcast %cst_274 : f32 to vector<4x256xf32>
    %c0_275 = arith.constant 0 : index
    %c111_276 = arith.constant 111 : index
    %418 = vector.load %arg21[%c0_275, %c111_276] : memref<4x512xf32, #tpu.memory_space<vmem>>, vector<4x256xf32>
    %419 = vector.broadcast %2 : vector<1x256xf32> to vector<4x256xf32>
    %420 = arith.mulf %418, %419 : vector<4x256xf32>
    %c0_277 = arith.constant 0 : index
    %c0_278 = arith.constant 0 : index
    %421 = vector.load %arg14[%c0_277, %c0_278] : memref<16x9xf32, #tpu.memory_space<vmem>>, vector<4x1xf32>
    %422 = vector.broadcast %421 : vector<4x1xf32> to vector<4x256xf32>
    %423 = arith.mulf %420, %422 : vector<4x256xf32>
    %424 = arith.addf %417, %423 : vector<4x256xf32>
    %c0_279 = arith.constant 0 : index
    %c112_280 = arith.constant 112 : index
    %425 = vector.load %arg21[%c0_279, %c112_280] : memref<4x512xf32, #tpu.memory_space<vmem>>, vector<4x256xf32>
    %c0_281 = arith.constant 0 : index
    %c1_282 = arith.constant 1 : index
    %426 = vector.load %arg14[%c0_281, %c1_282] : memref<16x9xf32, #tpu.memory_space<vmem>>, vector<4x1xf32>
    %427 = vector.broadcast %426 : vector<4x1xf32> to vector<4x256xf32>
    %428 = arith.mulf %425, %427 : vector<4x256xf32>
    %429 = arith.addf %424, %428 : vector<4x256xf32>
    %c0_283 = arith.constant 0 : index
    %c113_284 = arith.constant 113 : index
    %430 = vector.load %arg21[%c0_283, %c113_284] : memref<4x512xf32, #tpu.memory_space<vmem>>, vector<4x256xf32>
    %431 = vector.broadcast %3 : vector<1x256xf32> to vector<4x256xf32>
    %432 = arith.mulf %430, %431 : vector<4x256xf32>
    %c0_285 = arith.constant 0 : index
    %c2_286 = arith.constant 2 : index
    %433 = vector.load %arg14[%c0_285, %c2_286] : memref<16x9xf32, #tpu.memory_space<vmem>>, vector<4x1xf32>
    %434 = vector.broadcast %433 : vector<4x1xf32> to vector<4x256xf32>
    %435 = arith.mulf %432, %434 : vector<4x256xf32>
    %436 = arith.addf %429, %435 : vector<4x256xf32>
    %c0_287 = arith.constant 0 : index
    %c127_288 = arith.constant 127 : index
    %437 = vector.load %arg21[%c0_287, %c127_288] : memref<4x512xf32, #tpu.memory_space<vmem>>, vector<4x256xf32>
    %438 = vector.broadcast %2 : vector<1x256xf32> to vector<4x256xf32>
    %439 = arith.mulf %437, %438 : vector<4x256xf32>
    %c0_289 = arith.constant 0 : index
    %c3_290 = arith.constant 3 : index
    %440 = vector.load %arg14[%c0_289, %c3_290] : memref<16x9xf32, #tpu.memory_space<vmem>>, vector<4x1xf32>
    %441 = vector.broadcast %440 : vector<4x1xf32> to vector<4x256xf32>
    %442 = arith.mulf %439, %441 : vector<4x256xf32>
    %443 = arith.addf %436, %442 : vector<4x256xf32>
    %c0_291 = arith.constant 0 : index
    %c128_292 = arith.constant 128 : index
    %444 = vector.load %arg21[%c0_291, %c128_292] : memref<4x512xf32, #tpu.memory_space<vmem>>, vector<4x256xf32>
    %c0_293 = arith.constant 0 : index
    %c4_294 = arith.constant 4 : index
    %445 = vector.load %arg14[%c0_293, %c4_294] : memref<16x9xf32, #tpu.memory_space<vmem>>, vector<4x1xf32>
    %446 = vector.broadcast %445 : vector<4x1xf32> to vector<4x256xf32>
    %447 = arith.mulf %444, %446 : vector<4x256xf32>
    %448 = arith.addf %443, %447 : vector<4x256xf32>
    %c0_295 = arith.constant 0 : index
    %c129_296 = arith.constant 129 : index
    %449 = vector.load %arg21[%c0_295, %c129_296] : memref<4x512xf32, #tpu.memory_space<vmem>>, vector<4x256xf32>
    %450 = vector.broadcast %3 : vector<1x256xf32> to vector<4x256xf32>
    %451 = arith.mulf %449, %450 : vector<4x256xf32>
    %c0_297 = arith.constant 0 : index
    %c5_298 = arith.constant 5 : index
    %452 = vector.load %arg14[%c0_297, %c5_298] : memref<16x9xf32, #tpu.memory_space<vmem>>, vector<4x1xf32>
    %453 = vector.broadcast %452 : vector<4x1xf32> to vector<4x256xf32>
    %454 = arith.mulf %451, %453 : vector<4x256xf32>
    %455 = arith.addf %448, %454 : vector<4x256xf32>
    %c0_299 = arith.constant 0 : index
    %c143_300 = arith.constant 143 : index
    %456 = vector.load %arg21[%c0_299, %c143_300] : memref<4x512xf32, #tpu.memory_space<vmem>>, vector<4x256xf32>
    %457 = vector.broadcast %2 : vector<1x256xf32> to vector<4x256xf32>
    %458 = arith.mulf %456, %457 : vector<4x256xf32>
    %c0_301 = arith.constant 0 : index
    %c6_302 = arith.constant 6 : index
    %459 = vector.load %arg14[%c0_301, %c6_302] : memref<16x9xf32, #tpu.memory_space<vmem>>, vector<4x1xf32>
    %460 = vector.broadcast %459 : vector<4x1xf32> to vector<4x256xf32>
    %461 = arith.mulf %458, %460 : vector<4x256xf32>
    %462 = arith.addf %455, %461 : vector<4x256xf32>
    %c0_303 = arith.constant 0 : index
    %c144_304 = arith.constant 144 : index
    %463 = vector.load %arg21[%c0_303, %c144_304] : memref<4x512xf32, #tpu.memory_space<vmem>>, vector<4x256xf32>
    %c0_305 = arith.constant 0 : index
    %c7_306 = arith.constant 7 : index
    %464 = vector.load %arg14[%c0_305, %c7_306] : memref<16x9xf32, #tpu.memory_space<vmem>>, vector<4x1xf32>
    %465 = vector.broadcast %464 : vector<4x1xf32> to vector<4x256xf32>
    %466 = arith.mulf %463, %465 : vector<4x256xf32>
    %467 = arith.addf %462, %466 : vector<4x256xf32>
    %c0_307 = arith.constant 0 : index
    %c145_308 = arith.constant 145 : index
    %468 = vector.load %arg21[%c0_307, %c145_308] : memref<4x512xf32, #tpu.memory_space<vmem>>, vector<4x256xf32>
    %469 = vector.broadcast %3 : vector<1x256xf32> to vector<4x256xf32>
    %470 = arith.mulf %468, %469 : vector<4x256xf32>
    %c0_309 = arith.constant 0 : index
    %c8_310 = arith.constant 8 : index
    %471 = vector.load %arg14[%c0_309, %c8_310] : memref<16x9xf32, #tpu.memory_space<vmem>>, vector<4x1xf32>
    %472 = vector.broadcast %471 : vector<4x1xf32> to vector<4x256xf32>
    %473 = arith.mulf %470, %472 : vector<4x256xf32>
    %474 = arith.addf %467, %473 : vector<4x256xf32>
    %c0_311 = arith.constant 0 : index
    %c0_312 = arith.constant 0 : index
    %475 = vector.load %arg15[%c0_311, %c0_312] : memref<4x16xf32, #tpu.memory_space<vmem>>, vector<4x4xf32>
    %cst_313 = arith.constant dense<0.000000e+00> : vector<4x256xf32>
    %476 = tpu.matmul %475, %474, %cst_313 {dimension_numbers = #tpu.dot_dimension_numbers<[1], [0], [0], [1], [0, 0, 1, 1], [], []>} : vector<4x4xf32>, vector<4x256xf32>, vector<4x256xf32> -> vector<4x256xf32>
    %477 = arith.addf %416, %476 : vector<4x256xf32>
    %cst_314 = arith.constant 0.000000e+00 : f32
    %478 = vector.broadcast %cst_314 : f32 to vector<4x256xf32>
    %c0_315 = arith.constant 0 : index
    %c111_316 = arith.constant 111 : index
    %479 = vector.load %arg22[%c0_315, %c111_316] : memref<4x512xf32, #tpu.memory_space<vmem>>, vector<4x256xf32>
    %480 = vector.broadcast %2 : vector<1x256xf32> to vector<4x256xf32>
    %481 = arith.mulf %479, %480 : vector<4x256xf32>
    %c4_317 = arith.constant 4 : index
    %c0_318 = arith.constant 0 : index
    %482 = vector.load %arg14[%c4_317, %c0_318] : memref<16x9xf32, #tpu.memory_space<vmem>>, vector<4x1xf32>
    %483 = vector.broadcast %482 : vector<4x1xf32> to vector<4x256xf32>
    %484 = arith.mulf %481, %483 : vector<4x256xf32>
    %485 = arith.addf %478, %484 : vector<4x256xf32>
    %c0_319 = arith.constant 0 : index
    %c112_320 = arith.constant 112 : index
    %486 = vector.load %arg22[%c0_319, %c112_320] : memref<4x512xf32, #tpu.memory_space<vmem>>, vector<4x256xf32>
    %c4_321 = arith.constant 4 : index
    %c1_322 = arith.constant 1 : index
    %487 = vector.load %arg14[%c4_321, %c1_322] : memref<16x9xf32, #tpu.memory_space<vmem>>, vector<4x1xf32>
    %488 = vector.broadcast %487 : vector<4x1xf32> to vector<4x256xf32>
    %489 = arith.mulf %486, %488 : vector<4x256xf32>
    %490 = arith.addf %485, %489 : vector<4x256xf32>
    %c0_323 = arith.constant 0 : index
    %c113_324 = arith.constant 113 : index
    %491 = vector.load %arg22[%c0_323, %c113_324] : memref<4x512xf32, #tpu.memory_space<vmem>>, vector<4x256xf32>
    %492 = vector.broadcast %3 : vector<1x256xf32> to vector<4x256xf32>
    %493 = arith.mulf %491, %492 : vector<4x256xf32>
    %c4_325 = arith.constant 4 : index
    %c2_326 = arith.constant 2 : index
    %494 = vector.load %arg14[%c4_325, %c2_326] : memref<16x9xf32, #tpu.memory_space<vmem>>, vector<4x1xf32>
    %495 = vector.broadcast %494 : vector<4x1xf32> to vector<4x256xf32>
    %496 = arith.mulf %493, %495 : vector<4x256xf32>
    %497 = arith.addf %490, %496 : vector<4x256xf32>
    %c0_327 = arith.constant 0 : index
    %c127_328 = arith.constant 127 : index
    %498 = vector.load %arg22[%c0_327, %c127_328] : memref<4x512xf32, #tpu.memory_space<vmem>>, vector<4x256xf32>
    %499 = vector.broadcast %2 : vector<1x256xf32> to vector<4x256xf32>
    %500 = arith.mulf %498, %499 : vector<4x256xf32>
    %c4_329 = arith.constant 4 : index
    %c3_330 = arith.constant 3 : index
    %501 = vector.load %arg14[%c4_329, %c3_330] : memref<16x9xf32, #tpu.memory_space<vmem>>, vector<4x1xf32>
    %502 = vector.broadcast %501 : vector<4x1xf32> to vector<4x256xf32>
    %503 = arith.mulf %500, %502 : vector<4x256xf32>
    %504 = arith.addf %497, %503 : vector<4x256xf32>
    %c0_331 = arith.constant 0 : index
    %c128_332 = arith.constant 128 : index
    %505 = vector.load %arg22[%c0_331, %c128_332] : memref<4x512xf32, #tpu.memory_space<vmem>>, vector<4x256xf32>
    %c4_333 = arith.constant 4 : index
    %c4_334 = arith.constant 4 : index
    %506 = vector.load %arg14[%c4_333, %c4_334] : memref<16x9xf32, #tpu.memory_space<vmem>>, vector<4x1xf32>
    %507 = vector.broadcast %506 : vector<4x1xf32> to vector<4x256xf32>
    %508 = arith.mulf %505, %507 : vector<4x256xf32>
    %509 = arith.addf %504, %508 : vector<4x256xf32>
    %c0_335 = arith.constant 0 : index
    %c129_336 = arith.constant 129 : index
    %510 = vector.load %arg22[%c0_335, %c129_336] : memref<4x512xf32, #tpu.memory_space<vmem>>, vector<4x256xf32>
    %511 = vector.broadcast %3 : vector<1x256xf32> to vector<4x256xf32>
    %512 = arith.mulf %510, %511 : vector<4x256xf32>
    %c4_337 = arith.constant 4 : index
    %c5_338 = arith.constant 5 : index
    %513 = vector.load %arg14[%c4_337, %c5_338] : memref<16x9xf32, #tpu.memory_space<vmem>>, vector<4x1xf32>
    %514 = vector.broadcast %513 : vector<4x1xf32> to vector<4x256xf32>
    %515 = arith.mulf %512, %514 : vector<4x256xf32>
    %516 = arith.addf %509, %515 : vector<4x256xf32>
    %c0_339 = arith.constant 0 : index
    %c143_340 = arith.constant 143 : index
    %517 = vector.load %arg22[%c0_339, %c143_340] : memref<4x512xf32, #tpu.memory_space<vmem>>, vector<4x256xf32>
    %518 = vector.broadcast %2 : vector<1x256xf32> to vector<4x256xf32>
    %519 = arith.mulf %517, %518 : vector<4x256xf32>
    %c4_341 = arith.constant 4 : index
    %c6_342 = arith.constant 6 : index
    %520 = vector.load %arg14[%c4_341, %c6_342] : memref<16x9xf32, #tpu.memory_space<vmem>>, vector<4x1xf32>
    %521 = vector.broadcast %520 : vector<4x1xf32> to vector<4x256xf32>
    %522 = arith.mulf %519, %521 : vector<4x256xf32>
    %523 = arith.addf %516, %522 : vector<4x256xf32>
    %c0_343 = arith.constant 0 : index
    %c144_344 = arith.constant 144 : index
    %524 = vector.load %arg22[%c0_343, %c144_344] : memref<4x512xf32, #tpu.memory_space<vmem>>, vector<4x256xf32>
    %c4_345 = arith.constant 4 : index
    %c7_346 = arith.constant 7 : index
    %525 = vector.load %arg14[%c4_345, %c7_346] : memref<16x9xf32, #tpu.memory_space<vmem>>, vector<4x1xf32>
    %526 = vector.broadcast %525 : vector<4x1xf32> to vector<4x256xf32>
    %527 = arith.mulf %524, %526 : vector<4x256xf32>
    %528 = arith.addf %523, %527 : vector<4x256xf32>
    %c0_347 = arith.constant 0 : index
    %c145_348 = arith.constant 145 : index
    %529 = vector.load %arg22[%c0_347, %c145_348] : memref<4x512xf32, #tpu.memory_space<vmem>>, vector<4x256xf32>
    %530 = vector.broadcast %3 : vector<1x256xf32> to vector<4x256xf32>
    %531 = arith.mulf %529, %530 : vector<4x256xf32>
    %c4_349 = arith.constant 4 : index
    %c8_350 = arith.constant 8 : index
    %532 = vector.load %arg14[%c4_349, %c8_350] : memref<16x9xf32, #tpu.memory_space<vmem>>, vector<4x1xf32>
    %533 = vector.broadcast %532 : vector<4x1xf32> to vector<4x256xf32>
    %534 = arith.mulf %531, %533 : vector<4x256xf32>
    %535 = arith.addf %528, %534 : vector<4x256xf32>
    %c0_351 = arith.constant 0 : index
    %c4_352 = arith.constant 4 : index
    %536 = vector.load %arg15[%c0_351, %c4_352] : memref<4x16xf32, #tpu.memory_space<vmem>>, vector<4x4xf32>
    %cst_353 = arith.constant dense<0.000000e+00> : vector<4x256xf32>
    %537 = tpu.matmul %536, %535, %cst_353 {dimension_numbers = #tpu.dot_dimension_numbers<[1], [0], [0], [1], [0, 0, 1, 1], [], []>} : vector<4x4xf32>, vector<4x256xf32>, vector<4x256xf32> -> vector<4x256xf32>
    %538 = arith.addf %477, %537 : vector<4x256xf32>
    %cst_354 = arith.constant 0.000000e+00 : f32
    %539 = vector.broadcast %cst_354 : f32 to vector<4x256xf32>
    %c0_355 = arith.constant 0 : index
    %c111_356 = arith.constant 111 : index
    %540 = vector.load %arg23[%c0_355, %c111_356] : memref<4x512xf32, #tpu.memory_space<vmem>>, vector<4x256xf32>
    %541 = vector.broadcast %2 : vector<1x256xf32> to vector<4x256xf32>
    %542 = arith.mulf %540, %541 : vector<4x256xf32>
    %c8_357 = arith.constant 8 : index
    %c0_358 = arith.constant 0 : index
    %543 = vector.load %arg14[%c8_357, %c0_358] : memref<16x9xf32, #tpu.memory_space<vmem>>, vector<4x1xf32>
    %544 = vector.broadcast %543 : vector<4x1xf32> to vector<4x256xf32>
    %545 = arith.mulf %542, %544 : vector<4x256xf32>
    %546 = arith.addf %539, %545 : vector<4x256xf32>
    %c0_359 = arith.constant 0 : index
    %c112_360 = arith.constant 112 : index
    %547 = vector.load %arg23[%c0_359, %c112_360] : memref<4x512xf32, #tpu.memory_space<vmem>>, vector<4x256xf32>
    %c8_361 = arith.constant 8 : index
    %c1_362 = arith.constant 1 : index
    %548 = vector.load %arg14[%c8_361, %c1_362] : memref<16x9xf32, #tpu.memory_space<vmem>>, vector<4x1xf32>
    %549 = vector.broadcast %548 : vector<4x1xf32> to vector<4x256xf32>
    %550 = arith.mulf %547, %549 : vector<4x256xf32>
    %551 = arith.addf %546, %550 : vector<4x256xf32>
    %c0_363 = arith.constant 0 : index
    %c113_364 = arith.constant 113 : index
    %552 = vector.load %arg23[%c0_363, %c113_364] : memref<4x512xf32, #tpu.memory_space<vmem>>, vector<4x256xf32>
    %553 = vector.broadcast %3 : vector<1x256xf32> to vector<4x256xf32>
    %554 = arith.mulf %552, %553 : vector<4x256xf32>
    %c8_365 = arith.constant 8 : index
    %c2_366 = arith.constant 2 : index
    %555 = vector.load %arg14[%c8_365, %c2_366] : memref<16x9xf32, #tpu.memory_space<vmem>>, vector<4x1xf32>
    %556 = vector.broadcast %555 : vector<4x1xf32> to vector<4x256xf32>
    %557 = arith.mulf %554, %556 : vector<4x256xf32>
    %558 = arith.addf %551, %557 : vector<4x256xf32>
    %c0_367 = arith.constant 0 : index
    %c127_368 = arith.constant 127 : index
    %559 = vector.load %arg23[%c0_367, %c127_368] : memref<4x512xf32, #tpu.memory_space<vmem>>, vector<4x256xf32>
    %560 = vector.broadcast %2 : vector<1x256xf32> to vector<4x256xf32>
    %561 = arith.mulf %559, %560 : vector<4x256xf32>
    %c8_369 = arith.constant 8 : index
    %c3_370 = arith.constant 3 : index
    %562 = vector.load %arg14[%c8_369, %c3_370] : memref<16x9xf32, #tpu.memory_space<vmem>>, vector<4x1xf32>
    %563 = vector.broadcast %562 : vector<4x1xf32> to vector<4x256xf32>
    %564 = arith.mulf %561, %563 : vector<4x256xf32>
    %565 = arith.addf %558, %564 : vector<4x256xf32>
    %c0_371 = arith.constant 0 : index
    %c128_372 = arith.constant 128 : index
    %566 = vector.load %arg23[%c0_371, %c128_372] : memref<4x512xf32, #tpu.memory_space<vmem>>, vector<4x256xf32>
    %c8_373 = arith.constant 8 : index
    %c4_374 = arith.constant 4 : index
    %567 = vector.load %arg14[%c8_373, %c4_374] : memref<16x9xf32, #tpu.memory_space<vmem>>, vector<4x1xf32>
    %568 = vector.broadcast %567 : vector<4x1xf32> to vector<4x256xf32>
    %569 = arith.mulf %566, %568 : vector<4x256xf32>
    %570 = arith.addf %565, %569 : vector<4x256xf32>
    %c0_375 = arith.constant 0 : index
    %c129_376 = arith.constant 129 : index
    %571 = vector.load %arg23[%c0_375, %c129_376] : memref<4x512xf32, #tpu.memory_space<vmem>>, vector<4x256xf32>
    %572 = vector.broadcast %3 : vector<1x256xf32> to vector<4x256xf32>
    %573 = arith.mulf %571, %572 : vector<4x256xf32>
    %c8_377 = arith.constant 8 : index
    %c5_378 = arith.constant 5 : index
    %574 = vector.load %arg14[%c8_377, %c5_378] : memref<16x9xf32, #tpu.memory_space<vmem>>, vector<4x1xf32>
    %575 = vector.broadcast %574 : vector<4x1xf32> to vector<4x256xf32>
    %576 = arith.mulf %573, %575 : vector<4x256xf32>
    %577 = arith.addf %570, %576 : vector<4x256xf32>
    %c0_379 = arith.constant 0 : index
    %c143_380 = arith.constant 143 : index
    %578 = vector.load %arg23[%c0_379, %c143_380] : memref<4x512xf32, #tpu.memory_space<vmem>>, vector<4x256xf32>
    %579 = vector.broadcast %2 : vector<1x256xf32> to vector<4x256xf32>
    %580 = arith.mulf %578, %579 : vector<4x256xf32>
    %c8_381 = arith.constant 8 : index
    %c6_382 = arith.constant 6 : index
    %581 = vector.load %arg14[%c8_381, %c6_382] : memref<16x9xf32, #tpu.memory_space<vmem>>, vector<4x1xf32>
    %582 = vector.broadcast %581 : vector<4x1xf32> to vector<4x256xf32>
    %583 = arith.mulf %580, %582 : vector<4x256xf32>
    %584 = arith.addf %577, %583 : vector<4x256xf32>
    %c0_383 = arith.constant 0 : index
    %c144_384 = arith.constant 144 : index
    %585 = vector.load %arg23[%c0_383, %c144_384] : memref<4x512xf32, #tpu.memory_space<vmem>>, vector<4x256xf32>
    %c8_385 = arith.constant 8 : index
    %c7_386 = arith.constant 7 : index
    %586 = vector.load %arg14[%c8_385, %c7_386] : memref<16x9xf32, #tpu.memory_space<vmem>>, vector<4x1xf32>
    %587 = vector.broadcast %586 : vector<4x1xf32> to vector<4x256xf32>
    %588 = arith.mulf %585, %587 : vector<4x256xf32>
    %589 = arith.addf %584, %588 : vector<4x256xf32>
    %c0_387 = arith.constant 0 : index
    %c145_388 = arith.constant 145 : index
    %590 = vector.load %arg23[%c0_387, %c145_388] : memref<4x512xf32, #tpu.memory_space<vmem>>, vector<4x256xf32>
    %591 = vector.broadcast %3 : vector<1x256xf32> to vector<4x256xf32>
    %592 = arith.mulf %590, %591 : vector<4x256xf32>
    %c8_389 = arith.constant 8 : index
    %c8_390 = arith.constant 8 : index
    %593 = vector.load %arg14[%c8_389, %c8_390] : memref<16x9xf32, #tpu.memory_space<vmem>>, vector<4x1xf32>
    %594 = vector.broadcast %593 : vector<4x1xf32> to vector<4x256xf32>
    %595 = arith.mulf %592, %594 : vector<4x256xf32>
    %596 = arith.addf %589, %595 : vector<4x256xf32>
    %c0_391 = arith.constant 0 : index
    %c8_392 = arith.constant 8 : index
    %597 = vector.load %arg15[%c0_391, %c8_392] : memref<4x16xf32, #tpu.memory_space<vmem>>, vector<4x4xf32>
    %cst_393 = arith.constant dense<0.000000e+00> : vector<4x256xf32>
    %598 = tpu.matmul %597, %596, %cst_393 {dimension_numbers = #tpu.dot_dimension_numbers<[1], [0], [0], [1], [0, 0, 1, 1], [], []>} : vector<4x4xf32>, vector<4x256xf32>, vector<4x256xf32> -> vector<4x256xf32>
    %599 = arith.addf %538, %598 : vector<4x256xf32>
    %cst_394 = arith.constant 0.000000e+00 : f32
    %600 = vector.broadcast %cst_394 : f32 to vector<4x256xf32>
    %c0_395 = arith.constant 0 : index
    %c111_396 = arith.constant 111 : index
    %601 = vector.load %arg24[%c0_395, %c111_396] : memref<4x512xf32, #tpu.memory_space<vmem>>, vector<4x256xf32>
    %602 = vector.broadcast %2 : vector<1x256xf32> to vector<4x256xf32>
    %603 = arith.mulf %601, %602 : vector<4x256xf32>
    %c12 = arith.constant 12 : index
    %c0_397 = arith.constant 0 : index
    %604 = vector.load %arg14[%c12, %c0_397] : memref<16x9xf32, #tpu.memory_space<vmem>>, vector<4x1xf32>
    %605 = vector.broadcast %604 : vector<4x1xf32> to vector<4x256xf32>
    %606 = arith.mulf %603, %605 : vector<4x256xf32>
    %607 = arith.addf %600, %606 : vector<4x256xf32>
    %c0_398 = arith.constant 0 : index
    %c112_399 = arith.constant 112 : index
    %608 = vector.load %arg24[%c0_398, %c112_399] : memref<4x512xf32, #tpu.memory_space<vmem>>, vector<4x256xf32>
    %c12_400 = arith.constant 12 : index
    %c1_401 = arith.constant 1 : index
    %609 = vector.load %arg14[%c12_400, %c1_401] : memref<16x9xf32, #tpu.memory_space<vmem>>, vector<4x1xf32>
    %610 = vector.broadcast %609 : vector<4x1xf32> to vector<4x256xf32>
    %611 = arith.mulf %608, %610 : vector<4x256xf32>
    %612 = arith.addf %607, %611 : vector<4x256xf32>
    %c0_402 = arith.constant 0 : index
    %c113_403 = arith.constant 113 : index
    %613 = vector.load %arg24[%c0_402, %c113_403] : memref<4x512xf32, #tpu.memory_space<vmem>>, vector<4x256xf32>
    %614 = vector.broadcast %3 : vector<1x256xf32> to vector<4x256xf32>
    %615 = arith.mulf %613, %614 : vector<4x256xf32>
    %c12_404 = arith.constant 12 : index
    %c2_405 = arith.constant 2 : index
    %616 = vector.load %arg14[%c12_404, %c2_405] : memref<16x9xf32, #tpu.memory_space<vmem>>, vector<4x1xf32>
    %617 = vector.broadcast %616 : vector<4x1xf32> to vector<4x256xf32>
    %618 = arith.mulf %615, %617 : vector<4x256xf32>
    %619 = arith.addf %612, %618 : vector<4x256xf32>
    %c0_406 = arith.constant 0 : index
    %c127_407 = arith.constant 127 : index
    %620 = vector.load %arg24[%c0_406, %c127_407] : memref<4x512xf32, #tpu.memory_space<vmem>>, vector<4x256xf32>
    %621 = vector.broadcast %2 : vector<1x256xf32> to vector<4x256xf32>
    %622 = arith.mulf %620, %621 : vector<4x256xf32>
    %c12_408 = arith.constant 12 : index
    %c3_409 = arith.constant 3 : index
    %623 = vector.load %arg14[%c12_408, %c3_409] : memref<16x9xf32, #tpu.memory_space<vmem>>, vector<4x1xf32>
    %624 = vector.broadcast %623 : vector<4x1xf32> to vector<4x256xf32>
    %625 = arith.mulf %622, %624 : vector<4x256xf32>
    %626 = arith.addf %619, %625 : vector<4x256xf32>
    %c0_410 = arith.constant 0 : index
    %c128_411 = arith.constant 128 : index
    %627 = vector.load %arg24[%c0_410, %c128_411] : memref<4x512xf32, #tpu.memory_space<vmem>>, vector<4x256xf32>
    %c12_412 = arith.constant 12 : index
    %c4_413 = arith.constant 4 : index
    %628 = vector.load %arg14[%c12_412, %c4_413] : memref<16x9xf32, #tpu.memory_space<vmem>>, vector<4x1xf32>
    %629 = vector.broadcast %628 : vector<4x1xf32> to vector<4x256xf32>
    %630 = arith.mulf %627, %629 : vector<4x256xf32>
    %631 = arith.addf %626, %630 : vector<4x256xf32>
    %c0_414 = arith.constant 0 : index
    %c129_415 = arith.constant 129 : index
    %632 = vector.load %arg24[%c0_414, %c129_415] : memref<4x512xf32, #tpu.memory_space<vmem>>, vector<4x256xf32>
    %633 = vector.broadcast %3 : vector<1x256xf32> to vector<4x256xf32>
    %634 = arith.mulf %632, %633 : vector<4x256xf32>
    %c12_416 = arith.constant 12 : index
    %c5_417 = arith.constant 5 : index
    %635 = vector.load %arg14[%c12_416, %c5_417] : memref<16x9xf32, #tpu.memory_space<vmem>>, vector<4x1xf32>
    %636 = vector.broadcast %635 : vector<4x1xf32> to vector<4x256xf32>
    %637 = arith.mulf %634, %636 : vector<4x256xf32>
    %638 = arith.addf %631, %637 : vector<4x256xf32>
    %c0_418 = arith.constant 0 : index
    %c143_419 = arith.constant 143 : index
    %639 = vector.load %arg24[%c0_418, %c143_419] : memref<4x512xf32, #tpu.memory_space<vmem>>, vector<4x256xf32>
    %640 = vector.broadcast %2 : vector<1x256xf32> to vector<4x256xf32>
    %641 = arith.mulf %639, %640 : vector<4x256xf32>
    %c12_420 = arith.constant 12 : index
    %c6_421 = arith.constant 6 : index
    %642 = vector.load %arg14[%c12_420, %c6_421] : memref<16x9xf32, #tpu.memory_space<vmem>>, vector<4x1xf32>
    %643 = vector.broadcast %642 : vector<4x1xf32> to vector<4x256xf32>
    %644 = arith.mulf %641, %643 : vector<4x256xf32>
    %645 = arith.addf %638, %644 : vector<4x256xf32>
    %c0_422 = arith.constant 0 : index
    %c144_423 = arith.constant 144 : index
    %646 = vector.load %arg24[%c0_422, %c144_423] : memref<4x512xf32, #tpu.memory_space<vmem>>, vector<4x256xf32>
    %c12_424 = arith.constant 12 : index
    %c7_425 = arith.constant 7 : index
    %647 = vector.load %arg14[%c12_424, %c7_425] : memref<16x9xf32, #tpu.memory_space<vmem>>, vector<4x1xf32>
    %648 = vector.broadcast %647 : vector<4x1xf32> to vector<4x256xf32>
    %649 = arith.mulf %646, %648 : vector<4x256xf32>
    %650 = arith.addf %645, %649 : vector<4x256xf32>
    %c0_426 = arith.constant 0 : index
    %c145_427 = arith.constant 145 : index
    %651 = vector.load %arg24[%c0_426, %c145_427] : memref<4x512xf32, #tpu.memory_space<vmem>>, vector<4x256xf32>
    %652 = vector.broadcast %3 : vector<1x256xf32> to vector<4x256xf32>
    %653 = arith.mulf %651, %652 : vector<4x256xf32>
    %c12_428 = arith.constant 12 : index
    %c8_429 = arith.constant 8 : index
    %654 = vector.load %arg14[%c12_428, %c8_429] : memref<16x9xf32, #tpu.memory_space<vmem>>, vector<4x1xf32>
    %655 = vector.broadcast %654 : vector<4x1xf32> to vector<4x256xf32>
    %656 = arith.mulf %653, %655 : vector<4x256xf32>
    %657 = arith.addf %650, %656 : vector<4x256xf32>
    %c0_430 = arith.constant 0 : index
    %c12_431 = arith.constant 12 : index
    %658 = vector.load %arg15[%c0_430, %c12_431] : memref<4x16xf32, #tpu.memory_space<vmem>>, vector<4x4xf32>
    %cst_432 = arith.constant dense<0.000000e+00> : vector<4x256xf32>
    %659 = tpu.matmul %658, %657, %cst_432 {dimension_numbers = #tpu.dot_dimension_numbers<[1], [0], [0], [1], [0, 0, 1, 1], [], []>} : vector<4x4xf32>, vector<4x256xf32>, vector<4x256xf32> -> vector<4x256xf32>
    %660 = arith.addf %599, %659 : vector<4x256xf32>
    %c0_433 = arith.constant 0 : index
    %c0_434 = arith.constant 0 : index
    %661 = vector.load %arg16[%c0_433, %c0_434] : memref<4x1xf32, #tpu.memory_space<vmem>>, vector<4x1xf32>
    %662 = vector.broadcast %661 : vector<4x1xf32> to vector<4x256xf32>
    %663 = arith.addf %660, %662 : vector<4x256xf32>
    %cst_435 = arith.constant 0.000000e+00 : f32
    %664 = vector.broadcast %cst_435 : f32 to vector<4x256xf32>
    %665 = arith.cmpf oge, %663, %664 : vector<4x256xf32>
    %cst_436 = arith.constant 2.000000e-01 : f32
    %666 = vector.broadcast %cst_436 : f32 to vector<4x256xf32>
    %667 = arith.mulf %666, %663 : vector<4x256xf32>
    %668 = arith.select %665, %663, %667 : vector<4x256xi1>, vector<4x256xf32>
    %669 = arith.addf %668, %215 : vector<4x256xf32>
    %cst_437 = arith.constant 0.000000e+00 : f32
    %670 = vector.broadcast %cst_437 : f32 to vector<4x128xf32>
    %c0_438 = arith.constant 0 : index
    %c0_439 = arith.constant 0 : index
    %671 = vector.load %arg25[%c0_438, %c0_439] : memref<4x512xf32, #tpu.memory_space<vmem>>, vector<4x128xf32>
    tpu.vector_store %arg25[%c0_438, %c0_439], %670 {strides = array<i32>} : memref<4x512xf32, #tpu.memory_space<vmem>>, vector<4x128xf32>,
    %c0_440 = arith.constant 0 : index
    %c384_441 = arith.constant 384 : index
    %672 = vector.load %arg25[%c0_440, %c384_441] : memref<4x512xf32, #tpu.memory_space<vmem>>, vector<4x128xf32>
    tpu.vector_store %arg25[%c0_440, %c384_441], %670 {strides = array<i32>} : memref<4x512xf32, #tpu.memory_space<vmem>>, vector<4x128xf32>,
    %c0_442 = arith.constant 0 : index
    %c128_443 = arith.constant 128 : index
    %673 = vector.load %arg25[%c0_442, %c128_443] : memref<4x512xf32, #tpu.memory_space<vmem>>, vector<4x256xf32>
    tpu.vector_store %arg25[%c0_442, %c128_443], %669 {strides = array<i32>} : memref<4x512xf32, #tpu.memory_space<vmem>>, vector<4x256xf32>,
    %cst_444 = arith.constant 0.000000e+00 : f32
    %674 = vector.broadcast %cst_444 : f32 to vector<4x256xf32>
    %cst_445 = arith.constant 0.000000e+00 : f32
    %675 = vector.broadcast %cst_445 : f32 to vector<4x256xf32>
    %c0_446 = arith.constant 0 : index
    %c111_447 = arith.constant 111 : index
    %676 = vector.load %arg21[%c0_446, %c111_447] : memref<4x512xf32, #tpu.memory_space<vmem>>, vector<4x256xf32>
    %677 = vector.broadcast %2 : vector<1x256xf32> to vector<4x256xf32>
    %678 = arith.mulf %676, %677 : vector<4x256xf32>
    %c0_448 = arith.constant 0 : index
    %c0_449 = arith.constant 0 : index
    %679 = vector.load %arg17[%c0_448, %c0_449] : memref<20x9xf32, #tpu.memory_space<vmem>>, vector<4x1xf32>
    %680 = vector.broadcast %679 : vector<4x1xf32> to vector<4x256xf32>
    %681 = arith.mulf %678, %680 : vector<4x256xf32>
    %682 = arith.addf %675, %681 : vector<4x256xf32>
    %c0_450 = arith.constant 0 : index
    %c112_451 = arith.constant 112 : index
    %683 = vector.load %arg21[%c0_450, %c112_451] : memref<4x512xf32, #tpu.memory_space<vmem>>, vector<4x256xf32>
    %c0_452 = arith.constant 0 : index
    %c1_453 = arith.constant 1 : index
    %684 = vector.load %arg17[%c0_452, %c1_453] : memref<20x9xf32, #tpu.memory_space<vmem>>, vector<4x1xf32>
    %685 = vector.broadcast %684 : vector<4x1xf32> to vector<4x256xf32>
    %686 = arith.mulf %683, %685 : vector<4x256xf32>
    %687 = arith.addf %682, %686 : vector<4x256xf32>
    %c0_454 = arith.constant 0 : index
    %c113_455 = arith.constant 113 : index
    %688 = vector.load %arg21[%c0_454, %c113_455] : memref<4x512xf32, #tpu.memory_space<vmem>>, vector<4x256xf32>
    %689 = vector.broadcast %3 : vector<1x256xf32> to vector<4x256xf32>
    %690 = arith.mulf %688, %689 : vector<4x256xf32>
    %c0_456 = arith.constant 0 : index
    %c2_457 = arith.constant 2 : index
    %691 = vector.load %arg17[%c0_456, %c2_457] : memref<20x9xf32, #tpu.memory_space<vmem>>, vector<4x1xf32>
    %692 = vector.broadcast %691 : vector<4x1xf32> to vector<4x256xf32>
    %693 = arith.mulf %690, %692 : vector<4x256xf32>
    %694 = arith.addf %687, %693 : vector<4x256xf32>
    %c0_458 = arith.constant 0 : index
    %c127_459 = arith.constant 127 : index
    %695 = vector.load %arg21[%c0_458, %c127_459] : memref<4x512xf32, #tpu.memory_space<vmem>>, vector<4x256xf32>
    %696 = vector.broadcast %2 : vector<1x256xf32> to vector<4x256xf32>
    %697 = arith.mulf %695, %696 : vector<4x256xf32>
    %c0_460 = arith.constant 0 : index
    %c3_461 = arith.constant 3 : index
    %698 = vector.load %arg17[%c0_460, %c3_461] : memref<20x9xf32, #tpu.memory_space<vmem>>, vector<4x1xf32>
    %699 = vector.broadcast %698 : vector<4x1xf32> to vector<4x256xf32>
    %700 = arith.mulf %697, %699 : vector<4x256xf32>
    %701 = arith.addf %694, %700 : vector<4x256xf32>
    %c0_462 = arith.constant 0 : index
    %c128_463 = arith.constant 128 : index
    %702 = vector.load %arg21[%c0_462, %c128_463] : memref<4x512xf32, #tpu.memory_space<vmem>>, vector<4x256xf32>
    %c0_464 = arith.constant 0 : index
    %c4_465 = arith.constant 4 : index
    %703 = vector.load %arg17[%c0_464, %c4_465] : memref<20x9xf32, #tpu.memory_space<vmem>>, vector<4x1xf32>
    %704 = vector.broadcast %703 : vector<4x1xf32> to vector<4x256xf32>
    %705 = arith.mulf %702, %704 : vector<4x256xf32>
    %706 = arith.addf %701, %705 : vector<4x256xf32>
    %c0_466 = arith.constant 0 : index
    %c129_467 = arith.constant 129 : index
    %707 = vector.load %arg21[%c0_466, %c129_467] : memref<4x512xf32, #tpu.memory_space<vmem>>, vector<4x256xf32>
    %708 = vector.broadcast %3 : vector<1x256xf32> to vector<4x256xf32>
    %709 = arith.mulf %707, %708 : vector<4x256xf32>
    %c0_468 = arith.constant 0 : index
    %c5_469 = arith.constant 5 : index
    %710 = vector.load %arg17[%c0_468, %c5_469] : memref<20x9xf32, #tpu.memory_space<vmem>>, vector<4x1xf32>
    %711 = vector.broadcast %710 : vector<4x1xf32> to vector<4x256xf32>
    %712 = arith.mulf %709, %711 : vector<4x256xf32>
    %713 = arith.addf %706, %712 : vector<4x256xf32>
    %c0_470 = arith.constant 0 : index
    %c143_471 = arith.constant 143 : index
    %714 = vector.load %arg21[%c0_470, %c143_471] : memref<4x512xf32, #tpu.memory_space<vmem>>, vector<4x256xf32>
    %715 = vector.broadcast %2 : vector<1x256xf32> to vector<4x256xf32>
    %716 = arith.mulf %714, %715 : vector<4x256xf32>
    %c0_472 = arith.constant 0 : index
    %c6_473 = arith.constant 6 : index
    %717 = vector.load %arg17[%c0_472, %c6_473] : memref<20x9xf32, #tpu.memory_space<vmem>>, vector<4x1xf32>
    %718 = vector.broadcast %717 : vector<4x1xf32> to vector<4x256xf32>
    %719 = arith.mulf %716, %718 : vector<4x256xf32>
    %720 = arith.addf %713, %719 : vector<4x256xf32>
    %c0_474 = arith.constant 0 : index
    %c144_475 = arith.constant 144 : index
    %721 = vector.load %arg21[%c0_474, %c144_475] : memref<4x512xf32, #tpu.memory_space<vmem>>, vector<4x256xf32>
    %c0_476 = arith.constant 0 : index
    %c7_477 = arith.constant 7 : index
    %722 = vector.load %arg17[%c0_476, %c7_477] : memref<20x9xf32, #tpu.memory_space<vmem>>, vector<4x1xf32>
    %723 = vector.broadcast %722 : vector<4x1xf32> to vector<4x256xf32>
    %724 = arith.mulf %721, %723 : vector<4x256xf32>
    %725 = arith.addf %720, %724 : vector<4x256xf32>
    %c0_478 = arith.constant 0 : index
    %c145_479 = arith.constant 145 : index
    %726 = vector.load %arg21[%c0_478, %c145_479] : memref<4x512xf32, #tpu.memory_space<vmem>>, vector<4x256xf32>
    %727 = vector.broadcast %3 : vector<1x256xf32> to vector<4x256xf32>
    %728 = arith.mulf %726, %727 : vector<4x256xf32>
    %c0_480 = arith.constant 0 : index
    %c8_481 = arith.constant 8 : index
    %729 = vector.load %arg17[%c0_480, %c8_481] : memref<20x9xf32, #tpu.memory_space<vmem>>, vector<4x1xf32>
    %730 = vector.broadcast %729 : vector<4x1xf32> to vector<4x256xf32>
    %731 = arith.mulf %728, %730 : vector<4x256xf32>
    %732 = arith.addf %725, %731 : vector<4x256xf32>
    %c0_482 = arith.constant 0 : index
    %c0_483 = arith.constant 0 : index
    %733 = vector.load %arg18[%c0_482, %c0_483] : memref<4x20xf32, #tpu.memory_space<vmem>>, vector<4x4xf32>
    %cst_484 = arith.constant dense<0.000000e+00> : vector<4x256xf32>
    %734 = tpu.matmul %733, %732, %cst_484 {dimension_numbers = #tpu.dot_dimension_numbers<[1], [0], [0], [1], [0, 0, 1, 1], [], []>} : vector<4x4xf32>, vector<4x256xf32>, vector<4x256xf32> -> vector<4x256xf32>
    %735 = arith.addf %674, %734 : vector<4x256xf32>
    %cst_485 = arith.constant 0.000000e+00 : f32
    %736 = vector.broadcast %cst_485 : f32 to vector<4x256xf32>
    %c0_486 = arith.constant 0 : index
    %c111_487 = arith.constant 111 : index
    %737 = vector.load %arg22[%c0_486, %c111_487] : memref<4x512xf32, #tpu.memory_space<vmem>>, vector<4x256xf32>
    %738 = vector.broadcast %2 : vector<1x256xf32> to vector<4x256xf32>
    %739 = arith.mulf %737, %738 : vector<4x256xf32>
    %c4_488 = arith.constant 4 : index
    %c0_489 = arith.constant 0 : index
    %740 = vector.load %arg17[%c4_488, %c0_489] : memref<20x9xf32, #tpu.memory_space<vmem>>, vector<4x1xf32>
    %741 = vector.broadcast %740 : vector<4x1xf32> to vector<4x256xf32>
    %742 = arith.mulf %739, %741 : vector<4x256xf32>
    %743 = arith.addf %736, %742 : vector<4x256xf32>
    %c0_490 = arith.constant 0 : index
    %c112_491 = arith.constant 112 : index
    %744 = vector.load %arg22[%c0_490, %c112_491] : memref<4x512xf32, #tpu.memory_space<vmem>>, vector<4x256xf32>
    %c4_492 = arith.constant 4 : index
    %c1_493 = arith.constant 1 : index
    %745 = vector.load %arg17[%c4_492, %c1_493] : memref<20x9xf32, #tpu.memory_space<vmem>>, vector<4x1xf32>
    %746 = vector.broadcast %745 : vector<4x1xf32> to vector<4x256xf32>
    %747 = arith.mulf %744, %746 : vector<4x256xf32>
    %748 = arith.addf %743, %747 : vector<4x256xf32>
    %c0_494 = arith.constant 0 : index
    %c113_495 = arith.constant 113 : index
    %749 = vector.load %arg22[%c0_494, %c113_495] : memref<4x512xf32, #tpu.memory_space<vmem>>, vector<4x256xf32>
    %750 = vector.broadcast %3 : vector<1x256xf32> to vector<4x256xf32>
    %751 = arith.mulf %749, %750 : vector<4x256xf32>
    %c4_496 = arith.constant 4 : index
    %c2_497 = arith.constant 2 : index
    %752 = vector.load %arg17[%c4_496, %c2_497] : memref<20x9xf32, #tpu.memory_space<vmem>>, vector<4x1xf32>
    %753 = vector.broadcast %752 : vector<4x1xf32> to vector<4x256xf32>
    %754 = arith.mulf %751, %753 : vector<4x256xf32>
    %755 = arith.addf %748, %754 : vector<4x256xf32>
    %c0_498 = arith.constant 0 : index
    %c127_499 = arith.constant 127 : index
    %756 = vector.load %arg22[%c0_498, %c127_499] : memref<4x512xf32, #tpu.memory_space<vmem>>, vector<4x256xf32>
    %757 = vector.broadcast %2 : vector<1x256xf32> to vector<4x256xf32>
    %758 = arith.mulf %756, %757 : vector<4x256xf32>
    %c4_500 = arith.constant 4 : index
    %c3_501 = arith.constant 3 : index
    %759 = vector.load %arg17[%c4_500, %c3_501] : memref<20x9xf32, #tpu.memory_space<vmem>>, vector<4x1xf32>
    %760 = vector.broadcast %759 : vector<4x1xf32> to vector<4x256xf32>
    %761 = arith.mulf %758, %760 : vector<4x256xf32>
    %762 = arith.addf %755, %761 : vector<4x256xf32>
    %c0_502 = arith.constant 0 : index
    %c128_503 = arith.constant 128 : index
    %763 = vector.load %arg22[%c0_502, %c128_503] : memref<4x512xf32, #tpu.memory_space<vmem>>, vector<4x256xf32>
    %c4_504 = arith.constant 4 : index
    %c4_505 = arith.constant 4 : index
    %764 = vector.load %arg17[%c4_504, %c4_505] : memref<20x9xf32, #tpu.memory_space<vmem>>, vector<4x1xf32>
    %765 = vector.broadcast %764 : vector<4x1xf32> to vector<4x256xf32>
    %766 = arith.mulf %763, %765 : vector<4x256xf32>
    %767 = arith.addf %762, %766 : vector<4x256xf32>
    %c0_506 = arith.constant 0 : index
    %c129_507 = arith.constant 129 : index
    %768 = vector.load %arg22[%c0_506, %c129_507] : memref<4x512xf32, #tpu.memory_space<vmem>>, vector<4x256xf32>
    %769 = vector.broadcast %3 : vector<1x256xf32> to vector<4x256xf32>
    %770 = arith.mulf %768, %769 : vector<4x256xf32>
    %c4_508 = arith.constant 4 : index
    %c5_509 = arith.constant 5 : index
    %771 = vector.load %arg17[%c4_508, %c5_509] : memref<20x9xf32, #tpu.memory_space<vmem>>, vector<4x1xf32>
    %772 = vector.broadcast %771 : vector<4x1xf32> to vector<4x256xf32>
    %773 = arith.mulf %770, %772 : vector<4x256xf32>
    %774 = arith.addf %767, %773 : vector<4x256xf32>
    %c0_510 = arith.constant 0 : index
    %c143_511 = arith.constant 143 : index
    %775 = vector.load %arg22[%c0_510, %c143_511] : memref<4x512xf32, #tpu.memory_space<vmem>>, vector<4x256xf32>
    %776 = vector.broadcast %2 : vector<1x256xf32> to vector<4x256xf32>
    %777 = arith.mulf %775, %776 : vector<4x256xf32>
    %c4_512 = arith.constant 4 : index
    %c6_513 = arith.constant 6 : index
    %778 = vector.load %arg17[%c4_512, %c6_513] : memref<20x9xf32, #tpu.memory_space<vmem>>, vector<4x1xf32>
    %779 = vector.broadcast %778 : vector<4x1xf32> to vector<4x256xf32>
    %780 = arith.mulf %777, %779 : vector<4x256xf32>
    %781 = arith.addf %774, %780 : vector<4x256xf32>
    %c0_514 = arith.constant 0 : index
    %c144_515 = arith.constant 144 : index
    %782 = vector.load %arg22[%c0_514, %c144_515] : memref<4x512xf32, #tpu.memory_space<vmem>>, vector<4x256xf32>
    %c4_516 = arith.constant 4 : index
    %c7_517 = arith.constant 7 : index
    %783 = vector.load %arg17[%c4_516, %c7_517] : memref<20x9xf32, #tpu.memory_space<vmem>>, vector<4x1xf32>
    %784 = vector.broadcast %783 : vector<4x1xf32> to vector<4x256xf32>
    %785 = arith.mulf %782, %784 : vector<4x256xf32>
    %786 = arith.addf %781, %785 : vector<4x256xf32>
    %c0_518 = arith.constant 0 : index
    %c145_519 = arith.constant 145 : index
    %787 = vector.load %arg22[%c0_518, %c145_519] : memref<4x512xf32, #tpu.memory_space<vmem>>, vector<4x256xf32>
    %788 = vector.broadcast %3 : vector<1x256xf32> to vector<4x256xf32>
    %789 = arith.mulf %787, %788 : vector<4x256xf32>
    %c4_520 = arith.constant 4 : index
    %c8_521 = arith.constant 8 : index
    %790 = vector.load %arg17[%c4_520, %c8_521] : memref<20x9xf32, #tpu.memory_space<vmem>>, vector<4x1xf32>
    %791 = vector.broadcast %790 : vector<4x1xf32> to vector<4x256xf32>
    %792 = arith.mulf %789, %791 : vector<4x256xf32>
    %793 = arith.addf %786, %792 : vector<4x256xf32>
    %c0_522 = arith.constant 0 : index
    %c4_523 = arith.constant 4 : index
    %794 = vector.load %arg18[%c0_522, %c4_523] : memref<4x20xf32, #tpu.memory_space<vmem>>, vector<4x4xf32>
    %cst_524 = arith.constant dense<0.000000e+00> : vector<4x256xf32>
    %795 = tpu.matmul %794, %793, %cst_524 {dimension_numbers = #tpu.dot_dimension_numbers<[1], [0], [0], [1], [0, 0, 1, 1], [], []>} : vector<4x4xf32>, vector<4x256xf32>, vector<4x256xf32> -> vector<4x256xf32>
    %796 = arith.addf %735, %795 : vector<4x256xf32>
    %cst_525 = arith.constant 0.000000e+00 : f32
    %797 = vector.broadcast %cst_525 : f32 to vector<4x256xf32>
    %c0_526 = arith.constant 0 : index
    %c111_527 = arith.constant 111 : index
    %798 = vector.load %arg23[%c0_526, %c111_527] : memref<4x512xf32, #tpu.memory_space<vmem>>, vector<4x256xf32>
    %799 = vector.broadcast %2 : vector<1x256xf32> to vector<4x256xf32>
    %800 = arith.mulf %798, %799 : vector<4x256xf32>
    %c8_528 = arith.constant 8 : index
    %c0_529 = arith.constant 0 : index
    %801 = vector.load %arg17[%c8_528, %c0_529] : memref<20x9xf32, #tpu.memory_space<vmem>>, vector<4x1xf32>
    %802 = vector.broadcast %801 : vector<4x1xf32> to vector<4x256xf32>
    %803 = arith.mulf %800, %802 : vector<4x256xf32>
    %804 = arith.addf %797, %803 : vector<4x256xf32>
    %c0_530 = arith.constant 0 : index
    %c112_531 = arith.constant 112 : index
    %805 = vector.load %arg23[%c0_530, %c112_531] : memref<4x512xf32, #tpu.memory_space<vmem>>, vector<4x256xf32>
    %c8_532 = arith.constant 8 : index
    %c1_533 = arith.constant 1 : index
    %806 = vector.load %arg17[%c8_532, %c1_533] : memref<20x9xf32, #tpu.memory_space<vmem>>, vector<4x1xf32>
    %807 = vector.broadcast %806 : vector<4x1xf32> to vector<4x256xf32>
    %808 = arith.mulf %805, %807 : vector<4x256xf32>
    %809 = arith.addf %804, %808 : vector<4x256xf32>
    %c0_534 = arith.constant 0 : index
    %c113_535 = arith.constant 113 : index
    %810 = vector.load %arg23[%c0_534, %c113_535] : memref<4x512xf32, #tpu.memory_space<vmem>>, vector<4x256xf32>
    %811 = vector.broadcast %3 : vector<1x256xf32> to vector<4x256xf32>
    %812 = arith.mulf %810, %811 : vector<4x256xf32>
    %c8_536 = arith.constant 8 : index
    %c2_537 = arith.constant 2 : index
    %813 = vector.load %arg17[%c8_536, %c2_537] : memref<20x9xf32, #tpu.memory_space<vmem>>, vector<4x1xf32>
    %814 = vector.broadcast %813 : vector<4x1xf32> to vector<4x256xf32>
    %815 = arith.mulf %812, %814 : vector<4x256xf32>
    %816 = arith.addf %809, %815 : vector<4x256xf32>
    %c0_538 = arith.constant 0 : index
    %c127_539 = arith.constant 127 : index
    %817 = vector.load %arg23[%c0_538, %c127_539] : memref<4x512xf32, #tpu.memory_space<vmem>>, vector<4x256xf32>
    %818 = vector.broadcast %2 : vector<1x256xf32> to vector<4x256xf32>
    %819 = arith.mulf %817, %818 : vector<4x256xf32>
    %c8_540 = arith.constant 8 : index
    %c3_541 = arith.constant 3 : index
    %820 = vector.load %arg17[%c8_540, %c3_541] : memref<20x9xf32, #tpu.memory_space<vmem>>, vector<4x1xf32>
    %821 = vector.broadcast %820 : vector<4x1xf32> to vector<4x256xf32>
    %822 = arith.mulf %819, %821 : vector<4x256xf32>
    %823 = arith.addf %816, %822 : vector<4x256xf32>
    %c0_542 = arith.constant 0 : index
    %c128_543 = arith.constant 128 : index
    %824 = vector.load %arg23[%c0_542, %c128_543] : memref<4x512xf32, #tpu.memory_space<vmem>>, vector<4x256xf32>
    %c8_544 = arith.constant 8 : index
    %c4_545 = arith.constant 4 : index
    %825 = vector.load %arg17[%c8_544, %c4_545] : memref<20x9xf32, #tpu.memory_space<vmem>>, vector<4x1xf32>
    %826 = vector.broadcast %825 : vector<4x1xf32> to vector<4x256xf32>
    %827 = arith.mulf %824, %826 : vector<4x256xf32>
    %828 = arith.addf %823, %827 : vector<4x256xf32>
    %c0_546 = arith.constant 0 : index
    %c129_547 = arith.constant 129 : index
    %829 = vector.load %arg23[%c0_546, %c129_547] : memref<4x512xf32, #tpu.memory_space<vmem>>, vector<4x256xf32>
    %830 = vector.broadcast %3 : vector<1x256xf32> to vector<4x256xf32>
    %831 = arith.mulf %829, %830 : vector<4x256xf32>
    %c8_548 = arith.constant 8 : index
    %c5_549 = arith.constant 5 : index
    %832 = vector.load %arg17[%c8_548, %c5_549] : memref<20x9xf32, #tpu.memory_space<vmem>>, vector<4x1xf32>
    %833 = vector.broadcast %832 : vector<4x1xf32> to vector<4x256xf32>
    %834 = arith.mulf %831, %833 : vector<4x256xf32>
    %835 = arith.addf %828, %834 : vector<4x256xf32>
    %c0_550 = arith.constant 0 : index
    %c143_551 = arith.constant 143 : index
    %836 = vector.load %arg23[%c0_550, %c143_551] : memref<4x512xf32, #tpu.memory_space<vmem>>, vector<4x256xf32>
    %837 = vector.broadcast %2 : vector<1x256xf32> to vector<4x256xf32>
    %838 = arith.mulf %836, %837 : vector<4x256xf32>
    %c8_552 = arith.constant 8 : index
    %c6_553 = arith.constant 6 : index
    %839 = vector.load %arg17[%c8_552, %c6_553] : memref<20x9xf32, #tpu.memory_space<vmem>>, vector<4x1xf32>
    %840 = vector.broadcast %839 : vector<4x1xf32> to vector<4x256xf32>
    %841 = arith.mulf %838, %840 : vector<4x256xf32>
    %842 = arith.addf %835, %841 : vector<4x256xf32>
    %c0_554 = arith.constant 0 : index
    %c144_555 = arith.constant 144 : index
    %843 = vector.load %arg23[%c0_554, %c144_555] : memref<4x512xf32, #tpu.memory_space<vmem>>, vector<4x256xf32>
    %c8_556 = arith.constant 8 : index
    %c7_557 = arith.constant 7 : index
    %844 = vector.load %arg17[%c8_556, %c7_557] : memref<20x9xf32, #tpu.memory_space<vmem>>, vector<4x1xf32>
    %845 = vector.broadcast %844 : vector<4x1xf32> to vector<4x256xf32>
    %846 = arith.mulf %843, %845 : vector<4x256xf32>
    %847 = arith.addf %842, %846 : vector<4x256xf32>
    %c0_558 = arith.constant 0 : index
    %c145_559 = arith.constant 145 : index
    %848 = vector.load %arg23[%c0_558, %c145_559] : memref<4x512xf32, #tpu.memory_space<vmem>>, vector<4x256xf32>
    %849 = vector.broadcast %3 : vector<1x256xf32> to vector<4x256xf32>
    %850 = arith.mulf %848, %849 : vector<4x256xf32>
    %c8_560 = arith.constant 8 : index
    %c8_561 = arith.constant 8 : index
    %851 = vector.load %arg17[%c8_560, %c8_561] : memref<20x9xf32, #tpu.memory_space<vmem>>, vector<4x1xf32>
    %852 = vector.broadcast %851 : vector<4x1xf32> to vector<4x256xf32>
    %853 = arith.mulf %850, %852 : vector<4x256xf32>
    %854 = arith.addf %847, %853 : vector<4x256xf32>
    %c0_562 = arith.constant 0 : index
    %c8_563 = arith.constant 8 : index
    %855 = vector.load %arg18[%c0_562, %c8_563] : memref<4x20xf32, #tpu.memory_space<vmem>>, vector<4x4xf32>
    %cst_564 = arith.constant dense<0.000000e+00> : vector<4x256xf32>
    %856 = tpu.matmul %855, %854, %cst_564 {dimension_numbers = #tpu.dot_dimension_numbers<[1], [0], [0], [1], [0, 0, 1, 1], [], []>} : vector<4x4xf32>, vector<4x256xf32>, vector<4x256xf32> -> vector<4x256xf32>
    %857 = arith.addf %796, %856 : vector<4x256xf32>
    %cst_565 = arith.constant 0.000000e+00 : f32
    %858 = vector.broadcast %cst_565 : f32 to vector<4x256xf32>
    %c0_566 = arith.constant 0 : index
    %c111_567 = arith.constant 111 : index
    %859 = vector.load %arg24[%c0_566, %c111_567] : memref<4x512xf32, #tpu.memory_space<vmem>>, vector<4x256xf32>
    %860 = vector.broadcast %2 : vector<1x256xf32> to vector<4x256xf32>
    %861 = arith.mulf %859, %860 : vector<4x256xf32>
    %c12_568 = arith.constant 12 : index
    %c0_569 = arith.constant 0 : index
    %862 = vector.load %arg17[%c12_568, %c0_569] : memref<20x9xf32, #tpu.memory_space<vmem>>, vector<4x1xf32>
    %863 = vector.broadcast %862 : vector<4x1xf32> to vector<4x256xf32>
    %864 = arith.mulf %861, %863 : vector<4x256xf32>
    %865 = arith.addf %858, %864 : vector<4x256xf32>
    %c0_570 = arith.constant 0 : index
    %c112_571 = arith.constant 112 : index
    %866 = vector.load %arg24[%c0_570, %c112_571] : memref<4x512xf32, #tpu.memory_space<vmem>>, vector<4x256xf32>
    %c12_572 = arith.constant 12 : index
    %c1_573 = arith.constant 1 : index
    %867 = vector.load %arg17[%c12_572, %c1_573] : memref<20x9xf32, #tpu.memory_space<vmem>>, vector<4x1xf32>
    %868 = vector.broadcast %867 : vector<4x1xf32> to vector<4x256xf32>
    %869 = arith.mulf %866, %868 : vector<4x256xf32>
    %870 = arith.addf %865, %869 : vector<4x256xf32>
    %c0_574 = arith.constant 0 : index
    %c113_575 = arith.constant 113 : index
    %871 = vector.load %arg24[%c0_574, %c113_575] : memref<4x512xf32, #tpu.memory_space<vmem>>, vector<4x256xf32>
    %872 = vector.broadcast %3 : vector<1x256xf32> to vector<4x256xf32>
    %873 = arith.mulf %871, %872 : vector<4x256xf32>
    %c12_576 = arith.constant 12 : index
    %c2_577 = arith.constant 2 : index
    %874 = vector.load %arg17[%c12_576, %c2_577] : memref<20x9xf32, #tpu.memory_space<vmem>>, vector<4x1xf32>
    %875 = vector.broadcast %874 : vector<4x1xf32> to vector<4x256xf32>
    %876 = arith.mulf %873, %875 : vector<4x256xf32>
    %877 = arith.addf %870, %876 : vector<4x256xf32>
    %c0_578 = arith.constant 0 : index
    %c127_579 = arith.constant 127 : index
    %878 = vector.load %arg24[%c0_578, %c127_579] : memref<4x512xf32, #tpu.memory_space<vmem>>, vector<4x256xf32>
    %879 = vector.broadcast %2 : vector<1x256xf32> to vector<4x256xf32>
    %880 = arith.mulf %878, %879 : vector<4x256xf32>
    %c12_580 = arith.constant 12 : index
    %c3_581 = arith.constant 3 : index
    %881 = vector.load %arg17[%c12_580, %c3_581] : memref<20x9xf32, #tpu.memory_space<vmem>>, vector<4x1xf32>
    %882 = vector.broadcast %881 : vector<4x1xf32> to vector<4x256xf32>
    %883 = arith.mulf %880, %882 : vector<4x256xf32>
    %884 = arith.addf %877, %883 : vector<4x256xf32>
    %c0_582 = arith.constant 0 : index
    %c128_583 = arith.constant 128 : index
    %885 = vector.load %arg24[%c0_582, %c128_583] : memref<4x512xf32, #tpu.memory_space<vmem>>, vector<4x256xf32>
    %c12_584 = arith.constant 12 : index
    %c4_585 = arith.constant 4 : index
    %886 = vector.load %arg17[%c12_584, %c4_585] : memref<20x9xf32, #tpu.memory_space<vmem>>, vector<4x1xf32>
    %887 = vector.broadcast %886 : vector<4x1xf32> to vector<4x256xf32>
    %888 = arith.mulf %885, %887 : vector<4x256xf32>
    %889 = arith.addf %884, %888 : vector<4x256xf32>
    %c0_586 = arith.constant 0 : index
    %c129_587 = arith.constant 129 : index
    %890 = vector.load %arg24[%c0_586, %c129_587] : memref<4x512xf32, #tpu.memory_space<vmem>>, vector<4x256xf32>
    %891 = vector.broadcast %3 : vector<1x256xf32> to vector<4x256xf32>
    %892 = arith.mulf %890, %891 : vector<4x256xf32>
    %c12_588 = arith.constant 12 : index
    %c5_589 = arith.constant 5 : index
    %893 = vector.load %arg17[%c12_588, %c5_589] : memref<20x9xf32, #tpu.memory_space<vmem>>, vector<4x1xf32>
    %894 = vector.broadcast %893 : vector<4x1xf32> to vector<4x256xf32>
    %895 = arith.mulf %892, %894 : vector<4x256xf32>
    %896 = arith.addf %889, %895 : vector<4x256xf32>
    %c0_590 = arith.constant 0 : index
    %c143_591 = arith.constant 143 : index
    %897 = vector.load %arg24[%c0_590, %c143_591] : memref<4x512xf32, #tpu.memory_space<vmem>>, vector<4x256xf32>
    %898 = vector.broadcast %2 : vector<1x256xf32> to vector<4x256xf32>
    %899 = arith.mulf %897, %898 : vector<4x256xf32>
    %c12_592 = arith.constant 12 : index
    %c6_593 = arith.constant 6 : index
    %900 = vector.load %arg17[%c12_592, %c6_593] : memref<20x9xf32, #tpu.memory_space<vmem>>, vector<4x1xf32>
    %901 = vector.broadcast %900 : vector<4x1xf32> to vector<4x256xf32>
    %902 = arith.mulf %899, %901 : vector<4x256xf32>
    %903 = arith.addf %896, %902 : vector<4x256xf32>
    %c0_594 = arith.constant 0 : index
    %c144_595 = arith.constant 144 : index
    %904 = vector.load %arg24[%c0_594, %c144_595] : memref<4x512xf32, #tpu.memory_space<vmem>>, vector<4x256xf32>
    %c12_596 = arith.constant 12 : index
    %c7_597 = arith.constant 7 : index
    %905 = vector.load %arg17[%c12_596, %c7_597] : memref<20x9xf32, #tpu.memory_space<vmem>>, vector<4x1xf32>
    %906 = vector.broadcast %905 : vector<4x1xf32> to vector<4x256xf32>
    %907 = arith.mulf %904, %906 : vector<4x256xf32>
    %908 = arith.addf %903, %907 : vector<4x256xf32>
    %c0_598 = arith.constant 0 : index
    %c145_599 = arith.constant 145 : index
    %909 = vector.load %arg24[%c0_598, %c145_599] : memref<4x512xf32, #tpu.memory_space<vmem>>, vector<4x256xf32>
    %910 = vector.broadcast %3 : vector<1x256xf32> to vector<4x256xf32>
    %911 = arith.mulf %909, %910 : vector<4x256xf32>
    %c12_600 = arith.constant 12 : index
    %c8_601 = arith.constant 8 : index
    %912 = vector.load %arg17[%c12_600, %c8_601] : memref<20x9xf32, #tpu.memory_space<vmem>>, vector<4x1xf32>
    %913 = vector.broadcast %912 : vector<4x1xf32> to vector<4x256xf32>
    %914 = arith.mulf %911, %913 : vector<4x256xf32>
    %915 = arith.addf %908, %914 : vector<4x256xf32>
    %c0_602 = arith.constant 0 : index
    %c12_603 = arith.constant 12 : index
    %916 = vector.load %arg18[%c0_602, %c12_603] : memref<4x20xf32, #tpu.memory_space<vmem>>, vector<4x4xf32>
    %cst_604 = arith.constant dense<0.000000e+00> : vector<4x256xf32>
    %917 = tpu.matmul %916, %915, %cst_604 {dimension_numbers = #tpu.dot_dimension_numbers<[1], [0], [0], [1], [0, 0, 1, 1], [], []>} : vector<4x4xf32>, vector<4x256xf32>, vector<4x256xf32> -> vector<4x256xf32>
    %918 = arith.addf %857, %917 : vector<4x256xf32>
    %cst_605 = arith.constant 0.000000e+00 : f32
    %919 = vector.broadcast %cst_605 : f32 to vector<4x256xf32>
    %c0_606 = arith.constant 0 : index
    %c111_607 = arith.constant 111 : index
    %920 = vector.load %arg25[%c0_606, %c111_607] : memref<4x512xf32, #tpu.memory_space<vmem>>, vector<4x256xf32>
    %921 = vector.broadcast %2 : vector<1x256xf32> to vector<4x256xf32>
    %922 = arith.mulf %920, %921 : vector<4x256xf32>
    %c16 = arith.constant 16 : index
    %c0_608 = arith.constant 0 : index
    %923 = vector.load %arg17[%c16, %c0_608] : memref<20x9xf32, #tpu.memory_space<vmem>>, vector<4x1xf32>
    %924 = vector.broadcast %923 : vector<4x1xf32> to vector<4x256xf32>
    %925 = arith.mulf %922, %924 : vector<4x256xf32>
    %926 = arith.addf %919, %925 : vector<4x256xf32>
    %c0_609 = arith.constant 0 : index
    %c112_610 = arith.constant 112 : index
    %927 = vector.load %arg25[%c0_609, %c112_610] : memref<4x512xf32, #tpu.memory_space<vmem>>, vector<4x256xf32>
    %c16_611 = arith.constant 16 : index
    %c1_612 = arith.constant 1 : index
    %928 = vector.load %arg17[%c16_611, %c1_612] : memref<20x9xf32, #tpu.memory_space<vmem>>, vector<4x1xf32>
    %929 = vector.broadcast %928 : vector<4x1xf32> to vector<4x256xf32>
    %930 = arith.mulf %927, %929 : vector<4x256xf32>
    %931 = arith.addf %926, %930 : vector<4x256xf32>
    %c0_613 = arith.constant 0 : index
    %c113_614 = arith.constant 113 : index
    %932 = vector.load %arg25[%c0_613, %c113_614] : memref<4x512xf32, #tpu.memory_space<vmem>>, vector<4x256xf32>
    %933 = vector.broadcast %3 : vector<1x256xf32> to vector<4x256xf32>
    %934 = arith.mulf %932, %933 : vector<4x256xf32>
    %c16_615 = arith.constant 16 : index
    %c2_616 = arith.constant 2 : index
    %935 = vector.load %arg17[%c16_615, %c2_616] : memref<20x9xf32, #tpu.memory_space<vmem>>, vector<4x1xf32>
    %936 = vector.broadcast %935 : vector<4x1xf32> to vector<4x256xf32>
    %937 = arith.mulf %934, %936 : vector<4x256xf32>
    %938 = arith.addf %931, %937 : vector<4x256xf32>
    %c0_617 = arith.constant 0 : index
    %c127_618 = arith.constant 127 : index
    %939 = vector.load %arg25[%c0_617, %c127_618] : memref<4x512xf32, #tpu.memory_space<vmem>>, vector<4x256xf32>
    %940 = vector.broadcast %2 : vector<1x256xf32> to vector<4x256xf32>
    %941 = arith.mulf %939, %940 : vector<4x256xf32>
    %c16_619 = arith.constant 16 : index
    %c3_620 = arith.constant 3 : index
    %942 = vector.load %arg17[%c16_619, %c3_620] : memref<20x9xf32, #tpu.memory_space<vmem>>, vector<4x1xf32>
    %943 = vector.broadcast %942 : vector<4x1xf32> to vector<4x256xf32>
    %944 = arith.mulf %941, %943 : vector<4x256xf32>
    %945 = arith.addf %938, %944 : vector<4x256xf32>
    %c0_621 = arith.constant 0 : index
    %c128_622 = arith.constant 128 : index
    %946 = vector.load %arg25[%c0_621, %c128_622] : memref<4x512xf32, #tpu.memory_space<vmem>>, vector<4x256xf32>
    %c16_623 = arith.constant 16 : index
    %c4_624 = arith.constant 4 : index
    %947 = vector.load %arg17[%c16_623, %c4_624] : memref<20x9xf32, #tpu.memory_space<vmem>>, vector<4x1xf32>
    %948 = vector.broadcast %947 : vector<4x1xf32> to vector<4x256xf32>
    %949 = arith.mulf %946, %948 : vector<4x256xf32>
    %950 = arith.addf %945, %949 : vector<4x256xf32>
    %c0_625 = arith.constant 0 : index
    %c129_626 = arith.constant 129 : index
    %951 = vector.load %arg25[%c0_625, %c129_626] : memref<4x512xf32, #tpu.memory_space<vmem>>, vector<4x256xf32>
    %952 = vector.broadcast %3 : vector<1x256xf32> to vector<4x256xf32>
    %953 = arith.mulf %951, %952 : vector<4x256xf32>
    %c16_627 = arith.constant 16 : index
    %c5_628 = arith.constant 5 : index
    %954 = vector.load %arg17[%c16_627, %c5_628] : memref<20x9xf32, #tpu.memory_space<vmem>>, vector<4x1xf32>
    %955 = vector.broadcast %954 : vector<4x1xf32> to vector<4x256xf32>
    %956 = arith.mulf %953, %955 : vector<4x256xf32>
    %957 = arith.addf %950, %956 : vector<4x256xf32>
    %c0_629 = arith.constant 0 : index
    %c143_630 = arith.constant 143 : index
    %958 = vector.load %arg25[%c0_629, %c143_630] : memref<4x512xf32, #tpu.memory_space<vmem>>, vector<4x256xf32>
    %959 = vector.broadcast %2 : vector<1x256xf32> to vector<4x256xf32>
    %960 = arith.mulf %958, %959 : vector<4x256xf32>
    %c16_631 = arith.constant 16 : index
    %c6_632 = arith.constant 6 : index
    %961 = vector.load %arg17[%c16_631, %c6_632] : memref<20x9xf32, #tpu.memory_space<vmem>>, vector<4x1xf32>
    %962 = vector.broadcast %961 : vector<4x1xf32> to vector<4x256xf32>
    %963 = arith.mulf %960, %962 : vector<4x256xf32>
    %964 = arith.addf %957, %963 : vector<4x256xf32>
    %c0_633 = arith.constant 0 : index
    %c144_634 = arith.constant 144 : index
    %965 = vector.load %arg25[%c0_633, %c144_634] : memref<4x512xf32, #tpu.memory_space<vmem>>, vector<4x256xf32>
    %c16_635 = arith.constant 16 : index
    %c7_636 = arith.constant 7 : index
    %966 = vector.load %arg17[%c16_635, %c7_636] : memref<20x9xf32, #tpu.memory_space<vmem>>, vector<4x1xf32>
    %967 = vector.broadcast %966 : vector<4x1xf32> to vector<4x256xf32>
    %968 = arith.mulf %965, %967 : vector<4x256xf32>
    %969 = arith.addf %964, %968 : vector<4x256xf32>
    %c0_637 = arith.constant 0 : index
    %c145_638 = arith.constant 145 : index
    %970 = vector.load %arg25[%c0_637, %c145_638] : memref<4x512xf32, #tpu.memory_space<vmem>>, vector<4x256xf32>
    %971 = vector.broadcast %3 : vector<1x256xf32> to vector<4x256xf32>
    %972 = arith.mulf %970, %971 : vector<4x256xf32>
    %c16_639 = arith.constant 16 : index
    %c8_640 = arith.constant 8 : index
    %973 = vector.load %arg17[%c16_639, %c8_640] : memref<20x9xf32, #tpu.memory_space<vmem>>, vector<4x1xf32>
    %974 = vector.broadcast %973 : vector<4x1xf32> to vector<4x256xf32>
    %975 = arith.mulf %972, %974 : vector<4x256xf32>
    %976 = arith.addf %969, %975 : vector<4x256xf32>
    %c0_641 = arith.constant 0 : index
    %c16_642 = arith.constant 16 : index
    %977 = vector.load %arg18[%c0_641, %c16_642] : memref<4x20xf32, #tpu.memory_space<vmem>>, vector<4x4xf32>
    %cst_643 = arith.constant dense<0.000000e+00> : vector<4x256xf32>
    %978 = tpu.matmul %977, %976, %cst_643 {dimension_numbers = #tpu.dot_dimension_numbers<[1], [0], [0], [1], [0, 0, 1, 1], [], []>} : vector<4x4xf32>, vector<4x256xf32>, vector<4x256xf32> -> vector<4x256xf32>
    %979 = arith.addf %918, %978 : vector<4x256xf32>
    %c0_644 = arith.constant 0 : index
    %c0_645 = arith.constant 0 : index
    %980 = vector.load %arg19[%c0_644, %c0_645] : memref<4x1xf32, #tpu.memory_space<vmem>>, vector<4x1xf32>
    %981 = vector.broadcast %980 : vector<4x1xf32> to vector<4x256xf32>
    %982 = arith.addf %979, %981 : vector<4x256xf32>
    %cst_646 = arith.constant 2.000000e-01 : f32
    %983 = vector.broadcast %cst_646 : f32 to vector<4x256xf32>
    %984 = arith.mulf %982, %983 : vector<4x256xf32>
    %985 = arith.addf %984, %1 : vector<4x256xf32>
    %c0_647 = arith.constant 0 : index
    %c0_648 = arith.constant 0 : index
    %c0_649 = arith.constant 0 : index
    %986 = vector.load %arg20[%c0_647, %c0_648, %c0_649] : memref<1x4x256xf32, #tpu.memory_space<vmem>>, vector<1x4x256xf32>
    %987 = vector.shape_cast %986 : vector<1x4x256xf32> to vector<4x256xf32>
    %988 = vector.shape_cast %985 : vector<4x256xf32> to vector<1x4x256xf32>
    tpu.vector_store %arg20[%c0_647, %c0_648, %c0_649], %988 {strides = array<i32>} : memref<1x4x256xf32, #tpu.memory_space<vmem>>, vector<1x4x256xf32>,
    return
  }
  func.func @transform_0(%arg0: i32) -> (i32, i32, i32) {
    %c0_i32 = arith.constant 0 : i32
    %c0_i32_0 = arith.constant 0 : i32
    %c0_i32_1 = arith.constant 0 : i32
    return %arg0, %c0_i32, %c0_i32_0 : i32, i32, i32
  }
  func.func @transform_1(%arg0: i32) -> (i32, i32) {
    %c0_i32 = arith.constant 0 : i32
    %c0_i32_0 = arith.constant 0 : i32
    %c0_i32_1 = arith.constant 0 : i32
    return %c0_i32, %c0_i32_0 : i32, i32
  }
  func.func @transform_2(%arg0: i32) -> (i32, i32) {
    %c0_i32 = arith.constant 0 : i32
    %c0_i32_0 = arith.constant 0 : i32
    %c0_i32_1 = arith.constant 0 : i32
    return %c0_i32, %c0_i32_0 : i32, i32
  }
  func.func @transform_3(%arg0: i32) -> (i32, i32) {
    %c0_i32 = arith.constant 0 : i32
    %c0_i32_0 = arith.constant 0 : i32
    %c0_i32_1 = arith.constant 0 : i32
    return %c0_i32, %c0_i32_0 : i32, i32
  }
  func.func @transform_4(%arg0: i32) -> (i32, i32) {
    %c0_i32 = arith.constant 0 : i32
    %c0_i32_0 = arith.constant 0 : i32
    %c0_i32_1 = arith.constant 0 : i32
    return %c0_i32, %c0_i32_0 : i32, i32
  }
  func.func @transform_5(%arg0: i32) -> (i32, i32) {
    %c0_i32 = arith.constant 0 : i32
    %c0_i32_0 = arith.constant 0 : i32
    %c0_i32_1 = arith.constant 0 : i32
    return %c0_i32, %c0_i32_0 : i32, i32
  }
  func.func @transform_6(%arg0: i32) -> (i32, i32) {
    %c0_i32 = arith.constant 0 : i32
    %c0_i32_0 = arith.constant 0 : i32
    %c0_i32_1 = arith.constant 0 : i32
    return %c0_i32, %c0_i32_0 : i32, i32
  }
  func.func @transform_7(%arg0: i32) -> (i32, i32) {
    %c0_i32 = arith.constant 0 : i32
    %c0_i32_0 = arith.constant 0 : i32
    %c0_i32_1 = arith.constant 0 : i32
    return %c0_i32, %c0_i32_0 : i32, i32
  }
  func.func @transform_8(%arg0: i32) -> (i32, i32) {
    %c0_i32 = arith.constant 0 : i32
    %c0_i32_0 = arith.constant 0 : i32
    %c0_i32_1 = arith.constant 0 : i32
    return %c0_i32, %c0_i32_0 : i32, i32
  }
  func.func @transform_9(%arg0: i32) -> (i32, i32) {
    %c0_i32 = arith.constant 0 : i32
    %c0_i32_0 = arith.constant 0 : i32
    %c0_i32_1 = arith.constant 0 : i32
    return %c0_i32, %c0_i32_0 : i32, i32
  }
  func.func @transform_10(%arg0: i32) -> (i32, i32) {
    %c0_i32 = arith.constant 0 : i32
    %c0_i32_0 = arith.constant 0 : i32
    %c0_i32_1 = arith.constant 0 : i32
    return %c0_i32, %c0_i32_0 : i32, i32
  }
  func.func @transform_11(%arg0: i32) -> (i32, i32) {
    %c0_i32 = arith.constant 0 : i32
    %c0_i32_0 = arith.constant 0 : i32
    %c0_i32_1 = arith.constant 0 : i32
    return %c0_i32, %c0_i32_0 : i32, i32
  }
  func.func @transform_12(%arg0: i32) -> (i32, i32) {
    %c0_i32 = arith.constant 0 : i32
    %c0_i32_0 = arith.constant 0 : i32
    %c0_i32_1 = arith.constant 0 : i32
    return %c0_i32, %c0_i32_0 : i32, i32
  }
  func.func @transform_13(%arg0: i32) -> (i32, i32) {
    %c0_i32 = arith.constant 0 : i32
    %c0_i32_0 = arith.constant 0 : i32
    %c0_i32_1 = arith.constant 0 : i32
    return %c0_i32, %c0_i32_0 : i32, i32
  }
  func.func @transform_14(%arg0: i32) -> (i32, i32) {
    %c0_i32 = arith.constant 0 : i32
    %c0_i32_0 = arith.constant 0 : i32
    %c0_i32_1 = arith.constant 0 : i32
    return %c0_i32, %c0_i32_0 : i32, i32
  }
  func.func @transform_15(%arg0: i32) -> (i32, i32) {
    %c0_i32 = arith.constant 0 : i32
    %c0_i32_0 = arith.constant 0 : i32
    %c0_i32_1 = arith.constant 0 : i32
    return %c0_i32, %c0_i32_0 : i32, i32
  }
  func.func @transform_16(%arg0: i32) -> (i32, i32) {
    %c0_i32 = arith.constant 0 : i32
    %c0_i32_0 = arith.constant 0 : i32
    %c0_i32_1 = arith.constant 0 : i32
    return %c0_i32, %c0_i32_0 : i32, i32
  }
  func.func @transform_17(%arg0: i32) -> (i32, i32) {
    %c0_i32 = arith.constant 0 : i32
    %c0_i32_0 = arith.constant 0 : i32
    %c0_i32_1 = arith.constant 0 : i32
    return %c0_i32, %c0_i32_0 : i32, i32
  }
  func.func @transform_18(%arg0: i32) -> (i32, i32) {
    %c0_i32 = arith.constant 0 : i32
    %c0_i32_0 = arith.constant 0 : i32
    %c0_i32_1 = arith.constant 0 : i32
    return %c0_i32, %c0_i32_0 : i32, i32
  }
  func.func @transform_19(%arg0: i32) -> (i32, i32, i32) {
    %c0_i32 = arith.constant 0 : i32
    %c0_i32_0 = arith.constant 0 : i32
    %c0_i32_1 = arith.constant 0 : i32
    return %arg0, %c0_i32, %c0_i32_0 : i32, i32, i32
  }
}

</mosaic_0001>

<bundles_post_ra>
// kernel: residual_dense_block.1
= control target key start
LH: loop header
LB: loop body
LE: loop exit
PB: predicated region body
PF: predicated region fallthrough
CT: control target
= control target key end

     0   :  { %s9009_s0 = inlined_call_operand.vmem [shape: f32[2,4,256], index: 0, kind: input, shape index: {}]   ;;  %s9010_s1 = inlined_call_operand.vmem [shape: f32[1,256], index: 1, kind: input, shape index: {}]   ;;  %s9011_s2 = inlined_call_operand.vmem [shape: f32[1,256], index: 2, kind: input, shape index: {}]   ;;  %s9012_s3 = inlined_call_operand.vmem [shape: f32[4,4], index: 3, kind: input, shape index: {}]   ;;  %s9013_s4 = inlined_call_operand.vmem [shape: f32[4,9], index: 4, kind: input, shape index: {}]   ;;  %s9014_s5 = inlined_call_operand.vmem [shape: f32[4,4], index: 5, kind: input, shape index: {}]   ;;  %s9015_s6 = inlined_call_operand.vmem [shape: f32[4,1], index: 6, kind: input, shape index: {}]   ;;  %s9016_s7 = inlined_call_operand.vmem [shape: f32[8,9], index: 7, kind: input, shape index: {}]   ;;  %s9017_s8 = inlined_call_operand.vmem [shape: f32[4,8], index: 8, kind: input, shape index: {}]   ;;  %s9018_s9 = inlined_call_operand.vmem [shape: f32[4,1], index: 9, kind: input, shape index: {}]   ;;  %s9019_s10 = inlined_call_operand.vmem [shape: f32[12,9], index: 10, kind: input, shape index: {}]   ;;  %s9020_s11 = inlined_call_operand.vmem [shape: f32[4,12], index: 11, kind: input, shape index: {}]   ;;  %s9021_s12 = inlined_call_operand.vmem [shape: f32[4,1], index: 12, kind: input, shape index: {}]   ;;  %s9022_s13 = inlined_call_operand.vmem [shape: f32[16,9], index: 13, kind: input, shape index: {}]   ;;  %s9023_s14 = inlined_call_operand.vmem [shape: f32[4,16], index: 14, kind: input, shape index: {}]   ;;  %s9024_s15 = inlined_call_operand.vmem [shape: f32[4,1], index: 15, kind: input, shape index: {}]   ;;  %s9025_s16 = inlined_call_operand.vmem [shape: f32[20,9], index: 16, kind: input, shape index: {}]   ;;  %s9026_s17 = inlined_call_operand.vmem [shape: f32[4,20], index: 17, kind: input, shape index: {}]   ;;  %s9027_s18 = inlined_call_operand.vmem [shape: f32[4,1], index: 18, kind: input, shape index: {}]   ;;  %s9028_s19 = inlined_call_operand.vmem [shape: f32[2,4,256], index: 19, kind: output, shape index: {}]  }
   0x1   :  { %9110 = sst [smem:[#allocation21_spill]] %s9009_s0  ;;  %s6508_s0 = smov 0  }
   0x2   :  { %9111 = sst [smem:[#allocation22_spill]] %s9010_s1 }
   0x3   :  { %9112 = sst [smem:[#allocation23_spill]] %s9011_s2 }
   0x4   :  { %9113 = sst [smem:[#allocation24_spill]] %s9012_s3 }
   0x5   :  { %9114 = sst [smem:[#allocation25_spill]] %s9013_s4 }
   0x6   :  { %9115 = sst [smem:[#allocation26_spill]] %s9014_s5 }
   0x7   :  { %9116 = sst [smem:[#allocation27_spill]] %s9015_s6 }
   0x8   :  { %9117 = sst [smem:[#allocation28_spill]] %s9016_s7 }
   0x9   :  { %9118 = sst [smem:[#allocation29_spill]] %s9017_s8 }
   0xa LB: > { %s6171_s30 = sadd.s32 4294967295, %s6380_s0   ;;  %p6175_p0 = scmp.ge.s32.totalorder %s6380_s0, 1  ;;  %s6380_s0 = sphi %s6508_s0, %s29_s0  }
   0xb   : > { %p537_p1 = scmp.lt.s32.totalorder %s6380_s0, 3 }
   0xd   : > { %p538_p2 = pnand %p6175_p0, %p537_p1 }
   0xf   : > { %541 = sbr.rel (%p538_p2) target bundleno = 2612 (0xa34), region = 96 }
  0x14   : > { %s9119_s4 = sld [smem:[#allocation25_spill]]  ;;  %v612_v2 = vlaneseq  ;;  %v9064_v3 = vmov 3   ;;  %v9058_v4 = vmov 1   ;;  %p593_p3 = scmp.lt.s32.totalorder %s6171_s30, 1  ;;  %v9062_v11 = vmov 2  }
  0x15   : > { %6268 = vset.pattern.permute.xlu1 %v9064_v3  ;;  %6266 = vset.pattern.permute.xlu0 %v9058_v4  ;;  %s9120_s24 = sld [smem:[#allocation23_spill]]  ;;  %v9060_v16 = vmov 5   ;;  %v9038_v18 = vmov 0.0   ;;  %s6387_s20 = smov 113   ;;  %v9056_v20 = vmov 4   ;;  %v9046_v24 = vmov 6  }
  0x16   : > { %v6527_v5 = vshrl.u32 %v612_v2, 7  ;;  %s9121_s26 = sld [smem:[#allocation22_spill]]  ;;  %s9203_s30 = smov (!%p593_p3, %s6171_s30), 1  ;;  %606 = vst [vmem:[#allocation2] sm:$0xf] %v9038_v18  ;;  %1026 = vmatprep.mubr.f32.mxu0 %v9038_v18  ;;  %1648 = vmatprep.mubr.f32.mxu1 %v9038_v18  ;;  %v9044_v26 = vmov 8  }
  0x17   : > { %607 = vst [vmem:[#allocation2 + $0xc] sm:$0xf] %v9038_v18  ;;  %1039 = vst [vmem:[#allocation3] sm:$0xf] %v9038_v18  ;;  %s9029_s29 = sshll.u32 %s9203_s30, 3  ;;  %s9122_s22 = sld [smem:[#allocation21_spill]] }
  0x18   : > { %v614_v9 = vsub.s32 0, %v6527_v5  ;;  %v618_v10 = vsub.s32 1, %v6527_v5  ;;  %1040 = vst [vmem:[#allocation3 + $0xc] sm:$0xf] %v9038_v18  ;;  %1841 = vst [vmem:[#allocation4] sm:$0xf] %v9038_v18 }
  0x19   : > { %1842 = vst [vmem:[#allocation4 + $0xc] sm:$0xf] %v9038_v18  ;;  %2912 = vst [vmem:[#allocation5] sm:$0xf] %v9038_v18  ;;  %s9054_s23 = smov 127   ;;  %v9040_v27 = vmov 7  }
  0x1a   : > { %v737_v0 = vld [vmem:[%s9119_s4] sm:$0xf]  ;;  %2913 = vst [vmem:[#allocation5 + $0xc] sm:$0xf] %v9038_v18  ;;  %4337 = vst [vmem:[#allocation6] sm:$0xf] %v9038_v18 }
  0x1b   : > { %v6522_v1 = vld [vmem:[%s9119_s4] sm:$0xf]  ;;  %740 = vperm.xlu1 %6268, %v737_v0   ;;  %4338 = vst [vmem:[#allocation6 + $0xc] sm:$0xf] %v9038_v18  ;;  %s6394_s21 = smov 15   ;;  %s9048_s1 = smov 111  }
  0x1c   : > { %650 = vperm.xlu0 %6266, %v6522_v1   ;;  %v605_v6 = vld [vmem:[%s9120_s24] sm:$0x3]  ;;  %v9042_v28 = vmov 0   ;;  %v6398_v29 = vmov 839922192   ;;  %vm691_vm0 = vcmask 924672  }
  0x1d   : > { %v604_v7 = vld [vmem:[%s9121_s26] sm:$0x3]  ;;  %v682_v12 = vrot.slane %v605_v6, %v614_v9  ;;  %v686_v13 = vrot.slane %v605_v6, %v618_v10  ;;  %s597_s2 = scalar_lea.vmem %s9122_s22, %s9029_s29  ;;  %s6396_s22 = smov 17   ;;  %v636_v30 = vunpack.c.l.s4 %v6398_v29  ;;  %vm672_vm1 = vcmask 1039360  }
  0x1e   : > { %v697_v8 = vld [vmem:[%s9119_s4] sm:$0xf]  ;;  %v615_v14 = vrot.slane %v604_v7, %v614_v9  ;;  %v619_v15 = vrot.slane %v604_v7, %v618_v10  ;;  %s9050_s24 = smov 112   ;;  %vm794_vm2 = vcmask 7168   ;;  %v790_v62 = vld [vmem:[#allocation2 + $0xc] sm:$0xf] }
  0x1f   : > { %6270 = vset.pattern.permute.xlu1 %v9060_v16  ;;  %v687_v17 = vcombine.low %v682_v12, %v686_v13  ;;  %v6567_v21 = vld [vmem:[%s597_s2] sm:$0xff]  ;;  %v637_v31 = vunpack.c.0.s8 %v636_v30  ;;  %s9052_s2 = smov 126   ;;  %vm834_vm3 = vcmask 121856   ;;  %v830_v12 = vld [vmem:[#allocation2 + $0xc] sm:$0xf]  ;;  %s9034_s25 = smov 110  }
  0x20   : > { %6267 = vset.pattern.permute.xlu0 %v9062_v11  ;;  %v620_v19 = vcombine.low %v615_v14, %v619_v15  ;;  %608 = vst [vmem:[#allocation2 + $0x4] sm:$0xff] %v6567_v21  ;;  %v840_v22 = vld [vmem:[%s9119_s4] sm:$0xf]  ;;  %vm901_vm4 = vcmask 138240   ;;  %s9036_s3 = smov 95   ;;  %s9032_s26 = smov 96  }
  0x21   : > { %700 = vperm.xlu0 %6267, %v697_v8   ;;  %688 = vrot.lane.b32.xlu1 %v687_v17, %s6387_s20  ;;  %v800_v23 = vld [vmem:[%s9119_s4] sm:$0xf]  ;;  %s6392_s20 = smov 1   ;;  %v6589_v32 = vsub.s32 %v637_v31, %v6527_v5  ;;  %s9030_s27 = smov 94   ;;  %vm624_vm5 = vcmask 908288   ;;  %vm670_vm6 = vcmask 1043456  }
  0x22   : > { %v907_v25 = vld [vmem:[%s9119_s4] sm:$0xf]  ;;  %vm721_vm7 = vcmask 1031168   ;;  %vm761_vm8 = vcmask 916480   ;;  %vm822_vm9 = vcmask 900096   ;;  %vm862_vm10 = vcmask 785408  }
  0x23   : > { %vm891_vm11 = vcmask 777216   ;;  %vm929_vm12 = vcmask 769024   ;;  %s9132_s6 = sld [smem:[#allocation27_spill]]  ;;  %vm954_vm13 = vcmask 31744   ;;  %s9148_s4 = smov 126  }
  0x24   : > { %s9133_s7 = sld [smem:[#allocation28_spill]]  ;;  %s9150_s28 = smov 111  }
  0x25   : > { %6269 = vset.pattern.permute.xlu0 %v9056_v20  ;;  %729 = vrot.lane.b32.xlu1 %v620_v19, %s9054_s23  ;;  %s9134_s5 = sld [smem:[#allocation26_spill]]  ;;  %s9201_s29 = sshll.u32 %s9203_s30, 3 }
  0x26   : > { %769 = vperm.xlu0 %6269, %v737_v0   ;;  %s9139_s8 = sld [smem:[#allocation29_spill]] }
  0x27   : > { %v6591_v35 = vld [vmem:[#allocation2] sm:$0xff]  ;;  %v648_v36 = vld [vmem:[#allocation2 + $0x8] sm:$0xf] }
  0x28   : > { %v728_v46 = vld [vmem:[#allocation2 + $0x8] sm:$0xf] }
  0x29   : > { %803 = vperm.xlu1 %6270, %v800_v23  }
  0x2a   : > { %6271 = vset.pattern.permute.xlu0 %v9046_v24 }
  0x2b   : > { %843 = vperm.xlu0 %6271, %v840_v22  }
  0x2d   : > { %791 = vrot.lane.b32.xlu1 %v687_v17, %s6392_s20  ;;  %s9108_s20 = smov 120  }
  0x2e   : > { %6272 = vset.pattern.permute.xlu1 %v9040_v27 }
  0x2f   : > { %6273 = vset.pattern.permute.xlu0 %v9044_v26 }
  0x30   : > { %910 = vperm.xlu0 %6273, %v907_v25  }
  0x31   : > { %831 = vrot.lane.b32.xlu1 %v620_v19, %s6394_s21  ;;  %s9138_s21 = smov 94  }
  0x34   : > { %621 = vrot.lane.b32.xlu0 %v620_v19, %s9048_s1 }
  0x35   : > { %6275 = vset.pattern.permute.xlu0 %v9058_v4  ;;  %872 = vperm.xlu1 %6272, %v840_v22  }
  0x39   : > { %898 = vrot.lane.b32.xlu1 %v687_v17, %s6396_s22 }
  0x3a   : > { %6274 = vset.pattern.permute.xlu1 %v9042_v28 }
  0x3d   : > { %633 = vperm.xlu1 %6274, %v6522_v1  }
  0x96   : > { %v741_v33 = vpop.permute.xlu1 %740 }
  0x97   : > { %v651_v34 = vpop.permute.xlu0 %650  ;;  %v748_v51 = vrot.slane %v741_v33, %v6589_v32 }
  0x98   : > { %v658_v37 = vrot.slane %v651_v34, %v6589_v32  ;;  %v870_v34 = vld [vmem:[#allocation2 + $0xc] sm:$0xf] }
  0x9a   : > { %v660_v38 = vmul.f32 %v658_v37, %v6591_v35  ;;  %v661_v39 = vmul.f32 %v658_v37, %v648_v36  ;;  %v689_v40 = vpop.permute.xlu1 %688 }
  0x9b   : > { %v6595_v41 = vrot.slane %v689_v40, 4 }
  0x9c   : > { %v701_v42 = vpop.permute.xlu0 %700  ;;  %666 = vrot.lane.b32.xlu0 %v661_v39, %s9054_s23  ;;  %664 = vrot.lane.b32.xlu1 %v660_v38, %s9054_s23 }
  0x9d   : > { %v708_v43 = vrot.slane %v701_v42, %v6589_v32  ;;  %v696_v44 = vmul.f32 %v6595_v41, %v648_v36  ;;  %v6604_v49 = vsel %vm691_vm0, %v6595_v41, %v689_v40 }
  0x9e   : > { %v730_v45 = vpop.permute.xlu1 %729  ;;  %9124 = vst [vmem:[#allocation8_spill] sm:$0xff] %v6604_v49  ;;  %v6612_v54 = vmul.f32 %v6604_v49, %v6591_v35 }
  0x9f   : > { %v711_v47 = vmul.f32 %v708_v43, %v696_v44  ;;  %v6601_v48 = vrot.slane %v730_v45, 4 }
  0xa0   : > { %v710_v59 = vmul.f32 %v708_v43, %v6612_v54 }
  0xa1   : > { %9123 = vst [vmem:[#allocation7_spill] sm:$0xff] %v6601_v48  ;;  %v770_v50 = vpop.permute.xlu0 %769  ;;  %716 = vrot.lane.b32.xlu0 %v711_v47, %s9052_s2  ;;  %v736_v53 = vmul.f32 %v6601_v48, %v728_v46  ;;  %v6617_v57 = vsel %vm672_vm1, %v6601_v48, %v730_v45 }
  0xa2   : > { %v777_v52 = vrot.slane %v770_v50, %v6589_v32  ;;  %9125 = vst [vmem:[#allocation9_spill] sm:$0xff] %v6617_v57  ;;  %v6624_v60 = vmul.f32 %v6617_v57, %v6591_v35 }
  0xa3   : > { %v751_v56 = vmul.f32 %v748_v51, %v736_v53  ;;  %v610_v53 = vld [vmem:[#allocation2 + $0x8] sm:$0xf] }
  0xa4   : > { %v779_v55 = vmul.f32 %v777_v52, %v6567_v21  ;;  %v804_v58 = vpop.permute.xlu1 %803  ;;  %v750_v0 = vmul.f32 %v748_v51, %v6624_v60 }
  0xa5   : > { %756 = vrot.lane.b32.xlu0 %v751_v56, %s9050_s24  ;;  %v811_v1 = vrot.slane %v804_v58, %v6589_v32 }
  0xa6   : > { %781 = vrot.lane.b32.xlu1 %v779_v55, %s9048_s1  ;;  %v844_v10 = vpop.permute.xlu0 %843 }
  0xa7   : > { %v851_v17 = vrot.slane %v844_v10, %v6589_v32 }
  0xa8   : > { %v792_v61 = vpop.permute.xlu1 %791 }
  0xa9   : > { %v6627_v63 = vrot.slane %v792_v61, 4 }
  0xaa   : > { %714 = vrot.lane.b32.xlu1 %v710_v59, %s9052_s2 }
  0xab   : > { %9126 = vst [vmem:[#allocation10_spill] sm:$0xff] %v6627_v63  ;;  %v6632_v2 = vsel %vm794_vm2, %v6627_v63, %v792_v61  ;;  %v799_v5 = vmul.f32 %v6627_v63, %v790_v62  ;;  %v911_v29 = vpop.permute.xlu0 %910 }
  0xac   : > { %9127 = vst [vmem:[#allocation11_spill] sm:$0xff] %v6632_v2  ;;  %v832_v6 = vpop.permute.xlu1 %831  ;;  %v6640_v9 = vmul.f32 %v6632_v2, %v6567_v21  ;;  %v918_v36 = vrot.slane %v911_v29, %v6589_v32 }
  0xad   : > { %v6636_v7 = vrot.slane %v832_v6, 4  ;;  %v814_v8 = vmul.f32 %v811_v1, %v799_v5 }
  0xae   : > { %754 = vrot.lane.b32.xlu1 %v750_v0, %s9050_s24  ;;  %v813_v22 = vmul.f32 %v811_v1, %v6640_v9 }
  0xaf   : > { %9128 = vst [vmem:[#allocation12_spill] sm:$0xff] %v6636_v7  ;;  %819 = vrot.lane.b32.xlu0 %v814_v8, %s9034_s25  ;;  %v6644_v13 = vsel %vm834_vm3, %v6636_v7, %v832_v6  ;;  %v839_v15 = vmul.f32 %v6636_v7, %v830_v12  ;;  %v622_v45 = vpop.permute.xlu0 %621 }
  0xb0   : > { %9129 = vst [vmem:[#allocation13_spill] sm:$0xff] %v6644_v13  ;;  %v873_v14 = vpop.permute.xlu1 %872  ;;  %v6652_v23 = vmul.f32 %v6644_v13, %v6567_v21  ;;  %v6676_v51 = vrot.slane %v622_v45, 4 }
  0xb1   : > { %v880_v19 = vrot.slane %v873_v14, %v6589_v32  ;;  %v854_v31 = vmul.f32 %v851_v17, %v839_v15 }
  0xb2   : > { %v853_v37 = vmul.f32 %v851_v17, %v6652_v23  ;;  %v6680_v56 = vsel %vm624_vm5, %v6676_v51, %v622_v45  ;;  %v629_v58 = vmul.f32 %v6676_v51, %v610_v53 }
  0xb3   : > { %v882_v25 = vmul.f32 %v880_v19, %v6567_v21  ;;  %817 = vrot.lane.b32.xlu0 %v813_v22, %s9034_s25  ;;  %v883_v40 = vmul.f32 %v880_v19, %v870_v34  ;;  %v6686_v1 = vmul.f32 %v6591_v35, %v6680_v56  ;;  %s9135_s25 = smov 95  }
  0xb4   : > { %v899_v30 = vpop.permute.xlu1 %898 }
  0xb5   : > { %v6656_v33 = vrot.slane %v899_v30, 4  ;;  %886 = vrot.lane.b32.xlu1 %v882_v25, %s9036_s3 }
  0xb7   : > { %9130 = vst [vmem:[#allocation14_spill] sm:$0xff] %v6656_v33  ;;  %v6663_v38 = vsel %vm901_vm4, %v6656_v33, %v899_v30  ;;  %859 = vrot.lane.b32.xlu0 %v854_v31, %s9032_s26  ;;  %v906_v43 = vmul.f32 %v6656_v33, %v870_v34 }
  0xb8   : > { %9131 = vst [vmem:[#allocation15_spill] sm:$0xff] %v6663_v38  ;;  %v6668_v39 = vmul.f32 %v6663_v38, %v6567_v21  ;;  %v634_v46 = vpop.permute.xlu1 %633 }
  0xb9   : > { %857 = vrot.lane.b32.xlu1 %v853_v37, %s9032_s26  ;;  %v921_v44 = vmul.f32 %v918_v36, %v906_v43  ;;  %v641_v59 = vrot.slane %v634_v46, %v6589_v32  ;;  %s9178_s26 = smov 124  }
  0xba   : > { %v920_v42 = vmul.f32 %v918_v36, %v6668_v39 }
  0xbb   : > { %888 = vrot.lane.b32.xlu0 %v883_v40, %s9036_s3  ;;  %v644_v8 = vmul.f32 %v641_v59, %v629_v58  ;;  %v643_v17 = vmul.f32 %v641_v59, %v6686_v1  ;;  %s9136_s3 = smov 110  }
  0xbd   : > { %924 = vrot.lane.b32.xlu1 %v920_v42, %s9030_s27 }
  0xc1   : > { %926 = vrot.lane.b32.xlu1 %v921_v44, %s9030_s27  ;;  %s9137_s27 = smov 96  }
 0x10e   : > { %v667_v47 = vpop.permute.xlu0 %666  ;;  %v665_v50 = vpop.permute.xlu1 %664 }
 0x10f   : > { %v669_v61 = vrot.slane %v667_v47, 4  ;;  %v668_v62 = vrot.slane %v665_v50, 4  ;;  %v677_v29 = vadd.f32 %v667_v47, %v644_v8 }
 0x111   : > { %v671_v10 = vsel %vm670_vm6, %v668_v62, %v669_v61 }
 0x112   : > { %v673_v25 = vsel %vm672_vm1, %v665_v50, %v671_v10 }
 0x113   : > { %v717_v55 = vpop.permute.xlu0 %716  ;;  %v676_v36 = vadd.f32 %v673_v25, %v643_v17 }
 0x114   : > { %v719_v12 = vrot.slane %v717_v55, 4  ;;  %v726_v40 = vadd.f32 %v717_v55, %v677_v29 }
 0x117   : > { %v757_v6 = vpop.permute.xlu0 %756 }
 0x118   : > { %v782_v52 = vpop.permute.xlu1 %781  ;;  %v759_v19 = vrot.slane %v757_v6, 4  ;;  %v766_v45 = vadd.f32 %v757_v6, %v726_v40 }
 0x119   : > { %v783_v46 = vrot.slane %v782_v52, 4 }
 0x11b   : > { %v784_v47 = vsel %vm624_vm5, %v783_v46, %v782_v52  ;;  %v788_v62 = vadd.f32 %v783_v46, %v766_v45  ;;  %v1050_v45 = vld [vmem:[%s9133_s7] sm:$0xf]  ;;  %v1309_v46 = vld [vmem:[%s9133_s7 + $0x4] sm:$0xf] }
 0x11c   : > { %v715_v0 = vpop.permute.xlu1 %714 }
 0x11d   : > { %v718_v5 = vrot.slane %v715_v0, 4 }
 0x11f   : > { %v720_v22 = vsel %vm670_vm6, %v718_v5, %v719_v12 }
 0x120   : > { %v755_v14 = vpop.permute.xlu1 %754  ;;  %v722_v34 = vsel %vm721_vm7, %v715_v0, %v720_v22 }
 0x121   : > { %v758_v15 = vrot.slane %v755_v14, 4  ;;  %v820_v31 = vpop.permute.xlu0 %819  ;;  %v725_v42 = vadd.f32 %v722_v34, %v676_v36 }
 0x123   : > { %v760_v30 = vsel %vm670_vm6, %v758_v15, %v759_v19 }
 0x124   : > { %v762_v37 = vsel %vm761_vm8, %v755_v14, %v760_v30 }
 0x125   : > { %v818_v43 = vpop.permute.xlu0 %817  ;;  %v765_v53 = vadd.f32 %v762_v37, %v725_v42 }
 0x126   : > { %v821_v44 = vrot.slane %v818_v43, 4 }
 0x127   : > { %v887_v58 = vpop.permute.xlu1 %886  ;;  %v787_v0 = vadd.f32 %v784_v47, %v765_v53  ;;  %v1357_v53 = vld [vmem:[%s9133_s7 + $0x4] sm:$0xf] }
 0x128   : > { %v823_v59 = vsel %vm822_vm9, %v821_v44, %v818_v43  ;;  %v824_v61 = vsel %vm822_vm9, %v821_v44, %v820_v31  ;;  %v890_v55 = vrot.slane %v887_v58, 4  ;;  %v937_v44 = vld [vmem:[%s9132_s6] sm:$0xf]  ;;  %v1390_v47 = vld [vmem:[%s9133_s7 + $0x4] sm:$0xf] }
 0x129   : > { %v860_v50 = vpop.permute.xlu0 %859  ;;  %v827_v10 = vadd.f32 %v823_v59, %v787_v0  ;;  %v828_v6 = vadd.f32 %v824_v61, %v788_v62  ;;  %v1445_v59 = vld [vmem:[%s9133_s7 + $0x4] sm:$0xf]  ;;  %v1218_v61 = vld [vmem:[%s9133_s7] sm:$0xf] }
 0x12a   : > { %v892_v22 = vsel %vm891_vm11, %v890_v55, %v887_v58  ;;  %v1098_v58 = vld [vmem:[%s9133_s7] sm:$0xf]  ;;  %v1535_v0 = vld [vmem:[%s9133_s7 + $0x4] sm:$0xf] }
 0x12b   : > { %v858_v5 = vpop.permute.xlu1 %857  ;;  %v1186_v62 = vld [vmem:[%s9133_s7] sm:$0xf] }
 0x12c   : > { %v861_v8 = vrot.slane %v858_v5, 4 }
 0x12d   : > { %v889_v17 = vpop.permute.xlu0 %888 }
 0x12e   : > { %v863_v12 = vsel %vm862_vm10, %v861_v8, %v858_v5  ;;  %v864_v14 = vsel %vm862_vm10, %v861_v8, %v860_v50  ;;  %v893_v30 = vsel %vm891_vm11, %v890_v55, %v889_v17  ;;  %v1131_v50 = vld [vmem:[%s9133_s7] sm:$0xf]  ;;  %v1477_v5 = vld [vmem:[%s9133_s7 + $0x4] sm:$0xf] }
 0x12f   : > { %v867_v15 = vadd.f32 %v863_v12, %v827_v10  ;;  %v868_v52 = vadd.f32 %v864_v14, %v828_v6  ;;  %v925_v19 = vpop.permute.xlu1 %924  ;;  %v1276_v55 = vld [vmem:[%s9133_s7] sm:$0xf]  ;;  %s602_s7 = scalar_lea.vmem %s9028_s19, %s9201_s29 }
 0x130   : > { %v928_v25 = vrot.slane %v925_v19, 4  ;;  %v936_v14 = vld [vmem:[%s9134_s5] sm:$0xf] }
 0x131   : > { %v896_v29 = vadd.f32 %v892_v22, %v867_v15  ;;  %v897_v34 = vadd.f32 %v893_v30, %v868_v52 }
 0x132   : > { %v930_v31 = vsel %vm929_vm12, %v928_v25, %v925_v19 }
 0x133   : > { %v934_v36 = vadd.f32 %v930_v31, %v896_v29  ;;  %v927_v37 = vpop.permute.xlu1 %926 }
 0x134   : > { %v931_v40 = vsel %vm929_vm12, %v928_v25, %v927_v37  ;;  %v1068_v25 = vld [vmem:[#allocation2 + $0x8] sm:$0xf] }
 0x135   : > { %v935_v42 = vadd.f32 %v931_v40, %v897_v34  ;;  %v945_v43 = vcombine.high %v934_v36, %v934_v36 }
 0x137   : > { %950 = vrot.lane.b32.xlu1 %v935_v42, %s6396_s22  ;;  %948 = vrot.lane.b32.xlu0 %v945_v43, %s6396_s22  ;;  %v1128_v43 = vld [vmem:[#allocation2 + $0x8] sm:$0xf] }
 0x13b   : > { %940 = vperm.xlu1 %6274, %v937_v44   ;;  %946 = vrot.lane.b32.xlu0 %v934_v36, %s6396_s22  ;;  %v1097_v36 = vmul.f32 %v1068_v25, %v6595_v41 }
 0x13f   : > { %6276 = vset.pattern.permute.xlu1 %v9058_v4  ;;  %1070 = vperm.xlu0 %6275, %v1050_v45  }
 0x140   : > { %1329 = vperm.xlu1 %6276, %v1309_v46  }
 0x143   : > { %6278 = vset.pattern.permute.xlu0 %v9062_v11 }
 0x144   : > { %6277 = vset.pattern.permute.xlu1 %v9062_v11  ;;  %1360 = vperm.xlu0 %6278, %v1357_v53  }
 0x145   : > { %1101 = vperm.xlu1 %6277, %v1098_v58  }
 0x148   : > { %6280 = vset.pattern.permute.xlu0 %v9056_v20 }
 0x149   : > { %6279 = vset.pattern.permute.xlu1 %v9064_v3  ;;  %1162 = vperm.xlu0 %6280, %v1131_v50  }
 0x14a   : > { %1134 = vperm.xlu1 %6279, %v1131_v50  }
 0x14d   : > { %6283 = vset.pattern.permute.xlu0 %v9060_v16 }
 0x14e   : > { %1393 = vperm.xlu1 %6279, %v1390_v47   ;;  %1448 = vperm.xlu0 %6283, %v1445_v59  }
 0x152   : > { %6281 = vset.pattern.permute.xlu1 %v9056_v20  ;;  %6285 = vset.pattern.permute.xlu0 %v9040_v27 }
 0x153   : > { %1421 = vperm.xlu1 %6281, %v1390_v47   ;;  %1249 = vperm.xlu0 %6285, %v1218_v61  }
 0x157   : > { %6282 = vset.pattern.permute.xlu1 %v9060_v16  ;;  %6288 = vset.pattern.permute.xlu0 %v9044_v26 }
 0x158   : > { %1189 = vperm.xlu1 %6282, %v1186_v62   ;;  %1538 = vperm.xlu0 %6288, %v1535_v0  }
 0x15c   : > { %6284 = vset.pattern.permute.xlu1 %v9046_v24  ;;  %6290 = vset.pattern.permute.xlu0 %v9058_v4 }
 0x15d   : > { %1221 = vperm.xlu1 %6284, %v1218_v61  }
 0x161   : > { %1480 = vperm.xlu1 %6284, %v1477_v5  }
 0x165   : > { %6286 = vset.pattern.permute.xlu1 %v9040_v27 }
 0x166   : > { %1508 = vperm.xlu1 %6286, %v1477_v5  }
 0x16a   : > { %6287 = vset.pattern.permute.xlu1 %v9044_v26 }
 0x16b   : > { %1279 = vperm.xlu1 %6287, %v1276_v55  }
 0x16f   : > { %6289 = vset.pattern.permute.xlu1 %v9042_v28 }
 0x170   : > { %1053 = vperm.xlu1 %6289, %v1050_v45  }
 0x174   : > { %1312 = vperm.xlu1 %6289, %v1309_v46  }
 0x1a9   : > { %v951_v8 = vpop.permute.xlu1 %950  ;;  %v949_v10 = vpop.permute.xlu0 %948 }
 0x1aa   : > { %v953_v6 = vsel %vm901_vm4, %v949_v10, %v951_v8 }
 0x1ab   : > { %6180 = vmatprep.subr.msk.mxu0 %vm670_vm6, %v953_v6 }
 0x1ad   : > { %v947_v12 = vpop.permute.xlu0 %946 }
 0x1ae   : > { %v952_v15 = vsel %vm901_vm4, %v947_v12, %v949_v10  ;;  %v1215_v10 = vld [vmem:[#allocation2 + $0xc] sm:$0xf] }
 0x1af   : > { %6181 = vmatpush1.msk.msra.mxu0 %vm670_vm6, %v952_v15  ;;  %v1217_v12 = vmul.f32 %v1215_v10, %v6636_v7  ;;  %v1183_v15 = vld [vmem:[#allocation2 + $0xc] sm:$0xf] }
 0x1b0   : > { %6182 = vmatmul.mubr.msk.f32.vlgmr.msra.gmra.mxu0 %vm954_vm13, %v936_v14 }
 0x1b1   : > { %1737 = vmatprep.mubr.f32.mxu0 %v9038_v18 }
 0x1b6   : > { %v941_v17 = vpop.permute.xlu1 %940 }
 0x1ba   : > { %v1071_v52 = vpop.permute.xlu0 %1070 }
 0x1bb   : > { %v1078_v19 = vrot.slane %v1071_v52, %v6589_v32  ;;  %v6771_v22 = vpop.permute.xlu1 %1329 }
 0x1bd   : > { %v1080_v29 = vmul.f32 %v1078_v19, %v6591_v35  ;;  %v1081_v30 = vmul.f32 %v1078_v19, %v1068_v25  ;;  %v1130_v35 = vmul.f32 %v1128_v43, %v6601_v48  ;;  %v1442_v25 = vld [vmem:[#allocation3 + $0xc] sm:$0xf] }
 0x1bf   : > { %1086 = vrot.lane.b32.xlu1 %v1081_v30, %s9054_s23  ;;  %1084 = vrot.lane.b32.xlu0 %v1080_v29, %s9054_s23  ;;  %v6776_v31 = vpop.permute.xlu0 %1360  ;;  %v1444_v30 = vmul.f32 %v1442_v25, %v6627_v63 }
 0x1c0   : > { %v1102_v34 = vpop.permute.xlu1 %1101 }
 0x1c1   : > { %v1109_v37 = vrot.slane %v1102_v34, %v6589_v32 }
 0x1c3   : > { %v1111_v40 = vmul.f32 %v1109_v37, %v6612_v54  ;;  %v1112_v42 = vmul.f32 %v1109_v37, %v1097_v36 }
 0x1c4   : > { %v1163_v44 = vpop.permute.xlu0 %1162 }
 0x1c5   : > { %v1135_v45 = vpop.permute.xlu1 %1134  ;;  %1117 = vrot.lane.b32.xlu1 %v1112_v42, %s9052_s2  ;;  %1115 = vrot.lane.b32.xlu0 %v1111_v40, %s9052_s2  ;;  %v1170_v53 = vrot.slane %v1163_v44, %v6589_v32 }
 0x1c6   : > { %v1142_v46 = vrot.slane %v1135_v45, %v6589_v32 }
 0x1c7   : > { %v1172_v54 = vmul.f32 %v1170_v53, %v6567_v21 }
 0x1c8   : > { %v1144_v58 = vmul.f32 %v1142_v46, %v6624_v60  ;;  %v1145_v50 = vmul.f32 %v1142_v46, %v1130_v35  ;;  %v1337_v46 = vrot.slane %v6771_v22, %v6589_v32 }
 0x1c9   : > { %v1394_v47 = vpop.permute.xlu1 %1393  ;;  %v1449_v59 = vpop.permute.xlu0 %1448 }
 0x1ca   : > { %1150 = vrot.lane.b32.xlu1 %v1145_v50, %s9050_s24  ;;  %1148 = vrot.lane.b32.xlu0 %v1144_v58, %s9050_s24  ;;  %v6806_v29 = vrot.slane %v1449_v59, %v6589_v32 }
 0x1cc   : > { %v1459_v34 = vmul.f32 %v6806_v29, %v1444_v30 }
 0x1ce   : > { %1174 = vrot.lane.b32.xlu0 %v1172_v54, %s9048_s1  ;;  %v1422_v61 = vpop.permute.xlu1 %1421  ;;  %v1250_v62 = vpop.permute.xlu0 %1249 }
 0x1cf   : > { %v6792_v0 = vrot.slane %v1250_v62, %v6589_v32  ;;  %v1368_v62 = vrot.slane %v6776_v31, %v6589_v32 }
 0x1d1   : > { %v1259_v5 = vmul.f32 %v6792_v0, %v6567_v21  ;;  %v1185_v21 = vmul.f32 %v1183_v15, %v6627_v63  ;;  %v1474_v15 = vld [vmem:[#allocation3 + $0xc] sm:$0xf] }
 0x1d2   : > { %v1476_v25 = vmul.f32 %v1474_v15, %v6636_v7 }
 0x1d3   : > { %v1190_v60 = vpop.permute.xlu1 %1189  ;;  %1263 = vrot.lane.b32.xlu1 %v1259_v5, %s9135_s25  ;;  %v1429_v5 = vrot.slane %v1422_v61, %v6589_v32 }
 0x1d4   : > { %v1197_v55 = vrot.slane %v1190_v60, %v6589_v32 }
 0x1d6   : > { %v1199_v8 = vmul.f32 %v1197_v55, %v6640_v9  ;;  %v1200_v9 = vmul.f32 %v1197_v55, %v1185_v21 }
 0x1d8   : > { %v1222_v6 = vpop.permute.xlu1 %1221  ;;  %1203 = vrot.lane.b32.xlu0 %v1199_v8, %s9136_s3 }
 0x1d9   : > { %v1229_v14 = vrot.slane %v1222_v6, %v6589_v32  ;;  %v1401_v6 = vrot.slane %v1394_v47, %v6589_v32 }
 0x1db   : > { %v1231_v52 = vmul.f32 %v1229_v14, %v6652_v23  ;;  %v1232_v19 = vmul.f32 %v1229_v14, %v1217_v12 }
 0x1dc   : > { %v1481_v53 = vpop.permute.xlu1 %1480 }
 0x1dd   : > { %1235 = vrot.lane.b32.xlu0 %v1231_v52, %s9137_s27  ;;  %v1488_v52 = vrot.slane %v1481_v53, %v6589_v32 }
 0x1e1   : > { %1205 = vrot.lane.b32.xlu0 %v1200_v9, %s9136_s3  ;;  %v1509_v22 = vpop.permute.xlu1 %1508  ;;  %v1491_v9 = vmul.f32 %v1488_v52, %v1476_v25 }
 0x1e2   : > { %v1516_v60 = vrot.slane %v1509_v22, %v6589_v32 }
 0x1e5   : > { %1464 = vrot.lane.b32.xlu0 %v1459_v34, %s9136_s3 }
 0x1e6   : > { %v1280_v14 = vpop.permute.xlu1 %1279 }
 0x1e7   : > { %v1287_v47 = vrot.slane %v1280_v14, %v6589_v32 }
 0x1e9   : > { %v1289_v30 = vmul.f32 %v1287_v47, %v6668_v39 }
 0x270   : > { %v1028_v36 = vpop.f32.mrf.mxu0 }
 0x271   : > { %v1029_v23 = vadd.f32 %v1028_v36, %v941_v17  ;;  %v1247_v36 = vld [vmem:[#allocation2 + $0xc] sm:$0xf] }
 0x272   : > { %v1030_v37 = vpop.f32.mrf.mxu0 }
 0x273   : > { %v1035_v40 = vmul.f32 0.2, %v1029_v23  ;;  %v1031_v42 = vadd.f32 %v1030_v37, %v941_v17  ;;  %vm1033_vm14 = vcmp.ge.f32.partialorder %v1029_v23, 0.0  ;;  %v1260_v37 = vmul.f32 %v6792_v0, %v1247_v36 }
 0x275   : > { %vm1034_vm15 = vcmp.ge.f32.partialorder %v1031_v42, 0.0  ;;  %v1036_v43 = vmul.f32 0.2, %v1031_v42  ;;  %v1037_v44 = vsel %vm1033_vm14, %v1029_v23, %v1035_v40  ;;  %v1506_v23 = vld [vmem:[#allocation3 + $0xc] sm:$0xf] }
 0x276   : > { %v1519_v40 = vmul.f32 %v1516_v60, %v1506_v23 }
 0x277   : > { %v1038_v45 = vsel %vm1034_vm15, %v1031_v42, %v1036_v43  ;;  %v1275_v43 = vmul.f32 %v1247_v36, %v6656_v33 }
 0x278   : > { %v6812_v35 = vcombine.low %v1037_v44, %v1038_v45 }
 0x27a   : > { %1045 = vst [vmem:[#allocation3 + $0x4] sm:$0xff] %v6812_v35  ;;  %v1431_v8 = vmul.f32 %v1429_v5, %v6812_v35  ;;  %v1518_v61 = vmul.f32 %v1516_v60, %v6812_v35  ;;  %v6859_v39 = vmul.f32 %v6812_v35, %v6632_v2  ;;  %v6865_v0 = vmul.f32 %v6812_v35, %v6644_v13 }
 0x27b   : > { %v6872_v53 = vmul.f32 %v6812_v35, %v6663_v38 }
 0x27c   : > { %v1458_v45 = vmul.f32 %v6806_v29, %v6859_v39 }
 0x281   : > { %v6817_v58 = vld [vmem:[#allocation3] sm:$0xff]  ;;  %v1327_v50 = vld [vmem:[#allocation3 + $0x8] sm:$0xf] }
 0x282   : > { %v1339_v54 = vmul.f32 %v1337_v46, %v6817_v58  ;;  %v1340_v59 = vmul.f32 %v1337_v46, %v1327_v50  ;;  %v6822_v17 = vmul.f32 %v6817_v58, %v6604_v49  ;;  %v6832_v55 = vmul.f32 %v6817_v58, %v6617_v57  ;;  %v1387_v34 = vld [vmem:[#allocation3 + $0x8] sm:$0xf]  ;;  %v1539_v46 = vpop.permute.xlu0 %1538 }
 0x283   : > { %v1356_v31 = vmul.f32 %v1327_v50, %v6595_v41  ;;  %v1389_v42 = vmul.f32 %v1387_v34, %v6601_v48  ;;  %v1490_v50 = vmul.f32 %v1488_v52, %v6865_v0 }
 0x284   : > { %1343 = vrot.lane.b32.xlu0 %v1339_v54, %s9054_s23  ;;  %1345 = vrot.lane.b32.xlu1 %v1340_v59, %s9054_s23  ;;  %v1370_v10 = vmul.f32 %v1368_v62, %v6822_v17  ;;  %v1403_v12 = vmul.f32 %v1401_v6, %v6832_v55  ;;  %v1546_v54 = vrot.slane %v1539_v46, %v6589_v32  ;;  %s9149_s23 = smov 112  }
 0x285   : > { %v1371_v21 = vmul.f32 %v1368_v62, %v1356_v31  ;;  %v1404_v44 = vmul.f32 %v1401_v6, %v1389_v42  ;;  %v1534_v62 = vmul.f32 %v1506_v23, %v6656_v33 }
 0x286   : > { %v1548_v59 = vmul.f32 %v1546_v54, %v6872_v53  ;;  %v1085_v5 = vpop.permute.xlu0 %1084 }
 0x287   : > { %v1549_v29 = vmul.f32 %v1546_v54, %v1534_v62 }
 0x288   : > { %1374 = vrot.lane.b32.xlu0 %v1370_v10, %s9052_s2  ;;  %1433 = vrot.lane.b32.xlu1 %v1431_v8, %s9048_s1  ;;  %v1054_v8 = vpop.permute.xlu1 %1053  ;;  %s9081_s1 = smov 124  }
 0x28a   : > { %v1116_v22 = vpop.permute.xlu0 %1115 }
 0x28c   : > { %1407 = vrot.lane.b32.xlu0 %v1403_v12, %s9050_s24  ;;  %1522 = vrot.lane.b32.xlu1 %v1518_v61, %s9135_s25  ;;  %v1313_v6 = vpop.permute.xlu1 %1312 }
 0x28e   : > { %v1149_v60 = vpop.permute.xlu0 %1148 }
 0x28f   : > { %v1152_v23 = vrot.slane %v1149_v60, 4 }
 0x290   : > { %1237 = vrot.lane.b32.xlu0 %v1232_v19, %s9137_s27  ;;  %1376 = vrot.lane.b32.xlu1 %v1371_v21, %s9052_s2  ;;  %v1290_v19 = vmul.f32 %v1287_v47, %v1275_v43  ;;  %v1087_v61 = vpop.permute.xlu1 %1086  ;;  %v1088_v47 = vrot.slane %v1085_v5, 4  ;;  %s9146_s2 = sld [smem:[#allocation24_spill]] }
 0x291   : > { %v1089_v52 = vrot.slane %v1087_v61, 4 }
 0x292   : > { %v6881_v10 = vpop.permute.xlu0 %1174 }
 0x293   : > { %v1090_v34 = vsel %vm670_vm6, %v1088_v47, %v1089_v52  ;;  %v1176_v62 = vrot.slane %v6881_v10, 4  ;;  %v1047_v47 = vld [vmem:[#allocation2 + $0x8] sm:$0xf] }
 0x294   : > { %1496 = vrot.lane.b32.xlu0 %v1491_v9, %s9137_s27  ;;  %1293 = vrot.lane.b32.xlu1 %v1289_v30, %s9138_s21  ;;  %v1118_v14 = vpop.permute.xlu1 %1117  ;;  %v1119_v9 = vrot.slane %v1116_v22, 4  ;;  %v1061_v30 = vrot.slane %v1054_v8, %v6589_v32  ;;  %v1091_v43 = vsel %vm672_vm1, %v1085_v5, %v1090_v34  ;;  %v1049_v34 = vmul.f32 %v1047_v47, %v6676_v51  ;;  %v1306_v47 = vld [vmem:[#allocation3 + $0x8] sm:$0xf] }
 0x295   : > { %v1120_v25 = vrot.slane %v1118_v14, 4 }
 0x296   : > { %v1204_v31 = vpop.permute.xlu0 %1203 }
 0x297   : > { %v1121_v42 = vsel %vm670_vm6, %v1119_v9, %v1120_v25  ;;  %v1207_v25 = vrot.slane %v1204_v31, 4 }
 0x298   : > { %1265 = vrot.lane.b32.xlu0 %v1260_v37, %s9135_s25  ;;  %1524 = vrot.lane.b32.xlu1 %v1519_v40, %s9135_s25  ;;  %v1151_v21 = vpop.permute.xlu1 %1150 }
 0x299   : > { %v1153_v36 = vrot.slane %v1151_v21, 4 }
 0x29a   : > { %v6883_v12 = vpop.permute.xlu0 %1235 }
 0x29b   : > { %v1239_v9 = vrot.slane %v6883_v12, 4 }
 0x29c   : > { %1295 = vrot.lane.b32.xlu0 %v1290_v19, %s9138_s21  ;;  %1409 = vrot.lane.b32.xlu1 %v1404_v44, %s9050_s24  ;;  %v1264_v37 = vpop.permute.xlu1 %1263  ;;  %v1063_v19 = vmul.f32 %v1061_v30, %v6686_v1  ;;  %v1154_v44 = vsel %vm670_vm6, %v1152_v23, %v1153_v36  ;;  %v1177_v1 = vsel %vm624_vm5, %v1176_v62, %v6881_v10  ;;  %s9147_s24 = smov 127  }
 0x29d   : > { %v1064_v23 = vmul.f32 %v1061_v30, %v1049_v34  ;;  %v1320_v30 = vrot.slane %v1313_v6, %v6589_v32 }
 0x29e   : > { %v1206_v15 = vpop.permute.xlu0 %1205  ;;  %v1094_v54 = vadd.f32 %v1091_v43, %v1063_v19  ;;  %v1240_v43 = vsel %vm862_vm10, %v1239_v9, %v6883_v12  ;;  %v1267_v19 = vrot.slane %v1264_v37, 4 }
 0x2a0   : > { %1462 = vrot.lane.b32.xlu1 %v1458_v45, %s9136_s3  ;;  %v1268_v18 = vsel %vm891_vm11, %v1267_v19, %v1264_v37  ;;  %v1308_v37 = vmul.f32 %v1306_v47, %v6676_v51 }
 0x2a2   : > { %v6887_v40 = vpop.permute.xlu0 %1464 }
 0x2a4   : > { %1494 = vrot.lane.b32.xlu1 %v1490_v50, %s9137_s27  ;;  %v1122_v50 = vsel %vm721_vm7, %v1116_v22, %v1121_v42 }
 0x2a8   : > { %1552 = vrot.lane.b32.xlu1 %v1548_v59, %s9138_s21  ;;  %v1155_v59 = vsel %vm761_vm8, %v1149_v60, %v1154_v44  ;;  %v1208_v60 = vsel %vm822_vm9, %v1207_v25, %v1204_v31  ;;  %v1095_v44 = vadd.f32 %v1087_v61, %v1064_v23 }
 0x2aa   : > { %v1126_v10 = vadd.f32 %v1118_v14, %v1095_v44  ;;  %v6912_v14 = vmul.f32 %v6817_v58, %v6680_v56 }
 0x2ac   : > { %1554 = vrot.lane.b32.xlu1 %v1549_v29, %s9138_s21  ;;  %v1125_v29 = vadd.f32 %v1122_v50, %v1094_v54  ;;  %v1159_v26 = vadd.f32 %v1151_v21, %v1126_v10 }
 0x2ae   : > { %v1158_v5 = vadd.f32 %v1155_v59, %v1125_v29  ;;  %v1181_v34 = vadd.f32 %v1176_v62, %v1159_v26  ;;  %v1323_v62 = vmul.f32 %v1320_v30, %v1308_v37 }
 0x2b0   : > { %v1180_v42 = vadd.f32 %v1177_v1, %v1158_v5  ;;  %v1209_v5 = vsel %vm822_vm9, %v1207_v25, %v1206_v15 }
 0x2b1   : > { %v1213_v6 = vadd.f32 %v1209_v5, %v1181_v34 }
 0x2b2   : > { %v1212_v50 = vadd.f32 %v1208_v60, %v1180_v42 }
 0x2b4   : > { %v1244_v29 = vadd.f32 %v1240_v43, %v1212_v50 }
 0x2b6   : > { %v1272_v61 = vadd.f32 %v1268_v18, %v1244_v29 }
 0x2f6   : > { %v1346_v45 = vpop.permute.xlu1 %1345  ;;  %v1344_v46 = vpop.permute.xlu0 %1343 }
 0x2f7   : > { %v1348_v27 = vrot.slane %v1346_v45, 4  ;;  %v1347_v28 = vrot.slane %v1344_v46, 4 }
 0x2f9   : > { %v1349_v60 = vsel %vm670_vm6, %v1347_v28, %v1348_v27  ;;  %v1322_v27 = vmul.f32 %v1320_v30, %v6912_v14  ;;  %v1354_v28 = vadd.f32 %v1346_v45, %v1323_v62 }
 0x2fa   : > { %v6896_v8 = vpop.permute.xlu1 %1433  ;;  %v1375_v52 = vpop.permute.xlu0 %1374  ;;  %v1350_v44 = vsel %vm672_vm1, %v1344_v46, %v1349_v60 }
 0x2fb   : > { %v1378_v23 = vrot.slane %v1375_v52, 4  ;;  %v1353_v47 = vadd.f32 %v1350_v44, %v1322_v27 }
 0x2fe   : > { %v6902_v22 = vpop.permute.xlu1 %1522  ;;  %v1408_v36 = vpop.permute.xlu0 %1407 }
 0x2ff   : > { %v1411_v5 = vrot.slane %v1408_v36, 4 }
 0x302   : > { %v1377_v54 = vpop.permute.xlu1 %1376  ;;  %v1238_v59 = vpop.permute.xlu0 %1237 }
 0x303   : > { %v1379_v12 = vrot.slane %v1377_v54, 4  ;;  %v1241_v21 = vsel %vm862_vm10, %v1239_v9, %v1238_v59  ;;  %v1385_v46 = vadd.f32 %v1377_v54, %v1354_v28 }
 0x304   : > { %v1245_v50 = vadd.f32 %v1241_v21, %v1213_v6 }
 0x305   : > { %v1380_v18 = vsel %vm670_vm6, %v1378_v23, %v1379_v12 }
 0x306   : > { %v1294_v24 = vpop.permute.xlu1 %1293  ;;  %v1497_v31 = vpop.permute.xlu0 %1496  ;;  %v1381_v9 = vsel %vm721_vm7, %v1375_v52, %v1380_v18 }
 0x307   : > { %v1297_v1 = vrot.slane %v1294_v24, 4  ;;  %v1384_v30 = vadd.f32 %v1381_v9, %v1353_v47 }
 0x309   : > { %v1298_v42 = vsel %vm929_vm12, %v1297_v1, %v1294_v24 }
 0x30a   : > { %v1302_v43 = vadd.f32 %v1298_v42, %v1272_v61  ;;  %v1525_v15 = vpop.permute.xlu1 %1524  ;;  %v1266_v25 = vpop.permute.xlu0 %1265  ;;  %v1435_v61 = vrot.slane %v6896_v8, 4 }
 0x30b   : > { %v1269_v26 = vsel %vm891_vm11, %v1267_v19, %v1266_v25 }
 0x30c   : > { %v1657_v10 = vcombine.high %v1302_v43, %v1302_v43  ;;  %v1273_v59 = vadd.f32 %v1269_v26, %v1245_v50  ;;  %v1436_v42 = vsel %vm624_vm5, %v1435_v61, %v6896_v8  ;;  %v1526_v26 = vrot.slane %v6902_v22, 4 }
 0x30e   : > { %v1410_v24 = vpop.permute.xlu1 %1409  ;;  %1660 = vrot.lane.b32.xlu0 %v1657_v10, %s6396_s22  ;;  %v1296_v29 = vpop.permute.xlu0 %1295  ;;  %v1527_v9 = vsel %vm891_vm11, %v1526_v26, %v6902_v22  ;;  %v1563_v22 = vld [vmem:[%s9139_s8] sm:$0xf] }
 0x30f   : > { %v1412_v12 = vrot.slane %v1410_v24, 4  ;;  %v1299_v19 = vsel %vm929_vm12, %v1297_v1, %v1296_v29  ;;  %v1418_v45 = vadd.f32 %v1410_v24, %v1385_v46  ;;  %v2111_v46 = vld [vmem:[%s9019_s10 + $0x4] sm:$0xf] }
 0x310   : > { %v1303_v34 = vadd.f32 %v1299_v19, %v1273_v59 }
 0x311   : > { %v1413_v37 = vsel %vm670_vm6, %v1411_v5, %v1412_v12  ;;  %v1440_v25 = vadd.f32 %v1435_v61, %v1418_v45  ;;  %v2192_v45 = vld [vmem:[%s9019_s10 + $0x4] sm:$0xf] }
 0x312   : > { %v1463_v60 = vpop.permute.xlu1 %1462  ;;  %v1414_v52 = vsel %vm761_vm8, %v1408_v36, %v1413_v37  ;;  %1662 = vrot.lane.b32.xlu1 %v1303_v34, %s6396_s22  ;;  %v1852_v34 = vld [vmem:[%s9019_s10] sm:$0xf]  ;;  %v2159_v37 = vld [vmem:[%s9019_s10 + $0x4] sm:$0xf] }
 0x313   : > { %v1417_v23 = vadd.f32 %v1414_v52, %v1384_v30  ;;  %v1466_v21 = vrot.slane %v1463_v60, 4  ;;  %v2631_v30 = vld [vmem:[%s9019_s10 + $0x8] sm:$0xf]  ;;  %v2247_v52 = vld [vmem:[%s9019_s10 + $0x4] sm:$0xf] }
 0x315   : > { %v1439_v6 = vadd.f32 %v1436_v42, %v1417_v23  ;;  %v1467_v1 = vsel %vm822_vm9, %v1466_v21, %v1463_v60  ;;  %v1468_v54 = vsel %vm822_vm9, %v1466_v21, %v6887_v40  ;;  %v1528_v40 = vsel %vm891_vm11, %v1526_v26, %v1525_v15  ;;  %v1744_v15 = vld [vmem:[%s9018_s9] sm:$0xf]  ;;  %v2550_v60 = vld [vmem:[%s9019_s10 + $0x8] sm:$0xf]  ;;  %v2279_v26 = vld [vmem:[%s9019_s10 + $0x4] sm:$0xf] }
 0x316   : > { %v1495_v18 = vpop.permute.xlu1 %1494  ;;  %v1472_v36 = vadd.f32 %v1468_v54, %v1440_v25  ;;  %v2686_v23 = vld [vmem:[%s9019_s10 + $0x8] sm:$0xf]  ;;  %v9141_v54 = vmov 8   ;;  %v1988_v25 = vld [vmem:[%s9019_s10] sm:$0xf] }
 0x317   : > { %v1471_v62 = vadd.f32 %v1467_v1, %v1439_v6  ;;  %v1498_v44 = vrot.slane %v1495_v18, 4  ;;  %v2598_v21 = vld [vmem:[%s9019_s10 + $0x8] sm:$0xf]  ;;  %v9140_v6 = vmov 6  }
 0x318   : > { %v2718_v42 = vld [vmem:[%s9019_s10 + $0x8] sm:$0xf] }
 0x319   : > { %v1499_v50 = vsel %vm862_vm10, %v1498_v44, %v1495_v18  ;;  %v1500_v10 = vsel %vm862_vm10, %v1498_v44, %v1497_v31  ;;  %v2776_v1 = vld [vmem:[%s9019_s10 + $0x8] sm:$0xf]  ;;  %v9142_v18 = vmov 0   ;;  %v2020_v44 = vld [vmem:[%s9019_s10] sm:$0xf] }
 0x31a   : > { %v1503_v27 = vadd.f32 %v1499_v50, %v1471_v62  ;;  %v1553_v28 = vpop.permute.xlu1 %1552  ;;  %v1504_v8 = vadd.f32 %v1500_v10, %v1472_v36  ;;  %v1900_v62 = vld [vmem:[%s9019_s10] sm:$0xf]  ;;  %v9143_v36 = vmov 7   ;;  %v2337_v50 = vld [vmem:[%s9019_s10 + $0x4] sm:$0xf] }
 0x31b   : > { %v1556_v59 = vrot.slane %v1553_v28, 4  ;;  %v2078_v10 = vld [vmem:[%s9019_s10] sm:$0xf] }
 0x31c   : > { %v1531_v24 = vadd.f32 %v1527_v9, %v1503_v27  ;;  %v1532_v5 = vadd.f32 %v1528_v40, %v1504_v8  ;;  %v6371_v40 = vld [vmem:[#allocation2 + $0x4] sm:$0xff] }
 0x31d   : > { %v1557_v29 = vsel %vm929_vm12, %v1556_v59, %v1553_v28 }
 0x31e   : > { %v1555_v47 = vpop.permute.xlu1 %1554  ;;  %v1561_v12 = vadd.f32 %v1557_v29, %v1531_v24  ;;  %v7029_v29 = vcombine.high %v6371_v40, %v6371_v40 }
 0x31f   : > { %v1558_v19 = vsel %vm929_vm12, %v1556_v59, %v1555_v47 }
 0x320   : > { %v1562_v61 = vadd.f32 %v1558_v19, %v1532_v5  ;;  %1570 = vrot.lane.b32.xlu0 %v1561_v12, %s6396_s22  ;;  %v1569_v31 = vcombine.high %v1561_v12, %v1561_v12  ;;  %9144 = vst [vmem:[#allocation16_spill] sm:$0xff] %v7029_v29  ;;  %v1304_v19 = vld [vmem:[%s9139_s8] sm:$0xf]  ;;  %s9107_s8 = smov 116  }
 0x322   : > { %1574 = vrot.lane.b32.xlu1 %v1562_v61, %s6396_s22 }
 0x324   : > { %1572 = vrot.lane.b32.xlu0 %v1569_v31, %s6396_s22 }
 0x326   : > { %1658 = vrot.lane.b32.xlu1 %v1302_v43, %s6396_s22  ;;  %v1933_v43 = vld [vmem:[%s9019_s10] sm:$0xf] }
 0x328   : > { %1565 = vrot.lane.b32.xlu0 %v1563_v22, %s9081_s1  ;;  %v9145_v22 = vmov 0.0  }
 0x32a   : > { %1747 = vperm.xlu1 %6289, %v1744_v15   ;;  %v1758_v15 = vld [vmem:[%s9146_s2] sm:$0xf] }
 0x32c   : > { %2131 = vperm.xlu0 %6290, %v2111_v46  }
 0x32e   : > { %6291 = vset.pattern.permute.xlu1 %v9058_v4 }
 0x32f   : > { %1872 = vperm.xlu1 %6291, %v1852_v34  }
 0x330   : > { %6295 = vset.pattern.permute.xlu0 %v9064_v3 }
 0x331   : > { %1936 = vperm.xlu0 %6295, %v1933_v43  }
 0x333   : > { %6292 = vset.pattern.permute.xlu1 %v9062_v11 }
 0x334   : > { %2162 = vperm.xlu1 %6292, %v2159_v37  }
 0x335   : > { %2634 = vperm.xlu0 %6295, %v2631_v30  }
 0x338   : > { %6293 = vset.pattern.permute.xlu1 %v9064_v3 }
 0x339   : > { %6300 = vset.pattern.permute.xlu0 %v9056_v20  ;;  %2195 = vperm.xlu1 %6293, %v2192_v45  }
 0x33a   : > { %2662 = vperm.xlu0 %6300, %v2631_v30  }
 0x33d   : > { %6294 = vset.pattern.permute.xlu1 %v9058_v4 }
 0x33e   : > { %6301 = vset.pattern.permute.xlu0 %v9060_v16  ;;  %2570 = vperm.xlu1 %6294, %v2550_v60  }
 0x33f   : > { %2250 = vperm.xlu0 %6301, %v2247_v52  }
 0x342   : > { %6296 = vset.pattern.permute.xlu1 %v9062_v11 }
 0x343   : > { %2689 = vperm.xlu0 %6301, %v2686_v23   ;;  %2601 = vperm.xlu1 %6296, %v2598_v21   ;;  %v2129_v23 = vld [vmem:[#allocation3 + $0x8] sm:$0xf] }
 0x347   : > { %6304 = vset.pattern.permute.xlu0 %v9140_v6  ;;  %6297 = vset.pattern.permute.xlu1 %v9056_v20 }
 0x348   : > { %2721 = vperm.xlu0 %6304, %v2718_v42   ;;  %2223 = vperm.xlu1 %6297, %v2192_v45  }
 0x34c   : > { %6306 = vset.pattern.permute.xlu0 %v9141_v54  ;;  %1964 = vperm.xlu1 %6297, %v1933_v43  }
 0x34d   : > { %2779 = vperm.xlu0 %6306, %v2776_v1   ;;  %v1870_v1 = vld [vmem:[#allocation2 + $0x8] sm:$0xf] }
 0x350   : > { %6298 = vset.pattern.permute.xlu1 %v9060_v16 }
 0x351   : > { %6308 = vset.pattern.permute.xlu0 %v9142_v18  ;;  %1991 = vperm.xlu1 %6298, %v1988_v25  }
 0x352   : > { %2553 = vperm.xlu0 %6308, %v2550_v60   ;;  %v7057_v60 = vld [vmem:[#allocation2] sm:$0xff] }
 0x355   : > { %6299 = vset.pattern.permute.xlu1 %v9140_v6 }
 0x356   : > { %6309 = vset.pattern.permute.xlu0 %v9062_v11  ;;  %2282 = vperm.xlu1 %6299, %v2279_v26  }
 0x357   : > { %1903 = vperm.xlu0 %6309, %v1900_v62  }
 0x35a   : > { %2023 = vperm.xlu1 %6299, %v2020_v44  }
 0x35e   : > { %6302 = vset.pattern.permute.xlu1 %v9143_v36 }
 0x35f   : > { %2310 = vperm.xlu1 %6302, %v2279_v26  }
 0x363   : > { %2051 = vperm.xlu1 %6302, %v2020_v44  }
 0x367   : > { %6303 = vset.pattern.permute.xlu1 %v9141_v54 }
 0x368   : > { %2340 = vperm.xlu1 %6303, %v2337_v50   ;;  %v2158_v50 = vmul.f32 %v2129_v23, %v6595_v41 }
 0x36c   : > { %2081 = vperm.xlu1 %6303, %v2078_v10  }
 0x370   : > { %6305 = vset.pattern.permute.xlu1 %v9143_v36 }
 0x371   : > { %2749 = vperm.xlu1 %6305, %v2718_v42  }
 0x375   : > { %6307 = vset.pattern.permute.xlu1 %v9142_v18 }
 0x376   : > { %2114 = vperm.xlu1 %6307, %v2111_v46  }
 0x37a   : > { %1855 = vperm.xlu1 %6307, %v1852_v34  }
 0x37e   : > { %6310 = vset.pattern.permute.xlu1 %v9058_v4 }
 0x380   : > { %v1661_v27 = vpop.permute.xlu0 %1660 }
 0x384   : > { %v1663_v28 = vpop.permute.xlu1 %1662 }
 0x385   : > { %v1665_v8 = vsel %vm901_vm4, %v1661_v27, %v1663_v28 }
 0x386   : > { %6186 = vmatprep.subr.msk.mxu0 %vm670_vm6, %v1665_v8 }
 0x392   : > { %v1571_v9 = vpop.permute.xlu0 %1570 }
 0x394   : > { %v1575_v59 = vpop.permute.xlu1 %1574 }
 0x396   : > { %v1573_v24 = vpop.permute.xlu0 %1572 }
 0x397   : > { %v1577_v47 = vsel %vm901_vm4, %v1573_v24, %v1575_v59  ;;  %v1576_v5 = vsel %vm901_vm4, %v1571_v9, %v1573_v24 }
 0x398   : > { %v1659_v12 = vpop.permute.xlu1 %1658  ;;  %6183 = vmatprep.subr.msk.mxu1 %vm670_vm6, %v1577_v47 }
 0x399   : > { %v1664_v61 = vsel %vm901_vm4, %v1659_v12, %v1661_v27  ;;  %6184 = vmatpush1.msk.msra.mxu1 %vm670_vm6, %v1576_v5 }
 0x39a   : > { %6187 = vmatpush1.msk.msra.mxu0 %vm670_vm6, %v1664_v61  ;;  %v1566_v31 = vpop.permute.xlu0 %1565  ;;  %6189 = vmatprep.subr.msk.mxu1 %vm670_vm6, %v7029_v29 }
 0x39b   : > { %6185 = vmatmul.mubr.msk.f32.vlgmr.msra.gmra.mxu1 %vm954_vm13, %v1566_v31  ;;  %6188 = vmatmul.mubr.msk.f32.vlgmr.msra.gmra.mxu0 %vm954_vm13, %v1304_v19 }
 0x39c   : > { %6190 = vmatpush1.msk.msra.mxu1 %vm670_vm6, %v6371_v40  ;;  %1832 = vmatprep.mubr.f32.mxu1 %v9145_v22 }
 0x39d   : > { %2450 = vmatprep.mubr.f32.mxu0 %v9145_v22 }
 0x39f   : > { %6191 = vmatmul.mubr.msk.f32.vlgmr.msra.gmra.mxu1 %vm954_vm13, %v1758_v15  ;;  %v1898_v15 = vmul.f32 %v7057_v60, %v6604_v49 }
 0x3a0   : > { %2539 = vmatprep.mubr.f32.mxu1 %v9145_v22 }
 0x3a5   : > { %v7052_v46 = vpop.permute.xlu1 %1747 }
 0x3a7   : > { %v2132_v34 = vpop.permute.xlu0 %2131 }
 0x3a8   : > { %v2139_v43 = vrot.slane %v2132_v34, %v6589_v32  ;;  %v1899_v34 = vmul.f32 %v1870_v1, %v6595_v41 }
 0x3aa   : > { %v2141_v37 = vmul.f32 %v2139_v43, %v6817_v58  ;;  %v1873_v30 = vpop.permute.xlu1 %1872  ;;  %v2142_v42 = vmul.f32 %v2139_v43, %v2129_v23 }
 0x3ab   : > { %v1880_v45 = vrot.slane %v1873_v30, %v6589_v32 }
 0x3ac   : > { %2145 = vrot.lane.b32.xlu1 %v2141_v37, %s9147_s24  ;;  %v1937_v52 = vpop.permute.xlu0 %1936  ;;  %v2189_v37 = vld [vmem:[#allocation3 + $0x8] sm:$0xf] }
 0x3ad   : > { %v1882_v21 = vmul.f32 %v1880_v45, %v7057_v60  ;;  %v1883_v26 = vmul.f32 %v1880_v45, %v1870_v1 }
 0x3af   : > { %v2163_v25 = vpop.permute.xlu1 %2162  ;;  %1886 = vrot.lane.b32.xlu0 %v1882_v21, %s9147_s24 }
 0x3b0   : > { %v2170_v62 = vrot.slane %v2163_v25, %v6589_v32  ;;  %2147 = vrot.lane.b32.xlu1 %v2142_v42, %s9147_s24  ;;  %v7064_v58 = vpop.permute.xlu0 %2634  ;;  %v2191_v42 = vmul.f32 %v2189_v37, %v6601_v48  ;;  %v1930_v25 = vld [vmem:[#allocation2 + $0x8] sm:$0xf] }
 0x3b2   : > { %v2172_v44 = vmul.f32 %v2170_v62, %v6822_v17  ;;  %v2173_v28 = vmul.f32 %v2170_v62, %v2158_v50  ;;  %v1931_v50 = vmul.f32 %v7057_v60, %v6617_v57 }
 0x3b4   : > { %2176 = vrot.lane.b32.xlu0 %v2172_v44, %s9148_s4  ;;  %1888 = vrot.lane.b32.xlu1 %v1883_v26, %s9147_s24  ;;  %v2196_v10 = vpop.permute.xlu1 %2195  ;;  %v1944_v26 = vrot.slane %v1937_v52, %v6589_v32  ;;  %v1962_v52 = vld [vmem:[#allocation2 + $0x4] sm:$0xff] }
 0x3b5   : > { %v7070_v27 = vpop.permute.xlu0 %2662  ;;  %v2203_v30 = vrot.slane %v2196_v10, %v6589_v32  ;;  %v1932_v10 = vmul.f32 %v1930_v25, %v6601_v48 }
 0x3b7   : > { %v2205_v62 = vmul.f32 %v2203_v30, %v6832_v55  ;;  %v2206_v1 = vmul.f32 %v2203_v30, %v2191_v42 }
 0x3b8   : > { %2178 = vrot.lane.b32.xlu1 %v2173_v28, %s9148_s4 }
 0x3b9   : > { %v7073_v8 = vpop.permute.xlu1 %2570 }
 0x3ba   : > { %v2251_v9 = vpop.permute.xlu0 %2250 }
 0x3bb   : > { %v2258_v37 = vrot.slane %v2251_v9, %v6589_v32 }
 0x3be   : > { %v7075_v59 = vpop.permute.xlu0 %2689  ;;  %v7077_v24 = vpop.permute.xlu1 %2601 }
 0x3c3   : > { %v2224_v17 = vpop.permute.xlu1 %2223  ;;  %v7079_v40 = vpop.permute.xlu0 %2721 }
 0x3c7   : > { %v1965_v47 = vpop.permute.xlu1 %1964 }
 0x3c8   : > { %v7081_v5 = vpop.permute.xlu0 %2779  ;;  %v1972_v28 = vrot.slane %v1965_v47, %v6589_v32 }
 0x3ca   : > { %v1974_v55 = vmul.f32 %v1972_v28, %v1962_v52 }
 0x3cc   : > { %v1992_v12 = vpop.permute.xlu1 %1991 }
 0x3cd   : > { %v7083_v19 = vpop.permute.xlu0 %2553  ;;  %v1999_v47 = vrot.slane %v1992_v12, %v6589_v32 }
 0x3d1   : > { %v2283_v61 = vpop.permute.xlu1 %2282 }
 0x3d2   : > { %v1904_v31 = vpop.permute.xlu0 %1903 }
 0x3d3   : > { %v1911_v43 = vrot.slane %v1904_v31, %v6589_v32  ;;  %v1946_v31 = vmul.f32 %v1944_v26, %v1931_v50  ;;  %v2049_v50 = vld [vmem:[#allocation2 + $0xc] sm:$0xf] }
 0x3d5   : > { %v1913_v45 = vmul.f32 %v1911_v43, %v1898_v15  ;;  %v1914_v23 = vmul.f32 %v1911_v43, %v1899_v34  ;;  %v2024_v21 = vpop.permute.xlu1 %2023  ;;  %v1947_v15 = vmul.f32 %v1944_v26, %v1932_v10  ;;  %v2231_v34 = vrot.slane %v2224_v17, %v6589_v32  ;;  %v2244_v17 = vld [vmem:[#allocation3 + $0xc] sm:$0xf] }
 0x3d6   : > { %v2246_v10 = vmul.f32 %v2244_v17, %v6627_v63 }
 0x3d7   : > { %1919 = vrot.lane.b32.xlu1 %v1914_v23, %s9148_s4  ;;  %1917 = vrot.lane.b32.xlu0 %v1913_v45, %s9148_s4  ;;  %v2233_v30 = vmul.f32 %v2231_v34, %v6812_v35  ;;  %v2308_v45 = vld [vmem:[#allocation3 + $0xc] sm:$0xf]  ;;  %v1986_v23 = vmul.f32 %v1962_v52, %v6632_v2 }
 0x3d8   : > { %v2336_v25 = vmul.f32 %v2308_v45, %v6656_v33 }
 0x3d9   : > { %v2001_v9 = vmul.f32 %v1999_v47, %v1986_v23  ;;  %v2018_v23 = vmul.f32 %v1962_v52, %v6644_v13 }
 0x3da   : > { %v2311_v44 = vpop.permute.xlu1 %2310 }
 0x3db   : > { %2211 = vrot.lane.b32.xlu1 %v2206_v1, %s9149_s23  ;;  %2209 = vrot.lane.b32.xlu0 %v2205_v62, %s9149_s23  ;;  %v2260_v62 = vmul.f32 %v2258_v37, %v6859_v39  ;;  %v2290_v1 = vrot.slane %v2283_v61, %v6589_v32  ;;  %v2261_v39 = vmul.f32 %v2258_v37, %v2246_v10  ;;  %v1985_v37 = vld [vmem:[#allocation2 + $0xc] sm:$0xf]  ;;  %v2276_v10 = vld [vmem:[#allocation3 + $0xc] sm:$0xf] }
 0x3dc   : > { %v2031_v61 = vrot.slane %v2024_v21, %v6589_v32  ;;  %v2318_v17 = vrot.slane %v2311_v44, %v6589_v32 }
 0x3de   : > { %v2052_v43 = vpop.permute.xlu1 %2051  ;;  %v2320_v21 = vmul.f32 %v2318_v17, %v6812_v35 }
 0x3df   : > { %1952 = vrot.lane.b32.xlu1 %v1947_v15, %s9149_s23  ;;  %1950 = vrot.lane.b32.xlu0 %v1946_v31, %s9149_s23  ;;  %v2059_v28 = vrot.slane %v2052_v43, %v6589_v32  ;;  %v2077_v15 = vmul.f32 %v2049_v50, %v6656_v33  ;;  %v2033_v43 = vmul.f32 %v2031_v61, %v2018_v23 }
 0x3e1   : > { %v2062_v23 = vmul.f32 %v2059_v28, %v2049_v50 }
 0x3e3   : > { %v2341_v42 = vpop.permute.xlu1 %2340  ;;  %1976 = vrot.lane.b32.xlu1 %v1974_v55, %s9150_s28  ;;  %2235 = vrot.lane.b32.xlu0 %v2233_v30, %s9150_s28  ;;  %v2292_v55 = vmul.f32 %v2290_v1, %v6865_v0  ;;  %v2017_v0 = vld [vmem:[#allocation2 + $0xc] sm:$0xf] }
 0x3e4   : > { %v2348_v26 = vrot.slane %v2341_v42, %v6589_v32  ;;  %v2061_v42 = vmul.f32 %v2059_v28, %v1962_v52 }
 0x3e6   : > { %v7114_v12 = vmul.f32 %v2348_v26, %v2336_v25  ;;  %v2350_v25 = vmul.f32 %v2348_v26, %v6872_v53  ;;  %v2076_v53 = vmul.f32 %v1962_v52, %v6663_v38  ;;  %v2683_v26 = vld [vmem:[#allocation4 + $0xc] sm:$0xf] }
 0x3e7   : > { %v2082_v31 = vpop.permute.xlu1 %2081  ;;  %2005 = vrot.lane.b32.xlu1 %v2001_v9, %s9136_s3  ;;  %2264 = vrot.lane.b32.xlu0 %v2260_v62, %s9136_s3  ;;  %v1987_v62 = vmul.f32 %v1985_v37, %v6627_v63  ;;  %v2019_v9 = vmul.f32 %v2017_v0, %v6636_v7 }
 0x3e8   : > { %v2089_v34 = vrot.slane %v2082_v31, %v6589_v32 }
 0x3e9   : > { %v2002_v44 = vmul.f32 %v1999_v47, %v1987_v62  ;;  %v2034_v31 = vmul.f32 %v2031_v61, %v2019_v9  ;;  %v2685_v61 = vmul.f32 %v2683_v26, %v6627_v63 }
 0x3ea   : > { %v7124_v30 = vmul.f32 %v2089_v34, %v2077_v15  ;;  %v2278_v15 = vmul.f32 %v2276_v10, %v6636_v7  ;;  %v2091_v47 = vmul.f32 %v2089_v34, %v2076_v53 }
 0x3eb   : > { %2266 = vrot.lane.b32.xlu1 %v2261_v39, %s9136_s3  ;;  %2296 = vrot.lane.b32.xlu0 %v2292_v55, %s9137_s27  ;;  %v2321_v39 = vmul.f32 %v2318_v17, %v2308_v45  ;;  %v7146_v55 = vrot.slane %v7075_v59, %v6589_v32 }
 0x3ec   : > { %v2293_v35 = vmul.f32 %v2290_v1, %v2278_v15  ;;  %v7153_v52 = vpop.permute.xlu1 %2749 }
 0x3ed   : > { %v2700_v45 = vmul.f32 %v7146_v55, %v2685_v61 }
 0x3ef   : > { %2065 = vrot.lane.b32.xlu1 %v2061_v42, %s9135_s25  ;;  %2037 = vrot.lane.b32.xlu0 %v2033_v43, %s9137_s27 }
 0x3f1   : > { %v2115_v1 = vpop.permute.xlu1 %2114 }
 0x3f3   : > { %2354 = vrot.lane.b32.xlu1 %v2350_v25, %s9138_s21  ;;  %2324 = vrot.lane.b32.xlu0 %v2320_v21, %s9135_s25  ;;  %v2108_v21 = vld [vmem:[#allocation3 + $0x8] sm:$0xf]  ;;  %v7174_v25 = vrot.slane %v2115_v1, %v6589_v32 }
 0x3f4   : > { %v2110_v10 = vmul.f32 %v2108_v21, %v6676_v51 }
 0x3f5   : > { %v7155_v42 = vpop.permute.xlu1 %1855 }
 0x3f7   : > { %2039 = vrot.lane.b32.xlu1 %v2034_v31, %s9137_s27  ;;  %2007 = vrot.lane.b32.xlu0 %v2002_v44, %s9136_s3  ;;  %v2125_v44 = vmul.f32 %v7174_v25, %v2110_v10 }
 0x3fb   : > { %2326 = vrot.lane.b32.xlu1 %v2321_v39, %s9135_s25  ;;  %2298 = vrot.lane.b32.xlu0 %v2293_v35, %s9137_s27 }
 0x3ff   : > { %2095 = vrot.lane.b32.xlu0 %v2091_v47, %s9138_s21 }
 0x403   : > { %2705 = vrot.lane.b32.xlu0 %v2700_v45, %s9136_s3 }
 0x407   : > { %2067 = vrot.lane.b32.xlu0 %v2062_v23, %s9135_s25 }
 0x41e   : > { %v7157_v43 = vpop.permute.xlu1 %2145 }
 0x421   : > { %v7161_v34 = vpop.permute.xlu0 %1886 }
 0x422   : > { %v7159_v59 = vpop.permute.xlu1 %2147 }
 0x423   : > { %v2156_v39 = vadd.f32 %v7159_v59, %v2125_v44 }
 0x426   : > { %v7163_v17 = vpop.permute.xlu1 %1888  ;;  %v7165_v37 = vpop.permute.xlu0 %2176 }
 0x42a   : > { %v7167_v50 = vpop.permute.xlu1 %2178 }
 0x42b   : > { %v2187_v35 = vadd.f32 %v7167_v50, %v2156_v39 }
 0x449   : > { %v7169_v28 = vpop.permute.xlu1 %1919  ;;  %v7171_v0 = vpop.permute.xlu0 %1917 }
 0x44d   : > { %v7176_v62 = vpop.permute.xlu1 %2211  ;;  %v7178_v9 = vpop.permute.xlu0 %2209 }
 0x44e   : > { %v2220_v47 = vadd.f32 %v7176_v62, %v2187_v35 }
 0x451   : > { %v7182_v31 = vpop.permute.xlu1 %1952  ;;  %v7184_v15 = vpop.permute.xlu0 %1950 }
 0x455   : > { %v7188_v53 = vpop.permute.xlu1 %1976  ;;  %v7190_v26 = vpop.permute.xlu0 %2235 }
 0x456   : > { %v9066_v61 = vrot.slane %v7190_v26, 4 }
 0x458   : > { %v2242_v45 = vadd.f32 %v9066_v61, %v2220_v47 }
 0x459   : > { %v7196_v23 = vpop.permute.xlu1 %2005  ;;  %v7198_v1 = vpop.permute.xlu0 %2264 }
 0x45a   : > { %v9074_v39 = vrot.slane %v7198_v1, 4 }
 0x45b   : > { %v1650_v21 = vpop.f32.mrf.mxu1  ;;  %v1739_v10 = vpop.f32.mrf.mxu0 }
 0x45c   : > { %v1740_v44 = vadd.f32 %v1739_v10, %v1650_v21 }
 0x45d   : > { %v1652_v20 = vpop.f32.mrf.mxu1  ;;  %v1741_v4 = vpop.f32.mrf.mxu0 }
 0x45e   : > { %v1750_v16 = vadd.f32 %v7052_v46, %v1740_v44  ;;  %v1742_v11 = vadd.f32 %v1741_v4, %v1652_v20  ;;  %v2267_v35 = vpop.permute.xlu1 %2266  ;;  %v7202_v3 = vpop.permute.xlu0 %2296 }
 0x45f   : > { %v2270_v47 = vsel %vm822_vm9, %v9074_v39, %v2267_v35  ;;  %v1834_v21 = vpop.f32.mrf.mxu1 }
 0x460   : > { %v1751_v61 = vadd.f32 %v7052_v46, %v1742_v11  ;;  %v2274_v29 = vadd.f32 %v2270_v47, %v2242_v45  ;;  %vm1752_vm0 = vcmp.ge.f32.partialorder %v1750_v16, 0.0  ;;  %v1754_v63 = vmul.f32 0.2, %v1750_v16 }
 0x461   : > { %v1836_v44 = vpop.f32.mrf.mxu1  ;;  %v2578_v47 = vrot.slane %v7073_v8, %v6589_v32 }
 0x462   : > { %v1756_v10 = vsel %vm1752_vm0, %v1750_v16, %v1754_v63  ;;  %v7208_v22 = vpop.permute.xlu1 %2065  ;;  %v7210_v54 = vpop.permute.xlu0 %2037  ;;  %vm1753_vm2 = vcmp.ge.f32.partialorder %v1751_v61, 0.0  ;;  %v1755_v4 = vmul.f32 0.2, %v1751_v61 }
 0x463   : > { %v7212_v18 = vadd.f32 %v1834_v21, %v1756_v10 }
 0x464   : > { %v1757_v20 = vsel %vm1753_vm2, %v1751_v61, %v1755_v4  ;;  %v9078_v61 = vrot.slane %v7202_v3, 4 }
 0x465   : > { %9151 = vst [vmem:[#allocation17_spill] sm:$0xff] %v7212_v18  ;;  %v7214_v36 = vadd.f32 %v1836_v44, %v1757_v20 }
 0x466   : > { %v7216_v35 = vpop.permute.xlu1 %2354  ;;  %v7218_v11 = vpop.permute.xlu0 %2324 }
 0x467   : > { %9152 = vst [vmem:[#allocation18_spill] sm:$0xff] %v7214_v36  ;;  %v7222_v46 = vcombine.low %v7212_v18, %v7214_v36  ;;  %v9079_v4 = vrot.slane %v7218_v11, 4 }
 0x469   : > { %1847 = vst [vmem:[#allocation4 + $0x4] sm:$0xff] %v7222_v46 }
 0x46a   : > { %v7225_v16 = vpop.permute.xlu1 %2039  ;;  %v7227_v63 = vpop.permute.xlu0 %2007 }
 0x46b   : > { %9153 = vst [vmem:[#allocation19_spill] sm:$0xff] %v7225_v16 }
 0x46e   : > { %v2299_v45 = vpop.permute.xlu0 %2298  ;;  %v2327_v21 = vpop.permute.xlu1 %2326 }
 0x46f   : > { %v2302_v10 = vsel %vm862_vm10, %v9078_v61, %v2299_v45  ;;  %v2330_v8 = vsel %vm891_vm11, %v9079_v4, %v2327_v21  ;;  %v2670_v45 = vrot.slane %v7070_v27, %v6589_v32  ;;  %v2642_v27 = vrot.slane %v7064_v58, %v6589_v32 }
 0x470   : > { %v2306_v20 = vadd.f32 %v2302_v10, %v2274_v29  ;;  %v2568_v44 = vld [vmem:[#allocation4 + $0x8] sm:$0xf]  ;;  %v7236_v39 = vld [vmem:[#allocation4] sm:$0xff]  ;;  %v2609_v29 = vrot.slane %v7077_v24, %v6589_v32  ;;  %v7256_v10 = vrot.slane %v7153_v52, %v6589_v32  ;;  %v2715_v24 = vld [vmem:[#allocation4 + $0xc] sm:$0xf]  ;;  %v2149_v52 = vrot.slane %v7157_v43, 4 }
 0x471   : > { %v2581_v36 = vmul.f32 %v2578_v47, %v2568_v44  ;;  %v2580_v18 = vmul.f32 %v2578_v47, %v7236_v39  ;;  %v7241_v6 = vmul.f32 %v7236_v39, %v6604_v49  ;;  %v2628_v16 = vld [vmem:[#allocation4 + $0x8] sm:$0xf]  ;;  %v2672_v61 = vmul.f32 %v2670_v45, %v7222_v46 }
 0x472   : > { %v7252_v47 = vadd.f32 %v2330_v8, %v2306_v20  ;;  %v2630_v4 = vmul.f32 %v2628_v16, %v6601_v48  ;;  %v2181_v20 = vrot.slane %v7167_v50, 4  ;;  %v2759_v16 = vmul.f32 %v7256_v10, %v7222_v46 }
 0x473   : > { %9154 = vst [vmem:[#allocation20_spill] sm:$0xff] %v7241_v6  ;;  %2586 = vrot.lane.b32.xlu1 %v2581_v36, %s9147_s24  ;;  %2584 = vrot.lane.b32.xlu0 %v2580_v18, %s9147_s24  ;;  %v2611_v21 = vmul.f32 %v2609_v29, %v7241_v6  ;;  %v2150_v36 = vrot.slane %v7159_v59, 4  ;;  %v2729_v18 = vrot.slane %v7079_v40, %v6589_v32  ;;  %v2213_v40 = vrot.slane %v7178_v9, 4 }
 0x474   : > { %v2645_v8 = vmul.f32 %v2642_v27, %v2630_v4  ;;  %v2597_v58 = vmul.f32 %v2568_v44, %v6595_v41  ;;  %v2717_v45 = vmul.f32 %v2715_v24, %v6636_v7  ;;  %v7283_v44 = vmul.f32 %v7236_v39, %v6617_v57 }
 0x475   : > { %v2151_v59 = vsel %vm670_vm6, %v2149_v52, %v2150_v36  ;;  %v7287_v24 = vmul.f32 %v7222_v46, %v6644_v13  ;;  %v2124_v36 = vmul.f32 %v7174_v25, %v6912_v14  ;;  %v2747_v14 = vld [vmem:[#allocation4 + $0xc] sm:$0xf]  ;;  %v9155_v25 = vrot.slane %v7190_v26, 4 }
 0x476   : > { %v2732_v50 = vmul.f32 %v2729_v18, %v2717_v45  ;;  %v2612_v4 = vmul.f32 %v2609_v29, %v2597_v58 }
 0x477   : > { %2674 = vrot.lane.b32.xlu1 %v2672_v61, %s9150_s28  ;;  %2615 = vrot.lane.b32.xlu0 %v2611_v21, %s9148_s4  ;;  %v2180_v61 = vrot.slane %v7165_v37, 4  ;;  %v2214_v21 = vrot.slane %v7176_v62, 4  ;;  %v2152_v62 = vsel %vm672_vm1, %v7157_v43, %v2151_v59  ;;  %v2238_v45 = vsel %vm624_vm5, %v9155_v25, %v7190_v26 }
 0x478   : > { %v2775_v59 = vmul.f32 %v2747_v14, %v6656_v33  ;;  %v1863_v25 = vrot.slane %v7155_v42, %v6589_v32 }
 0x479   : > { %v2182_v6 = vsel %vm670_vm6, %v2180_v61, %v2181_v20  ;;  %v2215_v52 = vsel %vm670_vm6, %v2213_v40, %v2214_v21  ;;  %v2155_v20 = vadd.f32 %v2152_v62, %v2124_v36 }
 0x47a   : > { %v2183_v29 = vsel %vm721_vm7, %v7165_v37, %v2182_v6  ;;  %v2216_v43 = vsel %vm761_vm8, %v7178_v9, %v2215_v52  ;;  %v2787_v6 = vrot.slane %v7081_v5, %v6589_v32  ;;  %v9156_v9 = vrot.slane %v7198_v1, 4 }
 0x47b   : > { %2763 = vrot.lane.b32.xlu1 %v2759_v16, %s9135_s25  ;;  %2650 = vrot.lane.b32.xlu0 %v2645_v8, %s9149_s23  ;;  %v2644_v16 = vmul.f32 %v2642_v27, %v7283_v44  ;;  %v2731_v8 = vmul.f32 %v2729_v18, %v7287_v24  ;;  %v2186_v58 = vadd.f32 %v2183_v29, %v2155_v20  ;;  %v9157_v5 = vrot.slane %v7202_v3, 4  ;;  %v7350_v20 = vpop.permute.xlu0 %2095 }
 0x47c   : > { %v7312_v27 = vmul.f32 %v7222_v46, %v6632_v2  ;;  %v2269_v18 = vsel %vm822_vm9, %v9156_v9, %v7198_v1  ;;  %v2790_v21 = vmul.f32 %v2787_v6, %v2775_v59  ;;  %v7331_v1 = vmul.f32 %v7222_v46, %v6663_v38  ;;  %v1849_v9 = vld [vmem:[#allocation2 + $0x8] sm:$0xf] }
 0x47d   : > { %v2219_v37 = vadd.f32 %v2216_v43, %v2186_v58  ;;  %v2301_v26 = vsel %vm862_vm10, %v9157_v5, %v7202_v3  ;;  %v2358_v3 = vrot.slane %v7216_v35, 4  ;;  %v2760_v52 = vmul.f32 %v7256_v10, %v2747_v14 }
 0x47e   : > { %v2789_v36 = vmul.f32 %v2787_v6, %v7331_v1  ;;  %v1891_v43 = vrot.slane %v7163_v17, 4  ;;  %v1922_v58 = vrot.slane %v7169_v28, 4  ;;  %v1921_v10 = vrot.slane %v7171_v0, 4 }
 0x47f   : > { %2617 = vrot.lane.b32.xlu1 %v2612_v4, %s9148_s4  ;;  %2737 = vrot.lane.b32.xlu0 %v2732_v50, %s9137_s27  ;;  %v2241_v61 = vadd.f32 %v2238_v45, %v2219_v37  ;;  %v2699_v50 = vmul.f32 %v7146_v55, %v7312_v27  ;;  %v2359_v55 = vsel %vm929_vm12, %v2358_v3, %v7216_v35  ;;  %v1955_v6 = vrot.slane %v7182_v31, 4 }
 0x480   : > { %v1954_v37 = vrot.slane %v7184_v15, 4  ;;  %v1923_v59 = vsel %vm670_vm6, %v1921_v10, %v1922_v58 }
 0x481   : > { %v2273_v40 = vadd.f32 %v2269_v18, %v2241_v61  ;;  %v1850_v18 = vmul.f32 %v7057_v60, %v6680_v56 }
 0x483   : > { %2648 = vrot.lane.b32.xlu1 %v2644_v16, %s9149_s23  ;;  %2735 = vrot.lane.b32.xlu0 %v2731_v8, %s9137_s27  ;;  %v7352_v16 = vpop.permute.xlu0 %2705  ;;  %v1890_v8 = vrot.slane %v7161_v34, 4  ;;  %v1865_v42 = vmul.f32 %v1863_v25, %v1850_v18  ;;  %v2069_v18 = vrot.slane %v7208_v22, 4 }
 0x485   : > { %v1892_v45 = vsel %vm670_vm6, %v1890_v8, %v1891_v43  ;;  %v2547_v8 = vld [vmem:[#allocation4 + $0x8] sm:$0xf]  ;;  %v2041_v43 = vrot.slane %v7210_v54, 4 }
 0x486   : > { %v1893_v61 = vsel %vm672_vm1, %v7161_v34, %v1892_v45 }
 0x487   : > { %2356 = vrot.lane.b32.xlu1 %v7114_v12, %s9138_s21  ;;  %2097 = vrot.lane.b32.xlu0 %v7124_v30, %s9138_s21  ;;  %v9158_v12 = vrot.slane %v7218_v11, 4  ;;  %v2305_v30 = vadd.f32 %v2301_v26, %v2273_v40  ;;  %v2068_v14 = vpop.permute.xlu0 %2067  ;;  %v1956_v40 = vsel %vm670_vm6, %v1954_v37, %v1955_v6  ;;  %v2549_v6 = vmul.f32 %v2547_v8, %v6676_v51 }
 0x488   : > { %v1957_v60 = vsel %vm761_vm8, %v7184_v15, %v1956_v40 }
 0x489   : > { %v2329_v4 = vsel %vm891_vm11, %v9158_v12, %v7218_v11 }
 0x48a   : > { %v2333_v62 = vadd.f32 %v2329_v4, %v2305_v30  ;;  %v1896_v4 = vadd.f32 %v1893_v61, %v1865_v42  ;;  %v1978_v30 = vrot.slane %v7188_v53, 4 }
 0x48b   : > { %2703 = vrot.lane.b32.xlu1 %v2699_v50, %s9136_s3  ;;  %2795 = vrot.lane.b32.xlu0 %v2790_v21, %s9138_s21  ;;  %v1851_v21 = vmul.f32 %v1849_v9, %v6676_v51  ;;  %v1924_v50 = vsel %vm721_vm7, %v7171_v0, %v1923_v59  ;;  %v2042_v59 = vsel %vm862_vm10, %v2041_v43, %v7210_v54 }
 0x48c   : > { %v2363_v11 = vadd.f32 %v2359_v55, %v2333_v62  ;;  %v1927_v55 = vadd.f32 %v1924_v50, %v1896_v4  ;;  %v1979_v0 = vsel %vm624_vm5, %v1978_v30, %v7188_v53 }
 0x48d   : > { %v1866_v12 = vmul.f32 %v1863_v25, %v1851_v21 }
 0x48e   : > { %v2371_v29 = vcombine.high %v2363_v11, %v2363_v11 }
 0x48f   : > { %2793 = vrot.lane.b32.xlu1 %v2789_v36, %s9138_s21  ;;  %v1897_v36 = vadd.f32 %v7163_v17, %v1866_v12  ;;  %v2099_v12 = vrot.slane %v7350_v20, 4 }
 0x493   : > { %2765 = vrot.lane.b32.xlu1 %v2760_v52, %s9135_s25  ;;  %v2009_v52 = vrot.slane %v7196_v23, 4 }
 0x495   : > { %v2010_v17 = vsel %vm822_vm9, %v2009_v52, %v7196_v23  ;;  %v2011_v53 = vsel %vm822_vm9, %v2009_v52, %v7227_v63 }
 0x497   : > { %2374 = vrot.lane.b32.xlu1 %v2371_v29, %s6396_s22  ;;  %v1960_v29 = vadd.f32 %v1957_v60, %v1927_v55 }
 0x499   : > { %v1982_v37 = vadd.f32 %v1979_v0, %v1960_v29  ;;  %v2071_v0 = vsel %vm891_vm11, %v2069_v18, %v2068_v14 }
 0x49b   : > { %2372 = vrot.lane.b32.xlu1 %v2363_v11, %s6396_s22  ;;  %v1928_v11 = vadd.f32 %v7169_v28, %v1897_v36  ;;  %v2561_v28 = vrot.slane %v7083_v19, %v6589_v32  ;;  %v2014_v42 = vadd.f32 %v2010_v17, %v1982_v37  ;;  %v9159_v36 = vld [vmem:[#allocation19_spill] sm:$0xff] }
 0x49c   : > { %v2043_v55 = vsel %vm862_vm10, %v2041_v43, %v9159_v36 }
 0x49d   : > { %v1961_v45 = vadd.f32 %v7182_v31, %v1928_v11  ;;  %v7398_v31 = vmul.f32 %v7236_v39, %v6680_v56  ;;  %v2564_v63 = vmul.f32 %v2561_v28, %v2549_v6  ;;  %v2046_v4 = vadd.f32 %v2042_v59, %v2014_v42 }
 0x49f   : > { %v1983_v9 = vadd.f32 %v1978_v30, %v1961_v45  ;;  %v2070_v30 = vsel %vm891_vm11, %v2069_v18, %v7208_v22  ;;  %v2563_v11 = vmul.f32 %v2561_v28, %v7398_v31 }
 0x4a0   : > { %v2074_v37 = vadd.f32 %v2070_v30, %v2046_v4 }
 0x4a1   : > { %v2015_v50 = vadd.f32 %v2011_v53, %v1983_v9 }
 0x4a3   : > { %v2047_v17 = vadd.f32 %v2043_v55, %v2015_v50 }
 0x4e5   : > { %v2587_v5 = vpop.permute.xlu1 %2586  ;;  %v2585_v26 = vpop.permute.xlu0 %2584 }
 0x4e6   : > { %v2589_v15 = vrot.slane %v2587_v5, 4  ;;  %v2588_v58 = vrot.slane %v2585_v26, 4  ;;  %v2595_v52 = vadd.f32 %v2587_v5, %v2564_v63  ;;  %v2075_v5 = vadd.f32 %v2071_v0, %v2047_v17 }
 0x4e8   : > { %v2590_v23 = vsel %vm670_vm6, %v2588_v58, %v2589_v15 }
 0x4e9   : > { %v7375_v62 = vpop.permute.xlu1 %2674  ;;  %v2616_v34 = vpop.permute.xlu0 %2615  ;;  %v2591_v60 = vsel %vm672_vm1, %v2585_v26, %v2590_v23  ;;  %v2100_v26 = vsel %vm929_vm12, %v2099_v12, %v7350_v20 }
 0x4ea   : > { %v2619_v19 = vrot.slane %v2616_v34, 4  ;;  %v2594_v6 = vadd.f32 %v2591_v60, %v2563_v11  ;;  %v2104_v14 = vadd.f32 %v2100_v26, %v2074_v37  ;;  %v2676_v18 = vrot.slane %v7375_v62, 4 }
 0x4ec   : > { %v2677_v50 = vsel %vm624_vm5, %v2676_v18, %v7375_v62  ;;  %v2459_v35 = vcombine.high %v2104_v14, %v2104_v14 }
 0x4ed   : > { %v7383_v10 = vpop.permute.xlu1 %2763  ;;  %v2651_v25 = vpop.permute.xlu0 %2650 }
 0x4ee   : > { %v2653_v15 = vrot.slane %v2651_v25, 4 }
 0x4f1   : > { %v2618_v61 = vpop.permute.xlu1 %2617  ;;  %v2738_v21 = vpop.permute.xlu0 %2737 }
 0x4f2   : > { %v2620_v40 = vrot.slane %v2618_v61, 4  ;;  %v2626_v22 = vadd.f32 %v2618_v61, %v2595_v52  ;;  %v2365_v52 = vld [vmem:[%s9020_s11] sm:$0xf] }
 0x4f4   : > { %v2621_v54 = vsel %vm670_vm6, %v2619_v19, %v2620_v40  ;;  %v2659_v23 = vadd.f32 %v2651_v25, %v2626_v22 }
 0x4f5   : > { %v2649_v29 = vpop.permute.xlu1 %2648  ;;  %v2736_v8 = vpop.permute.xlu0 %2735  ;;  %v2622_v58 = vsel %vm721_vm7, %v2616_v34, %v2621_v54 }
 0x4f6   : > { %v2652_v45 = vrot.slane %v2649_v29, 4  ;;  %v2625_v9 = vadd.f32 %v2622_v58, %v2594_v6  ;;  %v2739_v63 = vrot.slane %v2736_v8, 4  ;;  %v2681_v60 = vadd.f32 %v2676_v18, %v2659_v23  ;;  %v2971_v18 = vld [vmem:[%s9022_s13] sm:$0xf] }
 0x4f7   : > { %v9162_v23 = vmov 5  }
 0x4f8   : > { %v2654_v43 = vsel %vm670_vm6, %v2652_v45, %v2653_v15  ;;  %v2740_v62 = vsel %vm862_vm10, %v2739_v63, %v2736_v8 }
 0x4f9   : > { %v2655_v28 = vsel %vm761_vm8, %v2649_v29, %v2654_v43  ;;  %v2357_v53 = vpop.permute.xlu1 %2356  ;;  %v2098_v59 = vpop.permute.xlu0 %2097 }
 0x4fa   : > { %v2360_v34 = vsel %vm929_vm12, %v2358_v3, %v2357_v53  ;;  %v2101_v20 = vsel %vm929_vm12, %v2099_v12, %v2098_v59  ;;  %v2658_v61 = vadd.f32 %v2655_v28, %v2625_v9  ;;  %v2767_v12 = vrot.slane %v7383_v10, 4  ;;  %v3263_v9 = vld [vmem:[%s9022_s13 + $0x4] sm:$0xf] }
 0x4fb   : > { %v2364_v42 = vadd.f32 %v2360_v34, %v7252_v47  ;;  %v2105_v19 = vadd.f32 %v2101_v20, %v2075_v5  ;;  %v3182_v5 = vld [vmem:[%s9022_s13 + $0x4] sm:$0xf]  ;;  %v9160_v53 = vmov 3   ;;  %v9161_v59 = vmov 2   ;;  %v7475_v20 = vld [vmem:[%s9022_s13 + $0x8] sm:$0xf] }
 0x4fc   : > { %v2680_v3 = vadd.f32 %v2677_v50, %v2658_v61  ;;  %v2768_v29 = vsel %vm891_vm11, %v2767_v12, %v7383_v10  ;;  %v2804_v10 = vld [vmem:[%s9020_s11] sm:$0xf]  ;;  %v3230_v28 = vld [vmem:[%s9022_s13 + $0x4] sm:$0xf]  ;;  %v9163_v61 = vmov 1  }
 0x4fd   : > { %v2704_v40 = vpop.permute.xlu1 %2703  ;;  %2376 = vrot.lane.b32.xlu0 %v2364_v42, %s6396_s22  ;;  %2464 = vrot.lane.b32.xlu1 %v2105_v19, %s6396_s22  ;;  %v2796_v26 = vpop.permute.xlu0 %2795  ;;  %v3318_v34 = vld [vmem:[%s9022_s13 + $0x4] sm:$0xf]  ;;  %v3004_v19 = vld [vmem:[%s9022_s13] sm:$0xf] }
 0x4fe   : > { %v2707_v4 = vrot.slane %v2704_v40, 4  ;;  %v3350_v42 = vld [vmem:[%s9022_s13 + $0x4] sm:$0xf]  ;;  %v3789_v50 = vld [vmem:[%s9022_s13 + $0x8] sm:$0xf] }
 0x500   : > { %v2708_v25 = vsel %vm822_vm9, %v2707_v4, %v2704_v40  ;;  %v2709_v47 = vsel %vm822_vm9, %v2707_v4, %v7352_v16  ;;  %v2741_v16 = vsel %vm862_vm10, %v2739_v63, %v2738_v21  ;;  %v3669_v21 = vld [vmem:[%s9022_s13 + $0x8] sm:$0xf]  ;;  %v9164_v40 = vmov 6   ;;  %v7494_v63 = vld [vmem:[%s9022_s13 + $0xc] sm:$0xf] }
 0x501   : > { %v2712_v54 = vadd.f32 %v2708_v25, %v2680_v3  ;;  %v2794_v30 = vpop.permute.xlu1 %2793  ;;  %2462 = vrot.lane.b32.xlu0 %v2459_v35, %s6396_s22  ;;  %2460 = vrot.lane.b32.xlu1 %v2104_v14, %s6396_s22  ;;  %v2713_v36 = vadd.f32 %v2709_v47, %v2681_v60  ;;  %v3702_v14 = vld [vmem:[%s9022_s13 + $0x8] sm:$0xf]  ;;  %v9165_v4 = vmov 7   ;;  %v9166_v35 = vmov 4   ;;  %v3091_v60 = vld [vmem:[%s9022_s13] sm:$0xf] }
 0x502   : > { %v2797_v55 = vrot.slane %v2794_v30, 4  ;;  %v4021_v3 = vld [vmem:[%s9022_s13 + $0xc] sm:$0xf]  ;;  %v2898_v47 = vld [vmem:[%s9021_s12] sm:$0xf] }
 0x503   : > { %v2744_v11 = vadd.f32 %v2740_v62, %v2712_v54  ;;  %v2745_v58 = vadd.f32 %v2741_v16, %v2713_v36  ;;  %v4054_v25 = vld [vmem:[%s9022_s13 + $0xc] sm:$0xf]  ;;  %v9167_v54 = vmov 0   ;;  %v3757_v36 = vld [vmem:[%s9022_s13 + $0x8] sm:$0xf] }
 0x504   : > { %v2798_v45 = vsel %vm929_vm12, %v2797_v55, %v2794_v30  ;;  %v2799_v22 = vsel %vm929_vm12, %v2797_v55, %v2796_v26  ;;  %v3059_v30 = vld [vmem:[%s9022_s13] sm:$0xf]  ;;  %v3408_v62 = vld [vmem:[%s9022_s13 + $0x4] sm:$0xf]  ;;  %v9168_v55 = vmov 8  }
 0x505   : > { %v2772_v0 = vadd.f32 %v2768_v29, %v2744_v11  ;;  %v2766_v15 = vpop.permute.xlu1 %2765  ;;  %2367 = vrot.lane.b32.xlu0 %v2365_v52, %s9081_s1  ;;  %v4109_v52 = vld [vmem:[%s9022_s13 + $0xc] sm:$0xf]  ;;  %v3149_v11 = vld [vmem:[%s9022_s13] sm:$0xf] }
 0x506   : > { %v2769_v8 = vsel %vm891_vm11, %v2767_v12, %v2766_v15  ;;  %v4141_v12 = vld [vmem:[%s9022_s13 + $0xc] sm:$0xf] }
 0x507   : > { %v2802_v17 = vadd.f32 %v2798_v45, %v2772_v0  ;;  %v2773_v6 = vadd.f32 %v2769_v8, %v2745_v58  ;;  %v3847_v0 = vld [vmem:[%s9022_s13 + $0x8] sm:$0xf]  ;;  %v4199_v26 = vld [vmem:[%s9022_s13 + $0xc] sm:$0xf] }
 0x509   : > { %v2810_v37 = vcombine.high %v2802_v17, %v2802_v17  ;;  %v2803_v43 = vadd.f32 %v2799_v22, %v2773_v6  ;;  %v2375_v29 = vpop.permute.xlu1 %2374 }
 0x50b   : > { %2813 = vrot.lane.b32.xlu0 %v2810_v37, %s6396_s22  ;;  %2815 = vrot.lane.b32.xlu1 %v2803_v43, %s6396_s22  ;;  %v2106_v43 = vld [vmem:[%s9020_s11] sm:$0xf] }
 0x50d   : > { %v2373_v16 = vpop.permute.xlu1 %2372 }
 0x50e   : > { %v2378_v8 = vsel %vm901_vm4, %v2373_v16, %v2375_v29 }
 0x50f   : > { %2811 = vrot.lane.b32.xlu0 %v2802_v17, %s6396_s22  ;;  %2806 = vrot.lane.b32.xlu1 %v2804_v10, %s9108_s20 }
 0x513   : > { %3672 = vperm.xlu0 %6309, %v3669_v21   ;;  %3202 = vperm.xlu1 %6310, %v3182_v5   ;;  %v2923_v21 = vld [vmem:[%s9022_s13] sm:$0xf] }
 0x517   : > { %6314 = vset.pattern.permute.xlu0 %v9160_v53  ;;  %6311 = vset.pattern.permute.xlu1 %v9161_v59 }
 0x518   : > { %3266 = vperm.xlu0 %6314, %v3263_v9   ;;  %3233 = vperm.xlu1 %6311, %v3230_v28  }
 0x51c   : > { %3705 = vperm.xlu0 %6314, %v3702_v14   ;;  %2974 = vperm.xlu1 %6311, %v2971_v18  }
 0x520   : > { %6319 = vset.pattern.permute.xlu0 %v9162_v23  ;;  %6312 = vset.pattern.permute.xlu1 %v9163_v61 }
 0x521   : > { %3321 = vperm.xlu0 %6319, %v3318_v34   ;;  %3641 = vperm.xlu1 %6312, %v7475_v20  }
 0x525   : > { %6322 = vset.pattern.permute.xlu0 %v9164_v40  ;;  %6313 = vset.pattern.permute.xlu1 %v9160_v53 }
 0x526   : > { %3353 = vperm.xlu0 %6322, %v3350_v42   ;;  %3007 = vperm.xlu1 %6313, %v3004_v19  }
 0x52a   : > { %3792 = vperm.xlu0 %6322, %v3789_v50   ;;  %6315 = vset.pattern.permute.xlu1 %v9163_v61 }
 0x52b   : > { %3993 = vperm.xlu1 %6315, %v7494_v63  }
 0x52e   : > { %6328 = vset.pattern.permute.xlu0 %v9165_v4 }
 0x52f   : > { %3381 = vperm.xlu0 %6328, %v3350_v42   ;;  %6316 = vset.pattern.permute.xlu1 %v9166_v35 }
 0x530   : > { %3294 = vperm.xlu1 %6316, %v3263_v9  }
 0x533   : > { %3122 = vperm.xlu0 %6328, %v3091_v60  }
 0x534   : > { %6317 = vset.pattern.permute.xlu1 %v9161_v59 }
 0x535   : > { %4024 = vperm.xlu1 %6317, %v4021_v3  }
 0x537   : > { %3820 = vperm.xlu0 %6328, %v3789_v50  }
 0x539   : > { %6318 = vset.pattern.permute.xlu1 %v9166_v35 }
 0x53a   : > { %3035 = vperm.xlu1 %6318, %v3004_v19  }
 0x53b   : > { %4172 = vperm.xlu0 %6328, %v4141_v12  }
 0x53e   : > { %6320 = vset.pattern.permute.xlu1 %v9160_v53 }
 0x53f   : > { %6333 = vset.pattern.permute.xlu0 %v9167_v54  ;;  %4057 = vperm.xlu1 %6320, %v4054_v25  }
 0x540   : > { %2901 = vperm.xlu0 %6333, %v2898_v47  }
 0x543   : > { %6321 = vset.pattern.permute.xlu1 %v9162_v23 }
 0x544   : > { %3185 = vperm.xlu0 %6333, %v3182_v5   ;;  %3062 = vperm.xlu1 %6321, %v3059_v30   ;;  %v9169_v5 = vmov 0.0  }
 0x548   : > { %6323 = vset.pattern.permute.xlu1 %v9166_v35 }
 0x549   : > { %3733 = vperm.xlu1 %6323, %v3702_v14  }
 0x54d   : > { %6324 = vset.pattern.permute.xlu1 %v9164_v40 }
 0x54e   : > { %3094 = vperm.xlu1 %6324, %v3091_v60   ;;  %v3200_v60 = vld [vmem:[#allocation3 + $0x8] sm:$0xf] }
 0x552   : > { %6325 = vset.pattern.permute.xlu1 %v9162_v23 }
 0x553   : > { %3760 = vperm.xlu1 %6325, %v3757_v36  }
 0x557   : > { %6326 = vset.pattern.permute.xlu1 %v9166_v35 }
 0x558   : > { %4085 = vperm.xlu1 %6326, %v4054_v25  }
 0x55c   : > { %6327 = vset.pattern.permute.xlu1 %v9168_v55 }
 0x55d   : > { %3411 = vperm.xlu1 %6327, %v3408_v62  }
 0x561   : > { %6329 = vset.pattern.permute.xlu1 %v9162_v23 }
 0x562   : > { %4112 = vperm.xlu1 %6329, %v4109_v52  }
 0x566   : > { %6330 = vset.pattern.permute.xlu1 %v9168_v55 }
 0x567   : > { %3152 = vperm.xlu1 %6330, %v3149_v11  }
 0x56b   : > { %6331 = vset.pattern.permute.xlu1 %v9164_v40 }
 0x56c   : > { %4144 = vperm.xlu1 %6331, %v4141_v12  }
 0x56f   : > { %v2465_v15 = vpop.permute.xlu1 %2464  ;;  %v2377_v58 = vpop.permute.xlu0 %2376 }
 0x570   : > { %v2379_v45 = vsel %vm901_vm4, %v2375_v29, %v2377_v58  ;;  %6332 = vset.pattern.permute.xlu1 %v9168_v55 }
 0x571   : > { %3850 = vperm.xlu1 %6332, %v3847_v0   ;;  %6192 = vmatprep.subr.msk.mxu0 %vm670_vm6, %v2379_v45 }
 0x572   : > { %6193 = vmatpush1.msk.msra.mxu0 %vm670_vm6, %v2378_v8 }
 0x573   : > { %v2461_v17 = vpop.permute.xlu1 %2460  ;;  %v2463_v6 = vpop.permute.xlu0 %2462 }
 0x574   : > { %v2466_v22 = vsel %vm901_vm4, %v2461_v17, %v2463_v6  ;;  %v2467_v37 = vsel %vm901_vm4, %v2463_v6, %v2465_v15 }
 0x575   : > { %4202 = vperm.xlu1 %6332, %v4199_v26   ;;  %6195 = vmatprep.subr.msk.mxu1 %vm670_vm6, %v2467_v37 }
 0x576   : > { %6196 = vmatpush1.msk.msra.mxu1 %vm670_vm6, %v2466_v22 }
 0x577   : > { %v2368_v10 = vpop.permute.xlu0 %2367  ;;  %6197 = vmatmul.mubr.msk.f32.vlgmr.msra.gmra.mxu1 %vm954_vm13, %v2106_v43 }
 0x578   : > { %6194 = vmatmul.mubr.msk.f32.vlgmr.msra.gmra.mxu0 %vm954_vm13, %v2368_v10  ;;  %3521 = vmatprep.mubr.f32.mxu1 %v9169_v5 }
 0x579   : > { %6334 = vset.pattern.permute.xlu1 %v9167_v54  ;;  %2889 = vmatprep.mubr.f32.mxu0 %v9169_v5 }
 0x57a   : > { %2926 = vperm.xlu1 %6334, %v2923_v21  }
 0x57d   : > { %v2816_v9 = vpop.permute.xlu1 %2815  ;;  %v2814_v28 = vpop.permute.xlu0 %2813 }
 0x57e   : > { %3624 = vperm.xlu1 %6334, %v7475_v20   ;;  %v2818_v14 = vsel %vm901_vm4, %v2814_v28, %v2816_v9  ;;  %v7578_v20 = vld [vmem:[#allocation3] sm:$0xff]  ;;  %v7618_v9 = vld [vmem:[#allocation2] sm:$0xff] }
 0x57f   : > { %6198 = vmatprep.subr.msk.mxu0 %vm670_vm6, %v2818_v14 }
 0x581   : > { %v2812_v18 = vpop.permute.xlu0 %2811  ;;  %v2807_v42 = vpop.permute.xlu1 %2806 }
 0x582   : > { %v2817_v34 = vsel %vm901_vm4, %v2812_v18, %v2814_v28  ;;  %6336 = vset.pattern.permute.xlu1 %v9163_v61  ;;  %v2941_v28 = vld [vmem:[#allocation2 + $0x8] sm:$0xf] }
 0x583   : > { %6199 = vmatpush1.msk.msra.mxu0 %vm670_vm6, %v2817_v34 }
 0x584   : > { %6200 = vmatmul.mubr.msk.f32.vlgmr.msra.gmra.mxu0 %vm954_vm13, %v2807_v42 }
 0x585   : > { %3610 = vmatprep.mubr.f32.mxu0 %v9169_v5  ;;  %v3260_v5 = vld [vmem:[#allocation3 + $0x8] sm:$0xf] }
 0x58e   : > { %v3203_v19 = vpop.permute.xlu1 %3202  ;;  %v7585_v25 = vpop.permute.xlu0 %3672 }
 0x58f   : > { %v3210_v50 = vrot.slane %v3203_v19, %v6589_v32  ;;  %v3228_v19 = vmul.f32 %v7578_v20, %v6604_v49 }
 0x591   : > { %v3212_v3 = vmul.f32 %v3210_v50, %v7578_v20  ;;  %v3213_v12 = vmul.f32 %v3210_v50, %v3200_v60  ;;  %v3229_v50 = vmul.f32 %v3200_v60, %v6595_v41 }
 0x593   : > { %3218 = vrot.lane.b32.xlu1 %v3213_v12, %s9147_s24  ;;  %3216 = vrot.lane.b32.xlu0 %v3212_v3, %s9147_s24  ;;  %v3267_v47 = vpop.permute.xlu0 %3266  ;;  %v3234_v16 = vpop.permute.xlu1 %3233 }
 0x594   : > { %v3241_v14 = vrot.slane %v3234_v16, %v6589_v32  ;;  %v2969_v16 = vmul.f32 %v7618_v9, %v6604_v49  ;;  %v3274_v60 = vrot.slane %v3267_v47, %v6589_v32  ;;  %v3639_v47 = vld [vmem:[#allocation4 + $0x8] sm:$0xf] }
 0x596   : > { %v3243_v3 = vmul.f32 %v3241_v14, %v3228_v19  ;;  %v3244_v12 = vmul.f32 %v3241_v14, %v3229_v50  ;;  %v3261_v14 = vmul.f32 %v7578_v20, %v6617_v57 }
 0x597   : > { %3976 = vperm.xlu0 %6333, %v7494_v63   ;;  %v7587_v30 = vpop.permute.xlu0 %3705  ;;  %v2975_v0 = vpop.permute.xlu1 %2974 }
 0x59b   : > { %6335 = vset.pattern.permute.xlu0 %v9163_v61 }
 0x59c   : > { %2943 = vperm.xlu0 %6335, %v2923_v21   ;;  %v7589_v36 = vpop.permute.xlu0 %3321  ;;  %v3642_v58 = vpop.permute.xlu1 %3641 }
 0x59d   : > { %v3649_v50 = vrot.slane %v3642_v58, %v6589_v32 }
 0x5a1   : > { %v7591_v62 = vpop.permute.xlu0 %3353  ;;  %v3008_v8 = vpop.permute.xlu1 %3007 }
 0x5a5   : > { %v7593_v52 = vpop.permute.xlu0 %3792 }
 0x5a6   : > { %v7607_v17 = vpop.permute.xlu1 %3993 }
 0x5aa   : > { %v7595_v11 = vpop.permute.xlu0 %3381 }
 0x5ab   : > { %v7611_v22 = vpop.permute.xlu1 %3294 }
 0x5ae   : > { %v7597_v29 = vpop.permute.xlu0 %3122 }
 0x5b0   : > { %v7615_v43 = vpop.permute.xlu1 %4024 }
 0x5b2   : > { %v7599_v63 = vpop.permute.xlu0 %3820 }
 0x5b5   : > { %v7622_v42 = vpop.permute.xlu1 %3035 }
 0x5b6   : > { %v7601_v15 = vpop.permute.xlu0 %4172 }
 0x5ba   : > { %v7635_v54 = vpop.permute.xlu1 %4057 }
 0x5bb   : > { %v7603_v45 = vpop.permute.xlu0 %2901 }
 0x5bf   : > { %v7605_v26 = vpop.permute.xlu0 %3185 }
 0x605   : > { %v7609_v6 = vpop.permute.xlu0 %3216 }
 0x612   : > { %v7613_v37 = vpop.permute.xlu0 %3976 }
 0x617   : > { %v2944_v10 = vpop.permute.xlu0 %2943 }
 0x618   : > { %v2951_v21 = vrot.slane %v2944_v10, %v6589_v32  ;;  %v2982_v10 = vrot.slane %v2975_v0, %v6589_v32  ;;  %v3262_v0 = vmul.f32 %v3260_v5, %v6601_v48  ;;  %v3015_v5 = vrot.slane %v3008_v8, %v6589_v32  ;;  %v9170_v8 = vld [vmem:[#allocation20_spill] sm:$0xff] }
 0x61a   : > { %v2953_v18 = vmul.f32 %v2951_v21, %v7618_v9  ;;  %v2954_v34 = vmul.f32 %v2951_v21, %v2941_v28  ;;  %v2970_v21 = vmul.f32 %v2941_v28, %v6595_v41  ;;  %v3276_v28 = vmul.f32 %v3274_v60, %v3261_v14 }
 0x61b   : > { %v3277_v19 = vmul.f32 %v3274_v60, %v3262_v0  ;;  %v3680_v60 = vrot.slane %v7585_v25, %v6589_v32  ;;  %v3699_v25 = vld [vmem:[#allocation4 + $0x8] sm:$0xf] }
 0x61c   : > { %2959 = vrot.lane.b32.xlu0 %v2954_v34, %s9147_s24  ;;  %2957 = vrot.lane.b32.xlu1 %v2953_v18, %s9147_s24  ;;  %v2984_v34 = vmul.f32 %v2982_v10, %v2969_v16  ;;  %v2985_v18 = vmul.f32 %v2982_v10, %v2970_v21  ;;  %v3651_v10 = vmul.f32 %v3649_v50, %v7236_v39 }
 0x61d   : > { %v3652_v16 = vmul.f32 %v3649_v50, %v3639_v47  ;;  %v3002_v21 = vmul.f32 %v7618_v9, %v6617_v57  ;;  %v3668_v39 = vmul.f32 %v3639_v47, %v6595_v41  ;;  %v3682_v0 = vmul.f32 %v3680_v60, %v9170_v8  ;;  %v7665_v47 = vld [vmem:[#allocation3 + $0x4] sm:$0xff] }
 0x61e   : > { %v3302_v50 = vrot.slane %v7611_v22, %v6589_v32  ;;  %v7674_v22 = vld [vmem:[#allocation2 + $0x4] sm:$0xff] }
 0x61f   : > { %v3089_v55 = vmul.f32 %v7674_v22, %v6644_v13 }
 0x620   : > { %3249 = vrot.lane.b32.xlu0 %v3244_v12, %s9148_s4  ;;  %3247 = vrot.lane.b32.xlu1 %v3243_v3, %s9148_s4  ;;  %v3063_v3 = vpop.permute.xlu1 %3062  ;;  %v3001_v12 = vld [vmem:[#allocation2 + $0x8] sm:$0xf] }
 0x624   : > { %2990 = vrot.lane.b32.xlu0 %v2985_v18, %s9148_s4  ;;  %2988 = vrot.lane.b32.xlu1 %v2984_v34, %s9148_s4  ;;  %v3003_v34 = vmul.f32 %v3001_v12, %v6601_v48  ;;  %v3734_v58 = vpop.permute.xlu1 %3733  ;;  %v3017_v18 = vmul.f32 %v3015_v5, %v3002_v21 }
 0x626   : > { %v3018_v14 = vmul.f32 %v3015_v5, %v3003_v34  ;;  %v3043_v5 = vrot.slane %v7622_v42, %v6589_v32  ;;  %v3316_v42 = vmul.f32 %v7665_v47, %v6632_v2 }
 0x628   : > { %3282 = vrot.lane.b32.xlu0 %v3277_v19, %s9149_s23  ;;  %3280 = vrot.lane.b32.xlu1 %v3276_v28, %s9149_s23  ;;  %v3683_v28 = vmul.f32 %v3680_v60, %v3668_v39  ;;  %v3713_v19 = vrot.slane %v7587_v30, %v6589_v32  ;;  %v3095_v12 = vpop.permute.xlu1 %3094  ;;  %v3701_v30 = vmul.f32 %v3699_v25, %v6601_v48 }
 0x629   : > { %v3329_v60 = vrot.slane %v7589_v36, %v6589_v32  ;;  %v3361_v36 = vrot.slane %v7591_v62, %v6589_v32 }
 0x62a   : > { %v3716_v34 = vmul.f32 %v3713_v19, %v3701_v30 }
 0x62c   : > { %3657 = vrot.lane.b32.xlu0 %v3652_v16, %s9147_s24  ;;  %3655 = vrot.lane.b32.xlu1 %v3651_v10, %s9147_s24  ;;  %v3715_v10 = vmul.f32 %v3713_v19, %v7283_v44  ;;  %v3304_v16 = vmul.f32 %v7665_v47, %v3302_v50  ;;  %v3761_v21 = vpop.permute.xlu1 %3760  ;;  %v3045_v44 = vmul.f32 %v7674_v22, %v3043_v5 }
 0x62d   : > { %v3348_v50 = vmul.f32 %v7665_v47, %v6644_v13 }
 0x62f   : > { %v3363_v30 = vmul.f32 %v3361_v36, %v3348_v50 }
 0x630   : > { %3023 = vrot.lane.b32.xlu0 %v3018_v14, %s9149_s23  ;;  %3021 = vrot.lane.b32.xlu1 %v3017_v18, %s9149_s23  ;;  %v3070_v18 = vrot.slane %v3063_v3, %v6589_v32  ;;  %v3057_v14 = vmul.f32 %v7674_v22, %v6632_v2  ;;  %v3741_v3 = vrot.slane %v3734_v58, %v6589_v32 }
 0x632   : > { %v3072_v19 = vmul.f32 %v3070_v18, %v3057_v14  ;;  %v9171_v14 = vld [vmem:[#allocation10_spill] sm:$0xff] }
 0x634   : > { %3688 = vrot.lane.b32.xlu0 %v3683_v28, %s9148_s4  ;;  %3686 = vrot.lane.b32.xlu1 %v3682_v0, %s9148_s4  ;;  %v7686_v0 = vpop.permute.xlu1 %4085  ;;  %v3331_v28 = vmul.f32 %v3329_v60, %v3316_v42 }
 0x637   : > { %v2541_v8 = vpop.f32.mrf.mxu1 }
 0x638   : > { %3719 = vrot.lane.b32.xlu0 %v3715_v10, %s9149_s23  ;;  %3306 = vrot.lane.b32.xlu1 %v3304_v16, %s9150_s28  ;;  %v2452_v39 = vpop.f32.mrf.mxu0  ;;  %v3315_v16 = vld [vmem:[#allocation3 + $0xc] sm:$0xf]  ;;  %v3412_v62 = vpop.permute.xlu1 %3411 }
 0x639   : > { %v2543_v10 = vpop.f32.mrf.mxu1  ;;  %v2542_v5 = vadd.f32 %v2541_v8, %v2452_v39  ;;  %v3317_v58 = vmul.f32 %v3315_v16, %v9171_v14  ;;  %v3389_v39 = vrot.slane %v7595_v11, %v6589_v32 }
 0x63a   : > { %v2454_v25 = vpop.f32.mrf.mxu0 }
 0x63b   : > { %v2544_v42 = vadd.f32 %v2543_v10, %v2454_v25  ;;  %v3056_v25 = vld [vmem:[#allocation2 + $0xc] sm:$0xf] }
 0x63c   : > { %3047 = vrot.lane.b32.xlu0 %v3045_v44, %s9150_s28  ;;  %3721 = vrot.lane.b32.xlu1 %v3716_v34, %s9149_s23  ;;  %v3743_v34 = vmul.f32 %v3741_v3, %v7222_v46  ;;  %v3102_v44 = vrot.slane %v3095_v12, %v6589_v32  ;;  %v3768_v12 = vrot.slane %v3761_v21, %v6589_v32  ;;  %v7708_v10 = vpop.permute.xlu1 %4112 }
 0x63e   : > { %v3104_v46 = vmul.f32 %v3102_v44, %v3089_v55  ;;  %v3130_v55 = vrot.slane %v7597_v29, %v6589_v32  ;;  %v3770_v11 = vmul.f32 %v3768_v12, %v7312_v27 }
 0x640   : > { %3076 = vrot.lane.b32.xlu0 %v3072_v19, %s9136_s3  ;;  %3335 = vrot.lane.b32.xlu1 %v3331_v28, %s9136_s3  ;;  %v3332_v19 = vmul.f32 %v3329_v60, %v3317_v58  ;;  %v3391_v60 = vmul.f32 %v3389_v39, %v7665_v47  ;;  %v3153_v27 = vpop.permute.xlu1 %3152 }
 0x644   : > { %v2891_v40 = vpop.f32.mrf.mxu0  ;;  %3745 = vrot.lane.b32.xlu0 %v3743_v34, %s9150_s28  ;;  %3367 = vrot.lane.b32.xlu1 %v3363_v30, %s9137_s27  ;;  %v3347_v30 = vld [vmem:[#allocation3 + $0xc] sm:$0xf] }
 0x645   : > { %v2896_v28 = vadd.f32 %v2891_v40, %v2542_v5  ;;  %v3058_v5 = vmul.f32 %v3056_v25, %v9171_v14  ;;  %v3754_v25 = vld [vmem:[#allocation4 + $0xc] sm:$0xf] }
 0x646   : > { %v2893_v8 = vpop.f32.mrf.mxu0 }
 0x647   : > { %v2904_v3 = vadd.f32 %v7603_v45, %v2896_v28  ;;  %v2897_v50 = vadd.f32 %v2893_v8, %v2544_v42  ;;  %v3073_v58 = vmul.f32 %v3070_v18, %v3058_v5  ;;  %v3419_v28 = vrot.slane %v3412_v62, %v6589_v32 }
 0x648   : > { %3337 = vrot.lane.b32.xlu0 %v3332_v19, %s9136_s3  ;;  %3108 = vrot.lane.b32.xlu1 %v3104_v46, %s9137_s27  ;;  %v3349_v19 = vmul.f32 %v3347_v30, %v6636_v7  ;;  %v3406_v46 = vmul.f32 %v7665_v47, %v6663_v38  ;;  %v3800_v18 = vrot.slane %v7593_v52, %v6589_v32  ;;  %v3088_v47 = vld [vmem:[#allocation2 + $0xc] sm:$0xf] }
 0x649   : > { %v2908_v16 = vmul.f32 0.2, %v2904_v3  ;;  %v2905_v40 = vadd.f32 %v7603_v45, %v2897_v50  ;;  %vm2906_vm3 = vcmp.ge.f32.partialorder %v2904_v3, 0.0  ;;  %v3132_v45 = vmul.f32 %v3130_v55, %v7674_v22 }
 0x64a   : > { %v3364_v8 = vmul.f32 %v3361_v36, %v3349_v19  ;;  %v7731_v62 = vrot.slane %v3153_v27, %v6589_v32  ;;  %v3147_v50 = vmul.f32 %v7674_v22, %v6663_v38  ;;  %v3802_v36 = vmul.f32 %v3800_v18, %v7287_v24  ;;  %v3379_v22 = vld [vmem:[#allocation3 + $0xc] sm:$0xf] }
 0x64b   : > { %vm2907_vm14 = vcmp.ge.f32.partialorder %v2905_v40, 0.0  ;;  %v2909_v21 = vmul.f32 0.2, %v2905_v40  ;;  %v2910_v34 = vsel %vm2906_vm3, %v2904_v3, %v2908_v16  ;;  %v3421_v3 = vmul.f32 %v3419_v28, %v3406_v46  ;;  %v7737_v16 = vpop.permute.xlu1 %4144 }
 0x64c   : > { %3774 = vrot.lane.b32.xlu0 %v3770_v11, %s9136_s3  ;;  %3395 = vrot.lane.b32.xlu1 %v3391_v60, %s9135_s25  ;;  %v3090_v52 = vmul.f32 %v3088_v47, %v6636_v7  ;;  %v3756_v60 = vmul.f32 %v3754_v25, %v9171_v14  ;;  %v3407_v30 = vmul.f32 %v3379_v22, %v6656_v33 }
 0x64d   : > { %v2911_v42 = vsel %vm2907_vm14, %v2905_v40, %v2909_v21  ;;  %v3162_v40 = vmul.f32 %v7731_v62, %v3147_v50  ;;  %v3392_v24 = vmul.f32 %v3389_v39, %v3379_v22  ;;  %v4001_v39 = vrot.slane %v7607_v17, %v6589_v32 }
 0x64e   : > { %v7720_v29 = vcombine.low %v2910_v34, %v2911_v42  ;;  %v3105_v11 = vmul.f32 %v3102_v44, %v3090_v52  ;;  %v3771_v21 = vmul.f32 %v3768_v12, %v3756_v60  ;;  %v3828_v34 = vrot.slane %v7599_v63, %v6589_v32  ;;  %v6372_v44 = vld [vmem:[#allocation4 + $0x4] sm:$0xff]  ;;  %v3786_v63 = vld [vmem:[#allocation4 + $0xc] sm:$0xf] }
 0x64f   : > { %v3851_v5 = vpop.permute.xlu1 %3850  ;;  %v3422_v42 = vmul.f32 %v3419_v28, %v3407_v30  ;;  %v3120_v28 = vld [vmem:[#allocation2 + $0xc] sm:$0xf]  ;;  %v4120_v50 = vrot.slane %v7708_v10, %v6589_v32  ;;  %v4032_v10 = vrot.slane %v7615_v43, %v6589_v32 }
 0x650   : > { %2918 = vst [vmem:[#allocation5 + $0x4] sm:$0xff] %v7720_v29  ;;  %3078 = vrot.lane.b32.xlu0 %v3073_v58, %s9136_s3  ;;  %3136 = vrot.lane.b32.xlu1 %v3132_v45, %s9135_s25  ;;  %v7751_v45 = vrot.slane %v3851_v5, %v6589_v32  ;;  %v3830_v12 = vmul.f32 %v6372_v44, %v3828_v34 }
 0x651   : > { %v3133_v19 = vmul.f32 %v3130_v55, %v3120_v28  ;;  %v4180_v55 = vrot.slane %v7601_v15, %v6589_v32 }
 0x652   : > { %v3860_v58 = vmul.f32 %v7751_v45, %v7331_v1  ;;  %v4106_v1 = vld [vmem:[#allocation5 + $0xc] sm:$0xf] }
 0x654   : > { %3369 = vrot.lane.b32.xlu0 %v3364_v8, %s9137_s27  ;;  %3425 = vrot.lane.b32.xlu1 %v3421_v3, %s9138_s21  ;;  %v3788_v8 = vmul.f32 %v3786_v63, %v6636_v7  ;;  %v4093_v3 = vrot.slane %v7686_v0, %v6589_v32 }
 0x656   : > { %v3803_v17 = vmul.f32 %v3800_v18, %v3788_v8  ;;  %v4095_v47 = vmul.f32 %v4093_v3, %v7720_v29 }
 0x657   : > { %v7757_v27 = vld [vmem:[#allocation5] sm:$0xff]  ;;  %v3991_v25 = vld [vmem:[#allocation5 + $0x8] sm:$0xf] }
 0x658   : > { %3806 = vrot.lane.b32.xlu0 %v3802_v36, %s9137_s27  ;;  %3166 = vrot.lane.b32.xlu1 %v3162_v40, %s9138_s21  ;;  %v4003_v46 = vmul.f32 %v4001_v39, %v7757_v27  ;;  %v4108_v36 = vmul.f32 %v4106_v1, %v9171_v14  ;;  %v4182_v40 = vmul.f32 %v4180_v55, %v7720_v29  ;;  %v4051_v22 = vld [vmem:[#allocation5 + $0x8] sm:$0xf] }
 0x659   : > { %v4020_v18 = vmul.f32 %v3991_v25, %v6595_v41  ;;  %v4004_v52 = vmul.f32 %v4001_v39, %v3991_v25  ;;  %v4019_v60 = vmul.f32 %v7757_v27, %v6604_v49  ;;  %v4052_v43 = vmul.f32 %v7757_v27, %v6617_v57  ;;  %v4138_v39 = vld [vmem:[#allocation5 + $0xc] sm:$0xf] }
 0x65a   : > { %v4123_v0 = vmul.f32 %v4120_v50, %v4108_v36  ;;  %v4053_v30 = vmul.f32 %v4051_v22, %v6601_v48  ;;  %v4140_v8 = vmul.f32 %v4138_v39, %v6636_v7  ;;  %v3179_v7 = vld [vmem:[#allocation3 + $0x8] sm:$0xf] }
 0x65b   : > { %v4035_v15 = vmul.f32 %v4032_v10, %v4020_v18  ;;  %v4034_v5 = vmul.f32 %v4032_v10, %v4019_v60 }
 0x65c   : > { %3110 = vrot.lane.b32.xlu0 %v3105_v11, %s9137_s27  ;;  %3776 = vrot.lane.b32.xlu1 %v3771_v21, %s9136_s3  ;;  %v3818_v11 = vld [vmem:[#allocation4 + $0xc] sm:$0xf] }
 0x65d   : > { %v3831_v21 = vmul.f32 %v3828_v34, %v3818_v11  ;;  %v3148_v34 = vmul.f32 %v3120_v28, %v6656_v33 }
 0x65f   : > { %v3163_v63 = vmul.f32 %v7731_v62, %v3148_v34  ;;  %v4197_v62 = vmul.f32 %v7720_v29, %v6663_v38 }
 0x660   : > { %3397 = vrot.lane.b32.xlu0 %v3392_v24, %s9135_s25  ;;  %3427 = vrot.lane.b32.xlu1 %v3422_v42, %s9138_s21  ;;  %v4065_v24 = vrot.slane %v7635_v54, %v6589_v32  ;;  %v4203_v42 = vpop.permute.xlu1 %4202  ;;  %v4152_v54 = vrot.slane %v7737_v16, %v6589_v32 }
 0x661   : > { %v4210_v16 = vrot.slane %v4203_v42, %v6589_v32 }
 0x662   : > { %v4067_v44 = vmul.f32 %v4065_v24, %v4052_v43  ;;  %v4155_v28 = vmul.f32 %v4152_v54, %v4140_v8 }
 0x663   : > { %v4212_v36 = vmul.f32 %v4210_v16, %v4197_v62 }
 0x664   : > { %3834 = vrot.lane.b32.xlu0 %v3830_v12, %s9135_s25  ;;  %3864 = vrot.lane.b32.xlu1 %v3860_v58, %s9138_s21  ;;  %v4068_v12 = vmul.f32 %v4065_v24, %v4053_v30  ;;  %v4107_v58 = vmul.f32 %v7720_v29, %v6632_v2  ;;  %v7805_v3 = vpop.permute.xlu1 %2926 }
 0x668   : > { %3138 = vrot.lane.b32.xlu0 %v3133_v19, %s9135_s25  ;;  %4007 = vrot.lane.b32.xlu1 %v4003_v46, %s9147_s24  ;;  %v4122_v19 = vmul.f32 %v4120_v50, %v4107_v58  ;;  %v4139_v46 = vmul.f32 %v7720_v29, %v6644_v13  ;;  %v4170_v50 = vld [vmem:[#allocation5 + $0xc] sm:$0xf]  ;;  %v7816_v25 = vpop.permute.xlu1 %3624 }
 0x669   : > { %v4183_v29 = vmul.f32 %v4180_v55, %v4170_v50 }
 0x66a   : > { %v4154_v1 = vmul.f32 %v4152_v54, %v4139_v46 }
 0x66c   : > { %3808 = vrot.lane.b32.xlu0 %v3803_v17, %s9137_s27  ;;  %4097 = vrot.lane.b32.xlu1 %v4095_v47, %s9150_s28  ;;  %v3846_v17 = vmul.f32 %v3818_v11, %v6656_v33  ;;  %v7821_v18 = vpop.permute.xlu1 %3218 }
 0x66d   : > { %v3221_v39 = vrot.slane %v7821_v18, 4 }
 0x66e   : > { %v3861_v47 = vmul.f32 %v7751_v45, %v3846_v17 }
 0x670   : > { %4128 = vrot.lane.b32.xlu0 %v4123_v0, %s9136_s3  ;;  %4186 = vrot.lane.b32.xlu1 %v4182_v40, %s9135_s25  ;;  %v4198_v0 = vmul.f32 %v4170_v50, %v6656_v33 }
 0x672   : > { %v4213_v40 = vmul.f32 %v4210_v16, %v4198_v0 }
 0x674   : > { %4009 = vrot.lane.b32.xlu0 %v4004_v52, %s9147_s24  ;;  %4040 = vrot.lane.b32.xlu1 %v4035_v15, %s9148_s4 }
 0x678   : > { %4038 = vrot.lane.b32.xlu0 %v4034_v5, %s9148_s4  ;;  %3836 = vrot.lane.b32.xlu1 %v3831_v21, %s9135_s25 }
 0x67c   : > { %4071 = vrot.lane.b32.xlu0 %v4067_v44, %s9149_s23  ;;  %4073 = vrot.lane.b32.xlu1 %v4068_v12, %s9149_s23 }
 0x680   : > { %3168 = vrot.lane.b32.xlu0 %v3163_v63, %s9138_s21  ;;  %4126 = vrot.lane.b32.xlu1 %v4122_v19, %s9136_s3  ;;  %v3220_v63 = vrot.slane %v7609_v6, 4 }
 0x684   : > { %4160 = vrot.lane.b32.xlu0 %v4155_v28, %s9137_s27  ;;  %4158 = vrot.lane.b32.xlu1 %v4154_v1, %s9137_s27  ;;  %v3193_v28 = vrot.slane %v7605_v26, %v6589_v32  ;;  %v3222_v1 = vsel %vm670_vm6, %v3220_v63, %v3221_v39 }
 0x685   : > { %v3223_v0 = vsel %vm672_vm1, %v7609_v6, %v3222_v1 }
 0x688   : > { %3866 = vrot.lane.b32.xlu0 %v3861_v47, %s9138_s21  ;;  %4216 = vrot.lane.b32.xlu1 %v4212_v36, %s9138_s21  ;;  %v3180_v47 = vmul.f32 %v7578_v20, %v6680_v56 }
 0x68c   : > { %4218 = vrot.lane.b32.xlu0 %v4213_v40, %s9138_s21  ;;  %4188 = vrot.lane.b32.xlu1 %v4183_v29, %s9135_s25  ;;  %v3195_v29 = vmul.f32 %v3193_v28, %v3180_v47  ;;  %v3181_v47 = vmul.f32 %v3179_v7, %v6676_v51 }
 0x68e   : > { %v7825_v10 = vpop.permute.xlu0 %2959  ;;  %v7827_v45 = vpop.permute.xlu1 %2957  ;;  %v3226_v38 = vadd.f32 %v3223_v0, %v3195_v29 }
 0x68f   : > { %v2962_v20 = vrot.slane %v7825_v10, 4 }
 0x692   : > { %v7829_v52 = vpop.permute.xlu0 %3249  ;;  %v3248_v15 = vpop.permute.xlu1 %3247 }
 0x693   : > { %v3252_v46 = vrot.slane %v7829_v52, 4  ;;  %v3251_v8 = vrot.slane %v3248_v15, 4 }
 0x695   : > { %v3253_v36 = vsel %vm670_vm6, %v3251_v8, %v3252_v46  ;;  %v2961_v46 = vrot.slane %v7827_v45, 4 }
 0x696   : > { %v7831_v60 = vpop.permute.xlu0 %2990  ;;  %v7833_v22 = vpop.permute.xlu1 %2988  ;;  %v3254_v63 = vsel %vm721_vm7, %v3248_v15, %v3253_v36  ;;  %v7910_v36 = vrot.slane %v7805_v3, %v6589_v32 }
 0x697   : > { %v3257_v1 = vadd.f32 %v3254_v63, %v3226_v38  ;;  %v2963_v0 = vsel %vm670_vm6, %v2961_v46, %v2962_v20  ;;  %v2992_v29 = vrot.slane %v7833_v22, 4 }
 0x698   : > { %v2964_v13 = vsel %vm672_vm1, %v7827_v45, %v2963_v0 }
 0x69a   : > { %v7835_v11 = vpop.permute.xlu0 %3282  ;;  %v3281_v55 = vpop.permute.xlu1 %3280 }
 0x69b   : > { %v3285_v62 = vrot.slane %v7835_v11, 4  ;;  %v3284_v17 = vrot.slane %v3281_v55, 4 }
 0x69d   : > { %v3286_v26 = vsel %vm670_vm6, %v3284_v17, %v3285_v62 }
 0x69e   : > { %v7837_v21 = vpop.permute.xlu0 %3657  ;;  %v7839_v5 = vpop.permute.xlu1 %3655  ;;  %v3287_v8 = vsel %vm761_vm8, %v3281_v55, %v3286_v26  ;;  %v2993_v55 = vrot.slane %v7831_v60, 4 }
 0x69f   : > { %v3290_v38 = vadd.f32 %v3287_v8, %v3257_v1  ;;  %v3196_v8 = vmul.f32 %v3193_v28, %v3181_v47  ;;  %v2921_v1 = vmul.f32 %v7618_v9, %v6680_v56 }
 0x6a0   : > { %v2994_v3 = vsel %vm670_vm6, %v2992_v29, %v2993_v55  ;;  %v7937_v55 = vrot.slane %v7816_v25, %v6589_v32 }
 0x6a1   : > { %v3227_v29 = vadd.f32 %v7821_v18, %v3196_v8 }
 0x6a2   : > { %v7841_v43 = vpop.permute.xlu0 %3023  ;;  %v7843_v30 = vpop.permute.xlu1 %3021 }
 0x6a3   : > { %v3026_v26 = vrot.slane %v7841_v43, 4  ;;  %v3025_v63 = vrot.slane %v7843_v30, 4 }
 0x6a5   : > { %v3027_v28 = vsel %vm670_vm6, %v3025_v63, %v3026_v26  ;;  %v2995_v63 = vsel %vm721_vm7, %v7833_v22, %v2994_v3  ;;  %v3634_v3 = vmul.f32 %v7937_v55, %v7398_v31 }
 0x6a6   : > { %v7845_v24 = vpop.permute.xlu0 %3688  ;;  %v7847_v42 = vpop.permute.xlu1 %3686  ;;  %v3028_v25 = vsel %vm761_vm8, %v7843_v30, %v3027_v28 }
 0x6a7   : > { %v3691_v47 = vrot.slane %v7845_v24, 4  ;;  %v3690_v9 = vrot.slane %v7847_v42, 4 }
 0x6aa   : > { %v7849_v44 = vpop.permute.xlu0 %3719  ;;  %v7851_v12 = vpop.permute.xlu1 %3306 }
 0x6ab   : > { %v9093_v33 = vrot.slane %v7851_v12, 4 }
 0x6ad   : > { %v3309_v15 = vsel %vm624_vm5, %v9093_v33, %v7851_v12 }
 0x6ae   : > { %v7853_v58 = vpop.permute.xlu0 %3047  ;;  %v7855_v34 = vpop.permute.xlu1 %3721  ;;  %v3312_v20 = vadd.f32 %v3309_v15, %v3290_v38  ;;  %v3660_v15 = vrot.slane %v7837_v21, 4  ;;  %v3659_v38 = vrot.slane %v7839_v5, 4 }
 0x6af   : > { %v3049_v48 = vrot.slane %v7853_v58, 4  ;;  %v3724_v57 = vrot.slane %v7855_v34, 4 }
 0x6b0   : > { %v3661_v49 = vsel %vm670_vm6, %v3659_v38, %v3660_v15 }
 0x6b1   : > { %v3662_v28 = vsel %vm672_vm1, %v7839_v5, %v3661_v49 }
 0x6b2   : > { %v7859_v54 = vpop.permute.xlu0 %3076  ;;  %v7861_v19 = vpop.permute.xlu1 %3335 }
 0x6b3   : > { %v9097_v6 = vrot.slane %v7861_v19, 4  ;;  %v3080_v8 = vrot.slane %v7859_v54, 4 }
 0x6b5   : > { %v3340_v7 = vsel %vm822_vm9, %v9097_v6, %v7861_v19  ;;  %v3081_v49 = vsel %vm822_vm9, %v3080_v8, %v7859_v54 }
 0x6b6   : > { %v7868_v16 = vpop.permute.xlu0 %3745  ;;  %v7870_v50 = vpop.permute.xlu1 %3367  ;;  %v3344_v2 = vadd.f32 %v3340_v7, %v3312_v20 }
 0x6b7   : > { %v9172_v6 = vrot.slane %v7870_v50, 4  ;;  %v3747_v5 = vrot.slane %v7868_v16, 4 }
 0x6b9   : > { %v3372_v33 = vsel %vm862_vm10, %v9172_v6, %v7870_v50  ;;  %v2936_v6 = vmul.f32 %v7910_v36, %v2921_v1 }
 0x6ba   : > { %v7878_v40 = vpop.permute.xlu0 %3337  ;;  %v7880_v39 = vpop.permute.xlu1 %3108  ;;  %v3376_v7 = vadd.f32 %v3372_v33, %v3344_v2  ;;  %v3692_v2 = vsel %vm670_vm6, %v3690_v9, %v3691_v47  ;;  %v3723_v33 = vrot.slane %v7849_v44, 4  ;;  %v3050_v47 = vsel %vm624_vm5, %v3049_v48, %v7853_v58 }
 0x6bb   : > { %v2967_v1 = vadd.f32 %v2964_v13, %v2936_v6  ;;  %v3258_v13 = vadd.f32 %v7829_v52, %v3227_v29  ;;  %v3112_v31 = vrot.slane %v7880_v39, 4  ;;  %v3693_v29 = vsel %vm721_vm7, %v7847_v42, %v3692_v2 }
 0x6bc   : > { %v3725_v9 = vsel %vm670_vm6, %v3723_v33, %v3724_v57 }
 0x6bd   : > { %v2998_v6 = vadd.f32 %v2995_v63, %v2967_v1  ;;  %v3291_v52 = vadd.f32 %v7835_v11, %v3258_v13  ;;  %v3665_v11 = vadd.f32 %v3662_v28, %v3634_v3  ;;  %v3726_v42 = vsel %vm761_vm8, %v7849_v44, %v3725_v9 }
 0x6be   : > { %v7888_v62 = vpop.permute.xlu0 %3774  ;;  %v7890_v17 = vpop.permute.xlu1 %3395  ;;  %v3748_v28 = vsel %vm624_vm5, %v3747_v5, %v7868_v16 }
 0x6bf   : > { %v9173_v45 = vrot.slane %v7890_v17, 4  ;;  %v3696_v3 = vadd.f32 %v3693_v29, %v3665_v11 }
 0x6c1   : > { %v3400_v0 = vsel %vm891_vm11, %v9173_v45, %v7890_v17 }
 0x6c2   : > { %v7912_v46 = vpop.permute.xlu0 %3078  ;;  %v7914_v14 = vpop.permute.xlu1 %3136  ;;  %v3404_v18 = vadd.f32 %v3400_v0, %v3376_v7  ;;  %v3031_v0 = vadd.f32 %v3028_v25, %v2998_v6  ;;  %v9175_v25 = vrot.slane %v7851_v12, 4 }
 0x6c3   : > { %v3140_v63 = vrot.slane %v7914_v14, 4 }
 0x6c4   : > { %v3053_v1 = vadd.f32 %v3050_v47, %v3031_v0 }
 0x6c5   : > { %v3141_v47 = vsel %vm891_vm11, %v3140_v63, %v7914_v14 }
 0x6c6   : > { %v3370_v20 = vpop.permute.xlu0 %3369  ;;  %v7940_v26 = vpop.permute.xlu1 %3425  ;;  %v3085_v13 = vadd.f32 %v3081_v49, %v3053_v1 }
 0x6c7   : > { %v3429_v45 = vrot.slane %v7940_v26, 4 }
 0x6c9   : > { %v3430_v22 = vsel %vm929_vm12, %v3429_v45, %v7940_v26  ;;  %v9174_v26 = vrot.slane %v7861_v19, 4  ;;  %v3113_v19 = vsel %vm862_vm10, %v3112_v31, %v7880_v39 }
 0x6ca   : > { %v3434_v15 = vadd.f32 %v3430_v22, %v3404_v18  ;;  %v7958_v38 = vpop.permute.xlu0 %3806  ;;  %v7960_v30 = vpop.permute.xlu1 %3166  ;;  %v3313_v18 = vadd.f32 %v9175_v25, %v3291_v52  ;;  %v9176_v22 = vrot.slane %v7870_v50, 4  ;;  %v3729_v50 = vadd.f32 %v3726_v42, %v3696_v3 }
 0x6cb   : > { %v3341_v57 = vsel %vm822_vm9, %v9174_v26, %v7878_v40  ;;  %v3778_v40 = vrot.slane %v7888_v62, 4  ;;  %v3170_v12 = vrot.slane %v7960_v30, 4  ;;  %v3810_v9 = vrot.slane %v7958_v38, 4 }
 0x6cc   : > { %v3442_v7 = vcombine.high %v3434_v15, %v3434_v15  ;;  %v3373_v44 = vsel %vm862_vm10, %v9176_v22, %v3370_v20  ;;  %v3345_v6 = vadd.f32 %v3341_v57, %v3313_v18  ;;  %v3117_v52 = vadd.f32 %v3113_v19, %v3085_v13 }
 0x6cd   : > { %v3171_v49 = vsel %vm929_vm12, %v3170_v12, %v7960_v30  ;;  %v9177_v26 = vrot.slane %v7890_v17, 4  ;;  %v3751_v11 = vadd.f32 %v3748_v28, %v3729_v50 }
 0x6ce   : > { %v7987_v2 = vpop.permute.xlu0 %3110  ;;  %3445 = vrot.lane.b32.xlu1 %v3442_v7, %s6396_s22  ;;  %v7990_v33 = vpop.permute.xlu1 %3776  ;;  %v3377_v20 = vadd.f32 %v3373_v44, %v3345_v6  ;;  %v3779_v7 = vsel %vm822_vm9, %v3778_v40, %v7888_v62  ;;  %v3145_v1 = vadd.f32 %v3141_v47, %v3117_v52 }
 0x6cf   : > { %v3783_v18 = vadd.f32 %v3779_v7, %v3751_v11 }
 0x6d0   : > { %v8027_v19 = vadd.f32 %v3171_v49, %v3145_v1 }
 0x6d2   : > { %v3398_v0 = vpop.permute.xlu0 %3397  ;;  %3443 = vrot.lane.b32.xlu1 %v3434_v15, %s6396_s22  ;;  %v3428_v29 = vpop.permute.xlu1 %3427  ;;  %v3811_v15 = vsel %vm862_vm10, %v3810_v9, %v7958_v38  ;;  %v3530_v28 = vcombine.high %v8027_v19, %v8027_v19 }
 0x6d3   : > { %v3401_v57 = vsel %vm891_vm11, %v9177_v26, %v3398_v0  ;;  %v3431_v25 = vsel %vm929_vm12, %v3429_v45, %v3428_v29  ;;  %v3815_v13 = vadd.f32 %v3811_v15, %v3783_v18  ;;  %v3436_v0 = vld [vmem:[%s9023_s14] sm:$0xf]  ;;  %v2920_v26 = vld [vmem:[#allocation2 + $0x8] sm:$0xf] }
 0x6d4   : > { %v3405_v42 = vadd.f32 %v3401_v57, %v3377_v20  ;;  %v2922_v57 = vmul.f32 %v2920_v26, %v6676_v51  ;;  %v3971_v26 = vmul.f32 %v7757_v27, %v6680_v56 }
 0x6d6   : > { %v3435_v22 = vadd.f32 %v3431_v25, %v3405_v42  ;;  %v8029_v44 = vpop.permute.xlu0 %3834  ;;  %v8031_v3 = vpop.permute.xlu1 %3864  ;;  %v2937_v15 = vmul.f32 %v7910_v36, %v2922_v57 }
 0x6d7   : > { %v3838_v17 = vrot.slane %v8029_v44, 4  ;;  %v9106_v45 = vrot.slane %v8031_v3, 4 }
 0x6d8   : > { %3447 = vrot.lane.b32.xlu0 %v3435_v22, %s6396_s22  ;;  %v2968_v25 = vadd.f32 %v7825_v10, %v2937_v15 }
 0x6d9   : > { %v3839_v6 = vsel %vm891_vm11, %v3838_v17, %v8029_v44  ;;  %v3869_v20 = vsel %vm929_vm12, %v9106_v45, %v8031_v3  ;;  %v3984_v45 = vrot.slane %v7613_v37, %v6589_v32 }
 0x6da   : > { %v3843_v47 = vadd.f32 %v3839_v6, %v3815_v13  ;;  %v3139_v50 = vpop.permute.xlu0 %3138  ;;  %v4008_v52 = vpop.permute.xlu1 %4007  ;;  %v3618_v13 = vld [vmem:[#allocation4 + $0x8] sm:$0xf] }
 0x6db   : > { %v4011_v6 = vrot.slane %v4008_v52, 4  ;;  %v3620_v36 = vmul.f32 %v3618_v13, %v6676_v51  ;;  %v3986_v37 = vmul.f32 %v3984_v45, %v3971_v26 }
 0x6dc   : > { %3533 = vrot.lane.b32.xlu0 %v3530_v28, %s6396_s22  ;;  %v3873_v29 = vadd.f32 %v3869_v20, %v3843_v47  ;;  %v3970_v28 = vld [vmem:[#allocation5 + $0x8] sm:$0xf]  ;;  %v2999_v20 = vadd.f32 %v7831_v60, %v2968_v25  ;;  %v3082_v60 = vsel %vm822_vm9, %v3080_v8, %v7912_v46 }
 0x6dd   : > { %v3972_v10 = vmul.f32 %v3970_v28, %v6676_v51  ;;  %v3635_v27 = vmul.f32 %v7937_v55, %v3620_v36 }
 0x6de   : > { %v8050_v7 = vpop.permute.xlu0 %3808  ;;  %v8052_v49 = vpop.permute.xlu1 %4097  ;;  %v3881_v11 = vcombine.high %v3873_v29, %v3873_v29  ;;  %v3032_v57 = vadd.f32 %v7841_v43, %v2999_v20 }
 0x6df   : > { %v3666_v54 = vadd.f32 %v7837_v21, %v3635_v27  ;;  %v3987_v8 = vmul.f32 %v3984_v45, %v3972_v10  ;;  %v3812_v62 = vsel %vm862_vm10, %v3810_v9, %v8050_v7 }
 0x6e0   : > { %3438 = vrot.lane.b32.xlu0 %v3436_v0, %s9178_s26  ;;  %v3054_v13 = vadd.f32 %v3049_v48, %v3032_v57  ;;  %v3142_v48 = vsel %vm891_vm11, %v3140_v63, %v3139_v50  ;;  %v3780_v63 = vsel %vm822_vm9, %v3778_v40, %v7990_v33 }
 0x6e2   : > { %v8056_v1 = vpop.permute.xlu0 %4128  ;;  %v8058_v42 = vpop.permute.xlu1 %4186  ;;  %v3086_v46 = vadd.f32 %v3082_v60, %v3054_v13 }
 0x6e4   : > { %3884 = vrot.lane.b32.xlu0 %v3881_v11, %s6396_s22 }
 0x6e6   : > { %v4010_v18 = vpop.permute.xlu0 %4009  ;;  %v4041_v22 = vpop.permute.xlu1 %4040 }
 0x6e7   : > { %v4012_v47 = vrot.slane %v4010_v18, 4  ;;  %v4018_v26 = vadd.f32 %v4010_v18, %v3987_v8 }
 0x6e8   : > { %3882 = vrot.lane.b32.xlu0 %v3873_v29, %s6396_s22  ;;  %v4043_v29 = vrot.slane %v4041_v22, 4 }
 0x6e9   : > { %v4013_v0 = vsel %vm670_vm6, %v4011_v6, %v4012_v47  ;;  %v3114_v6 = vsel %vm862_vm10, %v3112_v31, %v7987_v2  ;;  %v3697_v31 = vadd.f32 %v7845_v24, %v3666_v54 }
 0x6ea   : > { %v4039_v11 = vpop.permute.xlu0 %4038  ;;  %v3837_v15 = vpop.permute.xlu1 %3836  ;;  %v4014_v43 = vsel %vm672_vm1, %v4008_v52, %v4013_v0  ;;  %v3118_v2 = vadd.f32 %v3114_v6, %v3086_v46  ;;  %v4099_v0 = vrot.slane %v8052_v49, 4 }
 0x6eb   : > { %v4042_v25 = vrot.slane %v4039_v11, 4  ;;  %v4017_v58 = vadd.f32 %v4014_v43, %v3986_v37  ;;  %v3730_v36 = vadd.f32 %v7855_v34, %v3697_v31 }
 0x6ec   : > { %v3146_v57 = vadd.f32 %v3142_v48, %v3118_v2  ;;  %v4100_v34 = vsel %vm624_vm5, %v4099_v0, %v8052_v49  ;;  %v3840_v49 = vsel %vm891_vm11, %v3838_v17, %v3837_v15  ;;  %v9179_v17 = vrot.slane %v8031_v3, 4  ;;  %v3875_v3 = vld [vmem:[%s9023_s14] sm:$0xf] }
 0x6ed   : > { %v4044_v28 = vsel %vm670_vm6, %v4042_v25, %v4043_v29  ;;  %v3752_v60 = vadd.f32 %v3747_v5, %v3730_v36  ;;  %v4049_v29 = vadd.f32 %v4041_v22, %v4018_v26  ;;  %v4190_v5 = vrot.slane %v8058_v42, 4  ;;  %v4227_v26 = vld [vmem:[%s9023_s14] sm:$0xf]  ;;  %v4688_v36 = vld [vmem:[%s9025_s16 + $0x4] sm:$0xf] }
 0x6ee   : > { %v4045_v47 = vsel %vm721_vm7, %v4039_v11, %v4044_v28  ;;  %v4072_v55 = vpop.permute.xlu0 %4071  ;;  %v4074_v20 = vpop.permute.xlu1 %4073 }
 0x6ef   : > { %v4075_v52 = vrot.slane %v4072_v55, 4  ;;  %v4076_v39 = vrot.slane %v4074_v20, 4  ;;  %v4048_v21 = vadd.f32 %v4045_v47, %v4017_v58  ;;  %v3784_v40 = vadd.f32 %v3780_v63, %v3752_v60  ;;  %v8176_v63 = vld [vmem:[%s9025_s16 + $0x8] sm:$0xf]  ;;  %v4775_v60 = vld [vmem:[%s9025_s16 + $0x4] sm:$0xf] }
 0x6f0   : > { %v4191_v44 = vsel %vm891_vm11, %v4190_v5, %v8058_v42 }
 0x6f1   : > { %v4077_v45 = vsel %vm670_vm6, %v4075_v52, %v4076_v39  ;;  %v3816_v38 = vadd.f32 %v3812_v62, %v3784_v40  ;;  %v5886_v62 = vld [vmem:[%s9025_s16 + $0x10] sm:$0xf]  ;;  %v5479_v40 = vld [vmem:[%s9025_s16 + $0xc] sm:$0xf] }
 0x6f2   : > { %v3169_v10 = vpop.permute.xlu0 %3168  ;;  %v4078_v14 = vsel %vm761_vm8, %v4072_v55, %v4077_v45  ;;  %v4127_v11 = vpop.permute.xlu1 %4126  ;;  %v8151_v45 = vld [vmem:[%s9025_s16 + $0x4] sm:$0xf] }
 0x6f3   : > { %v3172_v24 = vsel %vm929_vm12, %v3170_v12, %v3169_v10  ;;  %v4081_v50 = vadd.f32 %v4078_v14, %v4048_v21  ;;  %v4130_v18 = vrot.slane %v4127_v11, 4  ;;  %v4082_v12 = vadd.f32 %v4074_v20, %v4049_v29  ;;  %v8145_v21 = vld [vmem:[%s9025_s16] sm:$0xf]  ;;  %v5127_v10 = vld [vmem:[%s9025_s16 + $0x8] sm:$0xf] }
 0x6f4   : > { %v3176_v25 = vadd.f32 %v3172_v24, %v3146_v57  ;;  %v3844_v43 = vadd.f32 %v3840_v49, %v3816_v38  ;;  %v4655_v57 = vld [vmem:[%s9025_s16 + $0x4] sm:$0xf]  ;;  %v4396_v14 = vld [vmem:[%s9025_s16] sm:$0xf]  ;;  %v5798_v24 = vld [vmem:[%s9025_s16 + $0x10] sm:$0xf] }
 0x6f5   : > { %v4103_v33 = vadd.f32 %v4100_v34, %v4081_v50  ;;  %v4131_v30 = vsel %vm822_vm9, %v4130_v18, %v4127_v11  ;;  %v4132_v7 = vsel %vm822_vm9, %v4130_v18, %v8056_v1  ;;  %v4104_v6 = vadd.f32 %v4099_v0, %v4082_v12  ;;  %v5094_v11 = vld [vmem:[%s9025_s16 + $0x8] sm:$0xf]  ;;  %v4429_v50 = vld [vmem:[%s9025_s16] sm:$0xf]  ;;  %v5398_v18 = vld [vmem:[%s9025_s16 + $0xc] sm:$0xf] }
 0x6f6   : > { %v4161_v27 = vpop.permute.xlu0 %4160  ;;  %3535 = vrot.lane.b32.xlu1 %v3176_v25, %s6396_s22  ;;  %v4159_v16 = vpop.permute.xlu1 %4158  ;;  %v5446_v34 = vld [vmem:[%s9025_s16 + $0xc] sm:$0xf]  ;;  %v4516_v29 = vld [vmem:[%s9025_s16] sm:$0xf]  ;;  %v8207_v25 = vld [vmem:[%s9025_s16 + $0x10] sm:$0xf] }
 0x6f7   : > { %v4135_v22 = vadd.f32 %v4131_v30, %v4103_v33  ;;  %v4162_v13 = vrot.slane %v4159_v16, 4  ;;  %v4136_v55 = vadd.f32 %v4132_v7, %v4104_v6  ;;  %v8221_v33 = vld [vmem:[%s9025_s16 + $0x8] sm:$0xf]  ;;  %v9180_v30 = vmov 6   ;;  %v4574_v12 = vld [vmem:[%s9025_s16] sm:$0xf] }
 0x6f8   : > { %v5976_v49 = vld [vmem:[%s9025_s16 + $0x10] sm:$0xf]  ;;  %v9182_v7 = vmov 0  }
 0x6f9   : > { %v4163_v9 = vsel %vm862_vm10, %v4162_v13, %v4159_v16  ;;  %v4164_v8 = vsel %vm862_vm10, %v4162_v13, %v4161_v27  ;;  %v4484_v27 = vld [vmem:[%s9025_s16] sm:$0xf]  ;;  %v9181_v16 = vmov 8  }
 0x6fa   : > { %v4167_v37 = vadd.f32 %v4163_v9, %v4135_v22  ;;  %v3867_v28 = vpop.permute.xlu0 %3866  ;;  %3531 = vrot.lane.b32.xlu1 %v8027_v19, %s6396_s22  ;;  %v4217_v54 = vpop.permute.xlu1 %4216  ;;  %v4168_v19 = vadd.f32 %v4164_v8, %v4136_v55  ;;  %v4321_v13 = vld [vmem:[%s9024_s15] sm:$0xf] }
 0x6fb   : > { %v3870_v15 = vsel %vm929_vm12, %v9179_v17, %v3867_v28  ;;  %v4220_v46 = vrot.slane %v4217_v54, 4  ;;  %v5534_v17 = vld [vmem:[%s9025_s16 + $0xc] sm:$0xf] }
 0x6fc   : > { %v3874_v47 = vadd.f32 %v3870_v15, %v3844_v43  ;;  %v4195_v1 = vadd.f32 %v4191_v44, %v4167_v37  ;;  %v5831_v43 = vld [vmem:[%s9025_s16 + $0x10] sm:$0xf]  ;;  %v5182_v44 = vld [vmem:[%s9025_s16 + $0x8] sm:$0xf] }
 0x6fd   : > { %v4221_v20 = vsel %vm929_vm12, %v4220_v46, %v4217_v54  ;;  %v9183_v54 = vmov 0.0  }
 0x6fe   : > { %v4219_v48 = vpop.permute.xlu0 %4218  ;;  %3886 = vrot.lane.b32.xlu1 %v3874_v47, %s6396_s22  ;;  %v4189_v58 = vpop.permute.xlu1 %4188  ;;  %v4225_v42 = vadd.f32 %v4221_v20, %v4195_v1  ;;  %v3177_v1 = vld [vmem:[%s9023_s14] sm:$0xf] }
 0x6ff   : > { %v4192_v52 = vsel %vm891_vm11, %v4190_v5, %v4189_v58  ;;  %v4222_v31 = vsel %vm929_vm12, %v4220_v46, %v4219_v48 }
 0x700   : > { %v4196_v39 = vadd.f32 %v4192_v52, %v4168_v19  ;;  %v4233_v0 = vcombine.high %v4225_v42, %v4225_v42  ;;  %v5566_v19 = vld [vmem:[%s9025_s16 + $0xc] sm:$0xf] }
 0x702   : > { %v4226_v2 = vadd.f32 %v4222_v31, %v4196_v39  ;;  %3877 = vrot.lane.b32.xlu1 %v3875_v3, %s9108_s20 }
 0x704   : > { %4238 = vrot.lane.b32.xlu0 %v4226_v2, %s6396_s22 }
 0x706   : > { %4236 = vrot.lane.b32.xlu1 %v4233_v0, %s6396_s22 }
 0x708   : > { %4234 = vrot.lane.b32.xlu0 %v4225_v42, %s6396_s22  ;;  %v5272_v42 = vld [vmem:[%s9025_s16 + $0x8] sm:$0xf] }
 0x70a   : > { %4229 = vrot.lane.b32.xlu1 %v4227_v26, %s9107_s8  ;;  %v5624_v26 = vld [vmem:[%s9025_s16 + $0xc] sm:$0xf] }
 0x70c   : > { %4368 = vperm.xlu0 %6335, %v8145_v21  }
 0x70e   : > { %4627 = vperm.xlu1 %6336, %v8151_v45  }
 0x710   : > { %6338 = vset.pattern.permute.xlu0 %v9160_v53 }
 0x711   : > { %4691 = vperm.xlu0 %6338, %v4688_v36  }
 0x712   : > { %6337 = vset.pattern.permute.xlu1 %v9161_v59 }
 0x713   : > { %4658 = vperm.xlu1 %6337, %v4655_v57  }
 0x715   : > { %5130 = vperm.xlu0 %6338, %v5127_v10  }
 0x717   : > { %4399 = vperm.xlu1 %6337, %v4396_v14  }
 0x719   : > { %6343 = vset.pattern.permute.xlu0 %v9161_v59 }
 0x71a   : > { %5097 = vperm.xlu0 %6343, %v5094_v11  }
 0x71b   : > { %6339 = vset.pattern.permute.xlu1 %v9163_v61 }
 0x71c   : > { %5066 = vperm.xlu1 %6339, %v8176_v63  }
 0x71e   : > { %5801 = vperm.xlu0 %6343, %v5798_v24  }
 0x720   : > { %6340 = vset.pattern.permute.xlu1 %v9160_v53 }
 0x721   : > { %4432 = vperm.xlu1 %6340, %v4429_v50  }
 0x722   : > { %6348 = vset.pattern.permute.xlu0 %v9166_v35 }
 0x723   : > { %4460 = vperm.xlu0 %6348, %v4429_v50  }
 0x725   : > { %6341 = vset.pattern.permute.xlu1 %v9163_v61 }
 0x726   : > { %5418 = vperm.xlu1 %6341, %v5398_v18  }
 0x727   : > { %5158 = vperm.xlu0 %6348, %v5127_v10   ;;  %v4366_v10 = vld [vmem:[#allocation2 + $0x8] sm:$0xf] }
 0x72a   : > { %6342 = vset.pattern.permute.xlu1 %v9166_v35 }
 0x72b   : > { %4719 = vperm.xlu1 %6342, %v4688_v36   ;;  %6353 = vset.pattern.permute.xlu0 %v9165_v4 }
 0x72c   : > { %4806 = vperm.xlu0 %6353, %v4775_v60  }
 0x72f   : > { %6344 = vset.pattern.permute.xlu1 %v9161_v59  ;;  %v4743_v59 = vld [vmem:[%s9025_s16 + $0x4] sm:$0xf] }
 0x730   : > { %5449 = vperm.xlu1 %6344, %v5446_v34   ;;  %4547 = vperm.xlu0 %6353, %v4516_v29  }
 0x734   : > { %6345 = vset.pattern.permute.xlu1 %v9163_v61  ;;  %6361 = vset.pattern.permute.xlu0 %v9162_v23  ;;  %v8229_v61 = vld [vmem:[%s9025_s16 + $0x10] sm:$0xf] }
 0x735   : > { %5770 = vperm.xlu1 %6345, %v8207_v25   ;;  %5889 = vperm.xlu0 %6361, %v5886_v62  }
 0x739   : > { %6346 = vset.pattern.permute.xlu1 %v9162_v23  ;;  %6362 = vset.pattern.permute.xlu0 %v9180_v30 }
 0x73a   : > { %4746 = vperm.xlu1 %6346, %v4743_v59   ;;  %5217 = vperm.xlu0 %6362, %v8221_v33   ;;  %v9184_v59 = vld [vmem:[#allocation8_spill] sm:$0xff] }
 0x73e   : > { %6347 = vset.pattern.permute.xlu1 %v9160_v53  ;;  %5921 = vperm.xlu0 %6362, %v8229_v61  }
 0x73f   : > { %5482 = vperm.xlu1 %6347, %v5479_v40  }
 0x740   : > { %v3446_v5 = vpop.permute.xlu1 %3445 }
 0x742   : > { %6365 = vset.pattern.permute.xlu0 %v9181_v16 }
 0x743   : > { %6349 = vset.pattern.permute.xlu1 %v9162_v23  ;;  %4577 = vperm.xlu0 %6365, %v4574_v12  }
 0x744   : > { %4487 = vperm.xlu1 %6349, %v4484_v27   ;;  %v3444_v22 = vpop.permute.xlu1 %3443  ;;  %v9185_v27 = vld [vmem:[#allocation9_spill] sm:$0xff] }
 0x745   : > { %v3449_v6 = vsel %vm901_vm4, %v3444_v22, %v3446_v5 }
 0x747   : > { %5979 = vperm.xlu0 %6365, %v5976_v49  }
 0x748   : > { %6350 = vset.pattern.permute.xlu1 %v9180_v30 }
 0x749   : > { %4778 = vperm.xlu1 %6350, %v4775_v60   ;;  %v8322_v60 = vld [vmem:[#allocation2] sm:$0xff] }
 0x74a   : > { %v3448_v38 = vpop.permute.xlu0 %3447 }
 0x74b   : > { %v3450_v9 = vsel %vm901_vm4, %v3446_v5, %v3448_v38  ;;  %6368 = vset.pattern.permute.xlu0 %v9182_v7  ;;  %v8341_v38 = vld [vmem:[#allocation4] sm:$0xff] }
 0x74c   : > { %4324 = vperm.xlu0 %6368, %v4321_v13   ;;  %6201 = vmatprep.subr.msk.mxu1 %vm670_vm6, %v3450_v9 }
 0x74d   : > { %6351 = vset.pattern.permute.xlu1 %v9160_v53  ;;  %6202 = vmatpush1.msk.msra.mxu1 %vm670_vm6, %v3449_v6  ;;  %v4833_v53 = vld [vmem:[%s9025_s16 + $0x4] sm:$0xf] }
 0x74e   : > { %v3534_v37 = vpop.permute.xlu0 %3533  ;;  %5834 = vperm.xlu1 %6351, %v5831_v43  }
 0x750   : > { %5049 = vperm.xlu0 %6368, %v8176_v63   ;;  %v4625_v63 = vld [vmem:[#allocation3 + $0x8] sm:$0xf] }
 0x751   : > { %v4654_v50 = vmul.f32 %v4625_v63, %v6595_v41 }
 0x752   : > { %v3439_v28 = vpop.permute.xlu0 %3438  ;;  %6352 = vset.pattern.permute.xlu1 %v9180_v30 }
 0x753   : > { %4519 = vperm.xlu1 %6352, %v4516_v29   ;;  %6203 = vmatmul.mubr.msk.f32.vlgmr.msra.gmra.mxu1 %vm954_vm13, %v3439_v28 }
 0x754   : > { %5401 = vperm.xlu0 %6368, %v5398_v18   ;;  %3960 = vmatprep.mubr.f32.mxu1 %v9183_v54 }
 0x756   : > { %v3885_v46 = vpop.permute.xlu0 %3884 }
 0x757   : > { %6354 = vset.pattern.permute.xlu1 %v9162_v23 }
 0x758   : > { %5185 = vperm.xlu1 %6354, %v5182_v44   ;;  %v4427_v44 = vmul.f32 %v8322_v60, %v9185_v27 }
 0x75c   : > { %6355 = vset.pattern.permute.xlu1 %v9166_v35 }
 0x75d   : > { %5510 = vperm.xlu1 %6355, %v5479_v40  }
 0x761   : > { %6356 = vset.pattern.permute.xlu1 %v9181_v16 }
 0x762   : > { %4836 = vperm.xlu1 %6356, %v4833_v53  }
 0x766   : > { %6357 = vset.pattern.permute.xlu1 %v9162_v23  ;;  %v3883_v23 = vpop.permute.xlu0 %3882 }
 0x767   : > { %5537 = vperm.xlu1 %6357, %v5534_v17   ;;  %v3888_v48 = vsel %vm901_vm4, %v3883_v23, %v3885_v46  ;;  %v4395_v23 = vmul.f32 %v4366_v10, %v6595_v41 }
 0x768   : > { %v3536_v15 = vpop.permute.xlu1 %3535 }
 0x769   : > { %v3538_v8 = vsel %vm901_vm4, %v3534_v37, %v3536_v15 }
 0x76a   : > { %6204 = vmatprep.subr.msk.mxu0 %vm670_vm6, %v3538_v8  ;;  %v5092_v8 = vmul.f32 %v8341_v38, %v9184_v59 }
 0x76b   : > { %6358 = vset.pattern.permute.xlu1 %v9166_v35 }
 0x76c   : > { %5862 = vperm.xlu1 %6358, %v5831_v43   ;;  %v3532_v47 = vpop.permute.xlu1 %3531 }
 0x76d   : > { %v3537_v55 = vsel %vm901_vm4, %v3532_v47, %v3534_v37 }
 0x76e   : > { %6205 = vmatpush1.msk.msra.mxu0 %vm670_vm6, %v3537_v55 }
 0x76f   : > { %6206 = vmatmul.mubr.msk.f32.vlgmr.msra.gmra.mxu0 %vm954_vm13, %v3177_v1 }
 0x770   : > { %6359 = vset.pattern.permute.xlu1 %v9165_v4  ;;  %v3887_v20 = vpop.permute.xlu1 %3886  ;;  %4312 = vmatprep.mubr.f32.mxu0 %v9183_v54 }
 0x771   : > { %v3889_v35 = vsel %vm901_vm4, %v3885_v46, %v3887_v20  ;;  %5245 = vperm.xlu1 %6359, %v8221_v33   ;;  %v4394_v33 = vmul.f32 %v8322_v60, %v9184_v59  ;;  %v4685_v20 = vld [vmem:[#allocation3 + $0x8] sm:$0xf] }
 0x772   : > { %6207 = vmatprep.subr.msk.mxu1 %vm670_vm6, %v3889_v35  ;;  %v8361_v35 = vld [vmem:[#allocation5] sm:$0xff] }
 0x773   : > { %6208 = vmatpush1.msk.msra.mxu1 %vm670_vm6, %v3888_v48 }
 0x774   : > { %v3878_v58 = vpop.permute.xlu1 %3877 }
 0x775   : > { %6360 = vset.pattern.permute.xlu1 %v9180_v30  ;;  %6209 = vmatmul.mubr.msk.f32.vlgmr.msra.gmra.mxu1 %vm954_vm13, %v3878_v58 }
 0x776   : > { %5569 = vperm.xlu1 %6360, %v5566_v19   ;;  %v4239_v52 = vpop.permute.xlu0 %4238  ;;  %4946 = vmatprep.mubr.f32.mxu1 %v9183_v54 }
 0x778   : > { %v4237_v3 = vpop.permute.xlu1 %4236 }
 0x779   : > { %v4241_v39 = vsel %vm901_vm4, %v4237_v3, %v4239_v52  ;;  %v9186_v52 = vld [vmem:[#allocation7_spill] sm:$0xff] }
 0x77a   : > { %6363 = vset.pattern.permute.xlu1 %v9181_v16  ;;  %v4235_v31 = vpop.permute.xlu0 %4234  ;;  %6210 = vmatprep.subr.msk.mxu0 %vm670_vm6, %v4241_v39  ;;  %v8368_v39 = vld [vmem:[#allocation3 + $0x4] sm:$0xff] }
 0x77b   : > { %v4240_v2 = vsel %vm901_vm4, %v4235_v31, %v4237_v3  ;;  %5275 = vperm.xlu1 %6363, %v5272_v42   ;;  %v4687_v3 = vmul.f32 %v4685_v20, %v9186_v52  ;;  %v5124_v42 = vld [vmem:[#allocation4 + $0x8] sm:$0xf] }
 0x77c   : > { %6211 = vmatpush1.msk.msra.mxu0 %vm670_vm6, %v4240_v2  ;;  %v4230_v0 = vpop.permute.xlu1 %4229 }
 0x77d   : > { %6212 = vmatmul.mubr.msk.f32.vlgmr.msra.gmra.mxu0 %vm954_vm13, %v4230_v0 }
 0x77e   : > { %5035 = vmatprep.mubr.f32.mxu0 %v9183_v54 }
 0x77f   : > { %6364 = vset.pattern.permute.xlu1 %v9165_v4 }
 0x780   : > { %5597 = vperm.xlu1 %6364, %v5566_v19  }
 0x784   : > { %6366 = vset.pattern.permute.xlu1 %v9181_v16 }
 0x785   : > { %5627 = vperm.xlu1 %6366, %v5624_v26   ;;  %v5126_v26 = vmul.f32 %v5124_v42, %v9186_v52 }
 0x787   : > { %v4369_v36 = vpop.permute.xlu0 %4368 }
 0x788   : > { %v4376_v57 = vrot.slane %v4369_v36, %v6589_v32  ;;  %v5064_v36 = vld [vmem:[#allocation4 + $0x8] sm:$0xf] }
 0x789   : > { %6367 = vset.pattern.permute.xlu1 %v9165_v4  ;;  %v4628_v14 = vpop.permute.xlu1 %4627 }
 0x78a   : > { %v4379_v11 = vmul.f32 %v4376_v57, %v4366_v10  ;;  %5949 = vperm.xlu1 %6367, %v8229_v61   ;;  %v4635_v4 = vrot.slane %v4628_v14, %v6589_v32  ;;  %v8330_v61 = vld [vmem:[#allocation3] sm:$0xff]  ;;  %v5416_v10 = vld [vmem:[#allocation5 + $0x8] sm:$0xf] }
 0x78b   : > { %v4686_v16 = vmul.f32 %v8330_v61, %v9185_v27  ;;  %v4653_v28 = vmul.f32 %v8330_v61, %v9184_v59 }
 0x78c   : > { %4384 = vrot.lane.b32.xlu0 %v4379_v11, %s9147_s24  ;;  %v4692_v29 = vpop.permute.xlu0 %4691  ;;  %v4638_v22 = vmul.f32 %v4635_v4, %v4625_v63 }
 0x78d   : > { %v4699_v40 = vrot.slane %v4692_v29, %v6589_v32 }
 0x78e   : > { %6369 = vset.pattern.permute.xlu1 %v9182_v7  ;;  %v4659_v24 = vpop.permute.xlu1 %4658  ;;  %v4378_v7 = vmul.f32 %v4376_v57, %v8322_v60  ;;  %v4426_v57 = vld [vmem:[#allocation2 + $0x8] sm:$0xf] }
 0x78f   : > { %v4666_v18 = vrot.slane %v4659_v24, %v6589_v32  ;;  %4610 = vperm.xlu1 %6369, %v8151_v45   ;;  %v4637_v45 = vmul.f32 %v4635_v4, %v8330_v61  ;;  %v4702_v31 = vmul.f32 %v4699_v40, %v4687_v3 }
 0x790   : > { %v5131_v49 = vpop.permute.xlu0 %5130 }
 0x791   : > { %v4669_v34 = vmul.f32 %v4666_v18, %v4654_v50  ;;  %v4668_v53 = vmul.f32 %v4666_v18, %v4653_v28  ;;  %v5138_v2 = vrot.slane %v5131_v49, %v6589_v32  ;;  %v4428_v50 = vmul.f32 %v4426_v57, %v9186_v52 }
 0x792   : > { %v4400_v62 = vpop.permute.xlu1 %4399  ;;  %v5445_v18 = vmul.f32 %v5416_v10, %v6595_v41 }
 0x793   : > { %v4407_v30 = vrot.slane %v4400_v62, %v6589_v32  ;;  %4351 = vperm.xlu1 %6369, %v8145_v21   ;;  %4674 = vrot.lane.b32.xlu0 %v4669_v34, %s9148_s4  ;;  %v4701_v21 = vmul.f32 %v4699_v40, %v4686_v16  ;;  %v5141_v11 = vmul.f32 %v5138_v2, %v5126_v26  ;;  %v5476_v16 = vld [vmem:[#allocation5 + $0x8] sm:$0xf] }
 0x794   : > { %v5093_v40 = vmul.f32 %v5064_v36, %v6595_v41 }
 0x795   : > { %v4409_v12 = vmul.f32 %v4407_v30, %v4394_v33  ;;  %v5098_v37 = vpop.permute.xlu0 %5097  ;;  %v4410_v48 = vmul.f32 %v4407_v30, %v4395_v23  ;;  %v9187_v33 = vld [vmem:[#allocation11_spill] sm:$0xff] }
 0x796   : > { %v5105_v17 = vrot.slane %v5098_v37, %v6589_v32  ;;  %v4741_v30 = vmul.f32 %v8368_v39, %v9187_v33 }
 0x797   : > { %4641 = vrot.lane.b32.xlu1 %v4637_v45, %s9147_s24  ;;  %4413 = vrot.lane.b32.xlu0 %v4409_v12, %s9148_s4  ;;  %v5067_v5 = vpop.permute.xlu1 %5066 }
 0x798   : > { %v5074_v13 = vrot.slane %v5067_v5, %v6589_v32  ;;  %v5107_v47 = vmul.f32 %v5105_v17, %v5092_v8  ;;  %v5108_v5 = vmul.f32 %v5105_v17, %v5093_v40 }
 0x799   : > { %v8382_v4 = vpop.permute.xlu0 %5801 }
 0x79a   : > { %v5076_v43 = vmul.f32 %v8341_v38, %v5074_v13  ;;  %v5077_v63 = vmul.f32 %v5074_v13, %v5064_v36 }
 0x79b   : > { %4643 = vrot.lane.b32.xlu1 %v4638_v22, %s9147_s24  ;;  %4705 = vrot.lane.b32.xlu0 %v4701_v21, %s9149_s23  ;;  %v5478_v21 = vmul.f32 %v5476_v16, %v9186_v52 }
 0x79c   : > { %v4433_v9 = vpop.permute.xlu1 %4432 }
 0x79d   : > { %v4440_v6 = vrot.slane %v4433_v9, %v6589_v32 }
 0x79e   : > { %v4461_v22 = vpop.permute.xlu0 %4460 }
 0x79f   : > { %4382 = vrot.lane.b32.xlu1 %v4378_v7, %s9147_s24  ;;  %5080 = vrot.lane.b32.xlu0 %v5076_v43, %s9147_s24  ;;  %v4442_v15 = vmul.f32 %v4440_v6, %v4427_v44  ;;  %v4443_v34 = vmul.f32 %v4440_v6, %v4428_v50  ;;  %v5125_v43 = vmul.f32 %v8341_v38, %v9185_v27  ;;  %v4740_v50 = vld [vmem:[#allocation3 + $0xc] sm:$0xf] }
 0x7a0   : > { %v4468_v44 = vrot.slane %v4461_v22, %v6589_v32  ;;  %v8450_v22 = vld [vmem:[#allocation5 + $0x4] sm:$0xff] }
 0x7a1   : > { %v5419_v46 = vpop.permute.xlu1 %5418  ;;  %v5140_v37 = vmul.f32 %v5138_v2, %v5125_v43 }
 0x7a2   : > { %v5426_v1 = vrot.slane %v5419_v46, %v6589_v32  ;;  %v5159_v28 = vpop.permute.xlu0 %5158  ;;  %v9188_v46 = vld [vmem:[#allocation13_spill] sm:$0xff] }
 0x7a3   : > { %4672 = vrot.lane.b32.xlu1 %v4668_v53, %s9148_s4  ;;  %4446 = vrot.lane.b32.xlu0 %v4442_v15, %s9149_s23  ;;  %v5444_v53 = vmul.f32 %v8361_v35, %v9184_v59  ;;  %v4773_v8 = vmul.f32 %v8368_v39, %v9188_v46  ;;  %v5166_v26 = vrot.slane %v5159_v28, %v6589_v32 }
 0x7a4   : > { %v5428_v19 = vmul.f32 %v5426_v1, %v8361_v35  ;;  %v5429_v9 = vmul.f32 %v5426_v1, %v5416_v10  ;;  %v8410_v1 = vld [vmem:[#allocation2 + $0x4] sm:$0xff] }
 0x7a5   : > { %v4514_v2 = vmul.f32 %v8410_v1, %v9188_v46 }
 0x7a6   : > { %v4720_v55 = vpop.permute.xlu1 %4719 }
 0x7a7   : > { %5753 = vperm.xlu1 %6369, %v8207_v25   ;;  %5111 = vrot.lane.b32.xlu0 %v5107_v47, %s9148_s4  ;;  %v4727_v58 = vrot.slane %v4720_v55, %v6589_v32  ;;  %v4470_v55 = vmul.f32 %v4468_v44, %v8410_v1  ;;  %v4807_v23 = vpop.permute.xlu0 %4806  ;;  %v4772_v44 = vld [vmem:[#allocation3 + $0xc] sm:$0xf] }
 0x7a8   : > { %v8430_v36 = vrot.slane %v4807_v23, %v6589_v32 }
 0x7a9   : > { %v4729_v0 = vmul.f32 %v4727_v58, %v8368_v39 }
 0x7ab   : > { %4415 = vrot.lane.b32.xlu1 %v4410_v48, %s9148_s4  ;;  %5432 = vrot.lane.b32.xlu0 %v5428_v19, %s9147_s24  ;;  %v5450_v25 = vpop.permute.xlu1 %5449  ;;  %v5477_v19 = vmul.f32 %v8361_v35, %v9185_v27  ;;  %v4548_v58 = vpop.permute.xlu0 %4547 }
 0x7ac   : > { %v5457_v24 = vrot.slane %v5450_v25, %v6589_v32  ;;  %v8445_v40 = vrot.slane %v4548_v58, %v6589_v32 }
 0x7ae   : > { %v5460_v29 = vmul.f32 %v5457_v24, %v5445_v18  ;;  %v5459_v15 = vmul.f32 %v5457_v24, %v5444_v53  ;;  %v8436_v24 = vld [vmem:[#allocation4 + $0x4] sm:$0xff] }
 0x7af   : > { %4707 = vrot.lane.b32.xlu1 %v4702_v31, %s9149_s23  ;;  %4731 = vrot.lane.b32.xlu0 %v4729_v0, %s9150_s28  ;;  %v4482_v31 = vmul.f32 %v8410_v1, %v9187_v33  ;;  %v5168_v18 = vmul.f32 %v5166_v26, %v8436_v24 }
 0x7b0   : > { %v8375_v14 = vpop.permute.xlu1 %5770 }
 0x7b3   : > { %5082 = vrot.lane.b32.xlu1 %v5077_v63, %s9147_s24  ;;  %5146 = vrot.lane.b32.xlu0 %v5141_v11, %s9149_s23  ;;  %v8432_v11 = vpop.permute.xlu0 %5889 }
 0x7b5   : > { %v4747_v62 = vpop.permute.xlu1 %4746 }
 0x7b6   : > { %v8387_v45 = vrot.slane %v4747_v62, %v6589_v32 }
 0x7b7   : > { %4448 = vrot.lane.b32.xlu1 %v4443_v34, %s9149_s23  ;;  %5465 = vrot.lane.b32.xlu0 %v5460_v29, %s9148_s4  ;;  %v4816_v34 = vmul.f32 %v8430_v36, %v8368_v39  ;;  %v9189_v29 = vld [vmem:[#allocation10_spill] sm:$0xff] }
 0x7b8   : > { %v4756_v12 = vmul.f32 %v8387_v45, %v4741_v30  ;;  %v4742_v62 = vmul.f32 %v4740_v50, %v9189_v29 }
 0x7ba   : > { %v5483_v49 = vpop.permute.xlu1 %5482  ;;  %v4757_v16 = vmul.f32 %v8387_v45, %v4742_v62  ;;  %v5179_v62 = vld [vmem:[#allocation4 + $0xc] sm:$0xf] }
 0x7bb   : > { %v5490_v13 = vrot.slane %v5483_v49, %v6589_v32  ;;  %5113 = vrot.lane.b32.xlu1 %v5108_v5, %s9148_s4  ;;  %4760 = vrot.lane.b32.xlu0 %v4756_v12, %s9136_s3  ;;  %v5218_v12 = vpop.permute.xlu0 %5217 }
 0x7bc   : > { %v5225_v58 = vrot.slane %v5218_v12, %v6589_v32 }
 0x7bd   : > { %v5493_v7 = vmul.f32 %v5490_v13, %v5478_v21  ;;  %v5492_v3 = vmul.f32 %v5490_v13, %v5477_v19  ;;  %v5180_v21 = vmul.f32 %v8436_v24, %v9187_v33 }
 0x7bf   : > { %5434 = vrot.lane.b32.xlu1 %v5429_v9, %s9147_s24  ;;  %5498 = vrot.lane.b32.xlu0 %v5493_v7, %s9149_s23  ;;  %v4488_v6 = vpop.permute.xlu1 %4487  ;;  %v4481_v9 = vld [vmem:[#allocation2 + $0xc] sm:$0xf]  ;;  %v4557_v7 = vmul.f32 %v8445_v40, %v8410_v1 }
 0x7c0   : > { %v4495_v42 = vrot.slane %v4488_v6, %v6589_v32  ;;  %v8459_v6 = vpop.permute.xlu0 %5921 }
 0x7c2   : > { %v4497_v57 = vmul.f32 %v4495_v42, %v4482_v31  ;;  %v5212_v31 = vmul.f32 %v8436_v24, %v9188_v46 }
 0x7c3   : > { %5144 = vrot.lane.b32.xlu1 %v5140_v37, %s9149_s23  ;;  %v4483_v37 = vmul.f32 %v4481_v9, %v9189_v29  ;;  %v5564_v9 = vmul.f32 %v8450_v22, %v9188_v46 }
 0x7c4   : > { %v4779_v17 = vpop.permute.xlu1 %4778 }
 0x7c5   : > { %v8408_v47 = vrot.slane %v4779_v17, %v6589_v32  ;;  %v4498_v53 = vmul.f32 %v4495_v42, %v4483_v37  ;;  %v9190_v17 = vld [vmem:[#allocation15_spill] sm:$0xff]  ;;  %v5532_v42 = vmul.f32 %v8450_v22, %v9187_v33 }
 0x7c7   : > { %v4788_v20 = vmul.f32 %v8408_v47, %v4773_v8  ;;  %5463 = vrot.lane.b32.xlu1 %v5459_v15, %s9148_s4  ;;  %v4831_v15 = vmul.f32 %v8368_v39, %v9190_v17  ;;  %v4513_v39 = vld [vmem:[#allocation2 + $0xc] sm:$0xf] }
 0x7c9   : > { %4792 = vrot.lane.b32.xlu0 %v4788_v20, %s9137_s27  ;;  %v8416_v48 = vpop.permute.xlu1 %5834 }
 0x7cb   : > { %4472 = vrot.lane.b32.xlu1 %v4470_v55, %s9150_s28  ;;  %v9191_v55 = vld [vmem:[#allocation12_spill] sm:$0xff] }
 0x7cc   : > { %v4774_v23 = vmul.f32 %v4772_v44, %v9191_v55  ;;  %v4545_v44 = vld [vmem:[#allocation2 + $0xc] sm:$0xf] }
 0x7ce   : > { %v4520_v25 = vpop.permute.xlu1 %4519 }
 0x7cf   : > { %v4527_v0 = vrot.slane %v4520_v25, %v6589_v32  ;;  %5496 = vrot.lane.b32.xlu1 %v5492_v3, %s9149_s23  ;;  %v4578_v3 = vpop.permute.xlu0 %4577  ;;  %v4789_v25 = vmul.f32 %v8408_v47, %v4774_v23  ;;  %v4515_v47 = vmul.f32 %v4513_v39, %v9191_v55 }
 0x7d1   : > { %v4529_v10 = vmul.f32 %v4527_v0, %v4514_v2 }
 0x7d3   : > { %4501 = vrot.lane.b32.xlu1 %v4497_v57, %s9136_s3  ;;  %4533 = vrot.lane.b32.xlu0 %v4529_v10, %s9137_s27  ;;  %v5186_v63 = vpop.permute.xlu1 %5185  ;;  %v5227_v57 = vmul.f32 %v5225_v58, %v5212_v31  ;;  %v4585_v10 = vrot.slane %v4578_v3, %v6589_v32  ;;  %v8488_v50 = vpop.permute.xlu0 %5979  ;;  %v5270_v3 = vmul.f32 %v8436_v24, %v9190_v17 }
 0x7d4   : > { %v5193_v5 = vrot.slane %v5186_v63, %v6589_v32  ;;  %v4572_v63 = vmul.f32 %v8410_v1, %v9190_v17 }
 0x7d6   : > { %v5195_v43 = vmul.f32 %v5193_v5, %v5180_v21 }
 0x7d7   : > { %5170 = vrot.lane.b32.xlu1 %v5168_v18, %s9150_s28  ;;  %4820 = vrot.lane.b32.xlu0 %v4816_v34, %s9135_s25  ;;  %v4530_v18 = vmul.f32 %v4527_v0, %v4515_v47  ;;  %v4804_v34 = vld [vmem:[#allocation3 + $0xc] sm:$0xf]  ;;  %v8496_v1 = vpop.permute.xlu0 %4324 }
 0x7d8   : > { %v5511_v30 = vpop.permute.xlu1 %5510  ;;  %v4817_v12 = vmul.f32 %v8430_v36, %v4804_v34 }
 0x7d9   : > { %v5518_v49 = vrot.slane %v5511_v30, %v6589_v32 }
 0x7db   : > { %v5520_v13 = vmul.f32 %v5518_v49, %v8450_v22  ;;  %4762 = vrot.lane.b32.xlu1 %v4757_v16, %s9136_s3  ;;  %v4587_v16 = vmul.f32 %v4585_v10, %v4572_v63  ;;  %v5181_v49 = vmul.f32 %v5179_v62, %v9189_v29 }
 0x7dd   : > { %5522 = vrot.lane.b32.xlu0 %v5520_v13, %s9150_s28  ;;  %v4837_v45 = vpop.permute.xlu1 %4836  ;;  %v5196_v13 = vmul.f32 %v5193_v5, %v5181_v49  ;;  %v4558_v5 = vmul.f32 %v8445_v40, %v4545_v44  ;;  %v5531_v40 = vld [vmem:[#allocation5 + $0xc] sm:$0xf] }
 0x7de   : > { %v4844_v28 = vrot.slane %v4837_v45, %v6589_v32  ;;  %v9192_v45 = vld [vmem:[#allocation14_spill] sm:$0xff]  ;;  %v5533_v47 = vmul.f32 %v5531_v40, %v9189_v29 }
 0x7df   : > { %5199 = vrot.lane.b32.xlu1 %v5195_v43, %s9136_s3  ;;  %v4832_v37 = vmul.f32 %v4804_v34, %v9192_v45 }
 0x7e0   : > { %v4846_v20 = vmul.f32 %v4844_v28, %v4831_v15  ;;  %v8507_v15 = vpop.permute.xlu0 %5049 }
 0x7e1   : > { %4561 = vrot.lane.b32.xlu0 %v4557_v7, %s9135_s25 }
 0x7e2   : > { %v5538_v8 = vpop.permute.xlu1 %5537 }
 0x7e3   : > { %v8469_v19 = vrot.slane %v5538_v8, %v6589_v32  ;;  %4503 = vrot.lane.b32.xlu1 %v4498_v53, %s9136_s3  ;;  %v4847_v8 = vmul.f32 %v4844_v28, %v4832_v37  ;;  %v8545_v37 = vrot.slane %v8432_v11, %v6589_v32 }
 0x7e5   : > { %4850 = vrot.lane.b32.xlu0 %v4846_v20, %s9138_s21  ;;  %v5547_v2 = vmul.f32 %v8469_v19, %v5532_v42  ;;  %v5211_v20 = vld [vmem:[#allocation4 + $0xc] sm:$0xf]  ;;  %v5548_v34 = vmul.f32 %v8469_v19, %v5533_v47 }
 0x7e7   : > { %4794 = vrot.lane.b32.xlu1 %v4789_v25, %s9137_s27  ;;  %v8481_v26 = vpop.permute.xlu1 %5862  ;;  %v5213_v25 = vmul.f32 %v5211_v20, %v9191_v55 }
 0x7e9   : > { %5551 = vrot.lane.b32.xlu0 %v5547_v2, %s9136_s3  ;;  %v5228_v28 = vmul.f32 %v5225_v58, %v5213_v25  ;;  %v8519_v2 = vpop.permute.xlu0 %5401  ;;  %v4604_v25 = vld [vmem:[#allocation3 + $0x8] sm:$0xf] }
 0x7ea   : > { %v4606_v40 = vmul.f32 %v4604_v25, %v6676_v51 }
 0x7eb   : > { %5231 = vrot.lane.b32.xlu1 %v5227_v57, %s9137_s27  ;;  %v8522_v57 = vld [vmem:[#allocation5 + $0xc] sm:$0xf] }
 0x7ec   : > { %v5246_v30 = vpop.permute.xlu1 %5245  ;;  %v5623_v58 = vmul.f32 %v8522_v57, %v9192_v45 }
 0x7ed   : > { %4535 = vrot.lane.b32.xlu0 %v4530_v18, %s9137_s27  ;;  %v5253_v21 = vrot.slane %v5246_v30, %v6589_v32  ;;  %v4573_v18 = vmul.f32 %v4545_v44, %v9192_v45 }
 0x7ef   : > { %4591 = vrot.lane.b32.xlu1 %v4587_v16, %s9138_s21  ;;  %v5255_v7 = vmul.f32 %v5253_v21, %v8436_v24  ;;  %v5563_v16 = vld [vmem:[#allocation5 + $0xc] sm:$0xf]  ;;  %v4588_v49 = vmul.f32 %v4585_v10, %v4573_v18  ;;  %v5622_v10 = vmul.f32 %v8450_v22, %v9190_v17 }
 0x7f1   : > { %4822 = vrot.lane.b32.xlu0 %v4817_v12, %s9135_s25  ;;  %v5570_v0 = vpop.permute.xlu1 %5569  ;;  %v5243_v12 = vld [vmem:[#allocation4 + $0xc] sm:$0xf] }
 0x7f2   : > { %v5577_v36 = vrot.slane %v5570_v0, %v6589_v32  ;;  %v5271_v11 = vmul.f32 %v5243_v12, %v9192_v45 }
 0x7f3   : > { %5201 = vrot.lane.b32.xlu1 %v5196_v13, %s9136_s3  ;;  %v5256_v13 = vmul.f32 %v5253_v21, %v5243_v12 }
 0x7f4   : > { %v5579_v43 = vmul.f32 %v5577_v36, %v5564_v9  ;;  %v5565_v9 = vmul.f32 %v5563_v16, %v9191_v55 }
 0x7f5   : > { %5259 = vrot.lane.b32.xlu0 %v5255_v7, %s9135_s25 }
 0x7f6   : > { %v5276_v53 = vpop.permute.xlu1 %5275  ;;  %v5580_v44 = vmul.f32 %v5577_v36, %v5565_v9  ;;  %v4345_v9 = vld [vmem:[#allocation2 + $0x8] sm:$0xf] }
 0x7f7   : > { %v5283_v23 = vrot.slane %v5276_v53, %v6589_v32  ;;  %5583 = vrot.lane.b32.xlu1 %v5579_v43, %s9137_s27  ;;  %v5883_v43 = vld [vmem:[#allocation6 + $0xc] sm:$0xf] }
 0x7f8   : > { %v5885_v21 = vmul.f32 %v5883_v43, %v9189_v29  ;;  %v4605_v43 = vmul.f32 %v8330_v61, %v6680_v56 }
 0x7f9   : > { %4852 = vrot.lane.b32.xlu0 %v4847_v8, %s9138_s21  ;;  %v5285_v42 = vmul.f32 %v5283_v23, %v5270_v3  ;;  %v5286_v36 = vmul.f32 %v5283_v23, %v5271_v11  ;;  %v4347_v11 = vmul.f32 %v4345_v9, %v6676_v51 }
 0x7fa   : > { %v5900_v20 = vmul.f32 %v8545_v37, %v5885_v21 }
 0x7fb   : > { %4563 = vrot.lane.b32.xlu1 %v4558_v5, %s9135_s25  ;;  %v5598_v39 = vpop.permute.xlu1 %5597 }
 0x7fc   : > { %v8517_v31 = vrot.slane %v5598_v39, %v6589_v32 }
 0x7fd   : > { %5289 = vrot.lane.b32.xlu0 %v5285_v42, %s9138_s21 }
 0x7fe   : > { %v5607_v24 = vmul.f32 %v8517_v31, %v8450_v22  ;;  %v8530_v62 = vpop.permute.xlu0 %4384 }
 0x7ff   : > { %5233 = vrot.lane.b32.xlu1 %v5228_v28, %s9137_s27 }
 0x800   : > { %v5628_v63 = vpop.permute.xlu1 %5627 }
 0x801   : > { %v5635_v30 = vrot.slane %v5628_v63, %v6589_v32  ;;  %5611 = vrot.lane.b32.xlu0 %v5607_v24, %s9135_s25 }
 0x803   : > { %v8536_v0 = vmul.f32 %v5635_v30, %v5623_v58  ;;  %5553 = vrot.lane.b32.xlu1 %v5548_v34, %s9136_s3  ;;  %v5637_v53 = vmul.f32 %v5635_v30, %v5622_v10 }
 0x805   : > { %v4675_v19 = vpop.permute.xlu0 %4674  ;;  %4593 = vrot.lane.b32.xlu0 %v4588_v49, %s9138_s21  ;;  %v8541_v7 = vpop.permute.xlu1 %5949  ;;  %v4387_v49 = vrot.slane %v8530_v62, 4 }
 0x807   : > { %5261 = vrot.lane.b32.xlu1 %v5256_v13, %s9135_s25 }
 0x809   : > { %v4414_v5 = vpop.permute.xlu0 %4413  ;;  %5585 = vrot.lane.b32.xlu0 %v5580_v44, %s9137_s27 }
 0x80a   : > { %v4611_v8 = vpop.permute.xlu1 %4610 }
 0x80b   : > { %5641 = vrot.lane.b32.xlu1 %v5637_v53, %s9138_s21  ;;  %v4618_v29 = vrot.slane %v4611_v8, %v6589_v32  ;;  %v4677_v8 = vrot.slane %v4675_v19, 4 }
 0x80d   : > { %v8555_v3 = vpop.permute.xlu0 %4705  ;;  %5905 = vrot.lane.b32.xlu0 %v5900_v20, %s9136_s3  ;;  %v4621_v24 = vmul.f32 %v4618_v29, %v4606_v40  ;;  %v4620_v20 = vmul.f32 %v4618_v29, %v4605_v43 }
 0x80e   : > { %v4352_v22 = vpop.permute.xlu1 %4351 }
 0x80f   : > { %v4359_v44 = vrot.slane %v4352_v22, %v6589_v32 }
 0x811   : > { %v8559_v42 = vpop.permute.xlu0 %5080  ;;  %5291 = vrot.lane.b32.xlu0 %v5286_v36, %s9138_s21 }
 0x812   : > { %v4642_v39 = vpop.permute.xlu1 %4641 }
 0x813   : > { %v4645_v63 = vrot.slane %v4642_v39, 4 }
 0x815   : > { %v8563_v28 = vpop.permute.xlu0 %4446 }
 0x816   : > { %v4644_v47 = vpop.permute.xlu1 %4643 }
 0x817   : > { %v4646_v18 = vrot.slane %v4644_v47, 4  ;;  %v4652_v34 = vadd.f32 %v4644_v47, %v4621_v24 }
 0x819   : > { %v4647_v58 = vsel %vm670_vm6, %v4645_v63, %v4646_v18  ;;  %v8566_v23 = vpop.permute.xlu0 %5111  ;;  %v8568_v30 = vadd.f32 %v4675_v19, %v4652_v34  ;;  %v4346_v63 = vmul.f32 %v8322_v60, %v6680_v56  ;;  %v4417_v34 = vrot.slane %v4414_v5, 4 }
 0x81a   : > { %v4383_v12 = vpop.permute.xlu1 %4382  ;;  %v4648_v16 = vsel %vm672_vm1, %v4642_v39, %v4647_v58  ;;  %v4362_v39 = vmul.f32 %v4359_v44, %v4347_v11 }
 0x81b   : > { %v4386_v13 = vrot.slane %v4383_v12, 4  ;;  %v4651_v40 = vadd.f32 %v4648_v16, %v4620_v20  ;;  %v4361_v58 = vmul.f32 %v4359_v44, %v4346_v63  ;;  %v5043_v16 = vld [vmem:[#allocation4 + $0x8] sm:$0xf] }
 0x81c   : > { %v4393_v19 = vadd.f32 %v8530_v62, %v4362_v39  ;;  %v4709_v62 = vrot.slane %v8555_v3, 4 }
 0x81d   : > { %v4388_v10 = vsel %vm670_vm6, %v4386_v13, %v4387_v49  ;;  %v8578_v36 = vpop.permute.xlu0 %5432  ;;  %v5057_v13 = vrot.slane %v8507_v15, %v6589_v32  ;;  %v5044_v15 = vmul.f32 %v8341_v38, %v6680_v56 }
 0x81e   : > { %v4389_v21 = vsel %vm672_vm1, %v4383_v12, %v4388_v10  ;;  %v4673_v53 = vpop.permute.xlu1 %4672 }
 0x81f   : > { %v4676_v25 = vrot.slane %v4673_v53, 4  ;;  %v4392_v9 = vadd.f32 %v4389_v21, %v4361_v58  ;;  %v5059_v63 = vmul.f32 %v5057_v13, %v5044_v15 }
 0x821   : > { %v4678_v24 = vsel %vm670_vm6, %v4676_v25, %v4677_v8  ;;  %v8586_v18 = vpop.permute.xlu0 %4731 }
 0x822   : > { %v4679_v61 = vsel %vm721_vm7, %v4673_v53, %v4678_v24  ;;  %v8582_v47 = vpop.permute.xlu1 %5753  ;;  %v5045_v53 = vmul.f32 %v5043_v16, %v6676_v51 }
 0x823   : > { %v4682_v22 = vadd.f32 %v4679_v61, %v4651_v40 }
 0x824   : > { %v5060_v11 = vmul.f32 %v5057_v13, %v5045_v53 }
 0x825   : > { %v8597_v8 = vpop.permute.xlu0 %5146 }
 0x826   : > { %v4416_v29 = vpop.permute.xlu1 %4415 }
 0x827   : > { %v4418_v12 = vrot.slane %v4416_v29, 4  ;;  %v4424_v49 = vadd.f32 %v4416_v29, %v4393_v19  ;;  %v3523_v19 = vpop.f32.mrf.mxu1 }
 0x829   : > { %v4419_v43 = vsel %vm670_vm6, %v4417_v34, %v4418_v12  ;;  %v8608_v29 = vpop.permute.xlu0 %5465  ;;  %v5395_v12 = vld [vmem:[#allocation5 + $0x8] sm:$0xf]  ;;  %v3525_v13 = vpop.f32.mrf.mxu1 }
 0x82a   : > { %v8592_v10 = vpop.permute.xlu1 %4707  ;;  %v4420_v60 = vsel %vm721_vm7, %v4414_v5, %v4419_v43  ;;  %v5084_v5 = vrot.slane %v8559_v42, 4  ;;  %v5409_v43 = vrot.slane %v8519_v2, %v6589_v32 }
 0x82b   : > { %v4710_v44 = vrot.slane %v8592_v10, 4  ;;  %v4423_v20 = vadd.f32 %v4420_v60, %v4392_v9 }
 0x82d   : > { %v4711_v25 = vsel %vm670_vm6, %v4709_v62, %v4710_v44  ;;  %v5397_v62 = vmul.f32 %v5395_v12, %v6676_v51  ;;  %v5436_v12 = vrot.slane %v8578_v36, 4 }
 0x82e   : > { %v4712_v21 = vsel %vm761_vm8, %v8555_v3, %v4711_v25  ;;  %v5083_v39 = vpop.permute.xlu1 %5082  ;;  %v4450_v3 = vrot.slane %v8563_v28, 4  ;;  %v8623_v25 = vpop.permute.xlu0 %4760 }
 0x82f   : > { %v8606_v40 = vadd.f32 %v4712_v21, %v4682_v22  ;;  %v5085_v24 = vrot.slane %v5083_v39, 4  ;;  %v5091_v61 = vadd.f32 %v5083_v39, %v5060_v11  ;;  %v3612_v60 = vpop.f32.mrf.mxu0  ;;  %v5115_v11 = vrot.slane %v8566_v23, 4 }
 0x830   : > { %v5412_v2 = vmul.f32 %v5409_v43, %v5397_v62 }
 0x831   : > { %v5086_v34 = vsel %vm670_vm6, %v5084_v5, %v5085_v24  ;;  %v3614_v5 = vpop.f32.mrf.mxu0 }
 0x832   : > { %v4449_v58 = vpop.permute.xlu1 %4448  ;;  %v5087_v38 = vsel %vm672_vm1, %v8559_v42, %v5086_v34  ;;  %v5396_v34 = vmul.f32 %v8361_v35, %v6680_v56 }
 0x833   : > { %v4451_v16 = vrot.slane %v4449_v58, 4  ;;  %v8614_v9 = vadd.f32 %v4449_v58, %v4424_v49  ;;  %v5090_v22 = vadd.f32 %v5087_v38, %v5059_v63 }
 0x835   : > { %v4452_v53 = vsel %vm670_vm6, %v4450_v3, %v4451_v16  ;;  %v3962_v49 = vpop.f32.mrf.mxu1 }
 0x836   : > { %v5114_v44 = vpop.permute.xlu1 %5113  ;;  %v4453_v42 = vsel %vm761_vm8, %v8563_v28, %v4452_v53  ;;  %v3613_v28 = vadd.f32 %v3612_v60, %v3523_v19  ;;  %v3615_v53 = vadd.f32 %v3614_v5, %v3525_v13 }
 0x837   : > { %v5116_v15 = vrot.slane %v5114_v44, 4  ;;  %v5122_v21 = vadd.f32 %v5114_v44, %v5091_v61  ;;  %v8625_v39 = vadd.f32 %v4453_v42, %v4423_v20  ;;  %v3964_v61 = vpop.f32.mrf.mxu1  ;;  %v5411_v44 = vmul.f32 %v5409_v43, %v5396_v34  ;;  %v8638_v42 = vpop.permute.xlu0 %5498 }
 0x838   : > { %v3967_v62 = vadd.f32 %v3962_v49, %v3613_v28  ;;  %v3968_v60 = vadd.f32 %v3964_v61, %v3615_v53 }
 0x839   : > { %v5117_v24 = vsel %vm670_vm6, %v5115_v11, %v5116_v15  ;;  %v8629_v63 = vadd.f32 %v8597_v8, %v5122_v21 }
 0x83a   : > { %v5435_v58 = vpop.permute.xlu1 %5434  ;;  %v5118_v38 = vsel %vm721_vm7, %v8566_v23, %v5117_v24 }
 0x83b   : > { %v5437_v20 = vrot.slane %v5435_v58, 4  ;;  %v5443_v3 = vadd.f32 %v5435_v58, %v5412_v2  ;;  %v8636_v16 = vadd.f32 %v5118_v38, %v5090_v22  ;;  %v8648_v5 = vpop.permute.xlu0 %4792  ;;  %v5468_v58 = vrot.slane %v8608_v29, 4 }
 0x83d   : > { %v5438_v11 = vsel %vm670_vm6, %v5436_v12, %v5437_v20  ;;  %v5474_v35 = vadd.f32 %v8608_v29, %v5443_v3  ;;  %v4314_v19 = vpop.f32.mrf.mxu0 }
 0x83e   : > { %v4319_v15 = vadd.f32 %v4314_v19, %v3967_v62  ;;  %v8642_v23 = vpop.permute.xlu1 %5144  ;;  %v5439_v21 = vsel %vm672_vm1, %v8578_v36, %v5438_v11 }
 0x83f   : > { %v4316_v2 = vpop.f32.mrf.mxu0  ;;  %v5442_v22 = vadd.f32 %v5439_v21, %v5411_v44  ;;  %v5507_v13 = vadd.f32 %v8638_v42, %v5474_v35  ;;  %v9193_v44 = vld [vmem:[#allocation17_spill] sm:$0xff]  ;;  %v9194_v35 = vld [vmem:[#allocation18_spill] sm:$0xff] }
 0x840   : > { %v4327_v43 = vadd.f32 %v8496_v1, %v4319_v15  ;;  %v4320_v49 = vadd.f32 %v4316_v2, %v3968_v60 }
 0x842   : > { %vm4329_vm15 = vcmp.ge.f32.partialorder %v4327_v43, 0.0  ;;  %v4331_v24 = vmul.f32 0.2, %v4327_v43  ;;  %v4328_v34 = vadd.f32 %v8496_v1, %v4320_v49  ;;  %v5464_v28 = vpop.permute.xlu1 %5463  ;;  %v5778_v49 = vrot.slane %v8375_v14, %v6589_v32 }
 0x843   : > { %v5467_v38 = vrot.slane %v5464_v28, 4  ;;  %v5870_v14 = vrot.slane %v8481_v26, %v6589_v32  ;;  %v5842_v26 = vrot.slane %v8416_v48, %v6589_v32 }
 0x844   : > { %v4333_v12 = vsel %vm4329_vm15, %v4327_v43, %v4331_v24  ;;  %vm4330_vm0 = vcmp.ge.f32.partialorder %v4328_v34, 0.0  ;;  %v4332_v36 = vmul.f32 0.2, %v4328_v34 }
 0x845   : > { %v5469_v61 = vsel %vm670_vm6, %v5467_v38, %v5468_v58  ;;  %v8653_v20 = vpop.permute.xlu0 %4533  ;;  %v4335_v11 = vadd.f32 %v4333_v12, %v9193_v44 }
 0x846   : > { %v4334_v3 = vsel %vm4330_vm0, %v4328_v34, %v4332_v36  ;;  %v5470_v53 = vsel %vm721_vm7, %v5464_v28, %v5469_v61  ;;  %v8656_v62 = vpop.permute.xlu1 %4472  ;;  %v5809_v61 = vrot.slane %v8382_v4, %v6589_v32 }
 0x847   : > { %v4336_v1 = vadd.f32 %v4334_v3, %v9194_v35  ;;  %v8660_v19 = vadd.f32 %v5470_v53, %v5442_v22  ;;  %v8704_v35 = vrot.slane %v8541_v7, %v6589_v32 }
 0x849   : > { %v8662_v29 = vcombine.low %v4335_v11, %v4336_v1  ;;  %v8667_v15 = vpop.permute.xlu0 %4820 }
 0x84a   : > { %v8664_v60 = vpop.permute.xlu1 %5496 }
 0x84b   : > { %4343 = vst [vmem:[#allocation6 + $0x4] sm:$0xff] %v8662_v29  ;;  %v5872_v44 = vmul.f32 %v5870_v14, %v8662_v29  ;;  %v5884_v48 = vmul.f32 %v8662_v29, %v9187_v33  ;;  %v5148_v14 = vrot.slane %v8642_v23, 4  ;;  %v5929_v33 = vrot.slane %v8459_v6, %v6589_v32 }
 0x84e   : > { %v8669_v21 = vpop.permute.xlu1 %4501 }
 0x84f   : > { %v8671_v2 = vpop.permute.xlu0 %5522 }
 0x850   : > { %v9109_v43 = vrot.slane %v8671_v2, 4 }
 0x852   : > { %v8678_v22 = vadd.f32 %v9109_v43, %v5507_v13  ;;  %v8680_v24 = vpop.permute.xlu1 %5170  ;;  %v5768_v34 = vld [vmem:[#allocation6 + $0x8] sm:$0xf]  ;;  %v5767_v28 = vld [vmem:[#allocation6] sm:$0xff] }
 0x853   : > { %v8682_v58 = vpop.permute.xlu0 %4561  ;;  %v5781_v38 = vmul.f32 %v5778_v49, %v5768_v34  ;;  %v5780_v12 = vmul.f32 %v5778_v49, %v5767_v28  ;;  %v5797_v36 = vmul.f32 %v5768_v34, %v6595_v41  ;;  %v5829_v11 = vmul.f32 %v5767_v28, %v9185_v27 }
 0x854   : > { %v8697_v41 = vrot.slane %v8582_v47, %v6589_v32  ;;  %v5748_v4 = vmul.f32 %v5767_v28, %v6680_v56  ;;  %v5959_v56 = vmul.f32 %v8704_v35, %v8662_v29  ;;  %v5796_v7 = vmul.f32 %v5767_v28, %v9184_v59 }
 0x855   : > { %5786 = vrot.lane.b32.xlu0 %v5781_v38, %s9147_s24  ;;  %5784 = vrot.lane.b32.xlu1 %v5780_v12, %s9147_s24  ;;  %v5812_v53 = vmul.f32 %v5809_v61, %v5797_v36  ;;  %v5844_v49 = vmul.f32 %v5842_v26, %v5829_v11  ;;  %v4474_v34 = vrot.slane %v8656_v62, 4  ;;  %v5828_v38 = vld [vmem:[#allocation6 + $0x8] sm:$0xf]  ;;  %v5915_v12 = vld [vmem:[#allocation6 + $0xc] sm:$0xf]  ;;  %v5899_v28 = vmul.f32 %v8545_v37, %v5884_v48  ;;  %s9198_s24 = smov 120  }
 0x856   : > { %v4763_v13 = vpop.permute.xlu1 %4762  ;;  %v8711_v27 = vmul.f32 %v8697_v41, %v5748_v4  ;;  %v8723_v36 = vld [vmem:[#allocation6 + $0xc] sm:$0xf]  ;;  %v5811_v11 = vmul.f32 %v5809_v61, %v5796_v7  ;;  %v5830_v4 = vmul.f32 %v5828_v38, %v9186_v52  ;;  %v5917_v6 = vmul.f32 %v5915_v12, %v9191_v55 }
 0x857   : > { %v8691_v3 = vpop.permute.xlu0 %4850  ;;  %v4475_v43 = vsel %vm624_vm5, %v4474_v34, %v8656_v62  ;;  %v4716_v37 = vadd.f32 %v8592_v10, %v8568_v30  ;;  %v4764_v52 = vrot.slane %v8623_v25, 4  ;;  %v4796_v38 = vrot.slane %v8648_v5, 4 }
 0x858   : > { %v4478_v48 = vadd.f32 %v4475_v43, %v8625_v39  ;;  %v5845_v10 = vmul.f32 %v5842_v26, %v5830_v4  ;;  %v4537_v12 = vrot.slane %v8653_v20, 4  ;;  %v5608_v39 = vmul.f32 %v8517_v31, %v8522_v57 }
 0x859   : > { %5817 = vrot.lane.b32.xlu0 %v5812_v53, %s9148_s4  ;;  %5874 = vrot.lane.b32.xlu1 %v5872_v44, %s9150_s28  ;;  %v5975_v53 = vmul.f32 %v8723_v36, %v9192_v45  ;;  %v5932_v45 = vmul.f32 %v5929_v33, %v5917_v6  ;;  %v4565_v26 = vrot.slane %v8682_v58, 4  ;;  %v4765_v4 = vsel %vm822_vm9, %v4764_v52, %v8623_v25 }
 0x85a   : > { %v8708_v1 = vpop.permute.xlu1 %5199  ;;  %v5916_v31 = vmul.f32 %v8662_v29, %v9188_v46 }
 0x85b   : > { %v8713_v47 = vpop.permute.xlu0 %5551  ;;  %v4566_v46 = vsel %vm891_vm11, %v4565_v26, %v8682_v58 }
 0x85d   : > { %5848 = vrot.lane.b32.xlu0 %v5844_v49, %s9149_s23  ;;  %5963 = vrot.lane.b32.xlu1 %v5959_v56, %s9135_s25  ;;  %v8737_v49 = vrot.slane %v8488_v50, %v6589_v32  ;;  %v5149_v56 = vrot.slane %v8597_v8, 4  ;;  %v4733_v32 = vrot.slane %v8586_v18, 4  ;;  %v9195_v8 = vrot.slane %v8669_v21, 4 }
 0x85e   : > { %v8727_v44 = vpop.permute.xlu1 %4503 }
 0x85f   : > { %v8731_v59 = vpop.permute.xlu0 %4535  ;;  %v5150_v50 = vsel %vm670_vm6, %v5148_v14, %v5149_v56  ;;  %v4506_v55 = vsel %vm822_vm9, %v9195_v8, %v8669_v21  ;;  %v5990_v7 = vmul.f32 %v8737_v49, %v5975_v53  ;;  %v4738_v14 = vadd.f32 %v4733_v32, %v4716_v37 }
 0x860   : > { %v4510_v56 = vadd.f32 %v4506_v55, %v4478_v48  ;;  %v5172_v8 = vrot.slane %v8680_v24, 4  ;;  %v4734_v43 = vsel %vm624_vm5, %v4733_v32, %v8586_v18  ;;  %v4538_v18 = vsel %vm862_vm10, %v4537_v12, %v8653_v20 }
 0x861   : > { %5903 = vrot.lane.b32.xlu0 %v5899_v28, %s9136_s3  ;;  %5815 = vrot.lane.b32.xlu1 %v5811_v11, %s9148_s4  ;;  %v4766_v28 = vsel %vm822_vm9, %v4764_v52, %v4763_v13  ;;  %v5151_v11 = vsel %vm761_vm8, %v8642_v23, %v5150_v50  ;;  %v4737_v23 = vadd.f32 %v4734_v43, %v8606_v40  ;;  %v4824_v32 = vrot.slane %v8667_v15, 4 }
 0x862   : > { %v4795_v61 = vpop.permute.xlu1 %4794  ;;  %v4770_v6 = vadd.f32 %v4766_v28, %v4738_v14  ;;  %v5154_v57 = vadd.f32 %v5151_v11, %v8636_v16  ;;  %v5203_v40 = vrot.slane %v8708_v1, 4  ;;  %v5173_v25 = vsel %vm624_vm5, %v5172_v8, %v8680_v24 }
 0x863   : > { %v4823_v30 = vpop.permute.xlu0 %4822  ;;  %v4798_v13 = vsel %vm862_vm10, %v4796_v38, %v4795_v61  ;;  %v4542_v52 = vadd.f32 %v4538_v18, %v4510_v56  ;;  %v4854_v16 = vrot.slane %v8691_v3, 4  ;;  %v4797_v48 = vsel %vm862_vm10, %v4796_v38, %v8648_v5 }
 0x864   : > { %v4802_v50 = vadd.f32 %v4798_v13, %v4770_v6  ;;  %v4826_v55 = vsel %vm891_vm11, %v4824_v32, %v4823_v30  ;;  %v5931_v28 = vmul.f32 %v5929_v33, %v5916_v31  ;;  %v5974_v14 = vmul.f32 %v8662_v29, %v9190_v17 }
 0x865   : > { %5937 = vrot.lane.b32.xlu0 %v5932_v45, %s9137_s27  ;;  %5850 = vrot.lane.b32.xlu1 %v5845_v10, %s9149_s23  ;;  %v4769_v11 = vadd.f32 %v4765_v4, %v4737_v23  ;;  %v5176_v56 = vadd.f32 %v5173_v25, %v5154_v57  ;;  %v5204_v30 = vsel %vm822_vm9, %v5203_v40, %v8708_v1 }
 0x866   : > { %v8774_v53 = vpop.permute.xlu1 %5231  ;;  %v4570_v43 = vadd.f32 %v4566_v46, %v4542_v52  ;;  %v4830_v13 = vadd.f32 %v4826_v55, %v4802_v50  ;;  %v4825_v29 = vsel %vm891_vm11, %v4824_v32, %v8667_v15  ;;  %v4855_v18 = vsel %vm929_vm12, %v4854_v16, %v8691_v3 }
 0x867   : > { %v8779_v37 = vpop.permute.xlu0 %5259  ;;  %v5235_v61 = vrot.slane %v8774_v53, 4  ;;  %v4801_v17 = vadd.f32 %v4797_v48, %v4769_v11  ;;  %v5208_v4 = vadd.f32 %v5204_v30, %v5176_v56  ;;  %v9196_v52 = vrot.slane %v8669_v21, 4 }
 0x868   : > { %v5263_v38 = vrot.slane %v8779_v37, 4  ;;  %v5960_v3 = vmul.f32 %v8704_v35, %v8723_v36  ;;  %v4539_v62 = vsel %vm862_vm10, %v4537_v12, %v8731_v59 }
 0x869   : > { %5643 = vrot.lane.b32.xlu0 %v8536_v0, %s9138_s21  ;;  %5613 = vrot.lane.b32.xlu1 %v5608_v39, %s9135_s25  ;;  %v5236_v33 = vsel %vm862_vm10, %v5235_v61, %v8774_v53  ;;  %v4829_v32 = vadd.f32 %v4825_v29, %v4801_v17  ;;  %v4507_v50 = vsel %vm822_vm9, %v9196_v52, %v8727_v44  ;;  %v5500_v44 = vrot.slane %v8664_v60, 4 }
 0x86a   : > { %v8804_v45 = vpop.permute.xlu1 %4591  ;;  %v5240_v25 = vadd.f32 %v5236_v33, %v5208_v4  ;;  %v9197_v29 = vrot.slane %v8671_v2, 4 }
 0x86b   : > { %v4595_v0 = vrot.slane %v8804_v45, 4  ;;  %v4853_v10 = vpop.permute.xlu0 %4852  ;;  %v4859_v55 = vadd.f32 %v4855_v18, %v4829_v32 }
 0x86c   : > { %v4856_v39 = vsel %vm929_vm12, %v4854_v16, %v4853_v10  ;;  %v4479_v16 = vadd.f32 %v4474_v34, %v8614_v9  ;;  %v5501_v9 = vrot.slane %v8638_v42, 4  ;;  %v4861_v34 = vld [vmem:[%s9026_s17] sm:$0xf]  ;;  %v5525_v33 = vsel %vm624_vm5, %v9197_v29, %v8671_v2 }
 0x86d   : > { %v4596_v5 = vsel %vm929_vm12, %v4595_v0, %v8804_v45  ;;  %5995 = vrot.lane.b32.xlu0 %v5990_v7, %s9138_s21  ;;  %5935 = vrot.lane.b32.xlu1 %v5931_v28, %s9137_s27  ;;  %v4860_v31 = vadd.f32 %v4856_v39, %v4830_v13  ;;  %v5989_v7 = vmul.f32 %v8737_v49, %v5974_v14 }
 0x86e   : > { %v5202_v23 = vpop.permute.xlu1 %5201  ;;  %v8829_v6 = vadd.f32 %v4596_v5, %v4570_v43  ;;  %v5264_v49 = vsel %vm891_vm11, %v5263_v38, %v8779_v37  ;;  %v4511_v28 = vadd.f32 %v4507_v50, %v4479_v16  ;;  %v4867_v36 = vcombine.high %v4859_v55, %v4859_v55 }
 0x86f   : > { %v8831_v57 = vpop.permute.xlu0 %5289  ;;  %v5268_v14 = vadd.f32 %v5264_v49, %v5240_v25  ;;  %v5502_v30 = vsel %vm670_vm6, %v5500_v44, %v5501_v9  ;;  %v5555_v43 = vrot.slane %v8713_v47, 4  ;;  %v5177_v45 = vadd.f32 %v5172_v8, %v8629_v63 }
 0x870   : > { %v5293_v15 = vrot.slane %v8831_v57, 4  ;;  %v4955_v48 = vcombine.high %v8829_v6, %v8829_v6  ;;  %v4543_v42 = vadd.f32 %v4539_v62, %v4511_v28  ;;  %v5503_v12 = vsel %vm761_vm8, %v8664_v60, %v5502_v30 }
 0x871   : > { %5993 = vrot.lane.b32.xlu1 %v5989_v7, %s9138_s21  ;;  %4872 = vrot.lane.b32.xlu0 %v4860_v31, %s6396_s22  ;;  %v5205_v60 = vsel %vm822_vm9, %v5203_v40, %v5202_v23  ;;  %v5506_v4 = vadd.f32 %v5503_v12, %v8660_v19  ;;  %v5556_v31 = vsel %vm822_vm9, %v5555_v43, %v8713_v47 }
 0x872   : > { %v5584_v46 = vpop.permute.xlu1 %5583  ;;  %v5294_v10 = vsel %vm929_vm12, %v5293_v15, %v8831_v57  ;;  %v5209_v18 = vadd.f32 %v5205_v60, %v5177_v45 }
 0x873   : > { %v8854_v21 = vpop.permute.xlu0 %5611  ;;  %v5298_v11 = vadd.f32 %v5294_v10, %v5268_v14  ;;  %v5587_v20 = vrot.slane %v5584_v46, 4  ;;  %v5528_v23 = vadd.f32 %v5525_v33, %v5506_v4 }
 0x874   : > { %v5615_v63 = vrot.slane %v8854_v21, 4 }
 0x875   : > { %5965 = vrot.lane.b32.xlu1 %v5960_v3, %s9135_s25  ;;  %4958 = vrot.lane.b32.xlu0 %v4955_v48, %s6396_s22  ;;  %v5306_v13 = vcombine.high %v5298_v11, %v5298_v11  ;;  %v5588_v24 = vsel %vm862_vm10, %v5587_v20, %v5584_v46  ;;  %v5560_v47 = vadd.f32 %v5556_v31, %v5528_v23 }
 0x876   : > { %v4564_v35 = vpop.permute.xlu1 %4563  ;;  %v5616_v49 = vsel %vm891_vm11, %v5615_v63, %v8854_v21 }
 0x877   : > { %v4594_v56 = vpop.permute.xlu0 %4593  ;;  %v4567_v39 = vsel %vm891_vm11, %v4565_v26, %v4564_v35  ;;  %v5592_v52 = vadd.f32 %v5588_v24, %v5560_v47  ;;  %v5747_v35 = vld [vmem:[#allocation6 + $0x8] sm:$0xf] }
 0x878   : > { %v4571_v5 = vadd.f32 %v4567_v39, %v4543_v42  ;;  %v4597_v58 = vsel %vm929_vm12, %v4595_v0, %v4594_v56 }
 0x879   : > { %4870 = vrot.lane.b32.xlu1 %v4867_v36, %s6396_s22  ;;  %4863 = vrot.lane.b32.xlu0 %v4861_v34, %s9178_s26  ;;  %s9199_s26 = smov 116   ;;  %v5749_v36 = vmul.f32 %v5747_v35, %v6676_v51 }
 0x87a   : > { %v5234_v59 = vpop.permute.xlu1 %5233  ;;  %v4601_v7 = vadd.f32 %v4597_v58, %v4571_v5 }
 0x87b   : > { %v5586_v17 = vpop.permute.xlu0 %5585  ;;  %v5237_v2 = vsel %vm862_vm10, %v5235_v61, %v5234_v59  ;;  %v5764_v59 = vmul.f32 %v8697_v41, %v5749_v36 }
 0x87c   : > { %v5589_v26 = vsel %vm862_vm10, %v5587_v20, %v5586_v17  ;;  %v5241_v8 = vadd.f32 %v5237_v2, %v5209_v18 }
 0x87d   : > { %4868 = vrot.lane.b32.xlu1 %v4859_v55, %s6396_s22  ;;  %5309 = vrot.lane.b32.xlu0 %v5306_v13, %s6396_s22  ;;  %v5620_v55 = vadd.f32 %v5616_v49, %v5592_v52 }
 0x87e   : > { %v5554_v0 = vpop.permute.xlu1 %5553 }
 0x87f   : > { %v5557_v1 = vsel %vm822_vm9, %v5555_v43, %v5554_v0  ;;  %v8903_v40 = vpop.permute.xlu0 %5905 }
 0x880   : > { %v5561_v19 = vadd.f32 %v5557_v1, %v8678_v22 }
 0x881   : > { %5307 = vrot.lane.b32.xlu0 %v5298_v11, %s6396_s22  ;;  %4960 = vrot.lane.b32.xlu1 %v4601_v7, %s6396_s22 }
 0x882   : > { %v5262_v53 = vpop.permute.xlu1 %5261  ;;  %v5593_v61 = vadd.f32 %v5589_v26, %v5561_v19 }
 0x883   : > { %v5265_v32 = vsel %vm891_vm11, %v5263_v38, %v5262_v53  ;;  %v5292_v25 = vpop.permute.xlu0 %5291 }
 0x884   : > { %v5269_v50 = vadd.f32 %v5265_v32, %v5241_v8  ;;  %v5295_v22 = vsel %vm929_vm12, %v5293_v15, %v5292_v25  ;;  %v5300_v15 = vld [vmem:[%s9026_s17] sm:$0xf] }
 0x885   : > { %4956 = vrot.lane.b32.xlu1 %v8829_v6, %s6396_s22  ;;  %v5652_v6 = vld [vmem:[%s9026_s17] sm:$0xf] }
 0x886   : > { %v5299_v46 = vadd.f32 %v5295_v22, %v5269_v50  ;;  %v5642_v3 = vpop.permute.xlu1 %5641 }
 0x887   : > { %v5645_v16 = vrot.slane %v5642_v3, 4 }
 0x889   : > { %v5646_v37 = vsel %vm929_vm12, %v5645_v16, %v5642_v3  ;;  %5311 = vrot.lane.b32.xlu1 %v5299_v46, %s6396_s22 }
 0x88a   : > { %v8922_v38 = vadd.f32 %v5646_v37, %v5620_v55 }
 0x88c   : > { %v5658_v57 = vcombine.high %v8922_v38, %v8922_v38 }
 0x88e   : > { %5661 = vrot.lane.b32.xlu1 %v5658_v57, %s6396_s22 }
 0x892   : > { %5302 = vrot.lane.b32.xlu1 %v5300_v15, %s9198_s24 }
 0x896   : > { %5654 = vrot.lane.b32.xlu1 %v5652_v6, %s9199_s26 }
 0x8c7   : > { %v5787_v48 = vpop.permute.xlu0 %5786  ;;  %v5785_v21 = vpop.permute.xlu1 %5784 }
 0x8c8   : > { %v5789_v28 = vrot.slane %v5787_v48, 4  ;;  %v5788_v14 = vrot.slane %v5785_v21, 4  ;;  %v5795_v26 = vadd.f32 %v5787_v48, %v5764_v59 }
 0x8ca   : > { %v5790_v34 = vsel %vm670_vm6, %v5788_v14, %v5789_v28 }
 0x8cb   : > { %v5818_v44 = vpop.permute.xlu0 %5817  ;;  %v5875_v10 = vpop.permute.xlu1 %5874  ;;  %v5791_v42 = vsel %vm672_vm1, %v5785_v21, %v5790_v34 }
 0x8cc   : > { %v5820_v30 = vrot.slane %v5818_v44, 4  ;;  %v5794_v5 = vadd.f32 %v5791_v42, %v8711_v27  ;;  %v5876_v51 = vrot.slane %v5875_v10, 4  ;;  %v5826_v60 = vadd.f32 %v5818_v44, %v5795_v26 }
 0x8ce   : > { %v5877_v2 = vsel %vm624_vm5, %v5876_v51, %v5875_v10 }
 0x8cf   : > { %v5849_v9 = vpop.permute.xlu0 %5848  ;;  %v5964_v62 = vpop.permute.xlu1 %5963 }
 0x8d0   : > { %v5852_v17 = vrot.slane %v5849_v9, 4  ;;  %v5967_v53 = vrot.slane %v5964_v62, 4 }
 0x8d3   : > { %v5904_v11 = vpop.permute.xlu0 %5903  ;;  %v5816_v56 = vpop.permute.xlu1 %5815 }
 0x8d4   : > { %v5819_v39 = vrot.slane %v5816_v56, 4  ;;  %v5907_v4 = vrot.slane %v5904_v11, 4 }
 0x8d6   : > { %v5821_v20 = vsel %vm670_vm6, %v5819_v39, %v5820_v30  ;;  %v5908_v19 = vsel %vm822_vm9, %v5907_v4, %v5904_v11  ;;  %v5909_v46 = vsel %vm822_vm9, %v5907_v4, %v8903_v40  ;;  %v6098_v11 = vld [vmem:[%s9027_s18] sm:$0xf] }
 0x8d7   : > { %v5822_v12 = vsel %vm721_vm7, %v5816_v56, %v5821_v20  ;;  %v5938_v43 = vpop.permute.xlu0 %5937  ;;  %v5851_v13 = vpop.permute.xlu1 %5850  ;;  %v4602_v20 = vld [vmem:[%s9026_s17] sm:$0xf] }
 0x8d8   : > { %v5853_v58 = vrot.slane %v5851_v13, 4  ;;  %v5825_v29 = vadd.f32 %v5822_v12, %v5794_v5  ;;  %v5859_v1 = vadd.f32 %v5851_v13, %v5826_v60 }
 0x8da   : > { %v5854_v33 = vsel %vm670_vm6, %v5852_v17, %v5853_v58  ;;  %v5881_v52 = vadd.f32 %v5876_v51, %v5859_v1 }
 0x8db   : > { %v5855_v45 = vsel %vm761_vm8, %v5849_v9, %v5854_v33  ;;  %v5644_v0 = vpop.permute.xlu0 %5643  ;;  %v5614_v31 = vpop.permute.xlu1 %5613 }
 0x8dc   : > { %v5617_v41 = vsel %vm891_vm11, %v5615_v63, %v5614_v31  ;;  %v5858_v7 = vadd.f32 %v5855_v45, %v5825_v29  ;;  %v5647_v23 = vsel %vm929_vm12, %v5645_v16, %v5644_v0  ;;  %v5913_v55 = vadd.f32 %v5909_v46, %v5881_v52 }
 0x8dd   : > { %v5621_v27 = vadd.f32 %v5617_v41, %v5593_v61  ;;  %v5968_v61 = vsel %vm891_vm11, %v5967_v53, %v5964_v62 }
 0x8de   : > { %v5880_v18 = vadd.f32 %v5877_v2, %v5858_v7 }
 0x8df   : > { %v5651_v24 = vadd.f32 %v5647_v23, %v5621_v27  ;;  %v5996_v47 = vpop.permute.xlu0 %5995  ;;  %v5936_v8 = vpop.permute.xlu1 %5935 }
 0x8e0   : > { %v5912_v32 = vadd.f32 %v5908_v19, %v5880_v18  ;;  %v5939_v25 = vrot.slane %v5936_v8, 4 }
 0x8e1   : > { %5663 = vrot.lane.b32.xlu0 %v5651_v24, %s6396_s22 }
 0x8e2   : > { %v5940_v63 = vsel %vm862_vm10, %v5939_v25, %v5936_v8  ;;  %v5941_v16 = vsel %vm862_vm10, %v5939_v25, %v5938_v43 }
 0x8e3   : > { %v5944_v50 = vadd.f32 %v5940_v63, %v5912_v32  ;;  %v4873_v22 = vpop.permute.xlu0 %4872  ;;  %v5994_v49 = vpop.permute.xlu1 %5993  ;;  %v5945_v6 = vadd.f32 %v5941_v16, %v5913_v55 }
 0x8e4   : > { %v5997_v3 = vrot.slane %v5994_v49, 4 }
 0x8e5   : > { %v5972_v37 = vadd.f32 %v5968_v61, %v5944_v50  ;;  %5659 = vrot.lane.b32.xlu0 %v8922_v38, %s6396_s22  ;;  %v6004_v38 = vld [vmem:[%s9026_s17] sm:$0xf] }
 0x8e6   : > { %v5998_v57 = vsel %vm929_vm12, %v5997_v3, %v5994_v49  ;;  %v5999_v40 = vsel %vm929_vm12, %v5997_v3, %v5996_v47 }
 0x8e7   : > { %v6002_v15 = vadd.f32 %v5998_v57, %v5972_v37  ;;  %v5966_v48 = vpop.permute.xlu1 %5965  ;;  %v4959_v21 = vpop.permute.xlu0 %4958  ;;  %v6373_v37 = vld [vmem:[#allocation2 + $0x4] sm:$0xff] }
 0x8e8   : > { %v5969_v44 = vsel %vm891_vm11, %v5967_v53, %v5966_v48 }
 0x8e9   : > { %v6010_v10 = vcombine.high %v6002_v15, %v6002_v15  ;;  %v5973_v28 = vadd.f32 %v5969_v44, %v5945_v6 }
 0x8eb   : > { %v6003_v14 = vadd.f32 %v5999_v40, %v5973_v28  ;;  %6013 = vrot.lane.b32.xlu1 %v6010_v10, %s6396_s22  ;;  %v4871_v9 = vpop.permute.xlu1 %4870  ;;  %v4864_v35 = vpop.permute.xlu0 %4863 }
 0x8ec   : > { %v4875_v62 = vsel %vm901_vm4, %v4871_v9, %v4873_v22 }
 0x8ed   : > { %6015 = vrot.lane.b32.xlu0 %v6003_v14, %s6396_s22  ;;  %6213 = vmatprep.subr.msk.mxu1 %vm670_vm6, %v4875_v62 }
 0x8ef   : > { %v4869_v34 = vpop.permute.xlu1 %4868  ;;  %6006 = vrot.lane.b32.xlu1 %v6004_v38, %s9149_s23  ;;  %v5310_v30 = vpop.permute.xlu0 %5309 }
 0x8f0   : > { %v4874_v36 = vsel %vm901_vm4, %v4869_v34, %v4871_v9 }
 0x8f1   : > { %6011 = vrot.lane.b32.xlu0 %v6002_v15, %s6396_s22  ;;  %6214 = vmatpush1.msk.msra.mxu1 %vm670_vm6, %v4874_v36  ;;  %v9200_v15 = vld [vmem:[#allocation16_spill] sm:$0xff] }
 0x8f2   : > { %6215 = vmatmul.mubr.msk.f32.vlgmr.msra.gmra.mxu1 %vm954_vm13, %v4864_v35 }
 0x8f3   : > { %v4961_v56 = vpop.permute.xlu1 %4960  ;;  %5385 = vmatprep.mubr.f32.mxu1 %v9183_v54  ;;  %v5308_v12 = vpop.permute.xlu0 %5307 }
 0x8f4   : > { %v4963_v39 = vsel %vm901_vm4, %v4959_v21, %v4961_v56  ;;  %v5313_v5 = vsel %vm901_vm4, %v5308_v12, %v5310_v30 }
 0x8f5   : > { %6101 = vperm.xlu0 %6368, %v6098_v11   ;;  %6216 = vmatprep.subr.msk.mxu0 %vm670_vm6, %v4963_v39 }
 0x8f7   : > { %v4957_v42 = vpop.permute.xlu1 %4956 }
 0x8f8   : > { %v4962_v59 = vsel %vm901_vm4, %v4957_v42, %v4959_v21 }
 0x8f9   : > { %6217 = vmatpush1.msk.msra.mxu0 %vm670_vm6, %v4962_v59 }
 0x8fa   : > { %6218 = vmatmul.mubr.msk.f32.vlgmr.msra.gmra.mxu0 %vm954_vm13, %v4602_v20 }
 0x8fb   : > { %v5312_v43 = vpop.permute.xlu1 %5311  ;;  %5737 = vmatprep.mubr.f32.mxu0 %v9183_v54 }
 0x8fc   : > { %v5314_v13 = vsel %vm901_vm4, %v5310_v30, %v5312_v43 }
 0x8fd   : > { %6219 = vmatprep.subr.msk.mxu1 %vm670_vm6, %v5314_v13 }
 0x8fe   : > { %6220 = vmatpush1.msk.msra.mxu1 %vm670_vm6, %v5313_v5 }
 0x900   : > { %v5662_v17 = vpop.permute.xlu1 %5661 }
 0x904   : > { %v5303_v58 = vpop.permute.xlu1 %5302 }
 0x905   : > { %6221 = vmatmul.mubr.msk.f32.vlgmr.msra.gmra.mxu1 %vm954_vm13, %v5303_v58 }
 0x906   : > { %6089 = vmatprep.mubr.f32.mxu1 %v9183_v54 }
 0x908   : > { %v5655_v33 = vpop.permute.xlu1 %5654 }
 0x953   : > { %v5664_v26 = vpop.permute.xlu0 %5663 }
 0x954   : > { %v5666_v51 = vsel %vm901_vm4, %v5662_v17, %v5664_v26 }
 0x955   : > { %6222 = vmatprep.subr.msk.mxu0 %vm670_vm6, %v5666_v51 }
 0x957   : > { %v5660_v29 = vpop.permute.xlu0 %5659 }
 0x958   : > { %v5665_v60 = vsel %vm901_vm4, %v5660_v29, %v5662_v17 }
 0x959   : > { %6223 = vmatpush1.msk.msra.mxu0 %vm670_vm6, %v5665_v60 }
 0x95a   : > { %6224 = vmatmul.mubr.msk.f32.vlgmr.msra.gmra.mxu0 %vm954_vm13, %v5655_v33 }
 0x95d   : > { %v6014_v4 = vpop.permute.xlu1 %6013 }
 0x95f   : > { %v6016_v45 = vpop.permute.xlu0 %6015 }
 0x960   : > { %v6018_v0 = vsel %vm901_vm4, %v6014_v4, %v6016_v45 }
 0x961   : > { %6225 = vmatprep.subr.msk.mxu1 %vm670_vm6, %v6018_v0  ;;  %v6007_v31 = vpop.permute.xlu1 %6006 }
 0x963   : > { %v6012_v54 = vpop.permute.xlu0 %6011 }
 0x964   : > { %v6017_v41 = vsel %vm901_vm4, %v6012_v54, %v6014_v4 }
 0x965   : > { %6226 = vmatpush1.msk.msra.mxu1 %vm670_vm6, %v6017_v41 }
 0x966   : > { %6227 = vmatmul.mubr.msk.f32.vlgmr.msra.gmra.mxu1 %vm954_vm13, %v6007_v31 }
 0x970   : > { %v6102_v22 = vpop.permute.xlu0 %6101 }
 0x9b2   : > { %v4948_v7 = vpop.f32.mrf.mxu1 }
 0x9b4   : > { %v4950_v2 = vpop.f32.mrf.mxu1 }
 0x9ba   : > { %v5037_v1 = vpop.f32.mrf.mxu0 }
 0x9bb   : > { %v5038_v18 = vadd.f32 %v5037_v1, %v4948_v7 }
 0x9bc   : > { %v5039_v27 = vpop.f32.mrf.mxu0 }
 0x9bd   : > { %v5040_v24 = vadd.f32 %v5039_v27, %v4950_v2 }
 0x9c5   : > { %v5387_v23 = vpop.f32.mrf.mxu1 }
 0x9c6   : > { %v5392_v8 = vadd.f32 %v5387_v23, %v5038_v18 }
 0x9c7   : > { %v5389_v47 = vpop.f32.mrf.mxu1 }
 0x9c8   : > { %v5393_v32 = vadd.f32 %v5389_v47, %v5040_v24 }
 0xa1a   : > { %v5739_v19 = vpop.f32.mrf.mxu0 }
 0xa1b   : > { %v5744_v25 = vadd.f32 %v5739_v19, %v5392_v8 }
 0xa1c   : > { %v5741_v53 = vpop.f32.mrf.mxu0 }
 0xa1d   : > { %v5745_v63 = vadd.f32 %v5741_v53, %v5393_v32 }
 0xa26   : > { %v6091_v52 = vpop.f32.mrf.mxu1 }
 0xa27   : > { %v6096_v50 = vadd.f32 %v6091_v52, %v5744_v25 }
 0xa28   : > { %v6093_v49 = vpop.f32.mrf.mxu1 }
 0xa29   : > { %v6104_v61 = vadd.f32 %v6102_v22, %v6096_v50  ;;  %v6097_v46 = vadd.f32 %v6093_v49, %v5745_v63 }
 0xa2b   : > { %v6106_v3 = vmul.f32 0.2, %v6104_v61  ;;  %v6105_v16 = vadd.f32 %v6102_v22, %v6097_v46 }
 0xa2d   : > { %v6107_v55 = vmul.f32 0.2, %v6105_v16  ;;  %v6109_v57 = vadd.f32 %v6373_v37, %v6106_v3 }
 0xa2f   : > { %v6110_v6 = vadd.f32 %v6107_v55, %v9200_v15 }
 0xa31   : > { %v6113_v48 = vcombine.low %v6109_v57, %v6110_v6 }
 0xa33   : > { %6115 = vst [vmem:[%s602_s7] sm:$0xff] %v6113_v48 }
 0xa34 PF: > { %s29_s0 = sadd.s32 1, %s6380_s0  }
 0xa35   : > { %p26_p4 = scmp.ge.s32.totalorder %s29_s0, 4  }
 0xa37   :  { %28 = sbr.rel (!%p26_p4) target bundleno = 10 (0xa), region = 126 }

</bundles_post_ra>
